<compile_context>
chip_gen: v7x
topology: tpu7x:2x2x1
jax: 0.10.0
libtpu: 0.0.40
codegen_flags: <defaults>
</compile_context>

<pallas_src>
import functools

import jax
import jax.numpy as jnp
import numpy as np
from jax.experimental import pallas as pl
from jax.experimental.pallas import tpu as pltpu


def _softplus(v):
    # numerically-stable softplus; identical expression used in kernel and reference
    return jnp.maximum(v, 0.0) + jnp.log(1.0 + jnp.exp(-jnp.abs(v)))


def _descriptor_kernel(base_t_ref, post_ref, batch_ref, posk_ref, batchk_ref,
                       kshift_ref, w2t_ref, b2_ref, o_ref, acc_ref, *, r2):
    """Grid step (i, j): TM key points  x  one TN-wide tile of source points."""
    j = pl.program_id(1)

    # ---- init running-max accumulator for this key block ----
    @pl.when(j == 0)
    def _():
        acc_ref[...] = jnp.full_like(acc_ref, -1e30)

    base_t = base_t_ref[...]      # [H, TN]  = (x@W1[:C] + pos@W1[C:] + b1)^T tile
    pos_t = post_ref[...]         # [3, TN]  transposed coordinates tile
    batch_row = batch_ref[...]    # [1, TN]  int32
    posk = posk_ref[...]          # [TM, 3]
    batchk = batchk_ref[...]      # [TM, 1]  int32
    kshift = kshift_ref[...]      # [TM, H]  = (pos @ W1[C:])[key_idx] block
    w2t = w2t_ref[...]            # [H, H]   bf16, = W2^T

    tm = posk.shape[0]
    hd = base_t.shape[0]

    # ---- dense radius + same-batch mask, lane-dense (N in lanes) ----
    dx = posk[:, 0:1] - pos_t[0:1, :]              # [TM, TN]
    dy = posk[:, 1:2] - pos_t[1:2, :]
    dz = posk[:, 2:3] - pos_t[2:3, :]
    d2 = dx * dx + dy * dy + dz * dz               # [TM, TN]
    mask = (d2 <= r2) & (batchk == batch_row)      # [TM, TN]

    # ---- message MLP, lane-dense: rel@W1[C:] == pos@W1[C:] - pos_k@W1[C:], the pos
    #      part is folded into base (wrapper), so only the per-key shift remains ----
    hpre = base_t[None, :, :] - kshift[:, :, None]         # [TM, H, TN]
    hact = _softplus(hpre)                                 # f32 softplus (v5e-safe)
    hact_bf = hact.astype(jnp.bfloat16)                    # bf16 MXU feed

    w2t_b = jnp.broadcast_to(w2t[None, :, :], (tm, hd, hd))
    # h2[t, jch, n] = sum_h W2[h, jch] * hact[t, h, n]   (batched over t)
    h2 = jax.lax.dot_general(
        w2t_b, hact_bf,
        dimension_numbers=(((2,), (1,)), ((0,), (0,))),
        preferred_element_type=jnp.float32)                # [TM, H, TN] f32

    # ---- masked max over this N tile (cross-lane reduce), fold into accumulator ----
    h2 = jnp.where(mask[:, None, :], h2, -1e30)
    raw = jnp.max(h2, axis=2)                              # [TM, H]
    acc_ref[...] = jnp.maximum(acc_ref[...], raw)

    # ---- finalize: +b2 (commutes with max), empty -> 0, F.normalize(dim=-1) ----
    @pl.when(j == pl.num_programs(1) - 1)
    def _():
        acc = acc_ref[...]
        has = jnp.max(acc, axis=1, keepdims=True) > -1e29  # any neighbor at all?
        agg = jnp.where(has, acc + b2_ref[...], 0.0)       # [TM, H]
        sumsq = jnp.sum(agg * agg, axis=1, keepdims=True)  # [TM, 1]
        o_ref[...] = agg * jax.lax.rsqrt(jnp.maximum(sumsq, 1e-24))


def descriptor_forward(x, pos, batch, key_idx, params, r, *, tm=64, tn=512):
    """Pallas equivalent of Descriptor.forward(x, pos, batch, key_idx)."""
    n, c = x.shape
    m = key_idx.shape[0]
    h = params["w2"].shape[0]

    w1 = params["w1"]                                   # [C+3, H]
    w1a, w1b = w1[:c], w1[c:]                           # [C, H], [3, H]
    b1 = params["b1"].reshape(1, h)
    w2t = params["w2"].T.astype(jnp.bfloat16)           # [H, H] bf16 MXU operand
    b2 = params["b2"].reshape(1, h).astype(jnp.float32)

    x = x.astype(jnp.float32)
    pos = pos.astype(jnp.float32)
    batch = batch.astype(jnp.int32)

    # ---- tile sizes: last-dim tiles must be multiples of 128; keep >=2 key tiles
    #      when possible so v7x's 2 TensorCores both get work ----
    tn = max(128, (min(tn, ((n + 127) // 128) * 128) // 128) * 128)
    n_pad = ((n + tn - 1) // tn) * tn
    m_pad = ((m + tm - 1) // tm) * tm

    # ---- pad source points; padded points get batch=-1 so they never match a real
    #      key (real batch ids assumed >= 0, as produced by PyG batching) ----
    if n_pad != n:
        pn = n_pad - n
        x_p = jnp.concatenate([x, jnp.zeros((pn, c), jnp.float32)], axis=0)
        pos_p = jnp.concatenate([pos, jnp.zeros((pn, 3), jnp.float32)], axis=0)
        batch_p = jnp.concatenate([batch, -jnp.ones((pn,), jnp.int32)], axis=0)
    else:
        x_p, pos_p, batch_p = x, pos, batch

    # key-independent part of Linear(C+3, H), hoisted to XLA; transposed so N is the
    # lane dim inside the kernel.
    pos_w1b = pos_p @ w1b                                        # [Npad, H]
    base_t = (x_p @ w1a + pos_w1b + b1).T.astype(jnp.float32)    # [H, Npad]
    pos_t = pos_p.T                                              # [3, Npad]
    batch_row = batch_p.reshape(1, n_pad)                        # [1, Npad]

    # ---- per-key quantities (gathered by XLA), padded to a multiple of tm; padded
    #      keys get batch=-1 -> garbage rows that are sliced off below ----
    pos_key = pos[key_idx]                                       # [M, 3]
    batch_key = batch[key_idx]                                   # [M]
    key_shift = pos_w1b[key_idx].astype(jnp.float32)             # [M, H]
    if m_pad != m:
        pm = m_pad - m
        pos_key_p = jnp.concatenate(
            [pos_key, jnp.zeros((pm, 3), jnp.float32)], axis=0)
        batch_key_p = jnp.concatenate(
            [batch_key, -jnp.ones((pm,), jnp.int32)], axis=0)
        key_shift_p = jnp.concatenate(
            [key_shift, jnp.zeros((pm, h), jnp.float32)], axis=0)
    else:
        pos_key_p, batch_key_p, key_shift_p = pos_key, batch_key, key_shift
    batch_key_col = batch_key_p.reshape(m_pad, 1)

    kernel = functools.partial(_descriptor_kernel, r2=float(r) * float(r))

    out = pl.pallas_call(
        kernel,
        out_shape=jax.ShapeDtypeStruct((m_pad, h), jnp.float32),
        grid=(m_pad // tm, n_pad // tn),                 # reduction (N) axis last
        in_specs=[
            pl.BlockSpec((h, tn), lambda i, j: (0, j)),  # base^T, streamed over N
            pl.BlockSpec((3, tn), lambda i, j: (0, j)),  # pos^T tile
            pl.BlockSpec((1, tn), lambda i, j: (0, j)),  # batch row tile
            pl.BlockSpec((tm, 3), lambda i, j: (i, 0)),  # pos[key_idx] block
            pl.BlockSpec((tm, 1), lambda i, j: (i, 0)),  # batch[key_idx] block
            pl.BlockSpec((tm, h), lambda i, j: (i, 0)),  # (pos@W1b)[key_idx] block
            pl.BlockSpec((h, h), lambda i, j: (0, 0)),   # W2^T (bf16)
            pl.BlockSpec((1, h), lambda i, j: (0, 0)),   # b2
        ],
        out_specs=pl.BlockSpec((tm, h), lambda i, j: (i, 0)),
        scratch_shapes=[pltpu.VMEM((tm, h), jnp.float32)],   # running-max accumulator
        compiler_params=pltpu.CompilerParams(
            dimension_semantics=("parallel", "arbitrary"),
            # Conservative, v7x-safe scoped budget; raise toward ~48-56 MiB (v7x) /
            # ~100 MiB (v5e/v6e) together with larger tm/tn for production sizes.
            vmem_limit_bytes=32 * 1024 * 1024,
        ),
    )(base_t, pos_t, batch_row, pos_key_p, batch_key_col, key_shift_p, w2t, b2)

    return out[:m], pos_key, batch_key


def descriptor_reference(x, pos, batch, key_idx, params, r):
    """Pure-JAX f32 reference with identical dense-radius semantics."""
    n, c = x.shape
    posk = pos[key_idx]
    batchk = batch[key_idx]

    dx = posk[:, None, 0] - pos[None, :, 0]
    dy = posk[:, None, 1] - pos[None, :, 1]
    dz = posk[:, None, 2] - pos[None, :, 2]
    d2 = dx * dx + dy * dy + dz * dz                       # [M, N]
    mask = (d2 <= r * r) & (batch[None, :] == batchk[:, None])

    w1 = params["w1"]
    w1a, w1b = w1[:c], w1[c:]
    rel = pos[None, :, :] - posk[:, None, :]               # [M, N, 3]
    h = x @ w1a + rel @ w1b + params["b1"][None, None, :]  # [M, N, H]
    h = _softplus(h)
    h = h @ params["w2"] + params["b2"][None, None, :]
    h = jnp.where(mask[..., None], h, -1e30)
    agg = jnp.max(h, axis=1)                               # [M, H]
    has = jnp.any(mask, axis=1, keepdims=True)
    agg = jnp.where(has, agg, 0.0)
    nrm = jnp.maximum(jnp.sqrt(jnp.sum(agg * agg, axis=-1, keepdims=True)), 1e-12)
    return agg / nrm


if __name__ == "__main__":
    # small, deterministic problem
    N, C, M, H = 128, 4, 128, 32
    R = 0.5
    key = jax.random.PRNGKey(0)
    k_pos, k_x, k_w1, k_b1, k_w2, k_b2 = jax.random.split(key, 6)

    pos = jax.random.uniform(k_pos, (N, 3), dtype=jnp.float32)
    x = jax.random.normal(k_x, (N, C), dtype=jnp.float32)
    batch = jnp.concatenate(
        [jnp.zeros((N // 2,), jnp.int32), jnp.ones((N // 2,), jnp.int32)]
    )
    key_idx = jnp.arange(M, dtype=jnp.int32)   # all points as keys

    # local_nn = Sequential(Linear(C+3, H), Softplus(), Linear(H, H)) -- deterministic init
    params = {
        "w1": jax.random.normal(k_w1, (C + 3, H), jnp.float32) * 0.2,
        "b1": jax.random.normal(k_b1, (H,), jnp.float32) * 0.05,
        "w2": jax.random.normal(k_w2, (H, H), jnp.float32) * 0.2,
        "b2": jax.random.normal(k_b2, (H,), jnp.float32) * 0.05,
    }

    out, out_pos, out_batch = descriptor_forward(
        x, pos, batch, key_idx, params, R, tm=64, tn=512)
    jax.block_until_ready(out)

    ref = descriptor_reference(x, pos, batch, key_idx, params, R)
    np.testing.assert_allclose(np.asarray(out), np.asarray(ref), atol=1e-2, rtol=1e-2)
    np.testing.assert_allclose(np.asarray(out_pos), np.asarray(pos[key_idx]))
    np.testing.assert_allclose(np.asarray(out_batch), np.asarray(batch[key_idx]))

    print("KERNEL_OK")
</pallas_src>

<mosaic_0001>
module attributes {stable_mosaic.version = 11 : i64} {
  func.func @_descriptor_kernel(%arg0: i32, %arg1: i32, %arg2: memref<32x128xf32, #tpu.memory_space<vmem>>, %arg3: memref<3x128xf32, #tpu.memory_space<vmem>>, %arg4: memref<1x128xi32, #tpu.memory_space<vmem>>, %arg5: memref<64x3xf32, #tpu.memory_space<vmem>>, %arg6: memref<64x1xi32, #tpu.memory_space<vmem>>, %arg7: memref<64x32xf32, #tpu.memory_space<vmem>>, %arg8: memref<32x32xbf16, #tpu.memory_space<vmem>>, %arg9: memref<1x32xf32, #tpu.memory_space<vmem>>, %arg10: memref<64x32xf32, #tpu.memory_space<vmem>>, %arg11: memref<64x32xf32, #tpu.memory_space<vmem>>) attributes {dimension_semantics = [#tpu.dimension_semantics<parallel>, #tpu.dimension_semantics<arbitrary>], iteration_bounds = array<i64: 2, 1>, scalar_prefetch = 0 : i64, scratch_operands = 1 : i64, tpu.core_type = #tpu.core_type<tc>, window_params = [{transform_indices = @transform_0, window_bounds = array<i64: 32, 128>}, {transform_indices = @transform_1, window_bounds = array<i64: 3, 128>}, {transform_indices = @transform_2, window_bounds = array<i64: 1, 128>}, {transform_indices = @transform_3, window_bounds = array<i64: 64, 3>}, {transform_indices = @transform_4, window_bounds = array<i64: 64, 1>}, {transform_indices = @transform_5, window_bounds = array<i64: 64, 32>}, {pipeline_mode = #tpu.pipeline_mode<synchronous>, transform_indices = @transform_6, window_bounds = array<i64: 32, 32>}, {pipeline_mode = #tpu.pipeline_mode<synchronous>, transform_indices = @transform_7, window_bounds = array<i64: 1, 32>}, {transform_indices = @transform_8, window_bounds = array<i64: 64, 32>}]} {
    %c0_i32 = arith.constant 0 : i32
    %0 = arith.cmpi eq, %arg1, %c0_i32 : i32
    %1 = arith.extui %0 : i1 to i32
    %c0_i32_0 = arith.constant 0 : i32
    %2 = arith.cmpi ne, %1, %c0_i32_0 : i32
    scf.if %2 {
      %cst_26 = arith.constant -1.000000e+30 : f32
      %68 = vector.broadcast %cst_26 : f32 to vector<64x32xf32>
      %c0_27 = arith.constant 0 : index
      %c0_28 = arith.constant 0 : index
      %69 = vector.load %arg11[%c0_27, %c0_28] : memref<64x32xf32, #tpu.memory_space<vmem>>, vector<64x32xf32>
      tpu.vector_store %arg11[%c0_27, %c0_28], %68 {strides = array<i32>} : memref<64x32xf32, #tpu.memory_space<vmem>>, vector<64x32xf32>,
    } else {
    }
    %c0 = arith.constant 0 : index
    %c0_1 = arith.constant 0 : index
    %3 = vector.load %arg2[%c0, %c0_1] : memref<32x128xf32, #tpu.memory_space<vmem>>, vector<32x128xf32>
    %c0_2 = arith.constant 0 : index
    %c0_3 = arith.constant 0 : index
    %4 = vector.load %arg3[%c0_2, %c0_3] : memref<3x128xf32, #tpu.memory_space<vmem>>, vector<3x128xf32>
    %c0_4 = arith.constant 0 : index
    %c0_5 = arith.constant 0 : index
    %5 = vector.load %arg4[%c0_4, %c0_5] : memref<1x128xi32, #tpu.memory_space<vmem>>, vector<1x128xi32>
    %c0_6 = arith.constant 0 : index
    %c0_7 = arith.constant 0 : index
    %6 = vector.load %arg5[%c0_6, %c0_7] : memref<64x3xf32, #tpu.memory_space<vmem>>, vector<64x3xf32>
    %c0_8 = arith.constant 0 : index
    %c0_9 = arith.constant 0 : index
    %7 = vector.load %arg6[%c0_8, %c0_9] : memref<64x1xi32, #tpu.memory_space<vmem>>, vector<64x1xi32>
    %c0_10 = arith.constant 0 : index
    %c0_11 = arith.constant 0 : index
    %8 = vector.load %arg7[%c0_10, %c0_11] : memref<64x32xf32, #tpu.memory_space<vmem>>, vector<64x32xf32>
    %c0_12 = arith.constant 0 : index
    %c0_13 = arith.constant 0 : index
    %9 = vector.load %arg8[%c0_12, %c0_13] : memref<32x32xbf16, #tpu.memory_space<vmem>>, vector<32x32xbf16>
    %10 = vector.extract_strided_slice %6 {offsets = [0, 0], sizes = [64, 1], strides = [1, 1]} : vector<64x3xf32> to vector<64x1xf32>
    %11 = vector.extract_strided_slice %4 {offsets = [0, 0], sizes = [1, 128], strides = [1, 1]} : vector<3x128xf32> to vector<1x128xf32>
    %12 = vector.broadcast %10 : vector<64x1xf32> to vector<64x128xf32>
    %13 = vector.broadcast %11 : vector<1x128xf32> to vector<64x128xf32>
    %14 = arith.subf %12, %13 : vector<64x128xf32>
    %15 = vector.extract_strided_slice %6 {offsets = [0, 1], sizes = [64, 1], strides = [1, 1]} : vector<64x3xf32> to vector<64x1xf32>
    %16 = vector.extract_strided_slice %4 {offsets = [1, 0], sizes = [1, 128], strides = [1, 1]} : vector<3x128xf32> to vector<1x128xf32>
    %17 = vector.broadcast %15 : vector<64x1xf32> to vector<64x128xf32>
    %18 = vector.broadcast %16 : vector<1x128xf32> to vector<64x128xf32>
    %19 = arith.subf %17, %18 : vector<64x128xf32>
    %20 = vector.extract_strided_slice %6 {offsets = [0, 2], sizes = [64, 1], strides = [1, 1]} : vector<64x3xf32> to vector<64x1xf32>
    %21 = vector.extract_strided_slice %4 {offsets = [2, 0], sizes = [1, 128], strides = [1, 1]} : vector<3x128xf32> to vector<1x128xf32>
    %22 = vector.broadcast %20 : vector<64x1xf32> to vector<64x128xf32>
    %23 = vector.broadcast %21 : vector<1x128xf32> to vector<64x128xf32>
    %24 = arith.subf %22, %23 : vector<64x128xf32>
    %25 = arith.mulf %14, %14 : vector<64x128xf32>
    %26 = arith.mulf %19, %19 : vector<64x128xf32>
    %27 = arith.addf %25, %26 : vector<64x128xf32>
    %28 = arith.mulf %24, %24 : vector<64x128xf32>
    %29 = arith.addf %27, %28 : vector<64x128xf32>
    %cst = arith.constant 2.500000e-01 : f32
    %30 = vector.broadcast %cst : f32 to vector<64x128xf32>
    %31 = arith.cmpf ole, %29, %30 : vector<64x128xf32>
    %32 = vector.broadcast %7 : vector<64x1xi32> to vector<64x128xi32>
    %33 = vector.broadcast %5 : vector<1x128xi32> to vector<64x128xi32>
    %34 = arith.cmpi eq, %32, %33 : vector<64x128xi32>
    %35 = arith.andi %31, %34 : vector<64x128xi1>
    %36 = vector.shape_cast %3 : vector<32x128xf32> to vector<1x32x128xf32>
    %37 = vector.shape_cast %8 : vector<64x32xf32> to vector<64x32x1xf32>
    %38 = vector.broadcast %36 : vector<1x32x128xf32> to vector<64x32x128xf32>
    %39 = vector.broadcast %37 : vector<64x32x1xf32> to vector<64x32x128xf32>
    %40 = arith.subf %38, %39 : vector<64x32x128xf32>
    %cst_14 = arith.constant 0.000000e+00 : f32
    %41 = vector.broadcast %cst_14 : f32 to vector<64x32x128xf32>
    %42 = arith.maximumf %40, %41 : vector<64x32x128xf32>
    %43 = math.absf %40 : vector<64x32x128xf32>
    %cst_15 = arith.constant 0.000000e+00 : f32
    %44 = vector.broadcast %cst_15 : f32 to vector<64x32x128xf32>
    %45 = arith.subf %44, %43 : vector<64x32x128xf32>
    %46 = math.exp %45 : vector<64x32x128xf32>
    %cst_16 = arith.constant 1.000000e+00 : f32
    %47 = vector.broadcast %cst_16 : f32 to vector<64x32x128xf32>
    %48 = arith.addf %47, %46 : vector<64x32x128xf32>
    %49 = math.log %48 : vector<64x32x128xf32>
    %50 = arith.addf %42, %49 : vector<64x32x128xf32>
    %51 = arith.truncf %50 : vector<64x32x128xf32> to vector<64x32x128xbf16>
    %52 = vector.shape_cast %9 : vector<32x32xbf16> to vector<1x32x32xbf16>
    %53 = vector.shape_cast %52 : vector<1x32x32xbf16> to vector<1x32x32xbf16>
    %54 = vector.broadcast %53 : vector<1x32x32xbf16> to vector<64x32x32xbf16>
    %cst_17 = arith.constant dense<0.000000e+00> : vector<64x32x128xf32>
    %55 = tpu.matmul %54, %51, %cst_17 {dimension_numbers = #tpu.dot_dimension_numbers<[2], [1], [1], [2], [0, 0, 0, 1, 1, 2], [0], [0]>} : vector<64x32x32xbf16>, vector<64x32x128xbf16>, vector<64x32x128xf32> -> vector<64x32x128xf32>
    %56 = vector.shape_cast %35 : vector<64x128xi1> to vector<64x1x128xi1>
    %cst_18 = arith.constant -1.000000e+30 : f32
    %57 = vector.shape_cast %56 : vector<64x1x128xi1> to vector<64x1x128xi1>
    %58 = vector.broadcast %57 : vector<64x1x128xi1> to vector<64x32x128xi1>
    %59 = vector.broadcast %cst_18 : f32 to vector<64x32x128xf32>
    %60 = arith.select %58, %55, %59 : vector<64x32x128xi1>, vector<64x32x128xf32>
    %cst_19 = arith.constant dense<0xFF800000> : vector<64x32xf32>
    %61 = vector.multi_reduction <maximumf>, %60, %cst_19 [2] : vector<64x32x128xf32> to vector<64x32xf32>
    %c0_20 = arith.constant 0 : index
    %c0_21 = arith.constant 0 : index
    %62 = vector.load %arg11[%c0_20, %c0_21] : memref<64x32xf32, #tpu.memory_space<vmem>>, vector<64x32xf32>
    %63 = arith.maximumf %62, %61 : vector<64x32xf32>
    %c0_22 = arith.constant 0 : index
    %c0_23 = arith.constant 0 : index
    %64 = vector.load %arg11[%c0_22, %c0_23] : memref<64x32xf32, #tpu.memory_space<vmem>>, vector<64x32xf32>
    tpu.vector_store %arg11[%c0_22, %c0_23], %63 {strides = array<i32>} : memref<64x32xf32, #tpu.memory_space<vmem>>, vector<64x32xf32>,
    %c0_i32_24 = arith.constant 0 : i32
    %65 = arith.cmpi eq, %arg1, %c0_i32_24 : i32
    %66 = arith.extui %65 : i1 to i32
    %c0_i32_25 = arith.constant 0 : i32
    %67 = arith.cmpi ne, %66, %c0_i32_25 : i32
    scf.if %67 {
      %c0_26 = arith.constant 0 : index
      %c0_27 = arith.constant 0 : index
      %68 = vector.load %arg11[%c0_26, %c0_27] : memref<64x32xf32, #tpu.memory_space<vmem>>, vector<64x32xf32>
      %cst_28 = arith.constant dense<0xFF800000> : vector<64xf32>
      %69 = vector.multi_reduction <maximumf>, %68, %cst_28 [1] : vector<64x32xf32> to vector<64xf32>
      %70 = vector.shape_cast %69 : vector<64xf32> to vector<64x1xf32>
      %cst_29 = arith.constant -1.000000e+29 : f32
      %71 = vector.broadcast %cst_29 : f32 to vector<64x1xf32>
      %72 = arith.cmpf ogt, %70, %71 : vector<64x1xf32>
      %c0_30 = arith.constant 0 : index
      %c0_31 = arith.constant 0 : index
      %73 = vector.load %arg9[%c0_30, %c0_31] : memref<1x32xf32, #tpu.memory_space<vmem>>, vector<1x32xf32>
      %74 = vector.broadcast %73 : vector<1x32xf32> to vector<64x32xf32>
      %75 = arith.addf %68, %74 : vector<64x32xf32>
      %cst_32 = arith.constant 0.000000e+00 : f32
      %76 = vector.shape_cast %72 : vector<64x1xi1> to vector<64x1xi1>
      %77 = vector.broadcast %76 : vector<64x1xi1> to vector<64x32xi1>
      %78 = vector.broadcast %cst_32 : f32 to vector<64x32xf32>
      %79 = arith.select %77, %75, %78 : vector<64x32xi1>, vector<64x32xf32>
      %80 = arith.mulf %79, %79 : vector<64x32xf32>
      %cst_33 = arith.constant dense<0.000000e+00> : vector<64xf32>
      %81 = vector.multi_reduction <add>, %80, %cst_33 [1] : vector<64x32xf32> to vector<64xf32>
      %82 = vector.shape_cast %81 : vector<64xf32> to vector<64x1xf32>
      %cst_34 = arith.constant 1.000000e-24 : f32
      %83 = vector.broadcast %cst_34 : f32 to vector<64x1xf32>
      %84 = arith.maximumf %82, %83 : vector<64x1xf32>
      %85 = math.rsqrt %84 : vector<64x1xf32>
      %86 = vector.broadcast %85 : vector<64x1xf32> to vector<64x32xf32>
      %87 = arith.mulf %79, %86 : vector<64x32xf32>
      %c0_35 = arith.constant 0 : index
      %c0_36 = arith.constant 0 : index
      %88 = vector.load %arg10[%c0_35, %c0_36] : memref<64x32xf32, #tpu.memory_space<vmem>>, vector<64x32xf32>
      tpu.vector_store %arg10[%c0_35, %c0_36], %87 {strides = array<i32>} : memref<64x32xf32, #tpu.memory_space<vmem>>, vector<64x32xf32>,
    } else {
    }
    return
  }
  func.func @transform_0(%arg0: i32, %arg1: i32) -> (i32, i32) {
    %c0_i32 = arith.constant 0 : i32
    %c0_i32_0 = arith.constant 0 : i32
    return %c0_i32, %arg1 : i32, i32
  }
  func.func @transform_1(%arg0: i32, %arg1: i32) -> (i32, i32) {
    %c0_i32 = arith.constant 0 : i32
    %c0_i32_0 = arith.constant 0 : i32
    return %c0_i32, %arg1 : i32, i32
  }
  func.func @transform_2(%arg0: i32, %arg1: i32) -> (i32, i32) {
    %c0_i32 = arith.constant 0 : i32
    %c0_i32_0 = arith.constant 0 : i32
    return %c0_i32, %arg1 : i32, i32
  }
  func.func @transform_3(%arg0: i32, %arg1: i32) -> (i32, i32) {
    %c0_i32 = arith.constant 0 : i32
    %c0_i32_0 = arith.constant 0 : i32
    return %arg0, %c0_i32 : i32, i32
  }
  func.func @transform_4(%arg0: i32, %arg1: i32) -> (i32, i32) {
    %c0_i32 = arith.constant 0 : i32
    %c0_i32_0 = arith.constant 0 : i32
    return %arg0, %c0_i32 : i32, i32
  }
  func.func @transform_5(%arg0: i32, %arg1: i32) -> (i32, i32) {
    %c0_i32 = arith.constant 0 : i32
    %c0_i32_0 = arith.constant 0 : i32
    return %arg0, %c0_i32 : i32, i32
  }
  func.func @transform_6(%arg0: i32, %arg1: i32) -> (i32, i32) {
    %c0_i32 = arith.constant 0 : i32
    %c0_i32_0 = arith.constant 0 : i32
    %c0_i32_1 = arith.constant 0 : i32
    return %c0_i32, %c0_i32_0 : i32, i32
  }
  func.func @transform_7(%arg0: i32, %arg1: i32) -> (i32, i32) {
    %c0_i32 = arith.constant 0 : i32
    %c0_i32_0 = arith.constant 0 : i32
    %c0_i32_1 = arith.constant 0 : i32
    return %c0_i32, %c0_i32_0 : i32, i32
  }
  func.func @transform_8(%arg0: i32, %arg1: i32) -> (i32, i32) {
    %c0_i32 = arith.constant 0 : i32
    %c0_i32_0 = arith.constant 0 : i32
    return %arg0, %c0_i32 : i32, i32
  }
}

</mosaic_0001>

<bundles_post_ra>
// kernel: tpu_custom_call.1
= control target key start
LH: loop header
LB: loop body
LE: loop exit
PB: predicated region body
PF: predicated region fallthrough
CT: control target
= control target key end

     0   :  { %s13338_s27 = smov 0   ;;  %s13340_s28 = smov 0   ;;  %s21552_s0 = inlined_call_operand.vmem [shape: f32[32,128], index: 0, kind: input, shape index: {}]   ;;  %s21553_s1 = inlined_call_operand.vmem [shape: f32[3,128], index: 1, kind: input, shape index: {}]   ;;  %s21554_s2 = inlined_call_operand.vmem [shape: s32[1,128], index: 2, kind: input, shape index: {}]   ;;  %s21555_s3 = inlined_call_operand.vmem [shape: f32[128,3], index: 3, kind: input, shape index: {}]   ;;  %s21556_s4 = inlined_call_operand.vmem [shape: s32[128,1], index: 4, kind: input, shape index: {}]   ;;  %s21557_s5 = inlined_call_operand.vmem [shape: f32[128,32], index: 5, kind: input, shape index: {}]   ;;  %s21558_s6 = inlined_call_operand.vmem [shape: bf16[32,32], index: 6, kind: input, shape index: {}]   ;;  %s21559_s7 = inlined_call_operand.vmem [shape: f32[1,32], index: 7, kind: input, shape index: {}]   ;;  %s21560_s8 = inlined_call_operand.vmem [shape: f32[128,32], index: 8, kind: output, shape index: {}]  }
   0x1   :  { %s13342_s29 = smov 0  }
   0x2 LB: > { %s30_s30 = sadd.s32 1, %s13282_s28  ;;  %p11225_p0 = scmp.ge.s32.totalorder %s13286_s29, 1  ;;  %s13286_s29 = sphi %s13342_s29, %s18_s29   ;;  %s13282_s28 = sphi %s13340_s28, %s23721_s28   ;;  %s13278_s27 = sphi %s13338_s27, %s23720_s27  }
   0x3   : > { %p32_p1 = scmp.ge.s32.totalorder %s30_s30, 2  ;;  %p323_p2 = scmp.lt.s32.totalorder %s13286_s29, 3 }
   0x5   : > { %s23723_s30 = smov (%p32_p1, %s30_s30), 0  ;;  %p324_p3 = pnand %p11225_p0, %p323_p2 }
   0x7   : > { %327 = sbr.rel (%p324_p3) target bundleno = 1859 (0x743), region = 52 }
   0xe   : > { %s11226_s9 = sshll.u32 %s13278_s27, 3  ;;  %v13288_v0 = vmov 1   ;;  %v21562_v1 = vmov 0   ;;  %v13290_v8 = vmov 2   ;;  %v21561_v12 = vlaneseq  ;;  %v431_v40 = vld [vmem:[%s21553_s1] sm:$0x7] }
   0xf   : > { %12166 = vset.pattern.permute.xlu0 %v13288_v0  ;;  %12165 = vset.pattern.permute.xlu1 %v21562_v1  ;;  %p390_p4 = scmp.lt.s32.totalorder %s11226_s9, 15  ;;  %v12172_v57 = vld [vmem:[%s21558_s6] sm:$0xff]   ;;  %vm21729_vm0 = vcmask 261120  }
  0x10   : > { %v13369_v14 = vshrl.u32 %v21561_v12, 7  ;;  %11628 = vmatprep.mubr.msk.bf16.mxu0 %vm21729_vm0, %v12172_v57  ;;  %11636 = vmatprep.mubr.msk.bf16.mxu1 %vm21729_vm0, %v12172_v57 }
  0x11   : > { %s23725_s9 = smov (!%p390_p4, %s11226_s9), 15 }
  0x12   : > { %s13357_s10 = sshll.u32 %s23725_s9, 3  ;;  %21985 = vst [vmem:[#allocation3_spill] sm:$0xff] %v13369_v14  ;;  %v13379_v17 = vsub.s32 0, %v13369_v14  ;;  %v13384_v23 = vsub.s32 1, %v13369_v14  ;;  %v13388_v26 = vsub.s32 2, %v13369_v14  ;;  %v13392_v28 = vsub.s32 3, %v13369_v14 }
  0x13   : > { %s393_s13 = scalar_lea.vmem %s21555_s3, %s13357_s10  ;;  %s399_s16 = scalar_lea.vmem %s21556_s4, %s13357_s10  ;;  %v13396_v30 = vsub.s32 4, %v13369_v14  ;;  %v13400_v32 = vsub.s32 5, %v13369_v14  ;;  %v13404_v34 = vsub.s32 6, %v13369_v14  ;;  %v13408_v36 = vsub.s32 7, %v13369_v14 }
  0x14   : > { %v435_v2 = vld [vmem:[%s393_s13 + $0x10] sm:$0xff]  ;;  %v433_v3 = vld [vmem:[%s393_s13] sm:$0xff]  ;;  %v436_v4 = vld [vmem:[%s393_s13 + $0x18] sm:$0xff]  ;;  %s13375_s19 = scalar_lea.vmem %s21557_s5, %s13357_s10  ;;  %21986 = vst [vmem:[#allocation4_spill] sm:$0xff] %v13379_v17  ;;  %v13422_v43 = vrot.slane %v431_v40, %v13384_v23  ;;  %v13425_v44 = vrot.slane %v431_v40, %v13379_v17 }
  0x15   : > { %473 = vperm.xlu1 %12165, %v435_v2   ;;  %514 = vperm.xlu0 %12166, %v433_v3   ;;  %v438_v5 = vld [vmem:[%s393_s13 + $0x28] sm:$0xff]  ;;  %v440_v6 = vld [vmem:[%s393_s13 + $0x38] sm:$0xff]  ;;  %v437_v9 = vld [vmem:[%s393_s13 + $0x20] sm:$0xff]  ;;  %21987 = vst [vmem:[#allocation5_spill] sm:$0xff] %v13384_v23 }
  0x16   : > { %v434_v7 = vld [vmem:[%s393_s13 + $0x8] sm:$0xff]  ;;  %v439_v10 = vld [vmem:[%s393_s13 + $0x30] sm:$0xff]  ;;  %v441_v11 = vld [vmem:[%s399_s16] sm:$0xff]  ;;  %21988 = vst [vmem:[#allocation6_spill] sm:$0xff] %v13388_v26  ;;  %s21520_s13 = scalar_lea.vmem %s21560_s8, %s13357_s10 }
  0x17   : > { %v444_v13 = vld [vmem:[%s399_s16 + $0x18] sm:$0xff]  ;;  %v446_v15 = vld [vmem:[%s399_s16 + $0x28] sm:$0xff]  ;;  %v449_v19 = vld [vmem:[%s13375_s19] sm:$0xff]  ;;  %21989 = vst [vmem:[#allocation7_spill] sm:$0xff] %v13392_v28 }
  0x18   : > { %v442_v16 = vld [vmem:[%s399_s16 + $0x8] sm:$0xff]  ;;  %v448_v18 = vld [vmem:[%s399_s16 + $0x38] sm:$0xff]  ;;  %v443_v20 = vld [vmem:[%s399_s16 + $0x10] sm:$0xff]  ;;  %v696_v21 = vrot.slane %v449_v19, %v13379_v17  ;;  %v715_v25 = vrot.slane %v449_v19, %v13384_v23  ;;  %v734_v27 = vrot.slane %v449_v19, %v13388_v26  ;;  %v753_v29 = vrot.slane %v449_v19, %v13392_v28  ;;  %21990 = vst [vmem:[#allocation8_spill] sm:$0xff] %v13396_v30 }
  0x19   : > { %478 = vperm.xlu1 %12165, %v436_v4   ;;  %526 = vperm.xlu0 %12166, %v436_v4   ;;  %v445_v22 = vld [vmem:[%s399_s16 + $0x20] sm:$0xff]  ;;  %v447_v24 = vld [vmem:[%s399_s16 + $0x30] sm:$0xff]  ;;  %v772_v31 = vrot.slane %v449_v19, %v13396_v30  ;;  %21991 = vst [vmem:[#allocation9_spill] sm:$0xff] %v13400_v32  ;;  %v791_v33 = vrot.slane %v449_v19, %v13400_v32  ;;  %21992 = vst [vmem:[#allocation10_spill] sm:$0xff] %v13404_v34 }
  0x1a   : > { %v810_v35 = vrot.slane %v449_v19, %v13404_v34  ;;  %21993 = vst [vmem:[#allocation11_spill] sm:$0xff] %v13408_v36  ;;  %v829_v37 = vrot.slane %v449_v19, %v13408_v36  ;;  %v13412_v38 = vld [vmem:[%s13375_s19 + $0x8] sm:$0xff] }
  0x1b   : > { %v848_v39 = vrot.slane %v13412_v38, %v13379_v17  ;;  %v867_v45 = vrot.slane %v13412_v38, %v13384_v23  ;;  %v886_v60 = vrot.slane %v13412_v38, %v13388_v26 }
  0x1d   : > { %488 = vperm.xlu1 %12165, %v438_v5   ;;  %534 = vperm.xlu0 %12166, %v438_v5  }
  0x21   : > { %498 = vperm.xlu1 %12165, %v440_v6   ;;  %542 = vperm.xlu0 %12166, %v440_v6  }
  0x25   : > { %12167 = vset.pattern.permute.xlu1 %v13288_v0  ;;  %12169 = vset.pattern.permute.xlu0 %v13290_v8 }
  0x26   : > { %518 = vperm.xlu1 %12167, %v434_v7   ;;  %562 = vperm.xlu0 %12169, %v434_v7  }
  0x2a   : > { %522 = vperm.xlu1 %12167, %v435_v2   ;;  %574 = vperm.xlu0 %12169, %v437_v9  }
  0x2e   : > { %530 = vperm.xlu1 %12167, %v437_v9   ;;  %582 = vperm.xlu0 %12169, %v439_v10  }
  0x32   : > { %538 = vperm.xlu1 %12167, %v439_v10   ;;  %12170 = vset.pattern.permute.xlu0 %v21562_v1 }
  0x33   : > { %463 = vperm.xlu0 %12170, %v433_v3  }
  0x36   : > { %12168 = vset.pattern.permute.xlu1 %v13290_v8  ;;  %v905_v8 = vrot.slane %v13412_v38, %v13392_v28 }
  0x37   : > { %558 = vperm.xlu1 %12168, %v433_v3   ;;  %468 = vperm.xlu0 %12170, %v434_v7  }
  0x3b   : > { %566 = vperm.xlu1 %12168, %v435_v2   ;;  %483 = vperm.xlu0 %12170, %v437_v9  }
  0x3f   : > { %570 = vperm.xlu1 %12168, %v436_v4   ;;  %493 = vperm.xlu0 %12170, %v439_v10  }
  0x43   : > { %578 = vperm.xlu1 %12168, %v438_v5   ;;  %650 = vperm.xlu0 %12170, %v441_v11  }
  0x47   : > { %586 = vperm.xlu1 %12168, %v440_v6   ;;  %659 = vperm.xlu0 %12170, %v444_v13  }
  0x4b   : > { %12171 = vset.pattern.permute.xlu1 %v21562_v1  ;;  %665 = vperm.xlu0 %12170, %v446_v15  }
  0x4c   : > { %653 = vperm.xlu1 %12171, %v442_v16  }
  0x4f   : > { %671 = vperm.xlu0 %12170, %v448_v18  }
  0x50   : > { %656 = vperm.xlu1 %12171, %v443_v20  }
  0x53   : > { %702 = vbcast.lane.b32.xlu0 %v696_v21, 264 }
  0x54   : > { %662 = vperm.xlu1 %12171, %v445_v22  }
  0x57   : > { %710 = vbcast.lane.b32.xlu0 %v696_v21, 280 }
  0x58   : > { %668 = vperm.xlu1 %12171, %v447_v24   ;;  %v13455_v24 = vrot.slane %v431_v40, %v13388_v26  ;;  %v13466_v40 = vrot.slane %v13412_v38, %v13400_v32 }
  0x5b   : > { %721 = vbcast.lane.b32.xlu0 %v715_v25, 264 }
  0x5c   : > { %698 = vbcast.lane.b32.xlu1 %v696_v21, 256 }
  0x5f   : > { %729 = vbcast.lane.b32.xlu0 %v715_v25, 280 }
  0x60   : > { %706 = vbcast.lane.b32.xlu1 %v696_v21, 272  ;;  %v924_v21 = vrot.slane %v13412_v38, %v13396_v30 }
  0x63   : > { %740 = vbcast.lane.b32.xlu0 %v734_v27, 264 }
  0x64   : > { %717 = vbcast.lane.b32.xlu1 %v715_v25, 256 }
  0x67   : > { %748 = vbcast.lane.b32.xlu0 %v734_v27, 280 }
  0x68   : > { %725 = vbcast.lane.b32.xlu1 %v715_v25, 272 }
  0x6b   : > { %759 = vbcast.lane.b32.xlu0 %v753_v29, 264 }
  0x6c   : > { %736 = vbcast.lane.b32.xlu1 %v734_v27, 256 }
  0x6f   : > { %767 = vbcast.lane.b32.xlu0 %v753_v29, 280 }
  0x70   : > { %744 = vbcast.lane.b32.xlu1 %v734_v27, 272 }
  0x73   : > { %778 = vbcast.lane.b32.xlu0 %v772_v31, 264 }
  0x74   : > { %755 = vbcast.lane.b32.xlu1 %v753_v29, 256 }
  0x77   : > { %786 = vbcast.lane.b32.xlu0 %v772_v31, 280 }
  0x78   : > { %763 = vbcast.lane.b32.xlu1 %v753_v29, 272 }
  0x7b   : > { %797 = vbcast.lane.b32.xlu0 %v791_v33, 264 }
  0x7c   : > { %774 = vbcast.lane.b32.xlu1 %v772_v31, 256 }
  0x7f   : > { %805 = vbcast.lane.b32.xlu0 %v791_v33, 280 }
  0x80   : > { %782 = vbcast.lane.b32.xlu1 %v772_v31, 272 }
  0x83   : > { %816 = vbcast.lane.b32.xlu0 %v810_v35, 264 }
  0x84   : > { %793 = vbcast.lane.b32.xlu1 %v791_v33, 256 }
  0x87   : > { %824 = vbcast.lane.b32.xlu0 %v810_v35, 280 }
  0x88   : > { %801 = vbcast.lane.b32.xlu1 %v791_v33, 272 }
  0x8b   : > { %835 = vbcast.lane.b32.xlu0 %v829_v37, 264 }
  0x8c   : > { %812 = vbcast.lane.b32.xlu1 %v810_v35, 256 }
  0x8f   : > { %843 = vbcast.lane.b32.xlu0 %v829_v37, 280 }
  0x90   : > { %820 = vbcast.lane.b32.xlu1 %v810_v35, 272 }
  0x93   : > { %854 = vbcast.lane.b32.xlu0 %v848_v39, 264 }
  0x94   : > { %v474_v41 = vpop.permute.xlu1 %473  ;;  %831 = vbcast.lane.b32.xlu1 %v829_v37, 256  ;;  %v13419_v42 = vpop.permute.xlu0 %514 }
  0x95   : > { %v507_v9 = vsub.f32 %v474_v41, %v13425_v44  ;;  %v549_v31 = vsub.f32 %v13419_v42, %v13422_v43 }
  0x97   : > { %862 = vbcast.lane.b32.xlu0 %v848_v39, 280  ;;  %v603_v15 = vmul.f32 %v507_v9, %v507_v9  ;;  %v609_v42 = vmul.f32 %v549_v31, %v549_v31  ;;  %v13477_v9 = vrot.slane %v13412_v38, %v13404_v34 }
  0x98   : > { %v479_v46 = vpop.permute.xlu1 %478  ;;  %839 = vbcast.lane.b32.xlu1 %v829_v37, 272  ;;  %v527_v47 = vpop.permute.xlu0 %526 }
  0x99   : > { %v508_v48 = vsub.f32 %v479_v46, %v13425_v44  ;;  %v552_v49 = vsub.f32 %v527_v47, %v13422_v43 }
  0x9b   : > { %v604_v50 = vmul.f32 %v508_v48, %v508_v48  ;;  %v612_v51 = vmul.f32 %v552_v49, %v552_v49  ;;  %873 = vbcast.lane.b32.xlu0 %v867_v45, 264 }
  0x9c   : > { %v489_v52 = vpop.permute.xlu1 %488  ;;  %850 = vbcast.lane.b32.xlu1 %v848_v39, 256  ;;  %v535_v53 = vpop.permute.xlu0 %534 }
  0x9d   : > { %v13431_v54 = vadd.f32 %v612_v51, %v604_v50  ;;  %v510_v55 = vsub.f32 %v489_v52, %v13425_v44  ;;  %v554_v56 = vsub.f32 %v535_v53, %v13422_v43 }
  0x9f   : > { %v606_v58 = vmul.f32 %v510_v55, %v510_v55  ;;  %v614_v59 = vmul.f32 %v554_v56, %v554_v56  ;;  %881 = vbcast.lane.b32.xlu0 %v867_v45, 280 }
  0xa0   : > { %v499_v61 = vpop.permute.xlu1 %498  ;;  %858 = vbcast.lane.b32.xlu1 %v848_v39, 272  ;;  %v543_v62 = vpop.permute.xlu0 %542 }
  0xa1   : > { %v13441_v63 = vadd.f32 %v614_v59, %v606_v58  ;;  %v512_v0 = vsub.f32 %v499_v61, %v13425_v44  ;;  %v556_v2 = vsub.f32 %v543_v62, %v13422_v43 }
  0xa3   : > { %v608_v3 = vmul.f32 %v512_v0, %v512_v0  ;;  %v616_v4 = vmul.f32 %v556_v2, %v556_v2  ;;  %892 = vbcast.lane.b32.xlu0 %v886_v60, 264 }
  0xa4   : > { %869 = vbcast.lane.b32.xlu1 %v867_v45, 256 }
  0xa5   : > { %v13446_v5 = vadd.f32 %v616_v4, %v608_v3  ;;  %v519_v6 = vpop.permute.xlu1 %518  ;;  %v563_v7 = vpop.permute.xlu0 %562 }
  0xa6   : > { %v550_v29 = vsub.f32 %v519_v6, %v13422_v43  ;;  %v594_v33 = vsub.f32 %v563_v7, %v13455_v24  ;;  %v13291_v7 = vmov 1966171168  }
  0xa7   : > { %900 = vbcast.lane.b32.xlu0 %v886_v60, 280 }
  0xa8   : > { %877 = vbcast.lane.b32.xlu1 %v867_v45, 272  ;;  %v610_v47 = vmul.f32 %v550_v29, %v550_v29  ;;  %v626_v49 = vmul.f32 %v594_v33, %v594_v33 }
  0xa9   : > { %v523_v10 = vpop.permute.xlu1 %522  ;;  %v575_v11 = vpop.permute.xlu0 %574 }
  0xaa   : > { %v551_v13 = vsub.f32 %v523_v10, %v13422_v43  ;;  %v597_v53 = vsub.f32 %v575_v11, %v13455_v24 }
  0xab   : > { %911 = vbcast.lane.b32.xlu0 %v905_v8, 264 }
  0xac   : > { %v611_v16 = vmul.f32 %v551_v13, %v551_v13  ;;  %888 = vbcast.lane.b32.xlu1 %v886_v60, 256  ;;  %v629_v10 = vmul.f32 %v597_v53, %v597_v53 }
  0xad   : > { %v531_v18 = vpop.permute.xlu1 %530  ;;  %v583_v19 = vpop.permute.xlu0 %582 }
  0xae   : > { %v619_v20 = vadd.f32 %v611_v16, %v603_v15  ;;  %v553_v45 = vsub.f32 %v531_v18, %v13422_v43  ;;  %v599_v2 = vsub.f32 %v583_v19, %v13455_v24  ;;  %v13485_v15 = vld [vmem:[%s21554_s2] ss:$0 sm:$0xff] }
  0xaf   : > { %919 = vbcast.lane.b32.xlu0 %v905_v8, 280 }
  0xb0   : > { %896 = vbcast.lane.b32.xlu1 %v886_v60, 272  ;;  %v613_v58 = vmul.f32 %v553_v45, %v553_v45 }
  0xb1   : > { %v539_v22 = vpop.permute.xlu1 %538 }
  0xb2   : > { %v464_v25 = vpop.permute.xlu0 %463  ;;  %v555_v60 = vsub.f32 %v539_v22, %v13422_v43 }
  0xb3   : > { %930 = vbcast.lane.b32.xlu0 %v924_v21, 264  ;;  %v505_v27 = vsub.f32 %v464_v25, %v13425_v44 }
  0xb4   : > { %907 = vbcast.lane.b32.xlu1 %v905_v8, 256  ;;  %v615_v18 = vmul.f32 %v555_v60, %v555_v60 }
  0xb5   : > { %v601_v46 = vmul.f32 %v505_v27, %v505_v27  ;;  %v631_v27 = vmul.f32 %v599_v2, %v599_v2 }
  0xb6   : > { %v559_v35 = vpop.permute.xlu1 %558  ;;  %v469_v37 = vpop.permute.xlu0 %468 }
  0xb7   : > { %v593_v39 = vsub.f32 %v559_v35, %v13455_v24  ;;  %v506_v41 = vsub.f32 %v469_v37, %v13425_v44  ;;  %938 = vbcast.lane.b32.xlu0 %v924_v21, 280  ;;  %v617_v59 = vadd.f32 %v609_v42, %v601_v46 }
  0xb8   : > { %915 = vbcast.lane.b32.xlu1 %v905_v8, 272  ;;  %v7760_v8 = vunpack.c.l.s4 %v13291_v7 }
  0xb9   : > { %v602_v48 = vmul.f32 %v506_v41, %v506_v41  ;;  %v625_v50 = vmul.f32 %v593_v39, %v593_v39 }
  0xba   : > { %v567_v51 = vpop.permute.xlu1 %566  ;;  %v484_v52 = vpop.permute.xlu0 %483  ;;  %v7761_v31 = vunpack.c.0.s8 %v7760_v8 }
  0xbb   : > { %v618_v55 = vadd.f32 %v610_v47, %v602_v48  ;;  %v595_v56 = vsub.f32 %v567_v51, %v13455_v24  ;;  %v509_v57 = vsub.f32 %v484_v52, %v13425_v44  ;;  %949 = vbcast.lane.b32.xlu0 %v13466_v40, 264  ;;  %v633_v6 = vadd.f32 %v625_v50, %v617_v59  ;;  %v451_v52 = vld [vmem:[%s13375_s19 + $0x10] sm:$0xff] }
  0xbc   : > { %926 = vbcast.lane.b32.xlu1 %v924_v21, 256  ;;  %v13499_v39 = vsub.s32 %v7761_v31, %v13369_v14  ;;  %v13504_v47 = vrot.slane %v13412_v38, %v13408_v36  ;;  %v13564_v7 = vrot.slane %v451_v52, %v13404_v34  ;;  %v13567_v8 = vrot.slane %v451_v52, %v13408_v36 }
  0xbd   : > { %v627_v61 = vmul.f32 %v595_v56, %v595_v56  ;;  %v605_v62 = vmul.f32 %v509_v57, %v509_v57  ;;  %v634_v0 = vadd.f32 %v626_v49, %v618_v55  ;;  %vm641_vm1 = vcmp.le.f32.partialorder %v633_v6, 0.25 }
  0xbe   : > { %v571_v3 = vpop.permute.xlu1 %570  ;;  %v494_v4 = vpop.permute.xlu0 %493  ;;  %21994 = vst [vmem:[#allocation12_spill] sm:$0xff] %v13499_v39  ;;  %v13528_v55 = vrot.slane %v451_v52, %v13379_v17  ;;  %v13531_v56 = vrot.slane %v451_v52, %v13384_v23  ;;  %v13537_v57 = vrot.slane %v451_v52, %v13392_v28  ;;  %v22001_v6 = vmov 0 }
  0xbf   : > { %v621_v11 = vadd.f32 %v613_v58, %v605_v62  ;;  %v596_v13 = vsub.f32 %v571_v3, %v13455_v24  ;;  %v511_v43 = vsub.f32 %v494_v4, %v13425_v44  ;;  %957 = vbcast.lane.b32.xlu0 %v13466_v40, 280  ;;  %v13487_v16 = vadd.f32 %v627_v61, %v619_v20  ;;  %v13540_v58 = vld [vmem:[%s13375_s19 + $0x18] sm:$0xff] }
  0xc0   : > { %934 = vbcast.lane.b32.xlu1 %v924_v21, 272  ;;  %vm642_vm10 = vcmp.le.f32.partialorder %v634_v0, 0.25  ;;  %v13546_v62 = vrot.slane %v451_v52, %v13396_v30  ;;  %v13549_v0 = vrot.slane %v451_v52, %v13400_v32  ;;  %v13649_v53 = vrot.slane %v13540_v58, %v13392_v28 }
  0xc1   : > { %v628_v19 = vmul.f32 %v596_v13, %v596_v13  ;;  %v607_v22 = vmul.f32 %v511_v43, %v511_v43  ;;  %v13489_v25 = vadd.f32 %v629_v10, %v621_v11  ;;  %v13571_v10 = vrot.slane %v13540_v58, %v13379_v17 }
  0xc2   : > { %v579_v29 = vpop.permute.xlu1 %578  ;;  %v651_v44 = vpop.permute.xlu0 %650 }
  0xc3   : > { %v623_v33 = vadd.f32 %v615_v18, %v607_v22  ;;  %v598_v21 = vsub.f32 %v579_v29, %v13455_v24  ;;  %vm677_vm2 = vcmp.eq.s32.totalorder %v651_v44, %v13485_v15  ;;  %968 = vbcast.lane.b32.xlu0 %v13477_v9, 264  ;;  %v636_v20 = vadd.f32 %v628_v19, %v13431_v54 }
  0xc4   : > { %vm685_vm3 = vmand %vm641_vm1, %vm677_vm2  ;;  %945 = vbcast.lane.b32.xlu1 %v13466_v40, 256  ;;  %vm643_vm1 = vcmp.le.f32.partialorder %v13487_v16, 0.25  ;;  %v13595_v22 = vrot.slane %v13540_v58, %v13384_v23  ;;  %v13604_v44 = vrot.slane %v13540_v58, %v13388_v26 }
  0xc5   : > { %v630_v35 = vmul.f32 %v598_v21, %v598_v21  ;;  %v13496_v37 = vadd.f32 %v631_v27, %v623_v33  ;;  %v7750_v41 = vsel %vm685_vm3, 1, %v21562_v1  ;;  %vm644_vm4 = vcmp.le.f32.partialorder %v636_v20, 0.25 }
  0xc6   : > { %v587_v45 = vpop.permute.xlu1 %586  ;;  %v660_v46 = vpop.permute.xlu0 %659  ;;  %v7758_v49 = vcombine.high %v7750_v41, %v7750_v41  ;;  %v7765_v50 = vrot.slane %v7750_v41, %v13499_v39 }
  0xc7   : > { %v600_v54 = vsub.f32 %v587_v45, %v13455_v24  ;;  %vm680_vm5 = vcmp.eq.s32.totalorder %v660_v46, %v13485_v15  ;;  %976 = vbcast.lane.b32.xlu0 %v13477_v9, 280  ;;  %v638_v48 = vadd.f32 %v630_v35, %v13441_v63 }
  0xc8   : > { %vm688_vm6 = vmand %vm644_vm4, %vm680_vm5  ;;  %953 = vbcast.lane.b32.xlu1 %v13466_v40, 272  ;;  %v13543_v59 = vrot.slane %v7765_v50, %v13499_v39  ;;  %v13552_v2 = vrot.slane %v7758_v49, %v13499_v39  ;;  %v7773_v11 = vcombine.high %v7765_v50, %v7765_v50  ;;  %vm645_vm4 = vcmp.le.f32.partialorder %v13489_v25, 0.25 }
  0xc9   : > { %v632_v42 = vmul.f32 %v600_v54, %v600_v54  ;;  %v7753_v38 = vsel %vm688_vm6, 1, %v21562_v1  ;;  %vm646_vm7 = vcmp.le.f32.partialorder %v638_v48, 0.25  ;;  %vm647_vm6 = vcmp.le.f32.partialorder %v13496_v37, 0.25 }
  0xca   : > { %v666_v51 = vpop.permute.xlu0 %665  ;;  %21999 = vst [vmem:[#allocation13_spill] sm:$0xff] %v13543_v59  ;;  %v7905_v60 = vcombine.high %v7753_v38, %v7753_v38  ;;  %22000 = vst [vmem:[#allocation14_spill] sm:$0xff] %v13552_v2  ;;  %v7912_v3 = vrot.slane %v7753_v38, %v13499_v39  ;;  %vm8150_vm5 = vcmp.ne.s32.totalorder %v13543_v59, 0  ;;  %v13608_v33 = vrot.slane %v13552_v2, %v13499_v39 }
  0xcb   : > { %vm682_vm8 = vcmp.eq.s32.totalorder %v666_v51, %v13485_v15  ;;  %v654_v24 = vpop.permute.xlu1 %653  ;;  %987 = vbcast.lane.b32.xlu0 %v13504_v47, 264  ;;  %v640_v63 = vadd.f32 %v632_v42, %v13446_v5  ;;  %v13534_v5 = vrot.slane %v451_v52, %v13388_v26  ;;  %v13615_v41 = vrot.slane %v7773_v11, %v13499_v39  ;;  %v13636_v51 = vld [vmem:[%s21552_s0 + $0x18] sm:$0xff] }
  0xcc   : > { %vm13517_vm9 = vmand %vm646_vm7, %vm682_vm8  ;;  %vm678_vm11 = vcmp.eq.s32.totalorder %v654_v24, %v13485_v15  ;;  %964 = vbcast.lane.b32.xlu1 %v13477_v9, 256  ;;  %v13586_v16 = vrot.slane %v7905_v60, %v13499_v39  ;;  %v7920_v29 = vcombine.high %v7912_v3, %v7912_v3  ;;  %22007 = vst [vmem:[#allocation17_spill] sm:$0xff] %v13608_v33  ;;  %v13624_v54 = vsel %vm8150_vm5, 1, %v21562_v1 }
  0xcd   : > { %vm13523_vm12 = vmand %vm642_vm10, %vm678_vm11  ;;  %vm648_vm13 = vcmp.le.f32.partialorder %v640_v63, 0.25  ;;  %v7755_v13 = vsel %vm13517_vm9, 1, %v21562_v1  ;;  %22008 = vst [vmem:[#allocation18_spill] sm:$0xff] %v13615_v41  ;;  %v13618_v45 = vrot.slane %v7912_v3, %v13499_v39  ;;  %v13721_v37 = vrot.slane %v13540_v58, %v13396_v30 }
  0xce   : > { %v672_v61 = vpop.permute.xlu0 %671  ;;  %v7751_v43 = vsel %vm13523_vm12, 1, %v21562_v1  ;;  %22004 = vst [vmem:[#allocation16_spill] sm:$0xff] %v13586_v16  ;;  %v8003_v21 = vcombine.high %v7755_v13, %v7755_v13  ;;  %22010 = vst [vmem:[#allocation20_spill] sm:$0xff] %v13624_v54  ;;  %v13629_v42 = vrot.slane %v7755_v13, %v13499_v39  ;;  %v13640_v38 = vrot.slane %v13586_v16, %v13499_v39 }
  0xcf   : > { %vm684_vm14 = vcmp.eq.s32.totalorder %v672_v61, %v13485_v15  ;;  %v657_v4 = vpop.permute.xlu1 %656  ;;  %995 = vbcast.lane.b32.xlu0 %v13504_v47, 280  ;;  %v7807_v20 = vcombine.high %v7751_v43, %v7751_v43  ;;  %22009 = vst [vmem:[#allocation19_spill] sm:$0xff] %v13618_v45  ;;  %v7814_v49 = vrot.slane %v7751_v43, %v13499_v39  ;;  %vm8151_vm11 = vcmp.ne.s32.totalorder %v13615_v41, 0 }
  0xd0   : > { %vm13557_vm15 = vmand %vm648_vm13, %vm684_vm14  ;;  %972 = vbcast.lane.b32.xlu1 %v13477_v9, 272  ;;  %vm679_vm2 = vcmp.eq.s32.totalorder %v657_v4, %v13485_v15  ;;  %v13583_v9 = vld [vmem:[%s21552_s0 + $0x8] sm:$0xff]  ;;  %22011 = vst [vmem:[#allocation21_spill] sm:$0xff] %v13629_v42  ;;  %v13643_v24 = vrot.slane %v7920_v29, %v13499_v39  ;;  %v13652_v40 = vrot.slane %v8003_v21, %v13499_v39 }
  0xd1   : > { %v22002_v6 = vsel %vm13557_vm15, 4294967295, %v22001_v6  ;;  %vm13588_vm3 = vmand %vm643_vm1, %vm679_vm2  ;;  %22012 = vst [vmem:[#allocation22_spill] sm:$0xff] %v13640_v38  ;;  %v13655_v60 = vrot.slane %v7807_v20, %v13499_v39  ;;  %v13670_v18 = vrot.slane %v13629_v42, %v13499_v39  ;;  %v7822_v25 = vcombine.high %v7814_v49, %v7814_v49 }
  0xd2   : > { %22003 = vst [vmem:[#allocation15_spill] sm:$0xff] %v22002_v6  ;;  %v703_v19 = vpop.permute.xlu0 %702  ;;  %v7752_v46 = vsel %vm13588_vm3, 1, %v21562_v1  ;;  %22013 = vst [vmem:[#allocation23_spill] sm:$0xff] %v13643_v24  ;;  %vm22395_vm15 = vcmask 261120  }
  0xd3   : > { %v663_v31 = vpop.permute.xlu1 %662  ;;  %1006 = vbcast.lane.b32.xlu0 %v13528_v55, 264  ;;  %v13611_v35 = vsub.f32 %v13583_v9, %v703_v19  ;;  %22014 = vst [vmem:[#allocation24_spill] sm:$0xff] %v13652_v40  ;;  %22015 = vst [vmem:[#allocation25_spill] sm:$0xff] %v13655_v60  ;;  %v7856_v61 = vcombine.high %v7752_v46, %v7752_v46  ;;  %v7863_v4 = vrot.slane %v7752_v46, %v13499_v39 }
  0xd4   : > { %983 = vbcast.lane.b32.xlu1 %v13504_v47, 256  ;;  %vm681_vm7 = vcmp.eq.s32.totalorder %v663_v31, %v13485_v15  ;;  %22016 = vst [vmem:[#allocation26_spill] sm:$0xff] %v13670_v18  ;;  %v13684_v31 = vrot.slane %v7814_v49, %v13499_v39  ;;  %v13705_v48 = vrot.slane %v13655_v60, %v13499_v39 }
  0xd5   : > { %v2422_v50 = vand.u32 2147483647, %v13611_v35  ;;  %vm689_vm8 = vmand %vm645_vm4, %vm681_vm7  ;;  %v13713_v27 = vrot.slane %v7863_v4, %v13499_v39 }
  0xd6   : > { %v711_v52 = vpop.permute.xlu0 %710  ;;  %v7754_v11 = vsel %vm689_vm8, 1, %v21562_v1  ;;  %22020 = vst [vmem:[#allocation28_spill] sm:$0xff] %v13684_v31  ;;  %22022 = vst [vmem:[#allocation30_spill] sm:$0xff] %v13705_v48 }
  0xd7   : > { %v669_v63 = vpop.permute.xlu1 %668  ;;  %1014 = vbcast.lane.b32.xlu0 %v13528_v55, 280  ;;  %v2678_v3 = vsub.f32 0.0, %v2422_v50  ;;  %v13663_v13 = vsub.f32 %v13636_v51, %v711_v52  ;;  %v7954_v21 = vcombine.high %v7754_v11, %v7754_v11  ;;  %v13693_v52 = vrot.slane %v7856_v61, %v13499_v39  ;;  %22024 = vst [vmem:[#allocation32_spill] sm:$0xff] %v13713_v27 }
  0xd8   : > { %991 = vbcast.lane.b32.xlu1 %v13504_v47, 272  ;;  %vm683_vm9 = vcmp.eq.s32.totalorder %v669_v63, %v13485_v15  ;;  %v22017_v47 = vmov 0  ;;  %v13681_v15 = vld [vmem:[%s21552_s0] sm:$0xff]  ;;  %v7961_v63 = vrot.slane %v7754_v11, %v13499_v39  ;;  %v13708_v61 = vrot.slane %v7822_v25, %v13499_v39 }
  0xd9   : > { %v2935_v19 = vmul.f32 1.442695, %v2678_v3  ;;  %vm13674_vm10 = vmand %vm647_vm6, %vm683_vm9  ;;  %v2424_v20 = vand.u32 2147483647, %v13663_v13  ;;  %22021 = vst [vmem:[#allocation29_spill] sm:$0xff] %v13693_v52  ;;  %v7871_v3 = vcombine.high %v7863_v4, %v7863_v4  ;;  %v13727_v11 = vrot.slane %v13693_v52, %v13499_v39 }
  0xda   : > { %v22018_v47 = vsel %vm13674_vm10, 4294967295, %v22017_v47  ;;  %v722_v29 = vpop.permute.xlu0 %721  ;;  %22023 = vst [vmem:[#allocation31_spill] sm:$0xff] %v13708_v61  ;;  %v7969_v4 = vcombine.high %v7961_v63, %v7961_v63  ;;  %vm22399_vm10 = vmmov %vm22395_vm15 }
  0xdb   : > { %22019 = vst [vmem:[#allocation27_spill] sm:$0xff] %v22018_v47  ;;  %v699_v46 = vpop.permute.xlu1 %698  ;;  %1025 = vbcast.lane.b32.xlu0 %v13531_v56, 264  ;;  %v13697_v49 = vsub.f32 %v13583_v9, %v722_v29  ;;  %12174 = vpow2.f32 %v2935_v19  ;;  %v2680_v43 = vsub.f32 0.0, %v2424_v20  ;;  %v13716_v19 = vrot.slane %v7954_v21, %v13499_v39  ;;  %22026 = vst [vmem:[#allocation34_spill] sm:$0xff] %v13727_v11 }
  0xdc   : > { %1002 = vbcast.lane.b32.xlu1 %v13528_v55, 256  ;;  %v13701_v12 = vsub.f32 %v13681_v15, %v699_v46  ;;  %v13736_v21 = vrot.slane %v7871_v3, %v13499_v39  ;;  %v13743_v47 = vrot.slane %v7961_v63, %v13499_v39  ;;  %v13759_v40 = vrot.slane %v7969_v4, %v13499_v39 }
  0xdd   : > { %v2426_v29 = vand.u32 2147483647, %v13697_v49  ;;  %22025 = vst [vmem:[#allocation33_spill] sm:$0xff] %v13716_v19  ;;  %v2939_v20 = vmul.f32 1.442695, %v2680_v43  ;;  %v13732_v43 = vld [vmem:[%s21552_s0 + $0x10] sm:$0xff]  ;;  %v13756_v63 = vrot.slane %v13716_v19, %v13499_v39 }
  0xde   : > { %v730_v50 = vpop.permute.xlu0 %729  ;;  %22027 = vst [vmem:[#allocation35_spill] sm:$0xff] %v13736_v21  ;;  %v2421_v6 = vand.u32 2147483647, %v13701_v12  ;;  %22028 = vst [vmem:[#allocation36_spill] sm:$0xff] %v13743_v47 }
  0xdf   : > { %v707_v46 = vpop.permute.xlu1 %706  ;;  %1033 = vbcast.lane.b32.xlu0 %v13531_v56, 280  ;;  %v2682_v1 = vsub.f32 0.0, %v2426_v29  ;;  %12176 = vpow2.f32 %v2939_v20  ;;  %v13740_v25 = vsub.f32 %v13636_v51, %v730_v50  ;;  %22029 = vst [vmem:[#allocation37_spill] sm:$0xff] %v13756_v63  ;;  %22030 = vst [vmem:[#allocation38_spill] sm:$0xff] %v13759_v40 }
  0xe0   : > { %1010 = vbcast.lane.b32.xlu1 %v13528_v55, 272  ;;  %v2677_v3 = vsub.f32 0.0, %v2421_v6  ;;  %v13751_v14 = vsub.f32 %v13732_v43, %v707_v46 }
  0xe1   : > { %v2943_v18 = vmul.f32 1.442695, %v2682_v1  ;;  %v2428_v20 = vand.u32 2147483647, %v13740_v25 }
  0xe2   : > { %v741_v42 = vpop.permute.xlu0 %740  ;;  %v2933_v46 = vmul.f32 1.442695, %v2677_v3  ;;  %v2423_v29 = vand.u32 2147483647, %v13751_v14 }
  0xe3   : > { %v718_v50 = vpop.permute.xlu1 %717  ;;  %1044 = vbcast.lane.b32.xlu0 %v13534_v5, 264  ;;  %v13762_v1 = vsub.f32 %v13583_v9, %v741_v42  ;;  %12178 = vpow2.f32 %v2943_v18  ;;  %v2684_v55 = vsub.f32 0.0, %v2428_v20  ;;  %v13777_v18 = vrot.slane %v13540_v58, %v13400_v32 }
  0xe4   : > { %v13765_v6 = vsub.f32 %v13681_v15, %v718_v50  ;;  %1021 = vbcast.lane.b32.xlu1 %v13531_v56, 256  ;;  %12180 = vpow2.f32 %v2933_v46  ;;  %v2679_v16 = vsub.f32 0.0, %v2423_v29 }
  0xe5   : > { %v2430_v63 = vand.u32 2147483647, %v13762_v1  ;;  %v12175_v50 = vpop.eup %12174  ;;  %v2947_v47 = vmul.f32 1.442695, %v2684_v55 }
  0xe6   : > { %v2425_v42 = vand.u32 2147483647, %v13765_v6  ;;  %v749_v40 = vpop.permute.xlu0 %748  ;;  %v2937_v55 = vmul.f32 1.442695, %v2679_v16  ;;  %v3446_v24 = vadd.f32 1.0, %v12175_v50 }
  0xe7   : > { %v726_v38 = vpop.permute.xlu1 %725  ;;  %1052 = vbcast.lane.b32.xlu0 %v13534_v5, 280  ;;  %v2686_v3 = vsub.f32 0.0, %v2430_v63  ;;  %v13780_v19 = vsub.f32 %v13636_v51, %v749_v40  ;;  %12182 = vpow2.f32 %v2947_v47 }
  0xe8   : > { %v2681_v20 = vsub.f32 0.0, %v2425_v42  ;;  %v13783_v4 = vsub.f32 %v13732_v43, %v726_v38  ;;  %1029 = vbcast.lane.b32.xlu1 %v13531_v56, 272  ;;  %12184 = vpow2.f32 %v2937_v55 }
  0xe9   : > { %v2951_v45 = vmul.f32 1.442695, %v2686_v3  ;;  %v12177_v11 = vpop.eup %12176  ;;  %v2432_v40 = vand.u32 2147483647, %v13780_v19  ;;  %v13801_v3 = vrot.slane %v13540_v58, %v13404_v34 }
  0xea   : > { %v2941_v63 = vmul.f32 1.442695, %v2681_v20  ;;  %v760_v42 = vpop.permute.xlu0 %759  ;;  %v2427_v38 = vand.u32 2147483647, %v13783_v4  ;;  %v3448_v16 = vadd.f32 1.0, %v12177_v11 }
  0xeb   : > { %v13792_v56 = vsub.f32 %v13583_v9, %v760_v42  ;;  %v737_v47 = vpop.permute.xlu1 %736  ;;  %1063 = vbcast.lane.b32.xlu0 %v13537_v57, 264  ;;  %12186 = vpow2.f32 %v2951_v45  ;;  %v2688_v55 = vsub.f32 0.0, %v2432_v40 }
  0xec   : > { %v13796_v50 = vsub.f32 %v13681_v15, %v737_v47  ;;  %1040 = vbcast.lane.b32.xlu1 %v13534_v5, 256  ;;  %12188 = vpow2.f32 %v2941_v63  ;;  %v2683_v42 = vsub.f32 0.0, %v2427_v38  ;;  %v22031_v63 = vmov 0  }
  0xed   : > { %12190 = vlog2.f32 %v3448_v16  ;;  %v2434_v11 = vand.u32 2147483647, %v13792_v56  ;;  %v12179_v46 = vpop.eup %12178  ;;  %v2955_v29 = vmul.f32 1.442695, %v2688_v55  ;;  %v13814_v40 = vsel %vm8151_vm11, 1, %v22031_v63 }
  0xee   : > { %v2429_v45 = vand.u32 2147483647, %v13796_v50  ;;  %v768_v47 = vpop.permute.xlu0 %767  ;;  %v2945_v21 = vmul.f32 1.442695, %v2683_v42  ;;  %22032 = vst [vmem:[#allocation39_spill] sm:$0xff] %v13814_v40  ;;  %12192 = vlog2.f32 %v3446_v24  ;;  %v12181_v55 = vpop.eup %12180  ;;  %v13823_v48 = vadd.f32 1.0, %v12179_v46 }
  0xef   : > { %v13808_v27 = vsub.f32 %v13636_v51, %v768_v47  ;;  %v745_v60 = vpop.permute.xlu1 %744  ;;  %1071 = vbcast.lane.b32.xlu0 %v13537_v57, 280  ;;  %v2690_v38 = vsub.f32 0.0, %v2434_v11  ;;  %12194 = vpow2.f32 %v2955_v29 }
  0xf0   : > { %v2685_v16 = vsub.f32 0.0, %v2429_v45  ;;  %v13817_v52 = vsub.f32 %v13732_v43, %v745_v60  ;;  %1048 = vbcast.lane.b32.xlu1 %v13534_v5, 272  ;;  %12196 = vpow2.f32 %v2945_v21  ;;  %v13837_v21 = vrot.slane %v13540_v58, %v13408_v36 }
  0xf1   : > { %v2436_v20 = vand.u32 2147483647, %v13808_v27  ;;  %v2959_v61 = vmul.f32 1.442695, %v2690_v38  ;;  %v12183_v31 = vpop.eup %12182  ;;  %v13839_v38 = vadd.f32 1.0, %v12181_v55 }
  0xf2   : > { %v2949_v11 = vmul.f32 1.442695, %v2685_v16  ;;  %v779_v45 = vpop.permute.xlu0 %778  ;;  %v2431_v5 = vand.u32 2147483647, %v13817_v52  ;;  %v3452_v47 = vadd.f32 1.0, %v12183_v31  ;;  %22033 = vst [vmem:[#allocation40_spill] sm:$0xff] %v13837_v21 }
  0xf3   : > { %v2692_v2 = vsub.f32 0.0, %v2436_v20  ;;  %v13828_v24 = vsub.f32 %v13583_v9, %v779_v45  ;;  %v756_v29 = vpop.permute.xlu1 %755  ;;  %1082 = vbcast.lane.b32.xlu0 %v13546_v62, 264  ;;  %12198 = vpow2.f32 %v2959_v61  ;;  %v12185_v20 = vpop.eup %12184 }
  0xf4   : > { %v13832_v46 = vsub.f32 %v13681_v15, %v756_v29  ;;  %1059 = vbcast.lane.b32.xlu1 %v13537_v57, 256  ;;  %12200 = vpow2.f32 %v2949_v11  ;;  %v2687_v45 = vsub.f32 0.0, %v2431_v5  ;;  %v3447_v42 = vadd.f32 1.0, %v12185_v20 }
  0xf5   : > { %v2963_v16 = vmul.f32 1.442695, %v2692_v2  ;;  %v12187_v60 = vpop.eup %12186  ;;  %12202 = vlog2.f32 %v3452_v47  ;;  %v2438_v61 = vand.u32 2147483647, %v13828_v24 }
  0xf6   : > { %v787_v29 = vpop.permute.xlu0 %786  ;;  %v12189_v39 = vpop.eup %12188  ;;  %v3454_v33 = vadd.f32 1.0, %v12187_v60  ;;  %v2953_v41 = vmul.f32 1.442695, %v2687_v45  ;;  %v2433_v58 = vand.u32 2147483647, %v13832_v46 }
  0xf7   : > { %12204 = vpow2.f32 %v2963_v16  ;;  %v764_v63 = vpop.permute.xlu1 %763  ;;  %1090 = vbcast.lane.b32.xlu0 %v13546_v62, 280  ;;  %v12191_v55 = vpop.eup %12190  ;;  %v2694_v47 = vsub.f32 0.0, %v2438_v61  ;;  %v13847_v11 = vsub.f32 %v13636_v51, %v787_v29  ;;  %v13857_v29 = vadd.f32 1.0, %v12189_v39 }
  0xf8   : > { %12206 = vlog2.f32 %v3447_v42  ;;  %1067 = vbcast.lane.b32.xlu1 %v13537_v57, 272  ;;  %v2689_v5 = vsub.f32 0.0, %v2433_v58  ;;  %v13852_v20 = vsub.f32 %v13732_v43, %v764_v63  ;;  %v13854_v16 = vpop.eup %12192  ;;  %v3708_v45 = vmul.f32 0.6931472, %v12191_v55 }
  0xf9   : > { %12208 = vlog2.f32 %v3454_v33  ;;  %v2967_v42 = vmul.f32 1.442695, %v2694_v47  ;;  %v2440_v2 = vand.u32 2147483647, %v13847_v11  ;;  %v12195_v31 = vpop.eup %12194 }
  0xfa   : > { %12210 = vpow2.f32 %v2953_v41  ;;  %v798_v61 = vpop.permute.xlu0 %797  ;;  %v2957_v59 = vmul.f32 1.442695, %v2689_v5  ;;  %v2435_v57 = vand.u32 2147483647, %v13852_v20  ;;  %v12197_v58 = vpop.eup %12196  ;;  %v3456_v60 = vadd.f32 1.0, %v12195_v31 }
  0xfb   : > { %v775_v33 = vpop.permute.xlu1 %774  ;;  %1101 = vbcast.lane.b32.xlu0 %v13549_v0, 264  ;;  %12212 = vpow2.f32 %v2967_v42  ;;  %v2696_v41 = vsub.f32 0.0, %v2440_v2  ;;  %v13864_v55 = vsub.f32 %v13583_v9, %v798_v61  ;;  %v3451_v39 = vadd.f32 1.0, %v12197_v58 }
  0xfc   : > { %1078 = vbcast.lane.b32.xlu1 %v13546_v62, 256  ;;  %12214 = vpow2.f32 %v2957_v59  ;;  %v2691_v47 = vsub.f32 0.0, %v2435_v57  ;;  %v13868_v5 = vsub.f32 %v13681_v15, %v775_v33  ;;  %v22034_v61 = vmax.f32 %v13663_v13, 0.0 }
  0xfd   : > { %v12199_v54 = vpop.eup %12198  ;;  %12216 = vlog2.f32 %v3456_v60  ;;  %v2971_v63 = vmul.f32 1.442695, %v2696_v41  ;;  %v2442_v31 = vand.u32 2147483647, %v13864_v55 }
  0xfe   : > { %v806_v42 = vpop.permute.xlu0 %805  ;;  %v12201_v2 = vpop.eup %12200  ;;  %v13874_v40 = vadd.f32 %v3708_v45, %v22034_v61  ;;  %12218 = vlog2.f32 %v3451_v39  ;;  %v3458_v58 = vadd.f32 1.0, %v12199_v54  ;;  %v2961_v59 = vmul.f32 1.442695, %v2691_v47 }
  0xff   : > { %v783_v57 = vpop.permute.xlu1 %782  ;;  %1109 = vbcast.lane.b32.xlu0 %v13549_v0, 280  ;;  %v12203_v33 = vpop.eup %12202  ;;  %v3453_v34 = vadd.f32 1.0, %v12201_v2  ;;  %12220 = vpow2.f32 %v2971_v63  ;;  %v2698_v60 = vsub.f32 0.0, %v2442_v31  ;;  %v2437_v41 = vand.u32 2147483647, %v13868_v5 }
 0x100   : > { %1086 = vbcast.lane.b32.xlu1 %v13546_v62, 272  ;;  %v3716_v32 = vmul.f32 0.6931472, %v12203_v33  ;;  %12222 = vlog2.f32 %v3458_v58  ;;  %v13880_v13 = vsub.f32 %v13636_v51, %v806_v42  ;;  %v13883_v54 = vsub.f32 %v13732_v43, %v783_v57 }
 0x101   : > { %v12205_v36 = vpop.eup %12204  ;;  %12224 = vlog2.f32 %v3453_v34  ;;  %v2975_v47 = vmul.f32 1.442695, %v2698_v60  ;;  %v2693_v2 = vsub.f32 0.0, %v2437_v41  ;;  %v22035_v57 = vmax.f32 %v13740_v25, 0.0 }
 0x102   : > { %v12207_v45 = vpop.eup %12206  ;;  %v3460_v39 = vadd.f32 1.0, %v12205_v36  ;;  %v817_v63 = vpop.permute.xlu0 %816  ;;  %12226 = vpow2.f32 %v2961_v59  ;;  %v2444_v36 = vand.u32 2147483647, %v13880_v13  ;;  %v2439_v28 = vand.u32 2147483647, %v13883_v54 }
 0x103   : > { %v12209_v31 = vpop.eup %12208  ;;  %v794_v33 = vpop.permute.xlu1 %793  ;;  %1120 = vbcast.lane.b32.xlu0 %v13564_v7, 264  ;;  %v13891_v30 = vadd.f32 %v3716_v32, %v22035_v57  ;;  %v2965_v34 = vmul.f32 1.442695, %v2693_v2  ;;  %v3706_v60 = vmul.f32 0.6931472, %v12207_v45  ;;  %v13899_v45 = vsub.f32 %v13583_v9, %v817_v63 }
 0x104   : > { %v12211_v42 = vpop.eup %12210  ;;  %12228 = vlog2.f32 %v3460_v39  ;;  %1097 = vbcast.lane.b32.xlu1 %v13549_v0, 256  ;;  %v3720_v62 = vmul.f32 0.6931472, %v12209_v31  ;;  %v2700_v61 = vsub.f32 0.0, %v2444_v36  ;;  %v3704_v2 = vmul.f32 0.6931472, %v13854_v16 }
 0x105   : > { %v3455_v41 = vadd.f32 1.0, %v12211_v42  ;;  %12230 = vpow2.f32 %v2975_v47  ;;  %v12213_v58 = vpop.eup %12212  ;;  %v2695_v31 = vsub.f32 0.0, %v2439_v28  ;;  %v22036_v36 = vmax.f32 %v13751_v14, 0.0 }
 0x106   : > { %12232 = vpow2.f32 %v2965_v34  ;;  %v825_v25 = vpop.permute.xlu0 %824  ;;  %v12215_v32 = vpop.eup %12214  ;;  %v3462_v39 = vadd.f32 1.0, %v12213_v58  ;;  %v2979_v59 = vmul.f32 1.442695, %v2700_v61  ;;  %v22042_v16 = vmax.f32 %v13796_v50, 0.0 }
 0x107   : > { %12234 = vlog2.f32 %v3455_v41  ;;  %v802_v47 = vpop.permute.xlu1 %801  ;;  %1128 = vbcast.lane.b32.xlu0 %v13564_v7, 280  ;;  %v12217_v42 = vpop.eup %12216  ;;  %v3457_v57 = vadd.f32 1.0, %v12215_v32  ;;  %v4215_v26 = vadd.f32 %v3706_v60, %v22036_v36  ;;  %v2969_v23 = vmul.f32 1.442695, %v2695_v31 }
 0x108   : > { %12236 = vlog2.f32 %v13839_v38  ;;  %v12219_v34 = vpop.eup %12218  ;;  %v3724_v41 = vmul.f32 0.6931472, %v12217_v42  ;;  %1105 = vbcast.lane.b32.xlu1 %v13549_v0, 272  ;;  %v2446_v32 = vand.u32 2147483647, %v13899_v45  ;;  %v22037_v38 = vmax.f32 %v13762_v1, 0.0 }
 0x109   : > { %12238 = vlog2.f32 %v3462_v39  ;;  %v12221_v63 = vpop.eup %12220  ;;  %v3714_v58 = vmul.f32 0.6931472, %v12219_v34  ;;  %v13913_v60 = vsub.f32 %v13681_v15, %v794_v33 }
 0x10a   : > { %12240 = vlog2.f32 %v3457_v57  ;;  %v836_v61 = vpop.permute.xlu0 %835  ;;  %v12223_v28 = vpop.eup %12222  ;;  %v13910_v17 = vadd.f32 %v3720_v62, %v22037_v38  ;;  %v3464_v14 = vadd.f32 1.0, %v12221_v63  ;;  %v22038_v57 = vmax.f32 %v13611_v35, 0.0 }
 0x10b   : > { %12242 = vpow2.f32 %v2979_v59  ;;  %v13915_v39 = vpop.permute.xlu1 %812  ;;  %1139 = vbcast.lane.b32.xlu0 %v13567_v8, 264  ;;  %v12225_v0 = vpop.eup %12224  ;;  %v3728_v42 = vmul.f32 0.6931472, %v12223_v28  ;;  %v2702_v34 = vsub.f32 0.0, %v2446_v32  ;;  %v22039_v62 = vmax.f32 %v13780_v19, 0.0 }
 0x10c   : > { %12244 = vpow2.f32 %v2969_v23  ;;  %v13920_v31 = vadd.f32 %v3704_v2, %v22038_v57  ;;  %v12227_v1 = vpop.eup %12226  ;;  %v2441_v59 = vand.u32 2147483647, %v13913_v60  ;;  %1116 = vbcast.lane.b32.xlu1 %v13564_v7, 256  ;;  %v22040_v23 = vmax.f32 %v13783_v4, 0.0 }
 0x10d   : > { %v13924_v36 = vadd.f32 %v3724_v41, %v22039_v62  ;;  %12246 = vlog2.f32 %v3464_v14  ;;  %v3718_v35 = vmul.f32 0.6931472, %v12225_v0  ;;  %v3459_v2 = vadd.f32 1.0, %v12227_v1 }
 0x10e   : > { %v12229_v63 = vpop.eup %12228  ;;  %v13931_v28 = vadd.f32 %v3714_v58, %v22040_v23  ;;  %v2983_v32 = vmul.f32 1.442695, %v2702_v34  ;;  %v13933_v38 = vpop.permute.xlu0 %843  ;;  %v2697_v57 = vsub.f32 0.0, %v2441_v59  ;;  %v13937_v62 = vsub.f32 %v13636_v51, %v825_v25 }
 0x10f   : > { %v12231_v19 = vpop.eup %12230  ;;  %v3732_v41 = vmul.f32 0.6931472, %v12229_v63  ;;  %v13939_v33 = vpop.permute.xlu1 %820  ;;  %1147 = vbcast.lane.b32.xlu0 %v13567_v8, 280  ;;  %v22041_v58 = vmax.f32 %v13792_v56, 0.0  ;;  %12248 = vlog2.f32 %v3459_v2  ;;  %v13947_v1 = vsub.f32 %v13732_v43, %v802_v47 }
 0x110   : > { %v12233_v4 = vpop.eup %12232  ;;  %v3466_v34 = vadd.f32 1.0, %v12231_v19  ;;  %12250 = vpow2.f32 %v2983_v32  ;;  %v2973_v59 = vmul.f32 1.442695, %v2697_v57  ;;  %v13950_v25 = vpack.c.bf16 %v13874_v40, %v4215_v26  ;;  %1124 = vbcast.lane.b32.xlu1 %v13564_v7, 272 }
 0x111   : > { %v13944_v0 = vadd.f32 %v3728_v42, %v22041_v58  ;;  %v12235_v63 = vpop.eup %12234  ;;  %v3461_v23 = vadd.f32 1.0, %v12233_v4  ;;  %v13955_v56 = vadd.f32 %v3718_v35, %v22042_v16  ;;  %v2448_v42 = vand.u32 2147483647, %v13937_v62 }
 0x112   : > { %v12237_v14 = vpop.eup %12236  ;;  %12252 = vlog2.f32 %v3466_v34  ;;  %v13959_v47 = vsub.f32 %v13583_v9, %v836_v61  ;;  %v13961_v2 = vpop.permute.xlu0 %854  ;;  %v22043_v19 = vmax.f32 %v13808_v27, 0.0  ;;  %v2443_v40 = vand.u32 2147483647, %v13947_v1 }
 0x113   : > { %v12239_v32 = vpop.eup %12238  ;;  %12254 = vlog2.f32 %v3461_v23  ;;  %v3702_v7 = vmul.f32 0.6931472, %v12237_v14  ;;  %v13968_v50 = vpop.permute.xlu1 %831  ;;  %1158 = vbcast.lane.b32.xlu0 %v13571_v10, 264  ;;  %v3722_v35 = vmul.f32 0.6931472, %v12235_v63  ;;  %v2704_v61 = vsub.f32 0.0, %v2448_v42 }
 0x114   : > { %v13965_v26 = vadd.f32 %v3732_v41, %v22043_v19  ;;  %v12241_v16 = vpop.eup %12240  ;;  %v3736_v57 = vmul.f32 0.6931472, %v12239_v32  ;;  %12256 = vpow2.f32 %v2973_v59  ;;  %v22044_v58 = vmax.f32 %v13701_v12, 0.0  ;;  %1135 = vbcast.lane.b32.xlu1 %v13567_v8, 256 }
 0x115   : > { %v12243_v4 = vpop.eup %12242  ;;  %v2192_v27 = vmax.f32 %v13937_v62, 0.0  ;;  %v2699_v41 = vsub.f32 0.0, %v2443_v40  ;;  %12258 = vlog2.f32 %v13857_v29  ;;  %v3726_v23 = vmul.f32 0.6931472, %v12241_v16 }
 0x116   : > { %v4213_v34 = vadd.f32 %v3702_v7, %v22044_v58  ;;  %v12245_v14 = vpop.eup %12244  ;;  %v3468_v19 = vadd.f32 1.0, %v12243_v4  ;;  %v2987_v21 = vmul.f32 1.442695, %v2704_v61  ;;  %12260 = vlog2.f32 %v13823_v48  ;;  %v13977_v63 = vpop.permute.xlu0 %862 }
 0x117   : > { %v12247_v59 = vpop.eup %12246  ;;  %v3463_v42 = vadd.f32 1.0, %v12245_v14  ;;  %v2977_v7 = vmul.f32 1.442695, %v2699_v41  ;;  %v13981_v40 = vpop.permute.xlu1 %839  ;;  %1166 = vbcast.lane.b32.xlu0 %v13571_v10, 280  ;;  %v22045_v29 = vmax.f32 %v13817_v52, 0.0  ;;  %v22046_v61 = vmax.f32 %v13828_v24, 0.0 }
 0x118   : > { %v4469_v12 = vpack.c.bf16 %v13920_v31, %v4213_v34  ;;  %12262 = vlog2.f32 %v3468_v19  ;;  %v2450_v4 = vand.u32 2147483647, %v13959_v47  ;;  %v3740_v58 = vmul.f32 0.6931472, %v12247_v59  ;;  %1143 = vbcast.lane.b32.xlu1 %v13567_v8, 272 }
 0x119   : > { %v13986_v16 = vadd.f32 %v3722_v35, %v22045_v29  ;;  %v13990_v48 = vadd.f32 %v3736_v57, %v22046_v61  ;;  %12264 = vlog2.f32 %v3463_v42  ;;  %v13995_v31 = vsub.f32 %v13681_v15, %v13915_v39  ;;  %v12249_v52 = vpop.eup %12248  ;;  %v14030_v61 = vld [vmem:[%s21558_s6 + $0x8] sm:$0xff]  }
 0x11a   : > { %11624 = vmatprep.subr.bf16.mxu0 %v4469_v12  ;;  %v13999_v34 = vsub.f32 %v13636_v51, %v13933_v38  ;;  %v22047_v24 = vmax.f32 %v13832_v46, 0.0  ;;  %12266 = vpow2.f32 %v2987_v21  ;;  %v2706_v57 = vsub.f32 0.0, %v2450_v4  ;;  %v14010_v39 = vpop.permute.xlu0 %873  ;;  %v12251_v14 = vpop.eup %12250 }
 0x11b   : > { %11625 = vmatpush3.bf16.msra.mxu0 %v4469_v12  ;;  %v14008_v41 = vsub.f32 %v13732_v43, %v13939_v33  ;;  %v3730_v19 = vmul.f32 0.6931472, %v12249_v52  ;;  %12268 = vpow2.f32 %v2977_v7  ;;  %v2445_v46 = vand.u32 2147483647, %v13995_v31  ;;  %v14015_v38 = vpop.permute.xlu1 %850  ;;  %1177 = vbcast.lane.b32.xlu0 %v13595_v22, 264 }
 0x11c   : > { %v14004_v35 = vadd.f32 %v3726_v23, %v22047_v24  ;;  %11626 = vmatprep.subr.bf16.mxu0 %v13950_v25  ;;  %v12253_v21 = vpop.eup %12252  ;;  %v3470_v23 = vadd.f32 1.0, %v12251_v14  ;;  %v2991_v59 = vmul.f32 1.442695, %v2706_v57  ;;  %v14020_v33 = vpack.c.bf16 %v13891_v30, %v13931_v28  ;;  %1154 = vbcast.lane.b32.xlu1 %v13571_v10, 256 }
 0x11d   : > { %v2452_v42 = vand.u32 2147483647, %v13999_v34  ;;  %v12255_v12 = vpop.eup %12254  ;;  %v22048_v7 = vmax.f32 %v13847_v11, 0.0  ;;  %v2701_v52 = vsub.f32 0.0, %v2445_v46  ;;  %v3744_v28 = vmul.f32 0.6931472, %v12253_v21 }
 0x11e   : > { %v12257_v30 = vpop.eup %12256  ;;  %12270 = vlog2.f32 %v3470_v23  ;;  %v14037_v57 = vpop.permute.xlu0 %881  ;;  %v22049_v21 = vmax.f32 %v13852_v20, 0.0 }
 0x11f   : > { %v14025_v29 = vadd.f32 %v3740_v58, %v22048_v7  ;;  %11627 = vmatpush3.bf16.msra.mxu0 %v13950_v25  ;;  %v2708_v11 = vsub.f32 0.0, %v2452_v42  ;;  %v2447_v58 = vand.u32 2147483647, %v14008_v41  ;;  %v12259_v14 = vpop.eup %12258  ;;  %v3734_v7 = vmul.f32 0.6931472, %v12255_v12  ;;  %v14039_v46 = vpop.permute.xlu1 %858  ;;  %1185 = vbcast.lane.b32.xlu0 %v13595_v22, 280 }
 0x120   : > { %v3465_v8 = vadd.f32 1.0, %v12257_v30  ;;  %12272 = vpow2.f32 %v2991_v59  ;;  %v2981_v4 = vmul.f32 1.442695, %v2701_v52  ;;  %v12261_v24 = vpop.eup %12260  ;;  %v14044_v23 = vadd.f32 %v3730_v19, %v22049_v21  ;;  %1162 = vbcast.lane.b32.xlu1 %v13571_v10, 272 }
 0x121   : > { %v3710_v25 = vmul.f32 0.6931472, %v12259_v14  ;;  %v2995_v42 = vmul.f32 1.442695, %v2708_v11  ;;  %v2703_v32 = vsub.f32 0.0, %v2447_v58  ;;  %v4473_v59 = vpack.c.bf16 %v13910_v17, %v13955_v56  ;;  %v14064_v17 = vld [vmem:[%s21558_s6] sm:$0xff]  }
 0x122   : > { %12274 = vlog2.f32 %v3465_v8  ;;  %11629 = vmatmul.mubr.msk.bf16.vlgmr.msra.gmra.mrb[0].mxu0 %vm21729_vm0, %v14030_v61  ;;  %v3712_v12 = vmul.f32 0.6931472, %v12261_v24  ;;  %v14052_v52 = vsub.f32 %v13583_v9, %v13961_v2  ;;  %v12263_v20 = vpop.eup %12262  ;;  %v22050_v19 = vmax.f32 %v13765_v6, 0.0  ;;  %v14068_v56 = vpop.permute.xlu0 %892 }
 0x123   : > { %12276 = vpow2.f32 %v2981_v4  ;;  %v2985_v11 = vmul.f32 1.442695, %v2703_v32  ;;  %v14059_v8 = vsub.f32 %v13681_v15, %v13968_v50  ;;  %11644 = vmatprep.mubr.msk.bf16.mxu0 %vm21729_vm0, %v14064_v17  ;;  %v12265_v10 = vpop.eup %12264  ;;  %v22051_v6 = vmax.f32 %v13864_v55, 0.0  ;;  %11640 = vmatprep.subr.bf16.mxu0 %v4473_v59  ;;  %v14077_v24 = vpop.permute.xlu1 %869 }
 0x124   : > { %v4217_v30 = vadd.f32 %v3710_v25, %v22050_v19  ;;  %v22052_v32 = vmax.f32 %v13697_v49, 0.0  ;;  %12278 = vpow2.f32 %v2995_v42  ;;  %1196 = vbcast.lane.b32.xlu0 %v13604_v44, 264  ;;  %v12267_v58 = vpop.eup %12266  ;;  %v22053_v14 = vmax.f32 %v13868_v5, 0.0  ;;  %11641 = vmatpush3.bf16.msra.mxu0 %v4473_v59 }
 0x125   : > { %v14072_v2 = vadd.f32 %v3744_v28, %v22051_v6  ;;  %v3748_v25 = vmul.f32 0.6931472, %v12263_v20  ;;  %12280 = vpow2.f32 %v2985_v11  ;;  %v2454_v55 = vand.u32 2147483647, %v14052_v52  ;;  %v12269_v49 = vpop.eup %12268  ;;  %1173 = vbcast.lane.b32.xlu1 %v13595_v22, 256 }
 0x126   : > { %v4218_v4 = vadd.f32 %v3712_v12, %v22052_v32  ;;  %v14082_v21 = vadd.f32 %v3734_v7, %v22053_v14  ;;  %v3472_v28 = vadd.f32 1.0, %v12267_v58  ;;  %v2198_v12 = vmax.f32 %v14052_v52, 0.0  ;;  %v14090_v7 = vpop.permute.xlu0 %900 }
 0x127   : > { %v2449_v19 = vand.u32 2147483647, %v14059_v8  ;;  %v3738_v6 = vmul.f32 0.6931472, %v12265_v10  ;;  %v3467_v32 = vadd.f32 1.0, %v12269_v49  ;;  %v2710_v50 = vsub.f32 0.0, %v2454_v55  ;;  %v14100_v11 = vpop.permute.xlu1 %877 }
 0x128   : > { %v4471_v42 = vpack.c.bf16 %v4218_v4, %v4217_v30  ;;  %v4474_v5 = vpack.c.bf16 %v13924_v36, %v13986_v16  ;;  %12282 = vlog2.f32 %v3472_v28  ;;  %v14094_v20 = vsub.f32 %v13636_v51, %v13977_v63  ;;  %1204 = vbcast.lane.b32.xlu0 %v13604_v44, 280  ;;  %v12271_v10 = vpop.eup %12270 }
 0x129   : > { %v2705_v59 = vsub.f32 0.0, %v2449_v19  ;;  %v14098_v30 = vsub.f32 %v13732_v43, %v13981_v40  ;;  %12284 = vlog2.f32 %v3467_v32  ;;  %v2999_v36 = vmul.f32 1.442695, %v2710_v50  ;;  %1181 = vbcast.lane.b32.xlu1 %v13595_v22, 272 }
 0x12a   : > { %11632 = vmatprep.subr.bf16.mxu1 %v4471_v42  ;;  %11642 = vmatprep.subr.bf16.mxu0 %v4474_v5  ;;  %v14106_v4 = vsub.f32 %v13583_v9, %v14010_v39  ;;  %v12273_v51 = vpop.eup %12272  ;;  %v22054_v63 = vmax.f32 %v13880_v13, 0.0  ;;  %v3752_v58 = vmul.f32 0.6931472, %v12271_v10  ;;  %v4475_v50 = vpack.c.bf16 %v13944_v0, %v14004_v35  ;;  %v14118_v39 = vpop.permute.xlu0 %911 }
 0x12b   : > { %11633 = vmatpush3.bf16.msra.mxu1 %v4471_v42  ;;  %v2989_v14 = vmul.f32 1.442695, %v2705_v59  ;;  %11643 = vmatpush3.bf16.msra.mxu0 %v4474_v5  ;;  %v3474_v55 = vadd.f32 1.0, %v12273_v51  ;;  %12286 = vpow2.f32 %v2999_v36  ;;  %v2456_v49 = vand.u32 2147483647, %v14094_v20  ;;  %v14126_v35 = vpop.permute.xlu1 %888 }
 0x12c   : > { %v14110_v40 = vadd.f32 %v3748_v25, %v22054_v63  ;;  %11634 = vmatprep.subr.bf16.mxu1 %v14020_v33  ;;  %v2451_v9 = vand.u32 2147483647, %v14098_v30  ;;  %v12275_v13 = vpop.eup %12274  ;;  %v22055_v25 = vmax.f32 %v13883_v54, 0.0  ;;  %v2458_v0 = vand.u32 2147483647, %v14106_v4  ;;  %1215 = vbcast.lane.b32.xlu0 %v13649_v53, 264 }
 0x12d   : > { %12288 = vpow2.f32 %v2989_v14  ;;  %v12277_v19 = vpop.eup %12276  ;;  %v3742_v32 = vmul.f32 0.6931472, %v12275_v13  ;;  %v2712_v22 = vsub.f32 0.0, %v2456_v49  ;;  %v14134_v10 = vsub.f32 %v13681_v15, %v14015_v38  ;;  %1192 = vbcast.lane.b32.xlu1 %v13604_v44, 256 }
 0x12e   : > { %v14122_v28 = vadd.f32 %v3738_v6, %v22055_v25  ;;  %12290 = vlog2.f32 %v3474_v55  ;;  %v2707_v5 = vsub.f32 0.0, %v2451_v9  ;;  %11645 = vmatmul.mubr.msk.bf16.vlgmr.msra.gmra.mrb[4].mxu0 %vm21729_vm0, %v14030_v61  ;;  %v12279_v54 = vpop.eup %12278  ;;  %v3469_v6 = vadd.f32 1.0, %v12277_v19  ;;  %v14146_v9 = vpop.permute.xlu0 %919 }
 0x12f   : > { %11635 = vmatpush3.bf16.msra.mxu1 %v14020_v33  ;;  %v2714_v59 = vsub.f32 0.0, %v2458_v0  ;;  %v4476_v36 = vpack.c.bf16 %v13965_v26, %v14044_v23  ;;  %11660 = vmatprep.mubr.msk.bf16.mxu0 %vm21729_vm0, %v14064_v17  ;;  %v12281_v33 = vpop.eup %12280  ;;  %v22056_v51 = vmax.f32 %v13899_v45, 0.0  ;;  %v3476_v14 = vadd.f32 1.0, %v12279_v54  ;;  %v14150_v23 = vpop.permute.xlu1 %896  ;;  %v14180_v54 = vld [vmem:[%s21552_s0 + $0x8] sm:$0xff] }
 0x130   : > { %11648 = vmatprep.subr.bf16.mxu1 %v4475_v50  ;;  %v3003_v55 = vmul.f32 1.442695, %v2712_v22  ;;  %12292 = vlog2.f32 %v3469_v6  ;;  %v3471_v15 = vadd.f32 1.0, %v12281_v33  ;;  %v2993_v26 = vmul.f32 1.442695, %v2707_v5  ;;  %1223 = vbcast.lane.b32.xlu0 %v13649_v53, 280 }
 0x131   : > { %v14142_v63 = vadd.f32 %v3752_v58, %v22056_v51  ;;  %v3007_v38 = vmul.f32 1.442695, %v2714_v59  ;;  %12294 = vlog2.f32 %v3476_v14  ;;  %v2453_v45 = vand.u32 2147483647, %v14134_v10  ;;  %v14157_v58 = vld [vmem:[%s21552_s0 + $0x18] sm:$0xff]  ;;  %1200 = vbcast.lane.b32.xlu1 %v13604_v44, 272 }
 0x132   : > { %11637 = vmatmul.mubr.msk.bf16.vlgmr.msra.gmra.mrb[0].mxu1 %vm21729_vm0, %v14030_v61  ;;  %v14161_v13 = vsub.f32 %v14157_v58, %v14037_v57  ;;  %v14165_v25 = vsub.f32 %v13732_v43, %v14039_v46  ;;  %v12283_v0 = vpop.eup %12282  ;;  %v22057_v19 = vmax.f32 %v13913_v60, 0.0  ;;  %12296 = vlog2.f32 %v3471_v15 }
 0x133   : > { %11649 = vmatpush3.bf16.msra.mxu1 %v4475_v50  ;;  %11652 = vmatprep.mubr.msk.bf16.mxu1 %vm21729_vm0, %v14064_v17  ;;  %v4477_v57 = vpack.c.bf16 %v13990_v48, %v14082_v21  ;;  %v12285_v5 = vpop.eup %12284  ;;  %12298 = vpow2.f32 %v3003_v55  ;;  %v2709_v46 = vsub.f32 0.0, %v2453_v45  ;;  %v14184_v60 = vsub.f32 %v14180_v54, %v14068_v56  ;;  %v14193_v21 = vld [vmem:[%s21552_s0] sm:$0xff]  ;;  %v14199_v56 = vpop.permute.xlu1 %907 }
 0x134   : > { %v14171_v50 = vadd.f32 %v3742_v32, %v22057_v19  ;;  %11650 = vmatprep.subr.bf16.mxu1 %v4476_v36  ;;  %v14187_v32 = vpop.permute.xlu0 %930  ;;  %v3756_v6 = vmul.f32 0.6931472, %v12283_v0  ;;  %12300 = vpow2.f32 %v2993_v26  ;;  %v2460_v48 = vand.u32 2147483647, %v14161_v13  ;;  %1234 = vbcast.lane.b32.xlu0 %v13721_v37, 264 }
 0x135   : > { %11656 = vmatprep.subr.bf16.mxu0 %v4477_v57  ;;  %v14197_v59 = vsub.f32 %v14193_v21, %v14077_v24  ;;  %v12287_v44 = vpop.eup %12286  ;;  %12302 = vpow2.f32 %v3007_v38  ;;  %v2997_v33 = vmul.f32 1.442695, %v2709_v46  ;;  %v2455_v14 = vand.u32 2147483647, %v14165_v25  ;;  %1211 = vbcast.lane.b32.xlu1 %v13649_v53, 256 }
 0x136   : > { %11657 = vmatpush3.bf16.msra.mxu0 %v4477_v57  ;;  %v3746_v15 = vmul.f32 0.6931472, %v12285_v5  ;;  %v3478_v26 = vadd.f32 1.0, %v12287_v44  ;;  %v2716_v45 = vsub.f32 0.0, %v2460_v48  ;;  %v2462_v22 = vand.u32 2147483647, %v14184_v60 }
 0x137   : > { %11651 = vmatpush3.bf16.msra.mxu1 %v4476_v36  ;;  %v12289_v55 = vpop.eup %12288  ;;  %12304 = vpow2.f32 %v2997_v33  ;;  %v2711_v43 = vsub.f32 0.0, %v2455_v14  ;;  %v14211_v36 = vadd.f32 %v3756_v6, %v2192_v27  ;;  %v14215_v46 = vpop.permute.xlu1 %915  ;;  %v2457_v33 = vand.u32 2147483647, %v14197_v59 }
 0x138   : > { %v12291_v0 = vpop.eup %12290  ;;  %v3473_v19 = vadd.f32 1.0, %v12289_v55  ;;  %v14207_v38 = vpop.permute.xlu0 %938  ;;  %12306 = vlog2.f32 %v3478_v26  ;;  %v3011_v5 = vmul.f32 1.442695, %v2716_v45  ;;  %1242 = vbcast.lane.b32.xlu0 %v13721_v37, 280  ;;  %v2718_v44 = vsub.f32 0.0, %v2462_v22 }
 0x139   : > { %v3760_v57 = vmul.f32 0.6931472, %v12291_v0  ;;  %v3001_v48 = vmul.f32 1.442695, %v2711_v43  ;;  %v22058_v27 = vmax.f32 %v13947_v1, 0.0  ;;  %v4478_v14 = vpack.c.bf16 %v14025_v29, %v14122_v28  ;;  %1219 = vbcast.lane.b32.xlu1 %v13649_v53, 272 }
 0x13a   : > { %11653 = vmatmul.mubr.msk.bf16.vlgmr.msra.gmra.mrb[4].mxu1 %vm21729_vm0, %v14030_v61  ;;  %12308 = vlog2.f32 %v3473_v19  ;;  %v12293_v62 = vpop.eup %12292  ;;  %v14227_v55 = vsub.f32 %v14157_v58, %v14090_v7  ;;  %v3015_v22 = vmul.f32 1.442695, %v2718_v44  ;;  %v2713_v45 = vsub.f32 0.0, %v2457_v33  ;;  %v14238_v7 = vld [vmem:[%s21552_s0 + $0x10] sm:$0xff] }
 0x13b   : > { %11668 = vmatprep.mubr.msk.bf16.mxu1 %vm21729_vm0, %v14064_v17  ;;  %v4235_v6 = vadd.f32 %v3746_v15, %v22058_v27  ;;  %12310 = vpow2.f32 %v3011_v5  ;;  %v12295_v26 = vpop.eup %12294  ;;  %v3750_v43 = vmul.f32 0.6931472, %v12293_v62  ;;  %11658 = vmatprep.subr.bf16.mxu0 %v4478_v14  ;;  %v14242_v28 = vsub.f32 %v14238_v7, %v14100_v11  ;;  %v14244_v53 = vpop.permute.xlu1 %926 }
 0x13c   : > { %12312 = vpow2.f32 %v3001_v48  ;;  %v14230_v0 = vpop.permute.xlu0 %949  ;;  %v12297_v19 = vpop.eup %12296  ;;  %v2464_v29 = vand.u32 2147483647, %v14227_v55  ;;  %1253 = vbcast.lane.b32.xlu0 %v13777_v18, 264  ;;  %v22059_v48 = vmax.f32 %v13959_v47, 0.0  ;;  %v3764_v33 = vmul.f32 0.6931472, %v12295_v26  ;;  %11659 = vmatpush3.bf16.msra.mxu0 %v4478_v14 }
 0x13d   : > { %v12299_v5 = vpop.eup %12298  ;;  %12314 = vpow2.f32 %v3015_v22  ;;  %v3005_v62 = vmul.f32 1.442695, %v2713_v45  ;;  %v22060_v15 = vmax.f32 %v13995_v31, 0.0  ;;  %v2208_v24 = vmax.f32 %v14227_v55, 0.0  ;;  %1230 = vbcast.lane.b32.xlu1 %v13721_v37, 256 }
 0x13e   : > { %v14249_v44 = vadd.f32 %v3760_v57, %v22059_v48  ;;  %v12301_v27 = vpop.eup %12300  ;;  %v3480_v11 = vadd.f32 1.0, %v12299_v5  ;;  %v2720_v51 = vsub.f32 0.0, %v2464_v29  ;;  %v3754_v42 = vmul.f32 0.6931472, %v12297_v19 }
 0x13f   : > { %v14253_v1 = vadd.f32 %v3750_v43, %v22060_v15  ;;  %v12303_v49 = vpop.eup %12302  ;;  %v3475_v16 = vadd.f32 1.0, %v12301_v27  ;;  %12316 = vpow2.f32 %v3005_v62  ;;  %v2459_v47 = vand.u32 2147483647, %v14242_v28  ;;  %11661 = vmatmul.mubr.msk.bf16.vlgmr.msra.gmra.mrb[8].mxu0 %vm21729_vm0, %v14030_v61  ;;  %v14264_v43 = vpop.permute.xlu1 %934 }
 0x140   : > { %v14258_v57 = vpop.permute.xlu0 %957  ;;  %12318 = vlog2.f32 %v3480_v11  ;;  %v3482_v14 = vadd.f32 1.0, %v12303_v49  ;;  %v3019_v26 = vmul.f32 1.442695, %v2720_v51  ;;  %v4479_v31 = vpack.c.bf16 %v14072_v2, %v14171_v50  ;;  %1261 = vbcast.lane.b32.xlu0 %v13777_v18, 280  ;;  %11676 = vmatprep.mubr.msk.bf16.mxu0 %vm21729_vm0, %v14064_v17 }
 0x141   : > { %v12305_v22 = vpop.eup %12304  ;;  %12320 = vlog2.f32 %v3475_v16  ;;  %v2715_v45 = vsub.f32 0.0, %v2459_v47  ;;  %v14269_v19 = vsub.f32 %v14180_v54, %v14118_v39  ;;  %v14273_v49 = vsub.f32 %v14193_v21, %v14126_v35  ;;  %1238 = vbcast.lane.b32.xlu1 %v13721_v37, 272 }
 0x142   : > { %v12307_v51 = vpop.eup %12306  ;;  %v22061_v2 = vmax.f32 %v13999_v34, 0.0  ;;  %12322 = vlog2.f32 %v3482_v14  ;;  %v3477_v15 = vadd.f32 1.0, %v12305_v22  ;;  %11664 = vmatprep.subr.bf16.mxu1 %v4479_v31  ;;  %v4480_v16 = vpack.c.bf16 %v14110_v40, %v4235_v6 }
 0x143   : > { %12324 = vpow2.f32 %v3019_v26  ;;  %v2203_v39 = vmax.f32 %v14242_v28, 0.0  ;;  %v3009_v5 = vmul.f32 1.442695, %v2715_v45  ;;  %11665 = vmatpush3.bf16.msra.mxu1 %v4479_v31  ;;  %v14285_v35 = vsub.f32 %v14157_v58, %v14146_v9  ;;  %v14295_v27 = vpop.permute.xlu1 %945 }
 0x144   : > { %v14279_v50 = vadd.f32 %v3764_v33, %v22061_v2  ;;  %v12309_v29 = vpop.eup %12308  ;;  %v14288_v34 = vpop.permute.xlu0 %968  ;;  %v22062_v33 = vmax.f32 %v14008_v41, 0.0  ;;  %v3768_v40 = vmul.f32 0.6931472, %v12307_v51  ;;  %12326 = vlog2.f32 %v3477_v15  ;;  %11666 = vmatprep.subr.bf16.mxu1 %v4480_v16  ;;  %1272 = vbcast.lane.b32.xlu0 %v13801_v3, 264 }
 0x145   : > { %v12311_v48 = vpop.eup %12310  ;;  %v2466_v6 = vand.u32 2147483647, %v14269_v19  ;;  %12328 = vpow2.f32 %v3009_v5  ;;  %v2461_v47 = vand.u32 2147483647, %v14273_v49  ;;  %v3758_v14 = vmul.f32 0.6931472, %v12309_v29 }
 0x146   : > { %v14292_v62 = vadd.f32 %v3754_v42, %v22062_v33  ;;  %v12313_v9 = vpop.eup %12312  ;;  %v3484_v11 = vadd.f32 1.0, %v12311_v48  ;;  %v2468_v45 = vand.u32 2147483647, %v14285_v35  ;;  %v14304_v51 = vsub.f32 %v14238_v7, %v14150_v23  ;;  %1249 = vbcast.lane.b32.xlu1 %v13777_v18, 256 }
 0x147   : > { %v3479_v41 = vadd.f32 1.0, %v12313_v9  ;;  %v2722_v42 = vsub.f32 0.0, %v2466_v6  ;;  %v12315_v31 = vpop.eup %12314  ;;  %v2717_v22 = vsub.f32 0.0, %v2461_v47  ;;  %11667 = vmatpush3.bf16.msra.mxu1 %v4480_v16  ;;  %v4481_v5 = vpack.c.bf16 %v14142_v63, %v14253_v1  ;;  %v14311_v48 = vpop.permute.xlu1 %953 }
 0x148   : > { %12330 = vlog2.f32 %v3484_v11  ;;  %v14307_v2 = vpop.permute.xlu0 %976  ;;  %v3486_v15 = vadd.f32 1.0, %v12315_v31  ;;  %1280 = vbcast.lane.b32.xlu0 %v13801_v3, 280  ;;  %v14316_v23 = vadd.f32 %v3768_v40, %v2198_v12  ;;  %v2724_v6 = vsub.f32 0.0, %v2468_v45 }
 0x149   : > { %12332 = vlog2.f32 %v3479_v41  ;;  %v3023_v29 = vmul.f32 1.442695, %v2722_v42  ;;  %v12317_v33 = vpop.eup %12316  ;;  %v3013_v16 = vmul.f32 1.442695, %v2717_v22  ;;  %v2463_v9 = vand.u32 2147483647, %v14304_v51  ;;  %11672 = vmatprep.subr.bf16.mxu0 %v4481_v5 }
 0x14a   : > { %v12319_v11 = vpop.eup %12318  ;;  %v22063_v47 = vmax.f32 %v14059_v8, 0.0  ;;  %12334 = vlog2.f32 %v3486_v15  ;;  %v3481_v42 = vadd.f32 1.0, %v12317_v33  ;;  %11669 = vmatmul.mubr.msk.bf16.vlgmr.msra.gmra.mrb[8].mxu1 %vm21729_vm0, %v14030_v61  ;;  %v14325_v63 = vsub.f32 %v14180_v54, %v14187_v32  ;;  %11673 = vmatpush3.bf16.msra.mxu0 %v4481_v5 }
 0x14b   : > { %v12321_v52 = vpop.eup %12320  ;;  %v3772_v12 = vmul.f32 0.6931472, %v12319_v11  ;;  %12336 = vpow2.f32 %v3023_v29  ;;  %v3027_v1 = vmul.f32 1.442695, %v2724_v6  ;;  %v2719_v40 = vsub.f32 0.0, %v2463_v9  ;;  %11684 = vmatprep.mubr.msk.bf16.mxu1 %vm21729_vm0, %v14064_v17  ;;  %1257 = vbcast.lane.b32.xlu1 %v13777_v18, 272  ;;  %v14338_v45 = vpop.permute.xlu1 %964 }
 0x14c   : > { %v4241_v41 = vadd.f32 %v3758_v14, %v22063_v47  ;;  %v14329_v8 = vpop.permute.xlu0 %987  ;;  %v12323_v14 = vpop.eup %12322  ;;  %12338 = vlog2.f32 %v3481_v42  ;;  %v2470_v22 = vand.u32 2147483647, %v14325_v63  ;;  %v14335_v32 = vsub.f32 %v14193_v21, %v14199_v56  ;;  %v22064_v6 = vld [vmem:[#allocation40_spill] sm:$0xff] }
 0x14d   : > { %v12325_v15 = vpop.eup %12324  ;;  %v3762_v29 = vmul.f32 0.6931472, %v12321_v52  ;;  %12340 = vpow2.f32 %v3013_v16  ;;  %v3017_v33 = vmul.f32 1.442695, %v2719_v40  ;;  %1291 = vbcast.lane.b32.xlu0 %v22064_v6, 264  ;;  %v22065_v56 = vmax.f32 %v14094_v20, 0.0 }
 0x14e   : > { %v12327_v9 = vpop.eup %12326  ;;  %v3776_v11 = vmul.f32 0.6931472, %v12323_v14  ;;  %v3488_v47 = vadd.f32 1.0, %v12325_v15  ;;  %12342 = vpow2.f32 %v3027_v1  ;;  %v2726_v42 = vsub.f32 0.0, %v2470_v22 }
 0x14f   : > { %v12329_v31 = vpop.eup %12328  ;;  %v14344_v26 = vadd.f32 %v3772_v12, %v22065_v56  ;;  %v3766_v18 = vmul.f32 0.6931472, %v12327_v9  ;;  %12344 = vpow2.f32 %v3017_v33  ;;  %v2214_v52 = vmax.f32 %v14325_v63, 0.0  ;;  %1268 = vbcast.lane.b32.xlu1 %v13801_v3, 256  ;;  %v14351_v1 = vpop.permute.xlu1 %972 }
 0x150   : > { %v14347_v16 = vpop.permute.xlu0 %995  ;;  %12346 = vlog2.f32 %v3488_v47  ;;  %v3483_v40 = vadd.f32 1.0, %v12329_v31  ;;  %v3031_v5 = vmul.f32 1.442695, %v2726_v42  ;;  %v2465_v37 = vand.u32 2147483647, %v14335_v32 }
 0x151   : > { %v22066_v20 = vmax.f32 %v14098_v30, 0.0  ;;  %v4482_v22 = vpack.c.bf16 %v14211_v36, %v14292_v62  ;;  %v14361_v15 = vsub.f32 %v14157_v58, %v14207_v38  ;;  %v14365_v31 = vsub.f32 %v14238_v7, %v14215_v46  ;;  %1299 = vbcast.lane.b32.xlu0 %v22064_v6, 280 }
 0x152   : > { %v12331_v14 = vpop.eup %12330  ;;  %v22067_v9 = vmax.f32 %v14106_v4, 0.0  ;;  %12348 = vlog2.f32 %v3483_v40  ;;  %v2721_v30 = vsub.f32 0.0, %v2465_v37  ;;  %v22068_v46 = vmax.f32 %v14134_v10, 0.0 }
 0x153   : > { %v14355_v12 = vadd.f32 %v3762_v29, %v22066_v20  ;;  %v12333_v33 = vpop.eup %12332  ;;  %v4483_v29 = vpack.c.bf16 %v14249_v44, %v4241_v41  ;;  %v3780_v36 = vmul.f32 0.6931472, %v12331_v14  ;;  %12350 = vpow2.f32 %v3031_v5  ;;  %11674 = vmatprep.subr.bf16.mxu0 %v4482_v22  ;;  %v14382_v44 = vpop.permute.xlu1 %983  ;;  %1276 = vbcast.lane.b32.xlu1 %v13801_v3, 272 }
 0x154   : > { %v14370_v47 = vadd.f32 %v3776_v11, %v22067_v9  ;;  %v3770_v62 = vmul.f32 0.6931472, %v12333_v33  ;;  %v2472_v38 = vand.u32 2147483647, %v14361_v15  ;;  %v12335_v42 = vpop.eup %12334  ;;  %v14376_v56 = vadd.f32 %v3766_v18, %v22068_v46  ;;  %11675 = vmatpush3.bf16.msra.mxu0 %v4482_v22  ;;  %v14380_v37 = vpop.permute.xlu0 %1006 }
 0x155   : > { %v2209_v20 = vmax.f32 %v14335_v32, 0.0  ;;  %v3021_v4 = vmul.f32 1.442695, %v2721_v30  ;;  %v2467_v11 = vand.u32 2147483647, %v14365_v31  ;;  %11680 = vmatprep.subr.bf16.mxu1 %v4483_v29  ;;  %v12337_v41 = vpop.eup %12336  ;;  %v14387_v10 = vsub.f32 %v14180_v54, %v14230_v0 }
 0x156   : > { %v3784_v5 = vmul.f32 0.6931472, %v12335_v42  ;;  %v2728_v14 = vsub.f32 0.0, %v2472_v38  ;;  %11681 = vmatpush3.bf16.msra.mxu1 %v4483_v29  ;;  %v12339_v18 = vpop.eup %12338  ;;  %v3490_v33 = vadd.f32 1.0, %v12337_v41  ;;  %v14392_v9 = vsub.f32 %v14193_v21, %v14244_v53 }
 0x157   : > { %12352 = vpow2.f32 %v3021_v4  ;;  %v2723_v22 = vsub.f32 0.0, %v2467_v11  ;;  %v12341_v30 = vpop.eup %12340  ;;  %v22069_v42 = vmax.f32 %v14161_v13, 0.0  ;;  %v22070_v38 = vmax.f32 %v14165_v25, 0.0  ;;  %11677 = vmatmul.mubr.msk.bf16.vlgmr.msra.gmra.mrb[12].mxu0 %vm21729_vm0, %v14030_v61  ;;  %v14410_v25 = vpop.permute.xlu1 %991  ;;  %1287 = vbcast.lane.b32.xlu1 %v22064_v6, 256 }
 0x158   : > { %v3035_v40 = vmul.f32 1.442695, %v2728_v14  ;;  %v2211_v29 = vmax.f32 %v14365_v31, 0.0  ;;  %v12343_v3 = vpop.eup %12342  ;;  %v22071_v4 = vmax.f32 %v14184_v60, 0.0  ;;  %12354 = vlog2.f32 %v3490_v33  ;;  %11692 = vmatprep.mubr.msk.bf16.mxu0 %vm21729_vm0, %v14064_v17 }
 0x159   : > { %v14396_v46 = vadd.f32 %v3780_v36, %v22069_v42  ;;  %v4247_v0 = vadd.f32 %v3770_v62, %v22070_v38  ;;  %v3485_v53 = vadd.f32 1.0, %v12341_v30  ;;  %v2474_v13 = vand.u32 2147483647, %v14387_v10  ;;  %v12345_v36 = vpop.eup %12344  ;;  %v14414_v30 = vpop.permute.xlu0 %1014 }
 0x15a   : > { %v14405_v11 = vadd.f32 %v3784_v5, %v22071_v4  ;;  %v3774_v62 = vmul.f32 0.6931472, %v12339_v18  ;;  %v3492_v41 = vadd.f32 1.0, %v12343_v3  ;;  %12356 = vpow2.f32 %v3035_v40  ;;  %v12347_v42 = vpop.eup %12346 }
 0x15b   : > { %v3025_v14 = vmul.f32 1.442695, %v2723_v22  ;;  %12358 = vlog2.f32 %v3485_v53  ;;  %v3487_v60 = vadd.f32 1.0, %v12345_v36  ;;  %v2730_v5 = vsub.f32 0.0, %v2474_v13  ;;  %v14426_v13 = vpop.permute.xlu1 %1002  ;;  %1295 = vbcast.lane.b32.xlu1 %v22064_v6, 272 }
 0x15c   : > { %v2469_v33 = vand.u32 2147483647, %v14392_v9  ;;  %v3788_v38 = vmul.f32 0.6931472, %v12347_v42  ;;  %12360 = vlog2.f32 %v3492_v41  ;;  %v4484_v4 = vpack.c.bf16 %v14279_v50, %v14355_v12  ;;  %v12349_v40 = vpop.eup %12348 }
 0x15d   : > { %v14420_v18 = vsub.f32 %v14157_v58, %v14258_v57  ;;  %12362 = vlog2.f32 %v3487_v60  ;;  %v3039_v22 = vmul.f32 1.442695, %v2730_v5  ;;  %v14424_v53 = vsub.f32 %v14238_v7, %v14264_v43  ;;  %v12351_v36 = vpop.eup %12350 }
 0x15e   : > { %v2725_v3 = vsub.f32 0.0, %v2469_v33  ;;  %v22072_v41 = vmax.f32 %v14197_v59, 0.0  ;;  %v3778_v50 = vmul.f32 0.6931472, %v12349_v40  ;;  %12364 = vpow2.f32 %v3025_v14  ;;  %11682 = vmatprep.subr.bf16.mxu1 %v4484_v4 }
 0x15f   : > { %v2218_v57 = vmax.f32 %v14387_v10, 0.0  ;;  %v3494_v12 = vadd.f32 1.0, %v12351_v36  ;;  %12366 = vpow2.f32 %v3039_v22  ;;  %v2476_v43 = vand.u32 2147483647, %v14420_v18  ;;  %11683 = vmatpush3.bf16.msra.mxu1 %v4484_v4 }
 0x160   : > { %v14430_v42 = vadd.f32 %v3774_v62, %v22072_v41  ;;  %v3029_v60 = vmul.f32 1.442695, %v2725_v3  ;;  %v14437_v5 = vadd.f32 %v3788_v38, %v2208_v24  ;;  %v2213_v59 = vmax.f32 %v14392_v9, 0.0  ;;  %v14451_v24 = vpop.permute.xlu0 %1025 }
 0x161   : > { %v2471_v62 = vand.u32 2147483647, %v14424_v53  ;;  %v4485_v14 = vpack.c.bf16 %v14316_v23, %v14376_v56  ;;  %v12353_v33 = vpop.eup %12352  ;;  %12368 = vlog2.f32 %v3494_v12  ;;  %v2732_v6 = vsub.f32 0.0, %v2476_v43  ;;  %v14456_v56 = vpop.permute.xlu1 %1010 }
 0x162   : > { %v14445_v40 = vsub.f32 %v14180_v54, %v14288_v34  ;;  %v14449_v4 = vsub.f32 %v14193_v21, %v14295_v27  ;;  %v3489_v55 = vadd.f32 1.0, %v12353_v33  ;;  %12370 = vpow2.f32 %v3029_v60  ;;  %11685 = vmatmul.mubr.msk.bf16.vlgmr.msra.gmra.mrb[12].mxu1 %vm21729_vm0, %v14030_v61  ;;  %v12355_v22 = vpop.eup %12354 }
 0x163   : > { %v2727_v38 = vsub.f32 0.0, %v2471_v62  ;;  %11688 = vmatprep.subr.bf16.mxu0 %v4485_v14  ;;  %v4486_v23 = vpack.c.bf16 %v14344_v26, %v4247_v0  ;;  %v4251_v34 = vadd.f32 %v3778_v50, %v2203_v39  ;;  %v3043_v3 = vmul.f32 1.442695, %v2732_v6  ;;  %11700 = vmatprep.mubr.msk.bf16.mxu1 %vm21729_vm0, %v14064_v17 }
 0x164   : > { %v2478_v36 = vand.u32 2147483647, %v14445_v40  ;;  %11689 = vmatpush3.bf16.msra.mxu0 %v4485_v14  ;;  %v12357_v41 = vpop.eup %12356  ;;  %v3792_v12 = vmul.f32 0.6931472, %v12355_v22  ;;  %12372 = vlog2.f32 %v3489_v55  ;;  %v2473_v26 = vand.u32 2147483647, %v14449_v4 }
 0x165   : > { %v3033_v60 = vmul.f32 1.442695, %v2727_v38  ;;  %11690 = vmatprep.subr.bf16.mxu0 %v4486_v23  ;;  %v12359_v0 = vpop.eup %12358  ;;  %v3496_v43 = vadd.f32 1.0, %v12357_v41  ;;  %12374 = vpow2.f32 %v3043_v3  ;;  %v14467_v39 = vsub.f32 %v14157_v58, %v14307_v2  ;;  %v14472_v3 = vpop.permute.xlu0 %1033 }
 0x166   : > { %v2734_v28 = vsub.f32 0.0, %v2478_v36  ;;  %v12361_v50 = vpop.eup %12360  ;;  %v2729_v33 = vsub.f32 0.0, %v2473_v26  ;;  %v3782_v55 = vmul.f32 0.6931472, %v12359_v0  ;;  %v22073_v2 = vmax.f32 %v14269_v19, 0.0  ;;  %v14479_v14 = vpop.permute.xlu1 %1021 }
 0x167   : > { %12376 = vpow2.f32 %v3033_v60  ;;  %v12363_v6 = vpop.eup %12362  ;;  %v3796_v27 = vmul.f32 0.6931472, %v12361_v50  ;;  %v2480_v60 = vand.u32 2147483647, %v14467_v39  ;;  %v22074_v50 = vmax.f32 %v14273_v49, 0.0 }
 0x168   : > { %12378 = vlog2.f32 %v3496_v43  ;;  %v3047_v38 = vmul.f32 1.442695, %v2734_v28  ;;  %11691 = vmatpush3.bf16.msra.mxu0 %v4486_v23  ;;  %v12365_v36 = vpop.eup %12364  ;;  %v14476_v41 = vadd.f32 %v3792_v12, %v22073_v2  ;;  %v3037_v62 = vmul.f32 1.442695, %v2729_v33 }
 0x169   : > { %v12367_v26 = vpop.eup %12366  ;;  %v3491_v0 = vadd.f32 1.0, %v12365_v36  ;;  %v2224_v43 = vmax.f32 %v14467_v39, 0.0  ;;  %v14484_v23 = vsub.f32 %v14238_v7, %v14311_v48  ;;  %v3786_v28 = vmul.f32 0.6931472, %v12363_v6  ;;  %v14683_v39 = vld [vmem:[%s21552_s0 + $0x8] sm:$0xff] }
 0x16a   : > { %12380 = vpow2.f32 %v3047_v38  ;;  %v3498_v22 = vadd.f32 1.0, %v12367_v26  ;;  %v2736_v19 = vsub.f32 0.0, %v2480_v60  ;;  %v4253_v33 = vadd.f32 %v3782_v55, %v22074_v50 }
 0x16b   : > { %12382 = vpow2.f32 %v3037_v62  ;;  %11693 = vmatmul.mubr.msk.bf16.vlgmr.msra.gmra.mrb[16].mxu0 %vm21729_vm0, %v14030_v61  ;;  %v12369_v12 = vpop.eup %12368  ;;  %v2475_v38 = vand.u32 2147483647, %v14484_v23  ;;  %v4487_v36 = vpack.c.bf16 %v14370_v47, %v14430_v42  ;;  %v14497_v61 = vsub.f32 %v14180_v54, %v14329_v8  ;;  %v14504_v42 = vpop.permute.xlu0 %1044 }
 0x16c   : > { %12384 = vlog2.f32 %v3491_v0  ;;  %11708 = vmatprep.mubr.msk.bf16.mxu0 %vm21729_vm0, %v14064_v17  ;;  %v12371_v48 = vpop.eup %12370  ;;  %v3800_v6 = vmul.f32 0.6931472, %v12369_v12  ;;  %v3051_v62 = vmul.f32 1.442695, %v2736_v19  ;;  %v14501_v55 = vsub.f32 %v14193_v21, %v14338_v45  ;;  %v14515_v12 = vpop.permute.xlu1 %1029 }
 0x16d   : > { %12386 = vlog2.f32 %v3498_v22  ;;  %v3493_v2 = vadd.f32 1.0, %v12371_v48  ;;  %v2731_v49 = vsub.f32 0.0, %v2475_v38  ;;  %11696 = vmatprep.subr.bf16.mxu1 %v4487_v36  ;;  %v4488_v47 = vpack.c.bf16 %v14396_v46, %v4251_v34 }
 0x16e   : > { %v12373_v60 = vpop.eup %12372  ;;  %v22075_v26 = vmax.f32 %v14285_v35, 0.0  ;;  %v22076_v0 = vmax.f32 %v14304_v51, 0.0  ;;  %12388 = vpow2.f32 %v3051_v62  ;;  %v2482_v19 = vand.u32 2147483647, %v14497_v61  ;;  %11697 = vmatpush3.bf16.msra.mxu1 %v4487_v36 }
 0x16f   : > { %v12375_v45 = vpop.eup %12374  ;;  %v3790_v50 = vmul.f32 0.6931472, %v12373_v60  ;;  %12390 = vlog2.f32 %v3493_v2  ;;  %v2219_v46 = vmax.f32 %v14484_v23, 0.0  ;;  %v3041_v34 = vmul.f32 1.442695, %v2731_v49  ;;  %11698 = vmatprep.subr.bf16.mxu1 %v4488_v47 }
 0x170   : > { %v14508_v22 = vadd.f32 %v3796_v27, %v22075_v26  ;;  %v14512_v8 = vadd.f32 %v3786_v28, %v22076_v0  ;;  %v3500_v27 = vadd.f32 1.0, %v12375_v45  ;;  %v2738_v38 = vsub.f32 0.0, %v2482_v19 }
 0x171   : > { %v12377_v35 = vpop.eup %12376  ;;  %v2477_v51 = vand.u32 2147483647, %v14501_v55  ;;  %v14521_v28 = vsub.f32 %v14157_v58, %v14347_v16  ;;  %v14525_v36 = vadd.f32 %v3800_v6, %v2214_v52  ;;  %12392 = vpow2.f32 %v3041_v34  ;;  %v14538_v6 = vpop.permute.xlu0 %1052 }
 0x172   : > { %v12379_v48 = vpop.eup %12378  ;;  %v3495_v62 = vadd.f32 1.0, %v12377_v35  ;;  %v14529_v2 = vsub.f32 %v14238_v7, %v14351_v1  ;;  %12394 = vlog2.f32 %v3500_v27  ;;  %v2226_v49 = vmax.f32 %v14497_v61, 0.0  ;;  %11699 = vmatpush3.bf16.msra.mxu1 %v4488_v47  ;;  %v14540_v35 = vpop.permute.xlu1 %1040 }
 0x173   : > { %v3055_v60 = vmul.f32 1.442695, %v2738_v38  ;;  %v2733_v26 = vsub.f32 0.0, %v2477_v51  ;;  %v14534_v16 = vadd.f32 %v3790_v50, %v2209_v20  ;;  %v2484_v52 = vand.u32 2147483647, %v14521_v28  ;;  %v14546_v20 = vld [vmem:[%s21558_s6 + $0x8] sm:$0xff]  }
 0x174   : > { %v12381_v0 = vpop.eup %12380  ;;  %12396 = vlog2.f32 %v3495_v62  ;;  %v3804_v19 = vmul.f32 0.6931472, %v12379_v48  ;;  %v2479_v32 = vand.u32 2147483647, %v14529_v2  ;;  %v4489_v50 = vpack.c.bf16 %v14405_v11, %v4253_v33 }
 0x175   : > { %v12383_v1 = vpop.eup %12382  ;;  %v3502_v45 = vadd.f32 1.0, %v12381_v0  ;;  %12398 = vpow2.f32 %v3055_v60  ;;  %v3045_v34 = vmul.f32 1.442695, %v2733_v26  ;;  %v2740_v38 = vsub.f32 0.0, %v2484_v52  ;;  %11701 = vmatmul.mubr.msk.bf16.vlgmr.msra.gmra.mrb[16].mxu1 %vm21729_vm0, %v14546_v20 }
 0x176   : > { %v12385_v47 = vpop.eup %12384  ;;  %v3497_v27 = vadd.f32 1.0, %v12383_v1  ;;  %v14553_v62 = vsub.f32 %v14180_v54, %v14380_v37  ;;  %v14557_v60 = vsub.f32 %v14193_v21, %v14382_v44  ;;  %11716 = vmatprep.mubr.msk.bf16.mxu1 %vm21729_vm0, %v14064_v17  ;;  %v2735_v11 = vsub.f32 0.0, %v2479_v32  ;;  %11704 = vmatprep.subr.bf16.mxu0 %v4489_v50  ;;  %v14571_v32 = vpop.permute.xlu0 %1063 }
 0x177   : > { %v12387_v51 = vpop.eup %12386  ;;  %v3794_v48 = vmul.f32 0.6931472, %v12385_v47  ;;  %12400 = vlog2.f32 %v3502_v45  ;;  %v3059_v0 = vmul.f32 1.442695, %v2740_v38  ;;  %v22077_v52 = vmax.f32 %v14361_v15, 0.0  ;;  %v14569_v45 = vld [vmem:[%s13375_s19 + $0x20] sm:$0xff]  ;;  %11705 = vmatpush3.bf16.msra.mxu0 %v4489_v50  ;;  %v14579_v37 = vpop.permute.xlu1 %1048 }
 0x178   : > { %12402 = vlog2.f32 %v3497_v27  ;;  %v12389_v33 = vpop.eup %12388  ;;  %v2486_v44 = vand.u32 2147483647, %v14553_v62  ;;  %v3808_v47 = vmul.f32 0.6931472, %v12387_v51  ;;  %v3049_v38 = vmul.f32 1.442695, %v2735_v11 }
 0x179   : > { %v14564_v1 = vadd.f32 %v3804_v19, %v22077_v52  ;;  %12404 = vpow2.f32 %v3045_v34  ;;  %v12391_v17 = vpop.eup %12390  ;;  %v3504_v27 = vadd.f32 1.0, %v12389_v33  ;;  %v14575_v15 = vadd.f32 %v3794_v48, %v2211_v29  ;;  %v22078_v50 = vld [vmem:[#allocation4_spill] sm:$0xff] }
 0x17a   : > { %12406 = vpow2.f32 %v3059_v0  ;;  %v2742_v34 = vsub.f32 0.0, %v2486_v44  ;;  %v2481_v52 = vand.u32 2147483647, %v14557_v60  ;;  %v1304_v51 = vrot.slane %v14569_v45, %v22078_v50 }
 0x17b   : > { %v12393_v26 = vpop.eup %12392  ;;  %12408 = vlog2.f32 %v3504_v27  ;;  %v4490_v0 = vpack.c.bf16 %v14437_v5, %v14512_v8  ;;  %v14587_v31 = vsub.f32 %v14157_v58, %v14414_v30  ;;  %v3798_v48 = vmul.f32 0.6931472, %v12391_v17 }
 0x17c   : > { %v12395_v29 = vpop.eup %12394  ;;  %v3499_v11 = vadd.f32 1.0, %v12393_v26  ;;  %12410 = vpow2.f32 %v3049_v38  ;;  %v3063_v33 = vmul.f32 1.442695, %v2742_v34  ;;  %v14591_v19 = vadd.f32 %v3808_v47, %v2218_v57  ;;  %1310 = vbcast.lane.b32.xlu0 %v1304_v51, 264  ;;  %1306 = vbcast.lane.b32.xlu1 %v1304_v51, 256  ;;  %v14601_v47 = vpop.permute.xlu0 %1071 }
 0x17d   : > { %v2225_v27 = vmax.f32 %v14557_v60, 0.0  ;;  %v2737_v63 = vsub.f32 0.0, %v2481_v52  ;;  %11706 = vmatprep.subr.bf16.mxu0 %v4490_v0  ;;  %v14596_v5 = vsub.f32 %v14238_v7, %v14410_v25  ;;  %v3812_v30 = vmul.f32 0.6931472, %v12395_v29 }
 0x17e   : > { %v12397_v44 = vpop.eup %12396  ;;  %12412 = vlog2.f32 %v3499_v11  ;;  %v2488_v8 = vand.u32 2147483647, %v14587_v31  ;;  %11707 = vmatpush3.bf16.msra.mxu0 %v4490_v0  ;;  %v4491_v10 = vpack.c.bf16 %v14476_v41, %v14534_v16  ;;  %v4261_v25 = vadd.f32 %v3798_v48, %v2213_v59  ;;  %v14607_v0 = vpop.permute.xlu1 %1059 }
 0x17f   : > { %v12399_v58 = vpop.eup %12398  ;;  %v3802_v57 = vmul.f32 0.6931472, %v12397_v44  ;;  %12414 = vpow2.f32 %v3063_v33  ;;  %v3053_v17 = vmul.f32 1.442695, %v2737_v63  ;;  %v2483_v29 = vand.u32 2147483647, %v14596_v5 }
 0x180   : > { %v3506_v26 = vadd.f32 1.0, %v12399_v58  ;;  %v2744_v52 = vsub.f32 0.0, %v2488_v8  ;;  %11712 = vmatprep.subr.bf16.mxu1 %v4491_v10  ;;  %1318 = vbcast.lane.b32.xlu0 %v1304_v51, 280  ;;  %v14613_v63 = vsub.f32 %v14180_v54, %v14451_v24  ;;  %v14617_v9 = vsub.f32 %v14193_v21, %v14426_v13 }
 0x181   : > { %v12401_v38 = vpop.eup %12400  ;;  %11709 = vmatmul.mubr.msk.bf16.vlgmr.msra.gmra.mrb[20].mxu0 %vm21729_vm0, %v14546_v20  ;;  %v22079_v48 = vmax.f32 %v14420_v18, 0.0  ;;  %v2739_v44 = vsub.f32 0.0, %v2483_v29  ;;  %11713 = vmatpush3.bf16.msra.mxu1 %v4491_v10  ;;  %v22080_v8 = vmax.f32 %v14424_v53, 0.0  ;;  %v14632_v18 = vld [vmem:[%s21558_s6] sm:$0xff]   ;;  %v22081_v10 = vmax.f32 %v14445_v40, 0.0 }
 0x182   : > { %v12403_v41 = vpop.eup %12402  ;;  %v3816_v16 = vmul.f32 0.6931472, %v12401_v38  ;;  %12416 = vlog2.f32 %v3506_v26  ;;  %v3067_v33 = vmul.f32 1.442695, %v2744_v52  ;;  %1314 = vbcast.lane.b32.xlu1 %v1304_v51, 272  ;;  %11724 = vmatprep.mubr.msk.bf16.mxu0 %vm21729_vm0, %v14632_v18  ;;  %v14641_v52 = vpop.permute.xlu0 %1082 }
 0x183   : > { %v12405_v59 = vpop.eup %12404  ;;  %v14621_v11 = vadd.f32 %v3812_v30, %v22079_v48  ;;  %12418 = vpow2.f32 %v3053_v17  ;;  %v14625_v26 = vadd.f32 %v3802_v57, %v22080_v8  ;;  %v2490_v21 = vand.u32 2147483647, %v14613_v63  ;;  %v22082_v48 = vld [vmem:[#allocation5_spill] sm:$0xff] }
 0x184   : > { %v12407_v58 = vpop.eup %12406  ;;  %v3501_v54 = vadd.f32 1.0, %v12405_v59  ;;  %v3806_v13 = vmul.f32 0.6931472, %v12403_v41  ;;  %12420 = vpow2.f32 %v3067_v33  ;;  %v3057_v30 = vmul.f32 1.442695, %v2739_v44  ;;  %v14647_v44 = vpop.permute.xlu1 %1067 }
 0x185   : > { %v3508_v51 = vadd.f32 1.0, %v12407_v58  ;;  %v12409_v53 = vpop.eup %12408  ;;  %v14638_v57 = vadd.f32 %v3816_v16, %v22081_v10  ;;  %v2746_v17 = vsub.f32 0.0, %v2490_v21  ;;  %v2485_v38 = vand.u32 2147483647, %v14617_v9 }
 0x186   : > { %12422 = vlog2.f32 %v3501_v54  ;;  %v12411_v29 = vpop.eup %12410  ;;  %v3820_v59 = vmul.f32 0.6931472, %v12409_v53  ;;  %v1323_v41 = vrot.slane %v14569_v45, %v22082_v48  ;;  %v4492_v33 = vpack.c.bf16 %v14508_v22, %v14575_v15 }
 0x187   : > { %12424 = vlog2.f32 %v3508_v51  ;;  %v3503_v40 = vadd.f32 1.0, %v12411_v29  ;;  %v3071_v16 = vmul.f32 1.442695, %v2746_v17  ;;  %v2741_v58 = vsub.f32 0.0, %v2485_v38  ;;  %v14657_v51 = vld [vmem:[%s21552_s0 + $0x18] sm:$0xff] }
 0x188   : > { %12426 = vpow2.f32 %v3057_v30  ;;  %v12413_v8 = vpop.eup %12412  ;;  %v22083_v54 = vmax.f32 %v14449_v4, 0.0  ;;  %1329 = vbcast.lane.b32.xlu0 %v1323_v41, 264  ;;  %11714 = vmatprep.subr.bf16.mxu1 %v4492_v33  ;;  %v14661_v22 = vsub.f32 %v14657_v51, %v14472_v3  ;;  %v14665_v15 = vsub.f32 %v14238_v7, %v14456_v56 }
 0x189   : > { %v12415_v4 = vpop.eup %12414  ;;  %12428 = vlog2.f32 %v3503_v40  ;;  %v3061_v30 = vmul.f32 1.442695, %v2741_v58  ;;  %11715 = vmatpush3.bf16.msra.mxu1 %v4492_v33  ;;  %v4493_v10 = vpack.c.bf16 %v14525_v36, %v4261_v25  ;;  %1325 = vbcast.lane.b32.xlu1 %v1323_v41, 256  ;;  %v3810_v17 = vmul.f32 0.6931472, %v12413_v8  ;;  %v14676_v33 = vpop.permute.xlu0 %1090  ;;  %v14694_v8 = vld [vmem:[%s21552_s0] sm:$0xff] }
 0x18a   : > { %v14651_v21 = vadd.f32 %v3806_v13, %v22083_v54  ;;  %v3510_v38 = vadd.f32 1.0, %v12415_v4  ;;  %12430 = vpow2.f32 %v3071_v16  ;;  %v2492_v29 = vand.u32 2147483647, %v14661_v22 }
 0x18b   : > { %v14672_v54 = vadd.f32 %v3820_v59, %v2224_v43  ;;  %12432 = vpow2.f32 %v3061_v30  ;;  %v2487_v56 = vand.u32 2147483647, %v14665_v15  ;;  %11720 = vmatprep.subr.bf16.mxu0 %v4493_v10  ;;  %v14687_v43 = vsub.f32 %v14683_v39, %v14504_v42  ;;  %v14689_v59 = vpop.permute.xlu1 %1078  ;;  %v22084_v30 = vld [vmem:[#allocation6_spill] sm:$0xff] }
 0x18c   : > { %v12417_v3 = vpop.eup %12416  ;;  %12434 = vlog2.f32 %v3510_v38  ;;  %v2748_v40 = vsub.f32 0.0, %v2492_v29  ;;  %1337 = vbcast.lane.b32.xlu0 %v1323_v41, 280  ;;  %11717 = vmatmul.mubr.msk.bf16.vlgmr.msra.gmra.mrb[20].mxu1 %vm21729_vm0, %v14546_v20  ;;  %v14698_v4 = vsub.f32 %v14694_v8, %v14479_v14  ;;  %v1342_v38 = vrot.slane %v14569_v45, %v22084_v30 }
 0x18d   : > { %v12419_v36 = vpop.eup %12418  ;;  %v3824_v25 = vmul.f32 0.6931472, %v12417_v3  ;;  %v2743_v58 = vsub.f32 0.0, %v2487_v56  ;;  %11721 = vmatpush3.bf16.msra.mxu0 %v4493_v10  ;;  %1333 = vbcast.lane.b32.xlu1 %v1323_v41, 272  ;;  %v14704_v29 = vadd.f32 %v3810_v17, %v2219_v46  ;;  %v4494_v53 = vpack.c.bf16 %v14564_v1, %v14625_v26 }
 0x18e   : > { %v3505_v16 = vadd.f32 1.0, %v12419_v36  ;;  %v12421_v42 = vpop.eup %12420  ;;  %v3075_v3 = vmul.f32 1.442695, %v2748_v40  ;;  %v2494_v36 = vand.u32 2147483647, %v14687_v43  ;;  %11732 = vmatprep.mubr.msk.bf16.mxu1 %vm21729_vm0, %v14632_v18  ;;  %v14720_v61 = vsub.f32 %v14657_v51, %v14538_v6 }
 0x18f   : > { %v14712_v7 = vadd.f32 %v3824_v25, %v2226_v49  ;;  %v3512_v41 = vadd.f32 1.0, %v12421_v42  ;;  %v3065_v10 = vmul.f32 1.442695, %v2743_v58  ;;  %v2489_v17 = vand.u32 2147483647, %v14698_v4  ;;  %v14722_v49 = vpop.permute.xlu0 %1101  ;;  %v14724_v42 = vpop.permute.xlu1 %1086  ;;  %11722 = vmatprep.subr.bf16.mxu0 %v4494_v53 }
 0x190   : > { %v12423_v14 = vpop.eup %12422  ;;  %12436 = vlog2.f32 %v3505_v16  ;;  %v2750_v46 = vsub.f32 0.0, %v2494_v36  ;;  %1348 = vbcast.lane.b32.xlu0 %v1342_v38, 264  ;;  %v22085_v36 = vmax.f32 %v14501_v55, 0.0  ;;  %v2496_v6 = vand.u32 2147483647, %v14720_v61 }
 0x191   : > { %v12425_v13 = vpop.eup %12424  ;;  %v3814_v23 = vmul.f32 0.6931472, %v12423_v14  ;;  %12438 = vpow2.f32 %v3075_v3  ;;  %1344 = vbcast.lane.b32.xlu1 %v1342_v38, 256  ;;  %v2745_v26 = vsub.f32 0.0, %v2489_v17  ;;  %11723 = vmatpush3.bf16.msra.mxu0 %v4494_v53  ;;  %v4495_v55 = vpack.c.bf16 %v14591_v19, %v14651_v21 }
 0x192   : > { %v12427_v40 = vpop.eup %12426  ;;  %12440 = vlog2.f32 %v3512_v41  ;;  %v3828_v25 = vmul.f32 0.6931472, %v12425_v13  ;;  %v3079_v58 = vmul.f32 1.442695, %v2750_v46  ;;  %v14735_v13 = vld [vmem:[%s21552_s0 + $0x10] sm:$0xff]  ;;  %v14753_v21 = vsub.f32 %v14683_v39, %v14571_v32 }
 0x193   : > { %v3507_v16 = vadd.f32 1.0, %v12427_v40  ;;  %12442 = vpow2.f32 %v3065_v10  ;;  %v12429_v3 = vpop.eup %12428  ;;  %v14728_v14 = vadd.f32 %v3814_v23, %v22085_v36  ;;  %v14739_v10 = vsub.f32 %v14735_v13, %v14515_v12  ;;  %11728 = vmatprep.subr.bf16.mxu1 %v4495_v55 }
 0x194   : > { %v12431_v41 = vpop.eup %12430  ;;  %v3818_v56 = vmul.f32 0.6931472, %v12429_v3  ;;  %1356 = vbcast.lane.b32.xlu0 %v1342_v38, 280  ;;  %v3069_v17 = vmul.f32 1.442695, %v2745_v26  ;;  %v2752_v40 = vsub.f32 0.0, %v2496_v6  ;;  %11725 = vmatmul.mubr.msk.bf16.vlgmr.msra.gmra.mrb[24].mxu0 %vm21729_vm0, %v14546_v20  ;;  %v14765_v6 = vpop.permute.xlu1 %1097 }
 0x195   : > { %12444 = vlog2.f32 %v3507_v16  ;;  %v12433_v23 = vpop.eup %12432  ;;  %v3514_v46 = vadd.f32 1.0, %v12431_v41  ;;  %1352 = vbcast.lane.b32.xlu1 %v1342_v38, 272  ;;  %v22086_v3 = vmax.f32 %v14521_v28, 0.0  ;;  %v2491_v24 = vand.u32 2147483647, %v14739_v10  ;;  %11729 = vmatpush3.bf16.msra.mxu1 %v4495_v55  ;;  %v14755_v28 = vpop.permute.xlu0 %1109 }
 0x196   : > { %12446 = vpow2.f32 %v3079_v58  ;;  %v12435_v16 = vpop.eup %12434  ;;  %v3509_v1 = vadd.f32 1.0, %v12433_v23  ;;  %v3083_v19 = vmul.f32 1.442695, %v2752_v40  ;;  %v22087_v58 = vld [vmem:[#allocation7_spill] sm:$0xff]  ;;  %11740 = vmatprep.mubr.msk.bf16.mxu0 %vm21729_vm0, %v14632_v18  ;;  %v22088_v32 = vmax.f32 %v14529_v2, 0.0 }
 0x197   : > { %v14745_v36 = vadd.f32 %v3828_v25, %v22086_v3  ;;  %v3832_v53 = vmul.f32 0.6931472, %v12435_v16  ;;  %12448 = vlog2.f32 %v3514_v46  ;;  %v2747_v38 = vsub.f32 0.0, %v2491_v24 }
 0x198   : > { %12450 = vlog2.f32 %v3509_v1  ;;  %v14759_v25 = vsub.f32 %v14694_v8, %v14540_v35  ;;  %v1361_v26 = vrot.slane %v14569_v45, %v22087_v58  ;;  %v14769_v55 = vadd.f32 %v3818_v56, %v22088_v32 }
 0x199   : > { %12452 = vpow2.f32 %v3069_v17  ;;  %v2498_v1 = vand.u32 2147483647, %v14753_v21  ;;  %v22089_v23 = vmax.f32 %v14553_v62, 0.0  ;;  %v3073_v16 = vmul.f32 1.442695, %v2747_v38 }
 0x19a   : > { %v12437_v41 = vpop.eup %12436  ;;  %12454 = vpow2.f32 %v3083_v19  ;;  %1367 = vbcast.lane.b32.xlu0 %v1361_v26, 264  ;;  %v2493_v2 = vand.u32 2147483647, %v14759_v25  ;;  %v4496_v56 = vpack.c.bf16 %v14621_v11, %v14704_v29  ;;  %1363 = vbcast.lane.b32.xlu1 %v1361_v26, 256  ;;  %v4497_v60 = vpack.c.bf16 %v14638_v57, %v14728_v14 }
 0x19b   : > { %v12439_v35 = vpop.eup %12438  ;;  %v14775_v46 = vadd.f32 %v3832_v53, %v22089_v23  ;;  %v3822_v40 = vmul.f32 0.6931472, %v12437_v41  ;;  %v2754_v34 = vsub.f32 0.0, %v2498_v1  ;;  %12456 = vpow2.f32 %v3073_v16  ;;  %v14785_v1 = vpop.permute.xlu0 %1120 }
 0x19c   : > { %v12441_v3 = vpop.eup %12440  ;;  %v3516_v12 = vadd.f32 1.0, %v12439_v35  ;;  %v14783_v53 = vsub.f32 %v14657_v51, %v14601_v47  ;;  %v2749_v41 = vsub.f32 0.0, %v2493_v2  ;;  %11730 = vmatprep.subr.bf16.mxu1 %v4496_v56  ;;  %v14795_v47 = vsub.f32 %v14735_v13, %v14579_v37  ;;  %11736 = vmatprep.subr.bf16.mxu0 %v4497_v60 }
 0x19d   : > { %v12443_v17 = vpop.eup %12442  ;;  %v3836_v32 = vmul.f32 0.6931472, %v12441_v3  ;;  %v3087_v38 = vmul.f32 1.442695, %v2754_v34  ;;  %v14789_v11 = vadd.f32 %v3822_v40, %v2225_v27  ;;  %11731 = vmatpush3.bf16.msra.mxu1 %v4496_v56  ;;  %v14797_v34 = vpop.permute.xlu1 %1105  ;;  %v22090_v27 = vmax.f32 %v14587_v31, 0.0  ;;  %11737 = vmatpush3.bf16.msra.mxu0 %v4497_v60  ;;  %v22093_v56 = vld [vmem:[#allocation8_spill] sm:$0xff] }
 0x19e   : > { %12458 = vlog2.f32 %v3516_v12  ;;  %v3511_v19 = vadd.f32 1.0, %v12443_v17  ;;  %v2500_v23 = vand.u32 2147483647, %v14783_v53  ;;  %1375 = vbcast.lane.b32.xlu0 %v1361_v26, 280  ;;  %v3077_v3 = vmul.f32 1.442695, %v2749_v41 }
 0x19f   : > { %v12445_v35 = vpop.eup %12444  ;;  %1371 = vbcast.lane.b32.xlu1 %v1361_v26, 272  ;;  %v14803_v40 = vadd.f32 %v3836_v32, %v22090_v27  ;;  %v2495_v29 = vand.u32 2147483647, %v14795_v47  ;;  %v14811_v57 = vsub.f32 %v14683_v39, %v14641_v52  ;;  %v14815_v32 = vsub.f32 %v14694_v8, %v14607_v0 }
 0x1a0   : > { %v12447_v12 = vpop.eup %12446  ;;  %v3826_v16 = vmul.f32 0.6931472, %v12445_v35  ;;  %12460 = vlog2.f32 %v3511_v19  ;;  %v2756_v37 = vsub.f32 0.0, %v2500_v23  ;;  %11733 = vmatmul.mubr.msk.bf16.vlgmr.msra.gmra.mrb[24].mxu1 %vm21729_vm0, %v14546_v20 }
 0x1a1   : > { %v3518_v2 = vadd.f32 1.0, %v12447_v12  ;;  %12462 = vpow2.f32 %v3087_v38  ;;  %v12449_v17 = vpop.eup %12448  ;;  %11748 = vmatprep.mubr.msk.bf16.mxu1 %vm21729_vm0, %v14632_v18  ;;  %v22091_v38 = vmax.f32 %v14596_v5, 0.0  ;;  %v2751_v35 = vsub.f32 0.0, %v2495_v29  ;;  %v14825_v12 = vpop.permute.xlu0 %1128 }
 0x1a2   : > { %12464 = vpow2.f32 %v3077_v3  ;;  %v12451_v31 = vpop.eup %12450  ;;  %v3840_v14 = vmul.f32 0.6931472, %v12449_v17  ;;  %v3091_v26 = vmul.f32 1.442695, %v2756_v37  ;;  %v2502_v23 = vand.u32 2147483647, %v14811_v57 }
 0x1a3   : > { %12466 = vlog2.f32 %v3518_v2  ;;  %v12453_v19 = vpop.eup %12452  ;;  %v14821_v41 = vadd.f32 %v3826_v16, %v22091_v38  ;;  %v3830_v27 = vmul.f32 0.6931472, %v12451_v31  ;;  %v14828_v2 = vpop.permute.xlu1 %1116  ;;  %v22092_v37 = vmax.f32 %v14613_v63, 0.0 }
 0x1a4   : > { %v12455_v3 = vpop.eup %12454  ;;  %v3513_v0 = vadd.f32 1.0, %v12453_v19  ;;  %12468 = vpow2.f32 %v3091_v26  ;;  %v3081_v17 = vmul.f32 1.442695, %v2751_v35  ;;  %v2758_v38 = vsub.f32 0.0, %v2502_v23 }
 0x1a5   : > { %v14832_v5 = vadd.f32 %v3840_v14, %v22092_v37  ;;  %v3520_v16 = vadd.f32 1.0, %v12455_v3  ;;  %v12457_v29 = vpop.eup %12456  ;;  %v2497_v52 = vand.u32 2147483647, %v14815_v32  ;;  %v1380_v31 = vrot.slane %v14569_v45, %v22093_v56 }
 0x1a6   : > { %12470 = vlog2.f32 %v3513_v0  ;;  %v4498_v26 = vpack.c.bf16 %v14672_v54, %v14769_v55  ;;  %v3515_v60 = vadd.f32 1.0, %v12457_v29  ;;  %v3095_v62 = vmul.f32 1.442695, %v2758_v38  ;;  %v14851_v0 = vpop.permute.xlu0 %1139 }
 0x1a7   : > { %12472 = vlog2.f32 %v3520_v16  ;;  %v14841_v63 = vsub.f32 %v14657_v51, %v14676_v33  ;;  %v2753_v35 = vsub.f32 0.0, %v2497_v52  ;;  %1386 = vbcast.lane.b32.xlu0 %v1380_v31, 264  ;;  %v14845_v23 = vsub.f32 %v14735_v13, %v14647_v44  ;;  %1382 = vbcast.lane.b32.xlu1 %v1380_v31, 256 }
 0x1a8   : > { %v12459_v19 = vpop.eup %12458  ;;  %12474 = vpow2.f32 %v3081_v17  ;;  %11738 = vmatprep.subr.bf16.mxu0 %v4498_v26  ;;  %v4499_v33 = vpack.c.bf16 %v14712_v7, %v14789_v11  ;;  %v22094_v37 = vmax.f32 %v14617_v9, 0.0  ;;  %v22095_v54 = vmax.f32 %v14661_v22, 0.0 }
 0x1a9   : > { %v3844_v14 = vmul.f32 0.6931472, %v12459_v19  ;;  %12476 = vlog2.f32 %v3515_v60  ;;  %v2504_v55 = vand.u32 2147483647, %v14841_v63  ;;  %11739 = vmatpush3.bf16.msra.mxu0 %v4498_v26  ;;  %v3085_v17 = vmul.f32 1.442695, %v2753_v35  ;;  %v14857_v60 = vpop.permute.xlu1 %1124 }
 0x1aa   : > { %v12461_v3 = vpop.eup %12460  ;;  %v14855_v16 = vadd.f32 %v3830_v27, %v22094_v37  ;;  %12478 = vpow2.f32 %v3095_v62  ;;  %v2499_v7 = vand.u32 2147483647, %v14845_v23  ;;  %11744 = vmatprep.subr.bf16.mxu1 %v4499_v33  ;;  %v14869_v62 = vsub.f32 %v14683_v39, %v14722_v49 }
 0x1ab   : > { %v12463_v52 = vpop.eup %12462  ;;  %v3834_v44 = vmul.f32 0.6931472, %v12461_v3  ;;  %v2760_v19 = vsub.f32 0.0, %v2504_v55  ;;  %v14863_v24 = vadd.f32 %v3844_v14, %v22095_v54  ;;  %12480 = vpow2.f32 %v3085_v17  ;;  %1394 = vbcast.lane.b32.xlu0 %v1380_v31, 280  ;;  %11745 = vmatpush3.bf16.msra.mxu1 %v4499_v33 }
 0x1ac   : > { %v12465_v38 = vpop.eup %12464  ;;  %v3522_v29 = vadd.f32 1.0, %v12463_v52  ;;  %11741 = vmatmul.mubr.msk.bf16.vlgmr.msra.gmra.mrb[28].mxu0 %vm21729_vm0, %v14546_v20  ;;  %v2755_v3 = vsub.f32 0.0, %v2499_v7  ;;  %1390 = vbcast.lane.b32.xlu1 %v1380_v31, 272  ;;  %v22096_v14 = vmax.f32 %v14665_v15, 0.0  ;;  %v2506_v55 = vand.u32 2147483647, %v14869_v62  ;;  %v14883_v31 = vpop.permute.xlu0 %1147 }
 0x1ad   : > { %v12467_v11 = vpop.eup %12466  ;;  %v3517_v9 = vadd.f32 1.0, %v12465_v38  ;;  %v3099_v27 = vmul.f32 1.442695, %v2760_v19  ;;  %v14879_v52 = vsub.f32 %v14694_v8, %v14689_v59  ;;  %11756 = vmatprep.mubr.msk.bf16.mxu0 %vm21729_vm0, %v14632_v18  ;;  %v14889_v59 = vpop.permute.xlu1 %1135  ;;  %v22098_v35 = vmax.f32 %v14687_v43, 0.0 }
 0x1ae   : > { %12482 = vlog2.f32 %v3522_v29  ;;  %v12469_v22 = vpop.eup %12468  ;;  %v14874_v54 = vadd.f32 %v3834_v44, %v22096_v14  ;;  %v3848_v49 = vmul.f32 0.6931472, %v12467_v11  ;;  %v3089_v33 = vmul.f32 1.442695, %v2755_v3  ;;  %v22097_v29 = vld [vmem:[#allocation9_spill] sm:$0xff] }
 0x1af   : > { %12484 = vlog2.f32 %v3517_v9  ;;  %v3524_v37 = vadd.f32 1.0, %v12469_v22  ;;  %v2762_v44 = vsub.f32 0.0, %v2506_v55  ;;  %v2501_v38 = vand.u32 2147483647, %v14879_v52 }
 0x1b0   : > { %12486 = vpow2.f32 %v3099_v27  ;;  %v12471_v17 = vpop.eup %12470  ;;  %v1399_v19 = vrot.slane %v14569_v45, %v22097_v29  ;;  %v4500_v11 = vpack.c.bf16 %v14745_v36, %v14821_v41  ;;  %v14895_v27 = vsub.f32 %v14657_v51, %v14755_v28 }
 0x1b1   : > { %v12473_v7 = vpop.eup %12472  ;;  %v3838_v9 = vmul.f32 0.6931472, %v12471_v17  ;;  %12488 = vlog2.f32 %v3524_v37  ;;  %v3103_v22 = vmul.f32 1.442695, %v2762_v44  ;;  %v2757_v55 = vsub.f32 0.0, %v2501_v38 }
 0x1b2   : > { %v12475_v3 = vpop.eup %12474  ;;  %12490 = vpow2.f32 %v3089_v33  ;;  %1405 = vbcast.lane.b32.xlu0 %v1399_v19, 264  ;;  %v14900_v26 = vadd.f32 %v3848_v49, %v22098_v35  ;;  %v3852_v37 = vmul.f32 0.6931472, %v12473_v7  ;;  %11746 = vmatprep.subr.bf16.mxu1 %v4500_v11  ;;  %v2508_v36 = vand.u32 2147483647, %v14895_v27  ;;  %v14911_v49 = vpop.permute.xlu0 %1158 }
 0x1b3   : > { %v12477_v15 = vpop.eup %12476  ;;  %v3519_v17 = vadd.f32 1.0, %v12475_v3  ;;  %1401 = vbcast.lane.b32.xlu1 %v1399_v19, 256  ;;  %v22099_v41 = vmax.f32 %v14698_v4, 0.0  ;;  %12492 = vpow2.f32 %v3103_v22  ;;  %v3093_v38 = vmul.f32 1.442695, %v2757_v55  ;;  %11747 = vmatpush3.bf16.msra.mxu1 %v4500_v11 }
 0x1b4   : > { %v12479_v28 = vpop.eup %12478  ;;  %v3842_v44 = vmul.f32 0.6931472, %v12477_v15  ;;  %v2764_v43 = vsub.f32 0.0, %v2508_v36  ;;  %v14909_v35 = vsub.f32 %v14735_v13, %v14724_v42  ;;  %v4501_v4 = vpack.c.bf16 %v14775_v46, %v14855_v16 }
 0x1b5   : > { %v14905_v33 = vadd.f32 %v3838_v9, %v22099_v41  ;;  %12494 = vlog2.f32 %v3519_v17  ;;  %v3526_v14 = vadd.f32 1.0, %v12479_v28  ;;  %v12481_v7 = vpop.eup %12480  ;;  %v14918_v15 = vsub.f32 %v14683_v39, %v14785_v1  ;;  %v14920_v9 = vpop.permute.xlu1 %1143 }
 0x1b6   : > { %12496 = vpow2.f32 %v3093_v38  ;;  %1413 = vbcast.lane.b32.xlu0 %v1399_v19, 280  ;;  %v22100_v42 = vmax.f32 %v14720_v61, 0.0  ;;  %v3521_v55 = vadd.f32 1.0, %v12481_v7  ;;  %v3107_v17 = vmul.f32 1.442695, %v2764_v43  ;;  %11749 = vmatmul.mubr.msk.bf16.vlgmr.msra.gmra.mrb[28].mxu1 %vm21729_vm0, %v14546_v20 }
 0x1b7   : > { %12498 = vlog2.f32 %v3526_v14  ;;  %1409 = vbcast.lane.b32.xlu1 %v1399_v19, 272  ;;  %v22101_v46 = vmax.f32 %v14739_v10, 0.0  ;;  %v2503_v28 = vand.u32 2147483647, %v14909_v35  ;;  %11752 = vmatprep.subr.bf16.mxu0 %v4501_v4  ;;  %v14935_v61 = vsub.f32 %v14694_v8, %v14765_v6  ;;  %v22102_v10 = vld [vmem:[#allocation10_spill] sm:$0xff]  ;;  %v14949_v19 = vpop.permute.xlu0 %1166 }
 0x1b8   : > { %v12483_v11 = vpop.eup %12482  ;;  %v14924_v22 = vadd.f32 %v3852_v37, %v22100_v42  ;;  %11764 = vmatprep.mubr.msk.bf16.mxu1 %vm21729_vm0, %v14632_v18  ;;  %12500 = vlog2.f32 %v3521_v55  ;;  %v2510_v37 = vand.u32 2147483647, %v14918_v15  ;;  %v1418_v41 = vrot.slane %v14569_v45, %v22102_v10  ;;  %11753 = vmatpush3.bf16.msra.mxu0 %v4501_v4 }
 0x1b9   : > { %v12485_v36 = vpop.eup %12484  ;;  %v14930_v16 = vadd.f32 %v3842_v44, %v22101_v46  ;;  %v3856_v1 = vmul.f32 0.6931472, %v12483_v11  ;;  %12502 = vpow2.f32 %v3107_v17  ;;  %v2759_v43 = vsub.f32 0.0, %v2503_v28  ;;  %v14953_v28 = vpop.permute.xlu1 %1154 }
 0x1ba   : > { %v12487_v14 = vpop.eup %12486  ;;  %v3846_v44 = vmul.f32 0.6931472, %v12485_v36  ;;  %v22103_v6 = vmax.f32 %v14753_v21, 0.0  ;;  %v2766_v55 = vsub.f32 0.0, %v2510_v37  ;;  %v2505_v46 = vand.u32 2147483647, %v14935_v61 }
 0x1bb   : > { %v3528_v38 = vadd.f32 1.0, %v12487_v14  ;;  %v12489_v7 = vpop.eup %12488  ;;  %1424 = vbcast.lane.b32.xlu0 %v1418_v41, 264  ;;  %1420 = vbcast.lane.b32.xlu1 %v1418_v41, 256  ;;  %v3097_v36 = vmul.f32 1.442695, %v2759_v43  ;;  %v4502_v17 = vpack.c.bf16 %v14803_v40, %v14874_v54  ;;  %v14957_v37 = vsub.f32 %v14657_v51, %v14825_v12 }
 0x1bc   : > { %v14945_v11 = vadd.f32 %v3856_v1, %v22103_v6  ;;  %v12491_v3 = vpop.eup %12490  ;;  %v3860_v4 = vmul.f32 0.6931472, %v12489_v7  ;;  %v3111_v1 = vmul.f32 1.442695, %v2766_v55  ;;  %v2761_v14 = vsub.f32 0.0, %v2505_v46 }
 0x1bd   : > { %12504 = vlog2.f32 %v3528_v38  ;;  %v3523_v21 = vadd.f32 1.0, %v12491_v3  ;;  %v12493_v6 = vpop.eup %12492  ;;  %v22104_v42 = vmax.f32 %v14759_v25, 0.0  ;;  %11754 = vmatprep.subr.bf16.mxu0 %v4502_v17  ;;  %v14965_v38 = vsub.f32 %v14735_v13, %v14797_v34 }
 0x1be   : > { %12506 = vpow2.f32 %v3097_v36  ;;  %v4503_v40 = vpack.c.bf16 %v14832_v5, %v14905_v33  ;;  %v3530_v3 = vadd.f32 1.0, %v12493_v6  ;;  %v2249_v12 = vmax.f32 %v14935_v61, 0.0  ;;  %11755 = vmatpush3.bf16.msra.mxu0 %v4502_v17  ;;  %v14980_v36 = vpop.permute.xlu0 %1177 }
 0x1bf   : > { %v14961_v10 = vadd.f32 %v3846_v44, %v22104_v42  ;;  %v12495_v54 = vpop.eup %12494  ;;  %12508 = vlog2.f32 %v3523_v21  ;;  %v3101_v43 = vmul.f32 1.442695, %v2761_v14  ;;  %1432 = vbcast.lane.b32.xlu0 %v1418_v41, 280  ;;  %v22105_v44 = vmax.f32 %v14783_v53, 0.0  ;;  %1428 = vbcast.lane.b32.xlu1 %v1418_v41, 272  ;;  %v14985_v41 = vpop.permute.xlu1 %1162 }
 0x1c0   : > { %v12497_v25 = vpop.eup %12496  ;;  %v3850_v42 = vmul.f32 0.6931472, %v12495_v54  ;;  %12510 = vpow2.f32 %v3111_v1  ;;  %v2512_v34 = vand.u32 2147483647, %v14957_v37  ;;  %11760 = vmatprep.subr.bf16.mxu1 %v4503_v40  ;;  %v2507_v55 = vand.u32 2147483647, %v14965_v38 }
 0x1c1   : > { %v14972_v7 = vadd.f32 %v3860_v4, %v22105_v44  ;;  %v12499_v5 = vpop.eup %12498  ;;  %12512 = vlog2.f32 %v3530_v3  ;;  %v3525_v33 = vadd.f32 1.0, %v12497_v25  ;;  %v14978_v46 = vsub.f32 %v14683_v39, %v14851_v0  ;;  %11761 = vmatpush3.bf16.msra.mxu1 %v4503_v40  ;;  %11757 = vmatmul.mubr.msk.bf16.vlgmr.msra.gmra.mrb[32].mxu0 %vm21729_vm0, %v14546_v20 }
 0x1c2   : > { %v3864_v53 = vmul.f32 0.6931472, %v12499_v5  ;;  %12514 = vpow2.f32 %v3101_v43  ;;  %v2768_v17 = vsub.f32 0.0, %v2512_v34  ;;  %v12501_v21 = vpop.eup %12500  ;;  %v2763_v14 = vsub.f32 0.0, %v2507_v55  ;;  %11772 = vmatprep.mubr.msk.bf16.mxu0 %vm21729_vm0, %v14632_v18  ;;  %v22107_v5 = vld [vmem:[#allocation11_spill] sm:$0xff] }
 0x1c3   : > { %12516 = vlog2.f32 %v3525_v33  ;;  %v2514_v0 = vand.u32 2147483647, %v14978_v46  ;;  %v12503_v6 = vpop.eup %12502  ;;  %v22106_v40 = vmax.f32 %v14795_v47, 0.0  ;;  %v3854_v3 = vmul.f32 0.6931472, %v12501_v21 }
 0x1c4   : > { %v3115_v43 = vmul.f32 1.442695, %v2768_v17  ;;  %v14997_v20 = vsub.f32 %v14694_v8, %v14828_v2  ;;  %v3532_v25 = vadd.f32 1.0, %v12503_v6  ;;  %v3105_v44 = vmul.f32 1.442695, %v2763_v14  ;;  %v15009_v14 = vpop.permute.xlu0 %1185 }
 0x1c5   : > { %v14993_v54 = vadd.f32 %v3850_v42, %v22106_v40  ;;  %v2770_v34 = vsub.f32 0.0, %v2514_v0  ;;  %v1437_v33 = vrot.slane %v14569_v45, %v22107_v5  ;;  %v22108_v1 = vmax.f32 %v14811_v57, 0.0  ;;  %v15019_v0 = vpop.permute.xlu1 %1173 }
 0x1c6   : > { %12518 = vpow2.f32 %v3115_v43  ;;  %v2258_v47 = vmax.f32 %v14978_v46, 0.0  ;;  %v2509_v42 = vand.u32 2147483647, %v14997_v20  ;;  %v4504_v21 = vpack.c.bf16 %v14863_v24, %v14930_v16 }
 0x1c7   : > { %v12505_v55 = vpop.eup %12504  ;;  %v15003_v4 = vadd.f32 %v3864_v53, %v22108_v1  ;;  %12520 = vlog2.f32 %v3532_v25  ;;  %v3119_v2 = vmul.f32 1.442695, %v2770_v34  ;;  %1443 = vbcast.lane.b32.xlu0 %v1437_v33, 264  ;;  %1439 = vbcast.lane.b32.xlu1 %v1437_v33, 256  ;;  %v15013_v53 = vsub.f32 %v14657_v51, %v14883_v31 }
 0x1c8   : > { %v3868_v17 = vmul.f32 0.6931472, %v12505_v55  ;;  %v12507_v45 = vpop.eup %12506  ;;  %12522 = vpow2.f32 %v3105_v44  ;;  %v2765_v57 = vsub.f32 0.0, %v2509_v42  ;;  %v15017_v1 = vsub.f32 %v14735_v13, %v14857_v60  ;;  %11762 = vmatprep.subr.bf16.mxu1 %v4504_v21 }
 0x1c9   : > { %v12509_v6 = vpop.eup %12508  ;;  %v22109_v40 = vmax.f32 %v14815_v32, 0.0  ;;  %v3527_v16 = vadd.f32 1.0, %v12507_v45  ;;  %12524 = vpow2.f32 %v3119_v2  ;;  %v4505_v43 = vpack.c.bf16 %v14900_v26, %v14961_v10  ;;  %11763 = vmatpush3.bf16.msra.mxu1 %v4504_v21 }
 0x1ca   : > { %v12511_v25 = vpop.eup %12510  ;;  %v22110_v31 = vmax.f32 %v14841_v63, 0.0  ;;  %v3858_v60 = vmul.f32 0.6931472, %v12509_v6  ;;  %v3109_v55 = vmul.f32 1.442695, %v2765_v57 }
 0x1cb   : > { %v15023_v24 = vadd.f32 %v3854_v3, %v22109_v40  ;;  %v12513_v42 = vpop.eup %12512  ;;  %12526 = vlog2.f32 %v3527_v16  ;;  %v3534_v32 = vadd.f32 1.0, %v12511_v25  ;;  %v2516_v3 = vand.u32 2147483647, %v15013_v53  ;;  %1451 = vbcast.lane.b32.xlu0 %v1437_v33, 280  ;;  %11768 = vmatprep.subr.bf16.mxu0 %v4505_v43  ;;  %v15042_v40 = vld [vmem:[%s21558_s6 + $0x8] sm:$0xff]   ;;  %v15049_v25 = vpop.permute.xlu0 %1196 }
 0x1cc   : > { %v15029_v44 = vadd.f32 %v3868_v17, %v22110_v31  ;;  %v2511_v2 = vand.u32 2147483647, %v15017_v1  ;;  %v12515_v26 = vpop.eup %12514  ;;  %v3872_v10 = vmul.f32 0.6931472, %v12513_v42  ;;  %12528 = vpow2.f32 %v3109_v55  ;;  %11769 = vmatpush3.bf16.msra.mxu0 %v4505_v43  ;;  %1447 = vbcast.lane.b32.xlu1 %v1437_v33, 272  ;;  %v15047_v16 = vld [vmem:[%s13375_s19 + $0x28] sm:$0xff] }
 0x1cd   : > { %v15037_v17 = vsub.f32 %v14683_v39, %v14911_v49  ;;  %v12517_v21 = vpop.eup %12516  ;;  %12530 = vlog2.f32 %v3534_v32  ;;  %v3529_v45 = vadd.f32 1.0, %v12515_v26  ;;  %v2772_v57 = vsub.f32 0.0, %v2516_v3  ;;  %11765 = vmatmul.mubr.msk.bf16.vlgmr.msra.gmra.mrb[32].mxu1 %vm21729_vm0, %v15042_v40  ;;  %v15063_v32 = vpop.permute.xlu1 %1181 }
 0x1ce   : > { %v2767_v6 = vsub.f32 0.0, %v2511_v2  ;;  %v22111_v49 = vmax.f32 %v14845_v23, 0.0  ;;  %v22112_v43 = vmax.f32 %v14869_v62, 0.0  ;;  %11780 = vmatprep.mubr.msk.bf16.mxu1 %vm21729_vm0, %v14632_v18  ;;  %v15067_v23 = vsub.f32 %v14694_v8, %v14889_v59 }
 0x1cf   : > { %v2518_v42 = vand.u32 2147483647, %v15037_v17  ;;  %12532 = vlog2.f32 %v3529_v45  ;;  %v3123_v3 = vmul.f32 1.442695, %v2772_v57  ;;  %v3862_v62 = vmul.f32 0.6931472, %v12517_v21 }
 0x1d0   : > { %v15053_v33 = vadd.f32 %v3858_v60, %v22111_v49  ;;  %v15057_v31 = vadd.f32 %v3872_v10, %v22112_v43  ;;  %v3113_v2 = vmul.f32 1.442695, %v2767_v6  ;;  %v12519_v60 = vpop.eup %12518  ;;  %v1456_v10 = vrot.slane %v15047_v16, %v22078_v50 }
 0x1d1   : > { %v2774_v26 = vsub.f32 0.0, %v2518_v42  ;;  %v4506_v49 = vpack.c.bf16 %v14924_v22, %v14993_v54  ;;  %v12521_v43 = vpop.eup %12520  ;;  %v3536_v55 = vadd.f32 1.0, %v12519_v60  ;;  %12534 = vpow2.f32 %v3123_v3  ;;  %v15083_v60 = vpop.permute.xlu0 %1204 }
 0x1d2   : > { %v2513_v57 = vand.u32 2147483647, %v15067_v23  ;;  %v12523_v6 = vpop.eup %12522  ;;  %v3876_v63 = vmul.f32 0.6931472, %v12521_v43  ;;  %12536 = vpow2.f32 %v3113_v2  ;;  %1462 = vbcast.lane.b32.xlu0 %v1456_v10, 264  ;;  %v15077_v21 = vsub.f32 %v14657_v51, %v14949_v19  ;;  %1458 = vbcast.lane.b32.xlu1 %v1456_v10, 256  ;;  %v15090_v19 = vpop.permute.xlu1 %1192 }
 0x1d3   : > { %v3127_v59 = vmul.f32 1.442695, %v2774_v26  ;;  %11770 = vmatprep.subr.bf16.mxu0 %v4506_v49  ;;  %v12525_v42 = vpop.eup %12524  ;;  %12538 = vlog2.f32 %v3536_v55  ;;  %v3531_v22 = vadd.f32 1.0, %v12523_v6  ;;  %v15081_v3 = vsub.f32 %v14735_v13, %v14920_v9 }
 0x1d4   : > { %v2769_v54 = vsub.f32 0.0, %v2513_v57  ;;  %11771 = vmatpush3.bf16.msra.mxu0 %v4506_v49  ;;  %v22113_v2 = vmax.f32 %v14879_v52, 0.0  ;;  %v3538_v43 = vadd.f32 1.0, %v12525_v42  ;;  %v2257_v51 = vmax.f32 %v15067_v23, 0.0 }
 0x1d5   : > { %12540 = vpow2.f32 %v3127_v59  ;;  %v12527_v55 = vpop.eup %12526  ;;  %v22114_v57 = vmax.f32 %v14895_v27, 0.0  ;;  %v2520_v49 = vand.u32 2147483647, %v15077_v21  ;;  %v2515_v52 = vand.u32 2147483647, %v15081_v3 }
 0x1d6   : > { %v15087_v26 = vadd.f32 %v3862_v62, %v22113_v2  ;;  %12542 = vlog2.f32 %v3531_v22  ;;  %v3117_v9 = vmul.f32 1.442695, %v2769_v54  ;;  %v12529_v45 = vpop.eup %12528  ;;  %v3866_v34 = vmul.f32 0.6931472, %v12527_v55  ;;  %1470 = vbcast.lane.b32.xlu0 %v1456_v10, 280  ;;  %1466 = vbcast.lane.b32.xlu1 %v1456_v10, 272 }
 0x1d7   : > { %v15094_v6 = vadd.f32 %v3876_v63, %v22114_v57  ;;  %12544 = vlog2.f32 %v3538_v43  ;;  %11773 = vmatmul.mubr.msk.bf16.vlgmr.msra.gmra.mrb[36].mxu0 %vm21729_vm0, %v15042_v40  ;;  %v4507_v62 = vpack.c.bf16 %v14945_v11, %v15023_v24  ;;  %v12531_v59 = vpop.eup %12530  ;;  %v3533_v27 = vadd.f32 1.0, %v12529_v45 }
 0x1d8   : > { %12546 = vpow2.f32 %v3117_v9  ;;  %v2776_v63 = vsub.f32 0.0, %v2520_v49  ;;  %v15104_v42 = vsub.f32 %v14683_v39, %v14980_v36  ;;  %11788 = vmatprep.mubr.msk.bf16.mxu0 %vm21729_vm0, %v14632_v18  ;;  %v3880_v22 = vmul.f32 0.6931472, %v12531_v59  ;;  %v15115_v36 = vpop.permute.xlu0 %1215  ;;  %v15126_v9 = vpop.permute.xlu1 %1200 }
 0x1d9   : > { %v2264_v54 = vmax.f32 %v15077_v21, 0.0  ;;  %v2771_v2 = vsub.f32 0.0, %v2515_v52  ;;  %11776 = vmatprep.subr.bf16.mxu1 %v4507_v62  ;;  %v15111_v11 = vsub.f32 %v14694_v8, %v14953_v28  ;;  %v12533_v24 = vpop.eup %12532  ;;  %12548 = vlog2.f32 %v3533_v27 }
 0x1da   : > { %v3131_v45 = vmul.f32 1.442695, %v2776_v63  ;;  %v2522_v39 = vand.u32 2147483647, %v15104_v42  ;;  %11777 = vmatpush3.bf16.msra.mxu1 %v4507_v62  ;;  %v22115_v18 = vmax.f32 %v14909_v35, 0.0  ;;  %v22116_v55 = vmax.f32 %v14918_v15, 0.0 }
 0x1db   : > { %v3121_v8 = vmul.f32 1.442695, %v2771_v2  ;;  %v12535_v49 = vpop.eup %12534  ;;  %v2517_v62 = vand.u32 2147483647, %v15111_v11  ;;  %v1475_v59 = vrot.slane %v15047_v16, %v22082_v48  ;;  %v4508_v15 = vpack.c.bf16 %v14972_v7, %v15053_v33 }
 0x1dc   : > { %v15119_v10 = vadd.f32 %v3866_v34, %v22115_v18  ;;  %v15123_v57 = vadd.f32 %v3880_v22, %v22116_v55  ;;  %12550 = vpow2.f32 %v3131_v45  ;;  %v2778_v52 = vsub.f32 0.0, %v2522_v39  ;;  %v12537_v35 = vpop.eup %12536  ;;  %v15136_v45 = vld [vmem:[%s21552_s0 + $0x18] sm:$0xff]  ;;  %v15154_v28 = vpop.permute.xlu1 %1211 }
 0x1dd   : > { %v3870_v34 = vmul.f32 0.6931472, %v12533_v24  ;;  %v3540_v27 = vadd.f32 1.0, %v12535_v49  ;;  %12552 = vpow2.f32 %v3121_v8  ;;  %v12539_v63 = vpop.eup %12538  ;;  %v3535_v22 = vadd.f32 1.0, %v12537_v35  ;;  %1481 = vbcast.lane.b32.xlu0 %v1475_v59, 264  ;;  %1477 = vbcast.lane.b32.xlu1 %v1475_v59, 256 }
 0x1de   : > { %v3135_v2 = vmul.f32 1.442695, %v2778_v52  ;;  %v2773_v18 = vsub.f32 0.0, %v2517_v62  ;;  %v15140_v39 = vsub.f32 %v15136_v45, %v15009_v14  ;;  %v3884_v55 = vmul.f32 0.6931472, %v12539_v63  ;;  %11778 = vmatprep.subr.bf16.mxu1 %v4508_v15  ;;  %v15149_v14 = vpop.permute.xlu0 %1223 }
 0x1df   : > { %v12541_v24 = vpop.eup %12540  ;;  %12554 = vlog2.f32 %v3540_v27  ;;  %v15144_v7 = vsub.f32 %v14735_v13, %v14985_v41  ;;  %v4509_v33 = vpack.c.bf16 %v15003_v4, %v15087_v26  ;;  %11779 = vmatpush3.bf16.msra.mxu1 %v4508_v15  ;;  %v4297_v27 = vadd.f32 %v3870_v34, %v2249_v12 }
 0x1e0   : > { %v12543_v8 = vpop.eup %12542  ;;  %12556 = vlog2.f32 %v3535_v22  ;;  %v3542_v49 = vadd.f32 1.0, %v12541_v24  ;;  %v3125_v62 = vmul.f32 1.442695, %v2773_v18  ;;  %v2524_v41 = vand.u32 2147483647, %v15140_v39 }
 0x1e1   : > { %v12545_v35 = vpop.eup %12544  ;;  %v3874_v63 = vmul.f32 0.6931472, %v12543_v8  ;;  %12558 = vpow2.f32 %v3135_v2  ;;  %11784 = vmatprep.subr.bf16.mxu0 %v4509_v33  ;;  %v2519_v15 = vand.u32 2147483647, %v15144_v7  ;;  %1489 = vbcast.lane.b32.xlu0 %v1475_v59, 280  ;;  %v22117_v18 = vmax.f32 %v14957_v37, 0.0 }
 0x1e2   : > { %v12547_v4 = vpop.eup %12546  ;;  %v3888_v26 = vmul.f32 0.6931472, %v12545_v35  ;;  %12560 = vlog2.f32 %v3542_v49  ;;  %11785 = vmatpush3.bf16.msra.mxu0 %v4509_v33  ;;  %v2780_v34 = vsub.f32 0.0, %v2524_v41  ;;  %11781 = vmatmul.mubr.msk.bf16.vlgmr.msra.gmra.mrb[36].mxu1 %vm21729_vm0, %v15042_v40  ;;  %v15168_v49 = vld [vmem:[%s21552_s0 + $0x8] sm:$0xff]  ;;  %v15186_v33 = vld [vmem:[%s21558_s6] sm:$0xff]   ;;  %v1494_v41 = vrot.slane %v15047_v16, %v22084_v30  ;;  %v15201_v22 = vpop.permute.xlu0 %1234 }
 0x1e3   : > { %v15160_v61 = vadd.f32 %v3884_v55, %v22117_v18  ;;  %v3537_v12 = vadd.f32 1.0, %v12547_v4  ;;  %12562 = vpow2.f32 %v3125_v62  ;;  %1485 = vbcast.lane.b32.xlu1 %v1475_v59, 272  ;;  %v12549_v2 = vpop.eup %12548  ;;  %v2775_v8 = vsub.f32 0.0, %v2519_v15  ;;  %v15177_v55 = vld [vmem:[%s21552_s0] sm:$0xff]  ;;  %11796 = vmatprep.mubr.msk.bf16.mxu1 %vm21729_vm0, %v15186_v33 }
 0x1e4   : > { %v15172_v37 = vsub.f32 %v15168_v49, %v15049_v25  ;;  %v15181_v59 = vsub.f32 %v15177_v55, %v15019_v0  ;;  %v22118_v25 = vmax.f32 %v14965_v38, 0.0  ;;  %v3139_v35 = vmul.f32 1.442695, %v2780_v34  ;;  %v15205_v34 = vpop.permute.xlu1 %1219 }
 0x1e5   : > { %12564 = vlog2.f32 %v3537_v12  ;;  %v15198_v0 = vadd.f32 %v3888_v26, %v2258_v47  ;;  %v3878_v15 = vmul.f32 0.6931472, %v12549_v2  ;;  %v3129_v18 = vmul.f32 1.442695, %v2775_v8  ;;  %1500 = vbcast.lane.b32.xlu0 %v1494_v41, 264 }
 0x1e6   : > { %v15192_v62 = vadd.f32 %v3874_v63, %v22118_v25  ;;  %v12551_v4 = vpop.eup %12550  ;;  %v2526_v24 = vand.u32 2147483647, %v15172_v37  ;;  %12566 = vpow2.f32 %v3139_v35  ;;  %v2521_v12 = vand.u32 2147483647, %v15181_v59 }
 0x1e7   : > { %v12553_v52 = vpop.eup %12552  ;;  %v3544_v38 = vadd.f32 1.0, %v12551_v4  ;;  %1496 = vbcast.lane.b32.xlu1 %v1494_v41, 256  ;;  %12568 = vpow2.f32 %v3129_v18  ;;  %v4510_v26 = vpack.c.bf16 %v15029_v44, %v15119_v10  ;;  %v15211_v25 = vsub.f32 %v15136_v45, %v15083_v60 }
 0x1e8   : > { %v3539_v46 = vadd.f32 1.0, %v12553_v52  ;;  %v2782_v47 = vsub.f32 0.0, %v2526_v24  ;;  %v2777_v8 = vsub.f32 0.0, %v2521_v12  ;;  %v15215_v35 = vsub.f32 %v14735_v13, %v15063_v32 }
 0x1e9   : > { %v12555_v2 = vpop.eup %12554  ;;  %12570 = vlog2.f32 %v3544_v38  ;;  %11786 = vmatprep.subr.bf16.mxu0 %v4510_v26  ;;  %v4511_v24 = vpack.c.bf16 %v15057_v31, %v4297_v27  ;;  %v22119_v10 = vmax.f32 %v14997_v20, 0.0  ;;  %1508 = vbcast.lane.b32.xlu0 %v1494_v41, 280 }
 0x1ea   : > { %v12557_v4 = vpop.eup %12556  ;;  %12572 = vlog2.f32 %v3539_v46  ;;  %v3143_v63 = vmul.f32 1.442695, %v2782_v47  ;;  %v3892_v38 = vmul.f32 0.6931472, %v12555_v2  ;;  %v3133_v12 = vmul.f32 1.442695, %v2777_v8  ;;  %11787 = vmatpush3.bf16.msra.mxu0 %v4510_v26  ;;  %v15225_v47 = vpop.permute.xlu0 %1242 }
 0x1eb   : > { %v12559_v44 = vpop.eup %12558  ;;  %v15221_v18 = vadd.f32 %v3878_v15, %v22119_v10  ;;  %v3882_v60 = vmul.f32 0.6931472, %v12557_v4  ;;  %v2528_v46 = vand.u32 2147483647, %v15211_v25  ;;  %11792 = vmatprep.subr.bf16.mxu1 %v4511_v24  ;;  %v2523_v15 = vand.u32 2147483647, %v15215_v35  ;;  %v15229_v26 = vpop.permute.xlu1 %1230 }
 0x1ec   : > { %v12561_v43 = vpop.eup %12560  ;;  %v3546_v13 = vadd.f32 1.0, %v12559_v44  ;;  %12574 = vpow2.f32 %v3143_v63  ;;  %11793 = vmatpush3.bf16.msra.mxu1 %v4511_v24  ;;  %1504 = vbcast.lane.b32.xlu1 %v1494_v41, 272  ;;  %v15235_v8 = vsub.f32 %v15168_v49, %v15115_v36  ;;  %v22120_v4 = vmax.f32 %v15013_v53, 0.0 }
 0x1ed   : > { %v12563_v31 = vpop.eup %12562  ;;  %v3896_v27 = vmul.f32 0.6931472, %v12561_v43  ;;  %12576 = vpow2.f32 %v3133_v12  ;;  %v2784_v2 = vsub.f32 0.0, %v2528_v46  ;;  %11789 = vmatmul.mubr.msk.bf16.vlgmr.msra.gmra.mrb[40].mxu0 %vm21729_vm0, %v15042_v40  ;;  %v2779_v10 = vsub.f32 0.0, %v2523_v15 }
 0x1ee   : > { %12578 = vlog2.f32 %v3546_v13  ;;  %v3541_v63 = vadd.f32 1.0, %v12563_v31  ;;  %v15239_v44 = vadd.f32 %v3892_v38, %v22120_v4  ;;  %v15243_v41 = vsub.f32 %v15177_v55, %v15090_v19  ;;  %11804 = vmatprep.mubr.msk.bf16.mxu0 %vm21729_vm0, %v15186_v33 }
 0x1ef   : > { %v12565_v43 = vpop.eup %12564  ;;  %v1513_v24 = vrot.slane %v15047_v16, %v22087_v58  ;;  %v22121_v12 = vmax.f32 %v15017_v1, 0.0  ;;  %v3147_v53 = vmul.f32 1.442695, %v2784_v2  ;;  %v22122_v46 = vmax.f32 %v15037_v17, 0.0 }
 0x1f0   : > { %v3886_v13 = vmul.f32 0.6931472, %v12565_v43  ;;  %12580 = vlog2.f32 %v3541_v63  ;;  %v12567_v38 = vpop.eup %12566  ;;  %v3137_v19 = vmul.f32 1.442695, %v2779_v10  ;;  %v2530_v15 = vand.u32 2147483647, %v15235_v8  ;;  %v15262_v63 = vpop.permute.xlu0 %1253 }
 0x1f1   : > { %v15251_v36 = vadd.f32 %v3882_v60, %v22121_v12  ;;  %v15255_v31 = vadd.f32 %v3896_v27, %v22122_v46  ;;  %1519 = vbcast.lane.b32.xlu0 %v1513_v24, 264  ;;  %v4512_v4 = vpack.c.bf16 %v15094_v6, %v15192_v62  ;;  %v12569_v20 = vpop.eup %12568  ;;  %v3548_v32 = vadd.f32 1.0, %v12567_v38  ;;  %1515 = vbcast.lane.b32.xlu1 %v1513_v24, 256  ;;  %v15268_v6 = vpop.permute.xlu1 %1238 }
 0x1f2   : > { %12582 = vpow2.f32 %v3147_v53  ;;  %v2525_v60 = vand.u32 2147483647, %v15243_v41  ;;  %v3543_v27 = vadd.f32 1.0, %v12569_v20  ;;  %v2786_v2 = vsub.f32 0.0, %v2530_v15  ;;  %v15273_v53 = vld [vmem:[%s21552_s0 + $0x10] sm:$0xff] }
 0x1f3   : > { %v12571_v17 = vpop.eup %12570  ;;  %12584 = vpow2.f32 %v3137_v19  ;;  %11794 = vmatprep.subr.bf16.mxu1 %v4512_v4  ;;  %v15266_v43 = vsub.f32 %v15136_v45, %v15149_v14  ;;  %v15277_v20 = vsub.f32 %v15273_v53, %v15126_v9 }
 0x1f4   : > { %v12573_v62 = vpop.eup %12572  ;;  %v3900_v10 = vmul.f32 0.6931472, %v12571_v17  ;;  %12586 = vlog2.f32 %v3548_v32  ;;  %v2781_v12 = vsub.f32 0.0, %v2525_v60  ;;  %11795 = vmatpush3.bf16.msra.mxu1 %v4512_v4  ;;  %v3151_v14 = vmul.f32 1.442695, %v2786_v2 }
 0x1f5   : > { %v3890_v38 = vmul.f32 0.6931472, %v12573_v62  ;;  %12588 = vlog2.f32 %v3543_v27  ;;  %1527 = vbcast.lane.b32.xlu0 %v1513_v24, 280  ;;  %v4305_v32 = vadd.f32 %v3886_v13, %v2257_v51  ;;  %v2532_v17 = vand.u32 2147483647, %v15266_v43  ;;  %1523 = vbcast.lane.b32.xlu1 %v1513_v24, 272  ;;  %v15295_v62 = vpop.permute.xlu0 %1261 }
 0x1f6   : > { %v12575_v19 = vpop.eup %12574  ;;  %v3141_v15 = vmul.f32 1.442695, %v2781_v12  ;;  %v15286_v9 = vadd.f32 %v3900_v10, %v2264_v54  ;;  %12590 = vpow2.f32 %v3151_v14  ;;  %v2527_v27 = vand.u32 2147483647, %v15277_v20  ;;  %v15291_v23 = vpop.f32.mrb[0].mxu0 }
 0x1f7   : > { %v12577_v1 = vpop.eup %12576  ;;  %v3550_v4 = vadd.f32 1.0, %v12575_v19  ;;  %11797 = vmatmul.mubr.msk.bf16.vlgmr.msra.gmra.mrb[40].mxu1 %vm21729_vm0, %v15042_v40  ;;  %22123 = vst [vmem:[#allocation40_spill] sm:$0xff] %v15291_v23  ;;  %v2788_v2 = vsub.f32 0.0, %v2532_v17  ;;  %v4513_v24 = vpack.c.bf16 %v15123_v57, %v15221_v18  ;;  %v15299_v21 = vpop.f32.mrb[1].mxu0  ;;  %v15303_v12 = vsub.f32 %v15168_v49, %v15201_v22 }
 0x1f8   : > { %v12579_v51 = vpop.eup %12578  ;;  %v3545_v13 = vadd.f32 1.0, %v12577_v1  ;;  %12592 = vpow2.f32 %v3141_v15  ;;  %11812 = vmatprep.mubr.msk.bf16.mxu1 %vm21729_vm0, %v15186_v33  ;;  %22124 = vst [vmem:[#allocation4_spill] sm:$0xff] %v15299_v21  ;;  %v2783_v10 = vsub.f32 0.0, %v2527_v27  ;;  %v15305_v1 = vpop.permute.xlu1 %1249  ;;  %v15311_v18 = vsub.f32 %v15177_v55, %v15154_v28 }
 0x1f9   : > { %v3904_v54 = vmul.f32 0.6931472, %v12579_v51  ;;  %12594 = vlog2.f32 %v3550_v4  ;;  %v15307_v14 = vpop.f32.mrb[2].mxu0  ;;  %v3155_v57 = vmul.f32 1.442695, %v2788_v2  ;;  %11800 = vmatprep.subr.bf16.mxu0 %v4513_v24  ;;  %v1532_v15 = vrot.slane %v15047_v16, %v22093_v56 }
 0x1fa   : > { %22125 = vst [vmem:[#allocation41_spill] sm:$0xff] %v15307_v14  ;;  %v12581_v19 = vpop.eup %12580  ;;  %12596 = vlog2.f32 %v3545_v13  ;;  %v15315_v17 = vpop.f32.mrb[3].mxu0  ;;  %v22127_v22 = vmax.f32 %v15081_v3, 0.0  ;;  %v3145_v60 = vmul.f32 1.442695, %v2783_v10  ;;  %11801 = vmatpush3.bf16.msra.mxu0 %v4513_v24  ;;  %v22128_v2 = vmax.f32 %v15104_v42, 0.0 }
 0x1fb   : > { %22126 = vst [vmem:[#allocation42_spill] sm:$0xff] %v15315_v17  ;;  %v3894_v27 = vmul.f32 0.6931472, %v12581_v19  ;;  %12598 = vpow2.f32 %v3155_v57  ;;  %v2534_v28 = vand.u32 2147483647, %v15303_v12  ;;  %1538 = vbcast.lane.b32.xlu0 %v1532_v15, 264  ;;  %v4514_v10 = vpack.c.bf16 %v15160_v61, %v15251_v36 }
 0x1fc   : > { %v15319_v4 = vadd.f32 %v3890_v38, %v22127_v22  ;;  %v12583_v13 = vpop.eup %12582  ;;  %v15324_v46 = vadd.f32 %v3904_v54, %v22128_v2  ;;  %v2529_v52 = vand.u32 2147483647, %v15311_v18  ;;  %12600 = vpow2.f32 %v3145_v60  ;;  %1534 = vbcast.lane.b32.xlu1 %v1532_v15, 256  ;;  %v15335_v22 = vpop.permute.xlu0 %1272 }
 0x1fd   : > { %v12585_v56 = vpop.eup %12584  ;;  %v3552_v3 = vadd.f32 1.0, %v12583_v13  ;;  %v2790_v42 = vsub.f32 0.0, %v2534_v28  ;;  %v15333_v57 = vsub.f32 %v15136_v45, %v15225_v47  ;;  %11802 = vmatprep.subr.bf16.mxu0 %v4514_v10  ;;  %v15339_v60 = vsub.f32 %v15273_v53, %v15205_v34  ;;  %v15342_v36 = vpop.permute.xlu1 %1257 }
 0x1fe   : > { %v12587_v24 = vpop.eup %12586  ;;  %v3547_v19 = vadd.f32 1.0, %v12585_v56  ;;  %v2785_v54 = vsub.f32 0.0, %v2529_v52  ;;  %v4515_v61 = vpack.c.bf16 %v15198_v0, %v4305_v32  ;;  %11803 = vmatpush3.bf16.msra.mxu0 %v4514_v10  ;;  %v22129_v28 = vmax.f32 %v15111_v11, 0.0 }
 0x1ff   : > { %v12589_v2 = vpop.eup %12588  ;;  %v3908_v51 = vmul.f32 0.6931472, %v12587_v24  ;;  %12602 = vlog2.f32 %v3552_v3  ;;  %v3159_v56 = vmul.f32 1.442695, %v2790_v42  ;;  %v22130_v3 = vmax.f32 %v15140_v39, 0.0  ;;  %1546 = vbcast.lane.b32.xlu0 %v1532_v15, 280 }
 0x200   : > { %12604 = vlog2.f32 %v3547_v19  ;;  %v3149_v47 = vmul.f32 1.442695, %v2785_v54  ;;  %v12591_v13 = vpop.eup %12590  ;;  %v15347_v24 = vadd.f32 %v3894_v27, %v22129_v28  ;;  %v3898_v34 = vmul.f32 0.6931472, %v12589_v2  ;;  %11808 = vmatprep.subr.bf16.mxu1 %v4515_v61  ;;  %1542 = vbcast.lane.b32.xlu1 %v1532_v15, 272  ;;  %v15370_v28 = vpop.permute.xlu0 %1280 }
 0x201   : > { %v15351_v38 = vadd.f32 %v3908_v51, %v22130_v3  ;;  %v2536_v0 = vand.u32 2147483647, %v15333_v57  ;;  %v3554_v19 = vadd.f32 1.0, %v12591_v13  ;;  %12606 = vpow2.f32 %v3159_v56  ;;  %11809 = vmatpush3.bf16.msra.mxu1 %v4515_v61  ;;  %v15356_v11 = vpop.f32.mrb[4].mxu0  ;;  %11805 = vmatmul.mubr.msk.bf16.vlgmr.msra.gmra.mrb[44].mxu0 %vm21729_vm0, %v15042_v40 }
 0x202   : > { %v12593_v32 = vpop.eup %12592  ;;  %v2531_v10 = vand.u32 2147483647, %v15339_v60  ;;  %22131 = vst [vmem:[#allocation43_spill] sm:$0xff] %v15356_v11  ;;  %12608 = vpow2.f32 %v3149_v47  ;;  %v15362_v54 = vsub.f32 %v15168_v49, %v15262_v63  ;;  %v15364_v2 = vpop.f32.mrb[5].mxu0  ;;  %v15368_v15 = vsub.f32 %v15177_v55, %v15229_v26  ;;  %11820 = vmatprep.mubr.msk.bf16.mxu0 %vm21729_vm0, %v15186_v33 }
 0x203   : > { %v12595_v27 = vpop.eup %12594  ;;  %v3549_v39 = vadd.f32 1.0, %v12593_v32  ;;  %v2792_v51 = vsub.f32 0.0, %v2536_v0  ;;  %22132 = vst [vmem:[#allocation44_spill] sm:$0xff] %v15364_v2  ;;  %12610 = vlog2.f32 %v3554_v19  ;;  %v15374_v47 = vpop.f32.mrb[6].mxu0  ;;  %v22135_v26 = vmax.f32 %v15144_v7, 0.0 }
 0x204   : > { %v12597_v56 = vpop.eup %12596  ;;  %v3912_v13 = vmul.f32 0.6931472, %v12595_v27  ;;  %v2787_v61 = vsub.f32 0.0, %v2531_v10  ;;  %22133 = vst [vmem:[#allocation45_spill] sm:$0xff] %v15374_v47  ;;  %v15377_v32 = vpop.permute.xlu1 %1268  ;;  %v2538_v2 = vand.u32 2147483647, %v15362_v54 }
 0x205   : > { %v3902_v3 = vmul.f32 0.6931472, %v12597_v56  ;;  %12612 = vlog2.f32 %v3549_v39  ;;  %v3163_v63 = vmul.f32 1.442695, %v2792_v51  ;;  %v15379_v19 = vpop.f32.mrb[0].mxu1  ;;  %v12599_v10 = vpop.eup %12598  ;;  %v15383_v27 = vadd.f32 %v3898_v34, %v22135_v26 }
 0x206   : > { %22134 = vst [vmem:[#allocation46_spill] sm:$0xff] %v15379_v19  ;;  %v3153_v42 = vmul.f32 1.442695, %v2787_v61  ;;  %v15387_v47 = vpop.f32.mrb[1].mxu1  ;;  %v12601_v39 = vpop.eup %12600  ;;  %v22137_v51 = vmax.f32 %v15172_v37, 0.0  ;;  %v3556_v0 = vadd.f32 1.0, %v12599_v10  ;;  %v1551_v61 = vrot.slane %v15047_v16, %v22097_v29 }
 0x207   : > { %22136 = vst [vmem:[#allocation47_spill] sm:$0xff] %v15387_v47  ;;  %12614 = vpow2.f32 %v3163_v63  ;;  %v2533_v11 = vand.u32 2147483647, %v15368_v15  ;;  %v15394_v58 = vpop.f32.mrb[2].mxu1  ;;  %v3551_v7 = vadd.f32 1.0, %v12601_v39  ;;  %v2794_v34 = vsub.f32 0.0, %v2538_v2 }
 0x208   : > { %v15391_v56 = vadd.f32 %v3912_v13, %v22137_v51  ;;  %22138 = vst [vmem:[#allocation48_spill] sm:$0xff] %v15394_v58  ;;  %12616 = vpow2.f32 %v3153_v42  ;;  %v15398_v26 = vpop.f32.mrb[3].mxu1  ;;  %v4516_v37 = vpack.c.bf16 %v15239_v44, %v15319_v4  ;;  %v15404_v13 = vsub.f32 %v15136_v45, %v15295_v62  ;;  %v15406_v63 = vpop.f32.mrb[7].mxu0  ;;  %1557 = vbcast.lane.b32.xlu0 %v1551_v61, 264 }
 0x209   : > { %22139 = vst [vmem:[#allocation49_spill] sm:$0xff] %v15398_v26  ;;  %v12603_v52 = vpop.eup %12602  ;;  %12618 = vlog2.f32 %v3556_v0  ;;  %v2789_v47 = vsub.f32 0.0, %v2533_v11  ;;  %22140 = vst [vmem:[#allocation50_spill] sm:$0xff] %v15406_v63  ;;  %v3167_v2 = vmul.f32 1.442695, %v2794_v34  ;;  %v15410_v39 = vsub.f32 %v15273_v53, %v15268_v6  ;;  %1553 = vbcast.lane.b32.xlu1 %v1551_v61, 256  ;;  %v15412_v11 = vpop.permute.xlu0 %1291 }
 0x20a   : > { %v12605_v10 = vpop.eup %12604  ;;  %v3916_v42 = vmul.f32 0.6931472, %v12603_v52  ;;  %12620 = vlog2.f32 %v3551_v7  ;;  %v22141_v44 = vmax.f32 %v15181_v59, 0.0  ;;  %11810 = vmatprep.subr.bf16.mxu1 %v4516_v37  ;;  %v4517_v52 = vpack.c.bf16 %v15255_v31, %v15347_v24  ;;  %v15421_v51 = vpop.permute.xlu1 %1276 }
 0x20b   : > { %v3157_v0 = vmul.f32 1.442695, %v2789_v47  ;;  %v12607_v7 = vpop.eup %12606  ;;  %v3906_v34 = vmul.f32 0.6931472, %v12605_v10  ;;  %12622 = vpow2.f32 %v3167_v2  ;;  %v2540_v29 = vand.u32 2147483647, %v15404_v13  ;;  %11811 = vmatpush3.bf16.msra.mxu1 %v4516_v37 }
 0x20c   : > { %v15416_v4 = vadd.f32 %v3902_v3, %v22141_v44  ;;  %v12609_v59 = vpop.eup %12608  ;;  %v22142_v3 = vmax.f32 %v15211_v25, 0.0  ;;  %v3558_v47 = vadd.f32 1.0, %v12607_v7  ;;  %v2535_v62 = vand.u32 2147483647, %v15410_v39  ;;  %11816 = vmatprep.subr.bf16.mxu0 %v4517_v52  ;;  %1565 = vbcast.lane.b32.xlu0 %v1551_v61, 280 }
 0x20d   : > { %12624 = vpow2.f32 %v3157_v0  ;;  %v15430_v31 = vpop.f32.mrb[4].mxu1  ;;  %v12611_v24 = vpop.eup %12610  ;;  %v3553_v10 = vadd.f32 1.0, %v12609_v59  ;;  %v2796_v2 = vsub.f32 0.0, %v2540_v29  ;;  %v15434_v6 = vsub.f32 %v15168_v49, %v15335_v22  ;;  %11817 = vmatpush3.bf16.msra.mxu0 %v4517_v52  ;;  %v22145_v29 = vld [vmem:[#allocation10_spill] sm:$0xff]  ;;  %1561 = vbcast.lane.b32.xlu1 %v1551_v61, 272 }
 0x20e   : > { %v15427_v44 = vadd.f32 %v3916_v42, %v22142_v3  ;;  %22143 = vst [vmem:[#allocation51_spill] sm:$0xff] %v15430_v31  ;;  %v15438_v25 = vsub.f32 %v15177_v55, %v15305_v1  ;;  %v15440_v37 = vpop.f32.mrb[5].mxu1  ;;  %v3920_v0 = vmul.f32 0.6931472, %v12611_v24  ;;  %12626 = vlog2.f32 %v3558_v47  ;;  %11813 = vmatmul.mubr.msk.bf16.vlgmr.msra.gmra.mrb[44].mxu1 %vm21729_vm0, %v15042_v40  ;;  %v15449_v31 = vpop.permute.xlu0 %1299 }
 0x20f   : > { %22144 = vst [vmem:[#allocation52_spill] sm:$0xff] %v15440_v37  ;;  %v12613_v42 = vpop.eup %12612  ;;  %v2791_v7 = vsub.f32 0.0, %v2535_v62  ;;  %v1570_v59 = vrot.slane %v15047_v16, %v22145_v29  ;;  %v15446_v22 = vpop.f32.mrb[6].mxu1  ;;  %12628 = vlog2.f32 %v3553_v10  ;;  %v3171_v1 = vmul.f32 1.442695, %v2796_v2  ;;  %11828 = vmatprep.mubr.msk.bf16.mxu1 %vm21729_vm0, %v15186_v33 }
 0x210   : > { %22146 = vst [vmem:[#allocation53_spill] sm:$0xff] %v15446_v22  ;;  %v3910_v3 = vmul.f32 0.6931472, %v12613_v42  ;;  %v15453_v62 = vpop.f32.mrb[7].mxu1  ;;  %v22148_v24 = vmax.f32 %v15215_v35, 0.0  ;;  %v15461_v2 = vpop.permute.xlu1 %1287  ;;  %v22149_v52 = vmax.f32 %v15235_v8, 0.0  ;;  %v15472_v8 = vsub.f32 %v15136_v45, %v15370_v28 }
 0x211   : > { %22147 = vst [vmem:[#allocation54_spill] sm:$0xff] %v15453_v62  ;;  %v12615_v47 = vpop.eup %12614  ;;  %v3161_v61 = vmul.f32 1.442695, %v2791_v7  ;;  %v2542_v10 = vand.u32 2147483647, %v15434_v6  ;;  %12630 = vpow2.f32 %v3171_v1  ;;  %1576 = vbcast.lane.b32.xlu0 %v1570_v59, 264 }
 0x212   : > { %v15457_v37 = vadd.f32 %v3906_v34, %v22148_v24  ;;  %v12617_v42 = vpop.eup %12616  ;;  %v15465_v22 = vadd.f32 %v3920_v0, %v22149_v52  ;;  %v3560_v63 = vadd.f32 1.0, %v12615_v47  ;;  %v2537_v62 = vand.u32 2147483647, %v15438_v25  ;;  %1572 = vbcast.lane.b32.xlu1 %v1570_v59, 256  ;;  %v15478_v47 = vpop.f32.mrb[8].mxu0 }
 0x213   : > { %v12619_v35 = vpop.eup %12618  ;;  %v3555_v34 = vadd.f32 1.0, %v12617_v42  ;;  %12632 = vpow2.f32 %v3161_v61  ;;  %v2798_v7 = vsub.f32 0.0, %v2542_v10  ;;  %v4518_v24 = vpack.c.bf16 %v15286_v9, %v15383_v27  ;;  %22150 = vst [vmem:[#allocation55_spill] sm:$0xff] %v15478_v47 }
 0x214   : > { %v12621_v29 = vpop.eup %12620  ;;  %v3924_v26 = vmul.f32 0.6931472, %v12619_v35  ;;  %12634 = vlog2.f32 %v3560_v63  ;;  %v2793_v58 = vsub.f32 0.0, %v2537_v62  ;;  %v15476_v52 = vsub.f32 %v15273_v53, %v15342_v36 }
 0x215   : > { %v3914_v0 = vmul.f32 0.6931472, %v12621_v29  ;;  %12636 = vlog2.f32 %v3555_v34  ;;  %v3175_v1 = vmul.f32 1.442695, %v2798_v7  ;;  %11818 = vmatprep.subr.bf16.mxu0 %v4518_v24  ;;  %v12623_v9 = vpop.eup %12622  ;;  %v22151_v27 = vmax.f32 %v15243_v41, 0.0  ;;  %1584 = vbcast.lane.b32.xlu0 %v1570_v59, 280  ;;  %v15486_v29 = vpop.permute.xlu0 %1310 }
 0x216   : > { %v3165_v62 = vmul.f32 1.442695, %v2793_v58  ;;  %v2544_v28 = vand.u32 2147483647, %v15472_v8  ;;  %11819 = vmatpush3.bf16.msra.mxu0 %v4518_v24  ;;  %v22152_v36 = vmax.f32 %v15266_v43, 0.0  ;;  %v3562_v35 = vadd.f32 1.0, %v12623_v9 }
 0x217   : > { %v15482_v61 = vadd.f32 %v3910_v3, %v22151_v27  ;;  %v12625_v10 = vpop.eup %12624  ;;  %12638 = vpow2.f32 %v3175_v1  ;;  %1580 = vbcast.lane.b32.xlu1 %v1570_v59, 272  ;;  %v15493_v3 = vpop.permute.xlu1 %1295  ;;  %v2539_v24 = vand.u32 2147483647, %v15476_v52  ;;  %v4519_v43 = vpack.c.bf16 %v15324_v46, %v15416_v4 }
 0x218   : > { %v15490_v42 = vadd.f32 %v3924_v26, %v22152_v36  ;;  %v15495_v34 = vpop.f32.mrb[9].mxu0  ;;  %v3557_v58 = vadd.f32 1.0, %v12625_v10  ;;  %12640 = vpow2.f32 %v3165_v62  ;;  %v2800_v7 = vsub.f32 0.0, %v2544_v28  ;;  %v12627_v63 = vpop.eup %12626 }
 0x219   : > { %22153 = vst [vmem:[#allocation56_spill] sm:$0xff] %v15495_v34  ;;  %v15498_v27 = vpop.f32.mrb[10].mxu0  ;;  %12642 = vlog2.f32 %v3562_v35  ;;  %11821 = vmatmul.mubr.msk.bf16.vlgmr.msra.gmra.mrb[48].mxu0 %vm21729_vm0, %v15042_v40  ;;  %v15506_v26 = vsub.f32 %v15168_v49, %v15412_v11  ;;  %v15510_v59 = vsub.f32 %v15177_v55, %v15377_v32  ;;  %v12629_v9 = vpop.eup %12628  ;;  %v2795_v10 = vsub.f32 0.0, %v2539_v24  ;;  %11824 = vmatprep.subr.bf16.mxu1 %v4519_v43 }
 0x21a   : > { %22154 = vst [vmem:[#allocation57_spill] sm:$0xff] %v15498_v27  ;;  %v15512_v1 = vpop.f32.mrb[11].mxu0  ;;  %12644 = vlog2.f32 %v3557_v58  ;;  %v3179_v62 = vmul.f32 1.442695, %v2800_v7  ;;  %11836 = vmatprep.mubr.msk.bf16.mxu0 %vm21729_vm0, %v15186_v33  ;;  %v22156_v40 = vmax.f32 %v15277_v20, 0.0  ;;  %11825 = vmatpush3.bf16.msra.mxu1 %v4519_v43  ;;  %v15524_v24 = vpop.permute.xlu0 %1318  ;;  %v4520_v58 = vpack.c.bf16 %v15351_v38, %v15457_v37 }
 0x21b   : > { %22155 = vst [vmem:[#allocation58_spill] sm:$0xff] %v15512_v1  ;;  %v3928_v11 = vmul.f32 0.6931472, %v12627_v63  ;;  %v3918_v4 = vmul.f32 0.6931472, %v12629_v9  ;;  %v12631_v36 = vpop.eup %12630  ;;  %v1589_v63 = vrot.slane %v15047_v16, %v22107_v5  ;;  %v15529_v9 = vpop.permute.xlu1 %1306  ;;  %v22157_v16 = vmax.f32 %v15303_v12, 0.0 }
 0x21c   : > { %v15519_v46 = vadd.f32 %v3914_v0, %v22156_v40  ;;  %v2546_v32 = vand.u32 2147483647, %v15506_v26  ;;  %12646 = vpow2.f32 %v3179_v62  ;;  %v3169_v35 = vmul.f32 1.442695, %v2795_v10  ;;  %11826 = vmatprep.subr.bf16.mxu1 %v4520_v58 }
 0x21d   : > { %v2541_v7 = vand.u32 2147483647, %v15510_v59  ;;  %v12633_v28 = vpop.eup %12632  ;;  %v3564_v41 = vadd.f32 1.0, %v12631_v36  ;;  %1595 = vbcast.lane.b32.xlu0 %v1589_v63, 264  ;;  %1591 = vbcast.lane.b32.xlu1 %v1589_v63, 256  ;;  %v15539_v36 = vadd.f32 %v3928_v11, %v22157_v16  ;;  %v15543_v38 = vsub.f32 %v15273_v53, %v15421_v51  ;;  %v15545_v37 = vpop.f32.mrb[8].mxu1 }
 0x21e   : > { %v2802_v20 = vsub.f32 0.0, %v2546_v32  ;;  %v12635_v40 = vpop.eup %12634  ;;  %v3559_v62 = vadd.f32 1.0, %v12633_v28  ;;  %12648 = vpow2.f32 %v3169_v35  ;;  %v15535_v32 = vsub.f32 %v15136_v45, %v15449_v31  ;;  %22158 = vst [vmem:[#allocation59_spill] sm:$0xff] %v15545_v37  ;;  %11827 = vmatpush3.bf16.msra.mxu1 %v4520_v58  ;;  %v15552_v11 = vpop.f32.mrb[9].mxu1 }
 0x21f   : > { %v2797_v10 = vsub.f32 0.0, %v2541_v7  ;;  %v12637_v43 = vpop.eup %12636  ;;  %v3932_v1 = vmul.f32 0.6931472, %v12635_v40  ;;  %12650 = vlog2.f32 %v3564_v41  ;;  %v22159_v35 = vmax.f32 %v15311_v18, 0.0  ;;  %22160 = vst [vmem:[#allocation60_spill] sm:$0xff] %v15552_v11  ;;  %v15559_v16 = vpop.permute.xlu0 %1329 }
 0x220   : > { %v3183_v27 = vmul.f32 1.442695, %v2802_v20  ;;  %12652 = vlog2.f32 %v3559_v62  ;;  %v3922_v31 = vmul.f32 0.6931472, %v12637_v43  ;;  %v2548_v12 = vand.u32 2147483647, %v15535_v32 }
 0x221   : > { %v3173_v28 = vmul.f32 1.442695, %v2797_v10  ;;  %v12639_v41 = vpop.eup %12638  ;;  %v15549_v7 = vadd.f32 %v3918_v4, %v22159_v35  ;;  %v22161_v40 = vmax.f32 %v15333_v57, 0.0  ;;  %v15561_v18 = vpop.f32.mrb[10].mxu1  ;;  %v2543_v58 = vand.u32 2147483647, %v15543_v38 }
 0x222   : > { %12654 = vpow2.f32 %v3183_v27  ;;  %v12641_v20 = vpop.eup %12640  ;;  %v3566_v51 = vadd.f32 1.0, %v12639_v41  ;;  %22162 = vst [vmem:[#allocation61_spill] sm:$0xff] %v15561_v18  ;;  %v2804_v43 = vsub.f32 0.0, %v2548_v12  ;;  %1603 = vbcast.lane.b32.xlu0 %v1589_v63, 280  ;;  %v4521_v35 = vpack.c.bf16 %v15391_v56, %v15482_v61  ;;  %1599 = vbcast.lane.b32.xlu1 %v1589_v63, 272  ;;  %v15566_v57 = vpop.permute.xlu1 %1314  ;;  %v15571_v41 = vld [vmem:[%s21558_s6 + $0x8] sm:$0xff]  }
 0x223   : > { %v15556_v62 = vadd.f32 %v3932_v1, %v22161_v40  ;;  %12656 = vpow2.f32 %v3173_v28  ;;  %v12643_v4 = vpop.eup %12642  ;;  %v3561_v27 = vadd.f32 1.0, %v12641_v20  ;;  %11829 = vmatmul.mubr.msk.bf16.vlgmr.msra.gmra.mrb[48].mxu1 %vm21729_vm0, %v15571_v41  ;;  %v15577_v12 = vsub.f32 %v15168_v49, %v15486_v29  ;;  %v15583_v61 = vpop.f32.mrb[11].mxu1 }
 0x224   : > { %v12645_v1 = vpop.eup %12644  ;;  %v3936_v28 = vmul.f32 0.6931472, %v12643_v4  ;;  %12658 = vlog2.f32 %v3566_v51  ;;  %v15581_v56 = vsub.f32 %v15177_v55, %v15461_v2  ;;  %22163 = vst [vmem:[#allocation62_spill] sm:$0xff] %v15583_v61  ;;  %v22164_v63 = vmax.f32 %v15339_v60, 0.0  ;;  %11832 = vmatprep.subr.bf16.mxu0 %v4521_v35  ;;  %v15590_v4 = vld [vmem:[%s13375_s19 + $0x30] sm:$0xff]  ;;  %11844 = vmatprep.mubr.msk.bf16.mxu1 %vm21729_vm0, %v15186_v33 }
 0x225   : > { %12660 = vlog2.f32 %v3561_v27  ;;  %v3187_v40 = vmul.f32 1.442695, %v2804_v43  ;;  %v2799_v51 = vsub.f32 0.0, %v2543_v58  ;;  %v22165_v10 = vmax.f32 %v15362_v54, 0.0  ;;  %11833 = vmatpush3.bf16.msra.mxu0 %v4521_v35 }
 0x226   : > { %v15587_v20 = vadd.f32 %v3922_v31, %v22164_v63  ;;  %v12647_v29 = vpop.eup %12646  ;;  %v3926_v0 = vmul.f32 0.6931472, %v12645_v1  ;;  %v2550_v60 = vand.u32 2147483647, %v15577_v12  ;;  %v2545_v61 = vand.u32 2147483647, %v15581_v56  ;;  %v15606_v1 = vpop.permute.xlu0 %1337 }
 0x227   : > { %v15596_v2 = vadd.f32 %v3936_v28, %v22165_v10  ;;  %v3568_v31 = vadd.f32 1.0, %v12647_v29  ;;  %12662 = vpow2.f32 %v3187_v40  ;;  %v3177_v27 = vmul.f32 1.442695, %v2799_v51  ;;  %v15616_v29 = vpop.permute.xlu1 %1325 }
 0x228   : > { %v12649_v58 = vpop.eup %12648  ;;  %v2806_v63 = vsub.f32 0.0, %v2550_v60  ;;  %v1608_v54 = vrot.slane %v15590_v4, %v22078_v50  ;;  %v4522_v10 = vpack.c.bf16 %v15427_v44, %v15519_v46  ;;  %v15610_v40 = vsub.f32 %v15136_v45, %v15524_v24  ;;  %v22166_v46 = vld [vmem:[#allocation20_spill] sm:$0xff] }
 0x229   : > { %v12651_v28 = vpop.eup %12650  ;;  %12664 = vlog2.f32 %v3568_v31  ;;  %v3563_v35 = vadd.f32 1.0, %v12649_v58  ;;  %v15614_v51 = vsub.f32 %v15273_v53, %v15493_v3  ;;  %v2801_v44 = vsub.f32 0.0, %v2545_v61 }
 0x22a   : > { %v12653_v60 = vpop.eup %12652  ;;  %v3940_v43 = vmul.f32 0.6931472, %v12651_v28  ;;  %12666 = vpow2.f32 %v3177_v27  ;;  %v3191_v5 = vmul.f32 1.442695, %v2806_v63  ;;  %1614 = vbcast.lane.b32.xlu0 %v1608_v54, 264  ;;  %11834 = vmatprep.subr.bf16.mxu0 %v4522_v10  ;;  %v22167_v31 = vrot.slane %v22166_v46, %v22078_v50 }
 0x22b   : > { %v22168_v58 = vmov 0  ;;  %v22171_v3 = vmax.f32 %v15368_v15, 0.0  ;;  %12668 = vlog2.f32 %v3563_v35  ;;  %v2552_v27 = vand.u32 2147483647, %v15610_v40  ;;  %11835 = vmatpush3.bf16.msra.mxu0 %v4522_v10  ;;  %1610 = vbcast.lane.b32.xlu1 %v1608_v54, 256 }
 0x22c   : > { %vm15621_vm12 = vcmp.eq.s32.totalorder %v22167_v31, 1  ;;  %v12655_v45 = vpop.eup %12654  ;;  %v3930_v63 = vmul.f32 0.6931472, %v12653_v60  ;;  %12670 = vpow2.f32 %v3191_v5  ;;  %v3181_v46 = vmul.f32 1.442695, %v2801_v44  ;;  %v15631_v31 = vpop.f32.mrb[12].mxu0 }
 0x22d   : > { %v22169_v58 = vsel %vm15621_vm12, 4294967295, %v22168_v58  ;;  %v15627_v24 = vadd.f32 %v3926_v0, %v22171_v3  ;;  %v12657_v61 = vpop.eup %12656  ;;  %v3570_v18 = vadd.f32 1.0, %v12655_v45  ;;  %22172 = vst [vmem:[#allocation63_spill] sm:$0xff] %v15631_v31  ;;  %v22173_v11 = vmax.f32 %v15404_v13, 0.0  ;;  %v15638_v3 = vpop.f32.mrb[13].mxu0 }
 0x22e   : > { %22170 = vst [vmem:[#allocation20_spill] sm:$0xff] %v22169_v58  ;;  %v3565_v15 = vadd.f32 1.0, %v12657_v61  ;;  %v2808_v35 = vsub.f32 0.0, %v2552_v27  ;;  %22174 = vst [vmem:[#allocation64_spill] sm:$0xff] %v15638_v3  ;;  %v12659_v28 = vpop.eup %12658  ;;  %v2547_v10 = vand.u32 2147483647, %v15614_v51  ;;  %11837 = vmatmul.mubr.msk.bf16.vlgmr.msra.gmra.mrb[52].mxu0 %vm21729_vm0, %v15571_v41  ;;  %v4523_v5 = vpack.c.bf16 %v15465_v22, %v15549_v7  ;;  %v15655_v45 = vpop.permute.xlu1 %1333 }
 0x22f   : > { %v15635_v37 = vadd.f32 %v3940_v43, %v22173_v11  ;;  %12672 = vlog2.f32 %v3570_v18  ;;  %1622 = vbcast.lane.b32.xlu0 %v1608_v54, 280  ;;  %v15647_v13 = vsub.f32 %v15168_v49, %v15559_v16  ;;  %v15649_v11 = vpop.permute.xlu0 %1348  ;;  %v12661_v43 = vpop.eup %12660  ;;  %v3944_v60 = vmul.f32 0.6931472, %v12659_v28  ;;  %1618 = vbcast.lane.b32.xlu1 %v1608_v54, 272 }
 0x230   : > { %12674 = vlog2.f32 %v3565_v15  ;;  %v3195_v44 = vmul.f32 1.442695, %v2808_v35  ;;  %v15653_v18 = vsub.f32 %v15177_v55, %v15529_v9  ;;  %11852 = vmatprep.mubr.msk.bf16.mxu0 %vm21729_vm0, %v15186_v33  ;;  %v15659_v22 = vpop.f32.mrb[14].mxu0  ;;  %v22176_v49 = vmax.f32 %v15410_v39, 0.0  ;;  %11840 = vmatprep.subr.bf16.mxu1 %v4523_v5 }
 0x231   : > { %22175 = vst [vmem:[#allocation65_spill] sm:$0xff] %v15659_v22  ;;  %12676 = vpow2.f32 %v3181_v46  ;;  %v2803_v28 = vsub.f32 0.0, %v2547_v10  ;;  %v15666_v27 = vpop.f32.mrb[15].mxu0  ;;  %v12663_v55 = vpop.eup %12662  ;;  %v3934_v9 = vmul.f32 0.6931472, %v12661_v43  ;;  %11841 = vmatpush3.bf16.msra.mxu1 %v4523_v5  ;;  %v22178_v61 = vmax.f32 %v15434_v6, 0.0 }
 0x232   : > { %v15663_v7 = vadd.f32 %v3930_v63, %v22176_v49  ;;  %22177 = vst [vmem:[#allocation66_spill] sm:$0xff] %v15666_v27  ;;  %12678 = vpow2.f32 %v3195_v44  ;;  %v2554_v33 = vand.u32 2147483647, %v15647_v13  ;;  %v3572_v63 = vadd.f32 1.0, %v12663_v55  ;;  %v15688_v49 = vld [vmem:[%s21552_s0 + $0x18] sm:$0xff] }
 0x233   : > { %v15672_v39 = vadd.f32 %v3944_v60, %v22178_v61  ;;  %v3185_v46 = vmul.f32 1.442695, %v2803_v28  ;;  %v2549_v15 = vand.u32 2147483647, %v15653_v18  ;;  %v12665_v35 = vpop.eup %12664  ;;  %v1627_v43 = vrot.slane %v15590_v4, %v22082_v48  ;;  %v15683_v28 = vpop.permute.xlu0 %1356 }
 0x234   : > { %v2810_v10 = vsub.f32 0.0, %v2554_v33  ;;  %v12667_v5 = vpop.eup %12666  ;;  %v3948_v54 = vmul.f32 0.6931472, %v12665_v35  ;;  %12680 = vlog2.f32 %v3572_v63  ;;  %v4524_v60 = vpack.c.bf16 %v15490_v42, %v15587_v20  ;;  %v22179_v63 = vld [vmem:[#allocation39_spill] sm:$0xff] }
 0x235   : > { %v2805_v6 = vsub.f32 0.0, %v2549_v15  ;;  %v12669_v55 = vpop.eup %12668  ;;  %v3567_v33 = vadd.f32 1.0, %v12667_v5  ;;  %12682 = vpow2.f32 %v3185_v46  ;;  %1633 = vbcast.lane.b32.xlu0 %v1627_v43, 264  ;;  %v15692_v35 = vsub.f32 %v15688_v49, %v15606_v1  ;;  %1629 = vbcast.lane.b32.xlu1 %v1627_v43, 256  ;;  %v15701_v46 = vpop.permute.xlu1 %1344 }
 0x236   : > { %v3199_v61 = vmul.f32 1.442695, %v2810_v10  ;;  %v22180_v42 = vrot.slane %v22179_v63, %v22078_v50  ;;  %v22181_v20 = vmov 0  ;;  %v12671_v15 = vpop.eup %12670  ;;  %v22184_v10 = vmax.f32 %v15438_v25, 0.0  ;;  %11842 = vmatprep.subr.bf16.mxu1 %v4524_v60  ;;  %v15711_v0 = vpop.f32.mrb[12].mxu1 }
 0x237   : > { %v3938_v44 = vmul.f32 0.6931472, %v12669_v55  ;;  %v3189_v16 = vmul.f32 1.442695, %v2805_v6  ;;  %v15709_v1 = vsub.f32 %v15273_v53, %v15566_v57  ;;  %22185 = vst [vmem:[#allocation67_spill] sm:$0xff] %v15711_v0  ;;  %12684 = vlog2.f32 %v3567_v33  ;;  %11843 = vmatpush3.bf16.msra.mxu1 %v4524_v60  ;;  %v15717_v25 = vpop.f32.mrb[13].mxu1 }
 0x238   : > { %vm15697_vm13 = vcmp.eq.s32.totalorder %v22180_v42, 1  ;;  %v15705_v5 = vadd.f32 %v3934_v9, %v22184_v10  ;;  %v3574_v63 = vadd.f32 1.0, %v12671_v15  ;;  %v2556_v23 = vand.u32 2147483647, %v15692_v35  ;;  %22186 = vst [vmem:[#allocation68_spill] sm:$0xff] %v15717_v25  ;;  %v15725_v15 = vpop.f32.mrb[14].mxu1 }
 0x239   : > { %v22182_v20 = vsel %vm15697_vm13, 4294967295, %v22181_v20  ;;  %v12673_v9 = vpop.eup %12672  ;;  %v22187_v6 = vmax.f32 %v15472_v8, 0.0  ;;  %12686 = vpow2.f32 %v3199_v61  ;;  %v2551_v33 = vand.u32 2147483647, %v15709_v1  ;;  %22188 = vst [vmem:[#allocation69_spill] sm:$0xff] %v15725_v15  ;;  %1641 = vbcast.lane.b32.xlu0 %v1627_v43, 280 }
 0x23a   : > { %22183 = vst [vmem:[#allocation39_spill] sm:$0xff] %v22182_v20  ;;  %v12675_v10 = vpop.eup %12674  ;;  %v22189_v42 = vmax.f32 %v15476_v52, 0.0  ;;  %v3952_v60 = vmul.f32 0.6931472, %v12673_v9  ;;  %12688 = vlog2.f32 %v3574_v63  ;;  %v2812_v48 = vsub.f32 0.0, %v2556_v23  ;;  %11845 = vmatmul.mubr.msk.bf16.vlgmr.msra.gmra.mrb[52].mxu1 %vm21729_vm0, %v15571_v41  ;;  %1637 = vbcast.lane.b32.xlu1 %v1627_v43, 272 }
 0x23b   : > { %v15721_v55 = vadd.f32 %v3948_v54, %v22187_v6  ;;  %v12677_v25 = vpop.eup %12676  ;;  %v3942_v8 = vmul.f32 0.6931472, %v12675_v10  ;;  %12690 = vpow2.f32 %v3189_v16  ;;  %v2807_v61 = vsub.f32 0.0, %v2551_v33  ;;  %v15734_v6 = vpop.permute.xlu0 %1367 }
 0x23c   : > { %v15729_v21 = vadd.f32 %v3938_v44, %v22189_v42  ;;  %v12679_v57 = vpop.eup %12678  ;;  %v3569_v52 = vadd.f32 1.0, %v12677_v25  ;;  %v3203_v44 = vmul.f32 1.442695, %v2812_v48  ;;  %v4525_v63 = vpack.c.bf16 %v15539_v36, %v15627_v24  ;;  %v15741_v16 = vpop.permute.xlu1 %1352  ;;  %v15746_v42 = vld [vmem:[%s21558_s6] sm:$0xff]   ;;  %v15758_v36 = vld [vmem:[%s21552_s0 + $0x8] sm:$0xff] }
 0x23d   : > { %11860 = vmatprep.mubr.msk.bf16.mxu1 %vm21729_vm0, %v15746_v42  ;;  %v15750_v43 = vpop.f32.mrb[15].mxu1  ;;  %v3576_v48 = vadd.f32 1.0, %v12679_v57  ;;  %v3193_v25 = vmul.f32 1.442695, %v2807_v61  ;;  %v15762_v24 = vsub.f32 %v15758_v36, %v15649_v11  ;;  %v22191_v33 = vmax.f32 %v15506_v26, 0.0  ;;  %v15771_v57 = vld [vmem:[%s21552_s0] sm:$0xff] }
 0x23e   : > { %22190 = vst [vmem:[#allocation70_spill] sm:$0xff] %v15750_v43  ;;  %12692 = vlog2.f32 %v3569_v52  ;;  %11848 = vmatprep.subr.bf16.mxu0 %v4525_v63  ;;  %v15775_v61 = vsub.f32 %v15771_v57, %v15616_v29  ;;  %v1646_v23 = vrot.slane %v15590_v4, %v22084_v30  ;;  %v12681_v11 = vpop.eup %12680  ;;  %v22192_v9 = vmax.f32 %v15510_v59, 0.0 }
 0x23f   : > { %v15766_v10 = vadd.f32 %v3952_v60, %v22191_v33  ;;  %12694 = vlog2.f32 %v3576_v48  ;;  %v2558_v60 = vand.u32 2147483647, %v15762_v24  ;;  %11849 = vmatpush3.bf16.msra.mxu0 %v4525_v63  ;;  %v15787_v33 = vpop.f32.mrb[16].mxu0  ;;  %v12683_v29 = vpop.eup %12682  ;;  %v3956_v54 = vmul.f32 0.6931472, %v12681_v11 }
 0x240   : > { %v15781_v26 = vadd.f32 %v3942_v8, %v22192_v9  ;;  %22193 = vst [vmem:[#allocation71_spill] sm:$0xff] %v15787_v33  ;;  %12696 = vpow2.f32 %v3203_v44  ;;  %v2553_v17 = vand.u32 2147483647, %v15775_v61  ;;  %1652 = vbcast.lane.b32.xlu0 %v1646_v23, 264  ;;  %v3571_v59 = vadd.f32 1.0, %v12683_v29  ;;  %1648 = vbcast.lane.b32.xlu1 %v1646_v23, 256  ;;  %v15793_v48 = vpop.permute.xlu0 %1375 }
 0x241   : > { %12698 = vpow2.f32 %v3193_v25  ;;  %v2814_v8 = vsub.f32 0.0, %v2558_v60  ;;  %v4526_v63 = vpack.c.bf16 %v15556_v62, %v15663_v7  ;;  %v15795_v9 = vpop.f32.mrb[17].mxu0  ;;  %v12685_v52 = vpop.eup %12684  ;;  %v15802_v14 = vsub.f32 %v15688_v49, %v15683_v28 }
 0x242   : > { %22194 = vst [vmem:[#allocation72_spill] sm:$0xff] %v15795_v9  ;;  %v2809_v19 = vsub.f32 0.0, %v2553_v17  ;;  %v15806_v25 = vsub.f32 %v15273_v53, %v15655_v45  ;;  %v15808_v62 = vpop.permute.xlu1 %1363  ;;  %v15810_v7 = vpop.f32.mrb[18].mxu0  ;;  %v3946_v29 = vmul.f32 0.6931472, %v12685_v52  ;;  %12700 = vlog2.f32 %v3571_v59 }
 0x243   : > { %22196 = vst [vmem:[#allocation73_spill] sm:$0xff] %v15810_v7  ;;  %v12687_v60 = vpop.eup %12686  ;;  %v3207_v17 = vmul.f32 1.442695, %v2814_v8  ;;  %11850 = vmatprep.subr.bf16.mxu0 %v4526_v63  ;;  %v22197_v11 = vmax.f32 %v15535_v32, 0.0  ;;  %v2560_v53 = vand.u32 2147483647, %v15802_v14 }
 0x244   : > { %v12689_v44 = vpop.eup %12688  ;;  %v3578_v30 = vadd.f32 1.0, %v12687_v60  ;;  %v3197_v9 = vmul.f32 1.442695, %v2809_v19  ;;  %11851 = vmatpush3.bf16.msra.mxu0 %v4526_v63  ;;  %v22198_v7 = vmax.f32 %v15543_v38, 0.0  ;;  %1660 = vbcast.lane.b32.xlu0 %v1646_v23, 280  ;;  %v15826_v32 = vpop.f32.mrb[19].mxu0  ;;  %v4527_v60 = vpack.c.bf16 %v15596_v2, %v15705_v5 }
 0x245   : > { %v15815_v28 = vadd.f32 %v3956_v54, %v22197_v11  ;;  %v12691_v45 = vpop.eup %12690  ;;  %12702 = vpow2.f32 %v3207_v17  ;;  %1656 = vbcast.lane.b32.xlu1 %v1646_v23, 272  ;;  %22200 = vst [vmem:[#allocation74_spill] sm:$0xff] %v15826_v32  ;;  %v2816_v54 = vsub.f32 0.0, %v2560_v53  ;;  %v2555_v63 = vand.u32 2147483647, %v15806_v25  ;;  %v15836_v23 = vpop.permute.xlu0 %1386  ;;  %v22202_v5 = vld [vmem:[#allocation7_spill] sm:$0xff] }
 0x246   : > { %v15820_v33 = vadd.f32 %v3946_v29, %v22198_v7  ;;  %12704 = vlog2.f32 %v3578_v30  ;;  %v3573_v19 = vadd.f32 1.0, %v12691_v45  ;;  %v3960_v11 = vmul.f32 0.6931472, %v12689_v44  ;;  %11856 = vmatprep.subr.bf16.mxu1 %v4527_v60 }
 0x247   : > { %12706 = vpow2.f32 %v3197_v9  ;;  %11853 = vmatmul.mubr.msk.bf16.vlgmr.msra.gmra.mrb[56].mxu0 %vm21729_vm0, %v15571_v41  ;;  %v3211_v30 = vmul.f32 1.442695, %v2816_v54  ;;  %v2811_v17 = vsub.f32 0.0, %v2555_v63  ;;  %v15840_v44 = vsub.f32 %v15758_v36, %v15734_v6  ;;  %v15842_v9 = vpop.permute.xlu1 %1371  ;;  %v22203_v54 = vld [vmem:[#allocation13_spill] sm:$0xff]  ;;  %11857 = vmatpush3.bf16.msra.mxu1 %v4527_v60 }
 0x248   : > { %v12693_v29 = vpop.eup %12692  ;;  %12708 = vlog2.f32 %v3573_v19  ;;  %11868 = vmatprep.mubr.msk.bf16.mxu0 %vm21729_vm0, %v15746_v42  ;;  %v15848_v2 = vsub.f32 %v15771_v57, %v15701_v46  ;;  %v1665_v19 = vrot.slane %v15590_v4, %v22202_v5  ;;  %v7803_v63 = vcombine.high %v22203_v54, %v22203_v54  ;;  %v15855_v58 = vpop.f32.mrb[16].mxu1 }
 0x249   : > { %v12695_v53 = vpop.eup %12694  ;;  %v3950_v45 = vmul.f32 0.6931472, %v12693_v29  ;;  %12710 = vpow2.f32 %v3211_v30  ;;  %v3201_v52 = vmul.f32 1.442695, %v2811_v17  ;;  %22204 = vst [vmem:[#allocation13_spill] sm:$0xff] %v15855_v58  ;;  %v22205_v59 = vmax.f32 %v15577_v12, 0.0 }
 0x24a   : > { %v12697_v6 = vpop.eup %12696  ;;  %v3964_v8 = vmul.f32 0.6931472, %v12695_v53  ;;  %v2562_v5 = vand.u32 2147483647, %v15840_v44  ;;  %1671 = vbcast.lane.b32.xlu0 %v1665_v19, 264  ;;  %1667 = vbcast.lane.b32.xlu1 %v1665_v19, 256 }
 0x24b   : > { %v12699_v29 = vpop.eup %12698  ;;  %v15859_v46 = vadd.f32 %v3960_v11, %v22205_v59  ;;  %v3580_v38 = vadd.f32 1.0, %v12697_v6  ;;  %v22206_v30 = vmax.f32 %v15581_v56, 0.0  ;;  %12712 = vpow2.f32 %v3201_v52  ;;  %v15868_v54 = vpop.f32.mrb[17].mxu1 }
 0x24c   : > { %v3575_v17 = vadd.f32 1.0, %v12699_v29  ;;  %v2557_v60 = vand.u32 2147483647, %v15848_v2  ;;  %22207 = vst [vmem:[#allocation75_spill] sm:$0xff] %v15868_v54  ;;  %v12701_v12 = vpop.eup %12700  ;;  %v2818_v59 = vsub.f32 0.0, %v2562_v5  ;;  %vm8152_vm14 = vcmp.ne.s32.totalorder %v7803_v63, 0  ;;  %v15872_v6 = vpop.permute.xlu0 %1394 }
 0x24d   : > { %v15865_v53 = vadd.f32 %v3950_v45, %v22206_v30  ;;  %12714 = vlog2.f32 %v3580_v38  ;;  %v4528_v11 = vpack.c.bf16 %v15635_v37, %v15729_v21  ;;  %v3954_v20 = vmul.f32 0.6931472, %v12701_v12  ;;  %v15875_v29 = vpop.permute.xlu1 %1382  ;;  %v15883_v21 = vpop.f32.mrb[18].mxu1 }
 0x24e   : > { %12716 = vlog2.f32 %v3575_v17  ;;  %v2813_v56 = vsub.f32 0.0, %v2557_v60  ;;  %v22208_v45 = vmov 0   ;;  %v3215_v7 = vmul.f32 1.442695, %v2818_v59  ;;  %1679 = vbcast.lane.b32.xlu0 %v1665_v19, 280  ;;  %22209 = vst [vmem:[#allocation76_spill] sm:$0xff] %v15883_v21 }
 0x24f   : > { %v8216_v30 = vsel %vm8152_vm14, 1, %v22208_v45  ;;  %v12703_v52 = vpop.eup %12702  ;;  %11858 = vmatprep.subr.bf16.mxu1 %v4528_v11  ;;  %v15881_v5 = vsub.f32 %v15688_v49, %v15793_v48  ;;  %v15888_v60 = vld [vmem:[%s21552_s0 + $0x10] sm:$0xff]  ;;  %v4529_v48 = vpack.c.bf16 %v15672_v39, %v15781_v26  ;;  %1675 = vbcast.lane.b32.xlu1 %v1665_v19, 272  ;;  %v15896_v59 = vpop.f32.mrb[19].mxu1  ;;  %v22212_v54 = vmax.f32 %v15614_v51, 0.0 }
 0x250   : > { %v8289_v38 = vrot.slane %v8216_v30, %v22078_v50  ;;  %v12705_v37 = vpop.eup %12704  ;;  %v3582_v63 = vadd.f32 1.0, %v12703_v52  ;;  %v3205_v17 = vmul.f32 1.442695, %v2813_v56  ;;  %v15892_v12 = vsub.f32 %v15888_v60, %v15741_v16  ;;  %11859 = vmatpush3.bf16.msra.mxu1 %v4528_v11  ;;  %22210 = vst [vmem:[#allocation77_spill] sm:$0xff] %v15896_v59 }
 0x251   : > { %v12707_v30 = vpop.eup %12706  ;;  %v22211_v52 = vmax.f32 %v15610_v40, 0.0  ;;  %v15904_v21 = vadd.f32 %v3954_v20, %v22212_v54  ;;  %v3968_v58 = vmul.f32 0.6931472, %v12705_v37  ;;  %12718 = vpow2.f32 %v3215_v7  ;;  %11864 = vmatprep.subr.bf16.mxu0 %v4529_v48  ;;  %v15920_v7 = vpop.permute.xlu0 %1405  ;;  %v22222_v20 = vld [vmem:[#allocation18_spill] sm:$0xff] }
 0x252   : > { %v12709_v16 = vpop.eup %12708  ;;  %12720 = vlog2.f32 %v3582_v63  ;;  %v3577_v11 = vadd.f32 1.0, %v12707_v30  ;;  %vm15906_vm1 = vcmp.eq.s32.totalorder %v8289_v38, 1  ;;  %v22213_v32 = vmov 0  ;;  %11865 = vmatpush3.bf16.msra.mxu0 %v4529_v48 }
 0x253   : > { %v15900_v56 = vadd.f32 %v3964_v8, %v22211_v52  ;;  %v22214_v32 = vsel %vm15906_vm1, 4294967295, %v22213_v32  ;;  %12722 = vpow2.f32 %v3205_v17  ;;  %v2564_v8 = vand.u32 2147483647, %v15881_v5  ;;  %11861 = vmatmul.mubr.msk.bf16.vlgmr.msra.gmra.mrb[56].mxu1 %vm21729_vm0, %v15571_v41  ;;  %v12711_v19 = vpop.eup %12710  ;;  %v15927_v17 = vpop.permute.xlu1 %1390 }
 0x254   : > { %22215 = vst [vmem:[#allocation78_spill] sm:$0xff] %v22214_v32  ;;  %v22218_v54 = vmax.f32 %v15647_v13, 0.0  ;;  %v3958_v37 = vmul.f32 0.6931472, %v12709_v16  ;;  %12724 = vlog2.f32 %v3577_v11  ;;  %v2559_v63 = vand.u32 2147483647, %v15892_v12  ;;  %11876 = vmatprep.mubr.msk.bf16.mxu1 %vm21729_vm0, %v15746_v42 }
 0x255   : > { %v3584_v30 = vadd.f32 1.0, %v12711_v19  ;;  %v2820_v52 = vsub.f32 0.0, %v2564_v8  ;;  %v12713_v13 = vpop.eup %12712  ;;  %v15937_v16 = vsub.f32 %v15758_v36, %v15836_v23  ;;  %v15941_v11 = vsub.f32 %v15771_v57, %v15808_v62  ;;  %v15945_v8 = vpop.f32.mrb[20].mxu0 }
 0x256   : > { %v15924_v38 = vadd.f32 %v3968_v58, %v22218_v54  ;;  %v2815_v58 = vsub.f32 0.0, %v2559_v63  ;;  %v22220_v54 = vld [vmem:[#allocation8_spill] sm:$0xff]  ;;  %22221 = vst [vmem:[#allocation79_spill] sm:$0xff] %v15945_v8  ;;  %v3579_v39 = vadd.f32 1.0, %v12713_v13  ;;  %v7805_v63 = vcombine.high %v22222_v20, %v22222_v20  ;;  %v15949_v26 = vpop.f32.mrb[21].mxu0  ;;  %v15961_v13 = vpop.permute.xlu0 %1413 }
 0x257   : > { %v1684_v19 = vrot.slane %v15590_v4, %v22220_v54  ;;  %v12715_v48 = vpop.eup %12714  ;;  %12726 = vlog2.f32 %v3584_v30  ;;  %v3219_v40 = vmul.f32 1.442695, %v2820_v52  ;;  %22223 = vst [vmem:[#allocation18_spill] sm:$0xff] %v15949_v26  ;;  %v22224_v51 = vmax.f32 %v15653_v18, 0.0  ;;  %v15968_v30 = vpop.f32.mrb[22].mxu0 }
 0x258   : > { %v12717_v23 = vpop.eup %12716  ;;  %v3972_v62 = vmul.f32 0.6931472, %v12715_v48  ;;  %v3209_v43 = vmul.f32 1.442695, %v2815_v58  ;;  %12728 = vlog2.f32 %v3579_v39  ;;  %v2566_v52 = vand.u32 2147483647, %v15937_v16 }
 0x259   : > { %v15953_v59 = vadd.f32 %v3958_v37, %v22224_v51  ;;  %v2561_v20 = vand.u32 2147483647, %v15941_v11  ;;  %12730 = vpow2.f32 %v3219_v40  ;;  %1690 = vbcast.lane.b32.xlu0 %v1684_v19, 264  ;;  %vm8153_vm2 = vcmp.ne.s32.totalorder %v7805_v63, 0  ;;  %1686 = vbcast.lane.b32.xlu1 %v1684_v19, 256  ;;  %v15966_v37 = vpop.permute.xlu1 %1401  ;;  %22226 = vst [vmem:[#allocation80_spill] sm:$0xff] %v15968_v30 }
 0x25a   : > { %v4530_v51 = vpack.c.bf16 %v15721_v55, %v15820_v33  ;;  %v3962_v48 = vmul.f32 0.6931472, %v12717_v23  ;;  %12732 = vpow2.f32 %v3209_v43  ;;  %v2822_v58 = vsub.f32 0.0, %v2566_v52  ;;  %v15979_v33 = vpop.f32.mrb[23].mxu0 }
 0x25b   : > { %v12719_v39 = vpop.eup %12718  ;;  %v2817_v54 = vsub.f32 0.0, %v2561_v20  ;;  %v8217_v40 = vsel %vm8153_vm2, 1, %v22208_v45  ;;  %v15973_v63 = vsub.f32 %v15688_v49, %v15872_v6  ;;  %v15977_v55 = vsub.f32 %v15888_v60, %v15842_v9  ;;  %22227 = vst [vmem:[#allocation81_spill] sm:$0xff] %v15979_v33 }
 0x25c   : > { %v12721_v15 = vpop.eup %12720  ;;  %v3586_v32 = vadd.f32 1.0, %v12719_v39  ;;  %11866 = vmatprep.subr.bf16.mxu0 %v4530_v51  ;;  %v3223_v52 = vmul.f32 1.442695, %v2822_v58  ;;  %v8293_v18 = vrot.slane %v8217_v40, %v22078_v50  ;;  %v22228_v30 = vmax.f32 %v15692_v35, 0.0 }
 0x25d   : > { %v12723_v43 = vpop.eup %12722  ;;  %v3976_v23 = vmul.f32 0.6931472, %v12721_v15  ;;  %v3213_v20 = vmul.f32 1.442695, %v2817_v54  ;;  %11867 = vmatpush3.bf16.msra.mxu0 %v4530_v51  ;;  %v2568_v8 = vand.u32 2147483647, %v15973_v63  ;;  %v15995_v51 = vpop.permute.xlu0 %1424  ;;  %v16028_v40 = vsub.f32 %v15758_v36, %v15920_v7 }
 0x25e   : > { %v12725_v39 = vpop.eup %12724  ;;  %v15984_v26 = vadd.f32 %v3972_v62, %v22228_v30  ;;  %12734 = vlog2.f32 %v3586_v32  ;;  %v3581_v6 = vadd.f32 1.0, %v12723_v43  ;;  %1698 = vbcast.lane.b32.xlu0 %v1684_v19, 280  ;;  %1694 = vbcast.lane.b32.xlu1 %v1684_v19, 272  ;;  %v22229_v9 = vmax.f32 %v15709_v1, 0.0  ;;  %v16003_v1 = vpop.permute.xlu1 %1409  ;;  %v22243_v62 = vld [vmem:[#allocation17_spill] sm:$0xff] }
 0x25f   : > { %v3966_v15 = vmul.f32 0.6931472, %v12725_v39  ;;  %12736 = vpow2.f32 %v3223_v52  ;;  %vm15991_vm3 = vcmp.eq.s32.totalorder %v8293_v18, 1  ;;  %v22230_v54 = vmov 0 }
 0x260   : > { %v15989_v33 = vadd.f32 %v3962_v48, %v22229_v9  ;;  %v22231_v54 = vsel %vm15991_vm3, 4294967295, %v22230_v54  ;;  %12738 = vlog2.f32 %v3581_v6  ;;  %v2824_v19 = vsub.f32 0.0, %v2568_v8  ;;  %11869 = vmatmul.mubr.msk.bf16.vlgmr.msra.gmra.mrb[60].mxu0 %vm21729_vm0, %v15571_v41  ;;  %v16015_v8 = vpop.f32.mrb[20].mxu1 }
 0x261   : > { %22232 = vst [vmem:[#allocation82_spill] sm:$0xff] %v22231_v54  ;;  %v12727_v30 = vpop.eup %12726  ;;  %v22234_v18 = vmax.f32 %v15762_v24, 0.0  ;;  %12740 = vpow2.f32 %v3213_v20  ;;  %v2563_v43 = vand.u32 2147483647, %v15977_v55  ;;  %11884 = vmatprep.mubr.msk.bf16.mxu0 %vm21729_vm0, %v15746_v42  ;;  %22236 = vst [vmem:[#allocation83_spill] sm:$0xff] %v16015_v8  ;;  %v22237_v52 = vmax.f32 %v15775_v61, 0.0  ;;  %v16043_v35 = vpop.permute.xlu0 %1432 }
 0x262   : > { %v3980_v6 = vmul.f32 0.6931472, %v12727_v30  ;;  %v3227_v24 = vmul.f32 1.442695, %v2824_v19  ;;  %v12729_v20 = vpop.eup %12728  ;;  %v16032_v61 = vsub.f32 %v15771_v57, %v15875_v29  ;;  %v2570_v29 = vand.u32 2147483647, %v16028_v40 }
 0x263   : > { %v16007_v48 = vadd.f32 %v3976_v23, %v22234_v18  ;;  %v16019_v39 = vadd.f32 %v3966_v15, %v22237_v52  ;;  %v4531_v23 = vpack.c.bf16 %v15766_v10, %v15865_v53  ;;  %v2819_v9 = vsub.f32 0.0, %v2563_v43  ;;  %v16034_v15 = vpop.f32.mrb[21].mxu1  ;;  %v12731_v19 = vpop.eup %12730  ;;  %v22241_v43 = vld [vmem:[#allocation9_spill] sm:$0xff] }
 0x264   : > { %22239 = vst [vmem:[#allocation84_spill] sm:$0xff] %v16034_v15  ;;  %v3970_v30 = vmul.f32 0.6931472, %v12729_v20  ;;  %12742 = vpow2.f32 %v3227_v24  ;;  %v1703_v52 = vrot.slane %v15590_v4, %v22241_v43  ;;  %v12733_v32 = vpop.eup %12732  ;;  %v3588_v7 = vadd.f32 1.0, %v12731_v19  ;;  %v16051_v19 = vpop.permute.xlu1 %1420 }
 0x265   : > { %11872 = vmatprep.subr.bf16.mxu1 %v4531_v23  ;;  %v3217_v18 = vmul.f32 1.442695, %v2819_v9  ;;  %v22242_v24 = vmax.f32 %v15802_v14, 0.0  ;;  %v3583_v58 = vadd.f32 1.0, %v12733_v32  ;;  %v2565_v10 = vand.u32 2147483647, %v16032_v61 }
 0x266   : > { %11873 = vmatpush3.bf16.msra.mxu1 %v4531_v23  ;;  %1709 = vbcast.lane.b32.xlu0 %v1703_v52, 264  ;;  %12744 = vlog2.f32 %v3588_v7  ;;  %v2826_v9 = vsub.f32 0.0, %v2570_v29  ;;  %vm8154_vm4 = vcmp.ne.s32.totalorder %v22243_v62, 0  ;;  %v4532_v23 = vpack.c.bf16 %v15815_v28, %v15904_v21  ;;  %v16062_v29 = vpop.f32.mrb[22].mxu1 }
 0x267   : > { %v16047_v20 = vadd.f32 %v3980_v6, %v22242_v24  ;;  %1705 = vbcast.lane.b32.xlu1 %v1703_v52, 256  ;;  %12746 = vlog2.f32 %v3583_v58  ;;  %v2821_v14 = vsub.f32 0.0, %v2565_v10  ;;  %v8218_v32 = vsel %vm8154_vm4, 1, %v22208_v45  ;;  %22244 = vst [vmem:[#allocation17_spill] sm:$0xff] %v16062_v29  ;;  %v22368_v29 = vld [vmem:[#allocation30_spill] sm:$0xff] }
 0x268   : > { %v12735_v54 = vpop.eup %12734  ;;  %v16059_v6 = vsub.f32 %v15688_v49, %v15961_v13  ;;  %12748 = vpow2.f32 %v3217_v18  ;;  %v3231_v43 = vmul.f32 1.442695, %v2826_v9  ;;  %v8297_v7 = vrot.slane %v8218_v32, %v22078_v50  ;;  %11874 = vmatprep.subr.bf16.mxu1 %v4532_v23  ;;  %v16071_v9 = vpop.permute.xlu0 %1443 }
 0x269   : > { %v12737_v24 = vpop.eup %12736  ;;  %v3984_v53 = vmul.f32 0.6931472, %v12735_v54  ;;  %v3221_v58 = vmul.f32 1.442695, %v2821_v14  ;;  %v22245_v13 = vmax.f32 %v15806_v25, 0.0  ;;  %v16073_v32 = vpop.f32.mrb[23].mxu1 }
 0x26a   : > { %v12739_v15 = vpop.eup %12738  ;;  %v3590_v28 = vadd.f32 1.0, %v12737_v24  ;;  %v2572_v10 = vand.u32 2147483647, %v16059_v6  ;;  %11875 = vmatpush3.bf16.msra.mxu1 %v4532_v23  ;;  %12750 = vpow2.f32 %v3231_v43  ;;  %1717 = vbcast.lane.b32.xlu0 %v1703_v52, 280  ;;  %22246 = vst [vmem:[#allocation85_spill] sm:$0xff] %v16073_v32  ;;  %v22247_v14 = vmax.f32 %v15840_v44, 0.0 }
 0x26b   : > { %v12741_v8 = vpop.eup %12740  ;;  %v16068_v0 = vadd.f32 %v3970_v30, %v22245_v13  ;;  %v3974_v54 = vmul.f32 0.6931472, %v12739_v15  ;;  %1713 = vbcast.lane.b32.xlu1 %v1703_v52, 272  ;;  %vm16079_vm5 = vcmp.eq.s32.totalorder %v8297_v7, 1  ;;  %v22248_v25 = vmov 0  ;;  %v16083_v15 = vpop.permute.xlu1 %1428  ;;  %v22254_v7 = vld [vmem:[#allocation12_spill] sm:$0xff] }
 0x26c   : > { %v16077_v24 = vadd.f32 %v3984_v53, %v22247_v14  ;;  %12752 = vlog2.f32 %v3590_v28  ;;  %v3585_v23 = vadd.f32 1.0, %v12741_v8  ;;  %v22249_v25 = vsel %vm16079_vm5, 4294967295, %v22248_v25 }
 0x26d   : > { %22250 = vst [vmem:[#allocation86_spill] sm:$0xff] %v22249_v25  ;;  %12754 = vpow2.f32 %v3221_v58  ;;  %v2828_v43 = vsub.f32 0.0, %v2572_v10  ;;  %v16090_v52 = vsub.f32 %v15888_v60, %v15927_v17  ;;  %11877 = vmatmul.mubr.msk.bf16.vlgmr.msra.gmra.mrb[60].mxu1 %vm21729_vm0, %v15571_v41  ;;  %v4533_v28 = vpack.c.bf16 %v15859_v46, %v15953_v59  ;;  %v22253_v46 = vld [vmem:[#allocation10_spill] sm:$0xff] }
 0x26e   : > { %v12743_v44 = vpop.eup %12742  ;;  %12756 = vlog2.f32 %v3585_v23  ;;  %11892 = vmatprep.mubr.msk.bf16.mxu1 %vm21729_vm0, %v15746_v42  ;;  %v22252_v17 = vmax.f32 %v15848_v2, 0.0  ;;  %v16111_v14 = vsub.f32 %v15758_v36, %v15995_v51  ;;  %v16115_v23 = vsub.f32 %v15771_v57, %v15966_v37  ;;  %v22255_v2 = vld [vmem:[#allocation14_spill] sm:$0xff] }
 0x26f   : > { %v3592_v41 = vadd.f32 1.0, %v12743_v44  ;;  %v3235_v10 = vmul.f32 1.442695, %v2828_v43  ;;  %v2567_v13 = vand.u32 2147483647, %v16090_v52  ;;  %11880 = vmatprep.subr.bf16.mxu0 %v4533_v28  ;;  %v1722_v59 = vrot.slane %v15590_v4, %v22253_v46  ;;  %v16125_v43 = vpop.f32.mrb[24].mxu0  ;;  %v16132_v4 = vpop.permute.xlu0 %1451 }
 0x270   : > { %v16106_v58 = vadd.f32 %v3974_v54, %v22252_v17  ;;  %v22256_v54 = vcombine.high %v22255_v2, %v22255_v2  ;;  %22257 = vst [vmem:[#allocation14_spill] sm:$0xff] %v16125_v43  ;;  %v12745_v17 = vpop.eup %12744  ;;  %11881 = vmatpush3.bf16.msra.mxu0 %v4533_v28  ;;  %v4534_v37 = vpack.c.bf16 %v15900_v56, %v15989_v33  ;;  %v16134_v18 = vpop.f32.mrb[25].mxu0  ;;  %v2569_v21 = vand.u32 2147483647, %v16115_v23 }
 0x271   : > { %12758 = vlog2.f32 %v3592_v41  ;;  %v2823_v30 = vsub.f32 0.0, %v2567_v13  ;;  %22259 = vst [vmem:[#allocation87_spill] sm:$0xff] %v16134_v18  ;;  %v12747_v2 = vpop.eup %12746  ;;  %v2574_v41 = vand.u32 2147483647, %v16111_v14  ;;  %1728 = vbcast.lane.b32.xlu0 %v1722_v59, 264  ;;  %v16138_v13 = vpop.permute.xlu1 %1439  ;;  %v16143_v56 = vsub.f32 %v15688_v49, %v16043_v35  ;;  %1724 = vbcast.lane.b32.xlu1 %v1722_v59, 256 }
 0x272   : > { %v16123_v44 = vrot.slane %v22256_v54, %v22254_v7  ;;  %v3988_v54 = vmul.f32 0.6931472, %v12745_v17  ;;  %12760 = vpow2.f32 %v3235_v10  ;;  %v12749_v53 = vpop.eup %12748  ;;  %v3978_v8 = vmul.f32 0.6931472, %v12747_v2  ;;  %11882 = vmatprep.subr.bf16.mxu0 %v4534_v37 }
 0x273   : > { %v3225_v28 = vmul.f32 1.442695, %v2823_v30  ;;  %v3587_v33 = vadd.f32 1.0, %v12749_v53  ;;  %v2830_v17 = vsub.f32 0.0, %v2574_v41  ;;  %v22260_v47 = vmax.f32 %v15881_v5, 0.0 }
 0x274   : > { %vm8155_vm6 = vcmp.ne.s32.totalorder %v16123_v44, 0  ;;  %v12751_v51 = vpop.eup %12750  ;;  %11883 = vmatpush3.bf16.msra.mxu0 %v4534_v37  ;;  %v2825_v10 = vsub.f32 0.0, %v2569_v21  ;;  %v2576_v5 = vand.u32 2147483647, %v16143_v56  ;;  %v16166_v21 = vld [vmem:[%s21558_s6 + $0x8] sm:$0xff]  }
 0x275   : > { %v16149_v34 = vadd.f32 %v3988_v54, %v22260_v47  ;;  %12762 = vpow2.f32 %v3225_v28  ;;  %v8219_v2 = vsel %vm8155_vm6, 1, %v22208_v45  ;;  %v3594_v53 = vadd.f32 1.0, %v12751_v51  ;;  %1736 = vbcast.lane.b32.xlu0 %v1722_v59, 280  ;;  %v16159_v54 = vpop.permute.xlu0 %1462  ;;  %v16161_v28 = vpop.f32.mrb[26].mxu0  ;;  %1732 = vbcast.lane.b32.xlu1 %v1722_v59, 272 }
 0x276   : > { %v12753_v35 = vpop.eup %12752  ;;  %12764 = vlog2.f32 %v3587_v33  ;;  %v3239_v25 = vmul.f32 1.442695, %v2830_v17  ;;  %v8301_v46 = vrot.slane %v8219_v2, %v22078_v50  ;;  %v16157_v47 = vsub.f32 %v15888_v60, %v16003_v1  ;;  %22261 = vst [vmem:[#allocation88_spill] sm:$0xff] %v16161_v28  ;;  %v16172_v17 = vpop.permute.xlu1 %1447  ;;  %v22275_v28 = vld [vmem:[#allocation11_spill] sm:$0xff] }
 0x277   : > { %v12755_v41 = vpop.eup %12754  ;;  %v3992_v7 = vmul.f32 0.6931472, %v12753_v35  ;;  %12766 = vlog2.f32 %v3594_v53  ;;  %v3229_v33 = vmul.f32 1.442695, %v2825_v10  ;;  %11885 = vmatmul.mubr.msk.bf16.vlgmr.msra.gmra.mrb[64].mxu0 %vm21729_vm0, %v16166_v21  ;;  %v4535_v1 = vpack.c.bf16 %v15924_v38, %v16019_v39  ;;  %v16174_v2 = vpop.f32.mrb[27].mxu0 }
 0x278   : > { %v12757_v37 = vpop.eup %12756  ;;  %v3589_v51 = vadd.f32 1.0, %v12755_v41  ;;  %22262 = vst [vmem:[#allocation89_spill] sm:$0xff] %v16174_v2  ;;  %v22263_v35 = vmax.f32 %v15892_v12, 0.0  ;;  %12768 = vpow2.f32 %v3239_v25  ;;  %vm16180_vm7 = vcmp.eq.s32.totalorder %v8301_v46, 1  ;;  %11900 = vmatprep.mubr.msk.bf16.mxu0 %vm21729_vm0, %v15746_v42 }
 0x279   : > { %v3982_v10 = vmul.f32 0.6931472, %v12757_v37  ;;  %v22264_v41 = vmov 0  ;;  %v2832_v30 = vsub.f32 0.0, %v2576_v5  ;;  %11888 = vmatprep.subr.bf16.mxu1 %v4535_v1  ;;  %v22271_v59 = vmax.f32 %v15941_v11, 0.0  ;;  %v16215_v11 = vpop.permute.xlu0 %1470 }
 0x27a   : > { %v16178_v53 = vadd.f32 %v3978_v8, %v22263_v35  ;;  %v22265_v41 = vsel %vm16180_vm7, 4294967295, %v22264_v41  ;;  %12770 = vlog2.f32 %v3589_v51  ;;  %v22268_v8 = vmax.f32 %v15937_v16, 0.0  ;;  %11889 = vmatpush3.bf16.msra.mxu1 %v4535_v1  ;;  %v16198_v35 = vpop.f32.mrb[24].mxu1 }
 0x27b   : > { %22266 = vst [vmem:[#allocation90_spill] sm:$0xff] %v22265_v41  ;;  %v12759_v12 = vpop.eup %12758  ;;  %12772 = vpow2.f32 %v3229_v33  ;;  %v2571_v51 = vand.u32 2147483647, %v16157_v47  ;;  %22270 = vst [vmem:[#allocation91_spill] sm:$0xff] %v16198_v35  ;;  %v16202_v5 = vadd.f32 %v3982_v10, %v22271_v59  ;;  %v3243_v2 = vmul.f32 1.442695, %v2832_v30  ;;  %v16222_v59 = vpop.permute.xlu1 %1458 }
 0x27c   : > { %v16192_v25 = vadd.f32 %v3992_v7, %v22268_v8  ;;  %v12761_v39 = vpop.eup %12760  ;;  %v3996_v38 = vmul.f32 0.6931472, %v12759_v12  ;;  %v16206_v16 = vsub.f32 %v15758_v36, %v16071_v9  ;;  %v16213_v1 = vsub.f32 %v15771_v57, %v16051_v19  ;;  %v16224_v12 = vpop.f32.mrb[25].mxu1  ;;  %v13238_v35 = vld [vmem:[%s13375_s19 + $0x30] sm:$0xff] }
 0x27d   : > { %v3596_v7 = vadd.f32 1.0, %v12761_v39  ;;  %v2827_v33 = vsub.f32 0.0, %v2571_v51  ;;  %12774 = vpow2.f32 %v3243_v2  ;;  %22274 = vst [vmem:[#allocation92_spill] sm:$0xff] %v16224_v12  ;;  %v1741_v41 = vrot.slane %v13238_v35, %v22275_v28  ;;  %v16238_v35 = vpop.f32.mrb[26].mxu1 }
 0x27e   : > { %v2578_v39 = vand.u32 2147483647, %v16206_v16  ;;  %v2573_v8 = vand.u32 2147483647, %v16213_v1  ;;  %v7804_v9 = vcombine.high %v22243_v62, %v22243_v62  ;;  %22276 = vst [vmem:[#allocation93_spill] sm:$0xff] %v16238_v35  ;;  %v22277_v62 = vmax.f32 %v15973_v63, 0.0 }
 0x27f   : > { %v12763_v51 = vpop.eup %12762  ;;  %12776 = vlog2.f32 %v3596_v7  ;;  %v3233_v19 = vmul.f32 1.442695, %v2827_v33  ;;  %v4536_v7 = vpack.c.bf16 %v15984_v26, %v16068_v0  ;;  %1747 = vbcast.lane.b32.xlu0 %v1741_v41, 264  ;;  %1743 = vbcast.lane.b32.xlu1 %v1741_v41, 256  ;;  %v16245_v26 = vpop.permute.xlu0 %1481 }
 0x280   : > { %v12765_v2 = vpop.eup %12764  ;;  %v3591_v46 = vadd.f32 1.0, %v12763_v51  ;;  %v2834_v30 = vsub.f32 0.0, %v2578_v39  ;;  %v2829_v18 = vsub.f32 0.0, %v2573_v8  ;;  %vm8156_vm8 = vcmp.ne.s32.totalorder %v7804_v9, 0  ;;  %v16251_v63 = vpop.permute.xlu1 %1466 }
 0x281   : > { %v3986_v10 = vmul.f32 0.6931472, %v12765_v2  ;;  %12778 = vpow2.f32 %v3233_v19  ;;  %v12767_v33 = vpop.eup %12766  ;;  %v16236_v39 = vsub.f32 %v15688_v49, %v16132_v4  ;;  %v16242_v19 = vadd.f32 %v3996_v38, %v22277_v62  ;;  %11890 = vmatprep.subr.bf16.mxu1 %v4536_v7 }
 0x282   : > { %12780 = vlog2.f32 %v3591_v46  ;;  %v3247_v37 = vmul.f32 1.442695, %v2834_v30  ;;  %v12769_v51 = vpop.eup %12768  ;;  %v4000_v8 = vmul.f32 0.6931472, %v12767_v33  ;;  %v3237_v2 = vmul.f32 1.442695, %v2829_v18  ;;  %11891 = vmatpush3.bf16.msra.mxu1 %v4536_v7 }
 0x283   : > { %v8220_v0 = vsel %vm8156_vm8, 1, %v22208_v45  ;;  %v16247_v46 = vpop.f32.mrb[27].mxu1  ;;  %v3598_v49 = vadd.f32 1.0, %v12769_v51  ;;  %v22279_v18 = vmax.f32 %v15977_v55, 0.0  ;;  %1755 = vbcast.lane.b32.xlu0 %v1741_v41, 280  ;;  %1751 = vbcast.lane.b32.xlu1 %v1741_v41, 272 }
 0x284   : > { %22278 = vst [vmem:[#allocation94_spill] sm:$0xff] %v16247_v46  ;;  %v12771_v30 = vpop.eup %12770  ;;  %12782 = vpow2.f32 %v3247_v37  ;;  %v8305_v9 = vrot.slane %v8220_v0, %v22078_v50  ;;  %v2580_v46 = vand.u32 2147483647, %v16236_v39  ;;  %v16261_v0 = vsub.f32 %v15888_v60, %v16083_v15  ;;  %v16278_v15 = vld [vmem:[%s13375_s19 + $0x38] sm:$0xff] }
 0x285   : > { %v12773_v38 = vpop.eup %12772  ;;  %v16255_v33 = vadd.f32 %v3986_v10, %v22279_v18  ;;  %v3990_v62 = vmul.f32 0.6931472, %v12771_v30  ;;  %12784 = vpow2.f32 %v3237_v2  ;;  %v22280_v7 = vmax.f32 %v16028_v40, 0.0  ;;  %11893 = vmatmul.mubr.msk.bf16.vlgmr.msra.gmra.mrb[64].mxu1 %vm21729_vm0, %v16166_v21 }
 0x286   : > { %12786 = vlog2.f32 %v3598_v49  ;;  %v3593_v51 = vadd.f32 1.0, %v12773_v38  ;;  %v22281_v10 = vmax.f32 %v16032_v61, 0.0  ;;  %vm16271_vm9 = vcmp.eq.s32.totalorder %v8305_v9, 1  ;;  %11908 = vmatprep.mubr.msk.bf16.mxu1 %vm21729_vm0, %v15746_v42 }
 0x287   : > { %v16265_v55 = vadd.f32 %v4000_v8, %v22280_v7  ;;  %v22282_v2 = vmov 0  ;;  %v2836_v49 = vsub.f32 0.0, %v2580_v46  ;;  %v12775_v38 = vpop.eup %12774  ;;  %v2575_v41 = vand.u32 2147483647, %v16261_v0  ;;  %v16294_v7 = vpop.f32.mrb[28].mxu0 }
 0x288   : > { %v16269_v30 = vadd.f32 %v3990_v62, %v22281_v10  ;;  %v22283_v2 = vsel %vm16271_vm9, 4294967295, %v22282_v2  ;;  %12788 = vlog2.f32 %v3593_v51  ;;  %v3600_v46 = vadd.f32 1.0, %v12775_v38  ;;  %v16292_v51 = vpop.permute.xlu0 %1489  ;;  %22285 = vst [vmem:[#allocation96_spill] sm:$0xff] %v16294_v7  ;;  %v16306_v38 = vpop.f32.mrb[29].mxu0 }
 0x289   : > { %22284 = vst [vmem:[#allocation95_spill] sm:$0xff] %v22283_v2  ;;  %v12777_v8 = vpop.eup %12776  ;;  %v3251_v9 = vmul.f32 1.442695, %v2836_v49  ;;  %v4537_v62 = vpack.c.bf16 %v16007_v48, %v16106_v58  ;;  %v2831_v40 = vsub.f32 0.0, %v2575_v41  ;;  %v16298_v61 = vsub.f32 %v15758_v36, %v16159_v54  ;;  %v16304_v49 = vpop.permute.xlu1 %1477  ;;  %22286 = vst [vmem:[#allocation97_spill] sm:$0xff] %v16306_v38 }
 0x28a   : > { %v4004_v10 = vmul.f32 0.6931472, %v12777_v8  ;;  %v16302_v42 = vsub.f32 %v15771_v57, %v16138_v13  ;;  %12790 = vlog2.f32 %v3600_v46  ;;  %v1760_v48 = vrot.slane %v16278_v15, %v22078_v50 }
 0x28b   : > { %v12779_v18 = vpop.eup %12778  ;;  %11896 = vmatprep.subr.bf16.mxu0 %v4537_v62  ;;  %v7806_v58 = vcombine.high %v16123_v44, %v16123_v44  ;;  %v4538_v36 = vpack.c.bf16 %v16047_v20, %v16178_v53  ;;  %12792 = vpow2.f32 %v3251_v9  ;;  %v3241_v57 = vmul.f32 1.442695, %v2831_v40 }
 0x28c   : > { %v12781_v54 = vpop.eup %12780  ;;  %v3595_v41 = vadd.f32 1.0, %v12779_v18  ;;  %11897 = vmatpush3.bf16.msra.mxu0 %v4537_v62  ;;  %v22287_v8 = vmax.f32 %v16059_v6, 0.0  ;;  %v2582_v20 = vand.u32 2147483647, %v16298_v61  ;;  %v2577_v40 = vand.u32 2147483647, %v16302_v42 }
 0x28d   : > { %v3994_v37 = vmul.f32 0.6931472, %v12781_v54  ;;  %11898 = vmatprep.subr.bf16.mxu0 %v4538_v36  ;;  %1766 = vbcast.lane.b32.xlu0 %v1760_v48, 264  ;;  %vm8157_vm11 = vcmp.ne.s32.totalorder %v7806_v58, 0  ;;  %v16329_v6 = vld [vmem:[%s21552_s0 + $0x18] sm:$0xff]  ;;  %v16340_v22 = vpop.permute.xlu1 %1485  ;;  %v22308_v7 = vmax.f32 %v16206_v16, 0.0 }
 0x28e   : > { %v16319_v46 = vadd.f32 %v4004_v10, %v22287_v8  ;;  %v12783_v53 = vpop.eup %12782  ;;  %12794 = vlog2.f32 %v3595_v41  ;;  %v16333_v9 = vsub.f32 %v16329_v6, %v16215_v11  ;;  %1762 = vbcast.lane.b32.xlu1 %v1760_v48, 256  ;;  %v2838_v54 = vsub.f32 0.0, %v2582_v20  ;;  %v16336_v41 = vpop.permute.xlu0 %1500 }
 0x28f   : > { %v12785_v18 = vpop.eup %12784  ;;  %v3602_v62 = vadd.f32 1.0, %v12783_v53  ;;  %12796 = vpow2.f32 %v3241_v57  ;;  %v2833_v44 = vsub.f32 0.0, %v2577_v40  ;;  %v8221_v4 = vsel %vm8157_vm11, 1, %v22208_v45  ;;  %v16342_v11 = vpop.f32.mrb[30].mxu0 }
 0x290   : > { %v12787_v8 = vpop.eup %12786  ;;  %v3597_v58 = vadd.f32 1.0, %v12785_v18  ;;  %11899 = vmatpush3.bf16.msra.mxu0 %v4538_v36  ;;  %22288 = vst [vmem:[#allocation98_spill] sm:$0xff] %v16342_v11  ;;  %v3255_v57 = vmul.f32 1.442695, %v2838_v54  ;;  %v8309_v53 = vrot.slane %v8221_v4, %v22078_v50  ;;  %v16345_v20 = vpop.f32.mrb[31].mxu0  ;;  %v16350_v40 = vsub.f32 %v15888_v60, %v16172_v17 }
 0x291   : > { %v4008_v27 = vmul.f32 0.6931472, %v12787_v8  ;;  %12798 = vlog2.f32 %v3602_v62  ;;  %22289 = vst [vmem:[#allocation99_spill] sm:$0xff] %v16345_v20  ;;  %v3245_v18 = vmul.f32 1.442695, %v2833_v44  ;;  %1774 = vbcast.lane.b32.xlu0 %v1760_v48, 280 }
 0x292   : > { %v12789_v10 = vpop.eup %12788  ;;  %12800 = vlog2.f32 %v3597_v58  ;;  %v2584_v13 = vand.u32 2147483647, %v16333_v9  ;;  %1770 = vbcast.lane.b32.xlu1 %v1760_v48, 272  ;;  %v22290_v36 = vmax.f32 %v16090_v52, 0.0  ;;  %vm16356_vm14 = vcmp.eq.s32.totalorder %v8309_v53, 1  ;;  %v16369_v52 = vld [vmem:[%s21558_s6] sm:$0xff]   ;;  %v16385_v17 = vpop.permute.xlu0 %1508 }
 0x293   : > { %v3998_v62 = vmul.f32 0.6931472, %v12789_v10  ;;  %12802 = vpow2.f32 %v3255_v57  ;;  %v22291_v4 = vmov 0  ;;  %11901 = vmatmul.mubr.msk.bf16.vlgmr.msra.gmra.mrb[68].mxu0 %vm21729_vm0, %v16166_v21  ;;  %v22295_v10 = vmax.f32 %v16111_v14, 0.0  ;;  %v16387_v48 = vpop.f32.mrb[28].mxu1 }
 0x294   : > { %v16354_v8 = vadd.f32 %v3994_v37, %v22290_v36  ;;  %v22292_v4 = vsel %vm16356_vm14, 4294967295, %v22291_v4  ;;  %12804 = vpow2.f32 %v3245_v18  ;;  %v2840_v54 = vsub.f32 0.0, %v2584_v13  ;;  %11916 = vmatprep.mubr.msk.bf16.mxu0 %vm21729_vm0, %v16369_v52  ;;  %v12791_v37 = vpop.eup %12790  ;;  %22298 = vst [vmem:[#allocation101_spill] sm:$0xff] %v16387_v48  ;;  %v22302_v18 = vld [vmem:[#allocation28_spill] sm:$0xff] }
 0x295   : > { %22293 = vst [vmem:[#allocation100_spill] sm:$0xff] %v22292_v4  ;;  %v16375_v58 = vadd.f32 %v4008_v27, %v22295_v10  ;;  %v22296_v57 = vmax.f32 %v16115_v23, 0.0  ;;  %v2579_v36 = vand.u32 2147483647, %v16350_v40  ;;  %v12793_v44 = vpop.eup %12792  ;;  %v4012_v31 = vmul.f32 0.6931472, %v12791_v37  ;;  %v16392_v23 = vpop.permute.xlu1 %1496 }
 0x296   : > { %v3259_v3 = vmul.f32 1.442695, %v2840_v54  ;;  %v4539_v14 = vpack.c.bf16 %v16077_v24, %v16202_v5  ;;  %v16406_v54 = vld [vmem:[%s21552_s0] sm:$0xff]  ;;  %v16412_v5 = vpop.f32.mrb[29].mxu1  ;;  %vm8158_vm2 = vcmp.ne.s32.totalorder %v22302_v18, 0 }
 0x297   : > { %v16379_v53 = vadd.f32 %v3998_v62, %v22296_v57  ;;  %v3604_v62 = vadd.f32 1.0, %v12793_v44  ;;  %v2835_v10 = vsub.f32 0.0, %v2579_v36  ;;  %v16397_v57 = vld [vmem:[%s21552_s0 + $0x8] sm:$0xff]  ;;  %v16410_v24 = vsub.f32 %v16406_v54, %v16222_v59  ;;  %22299 = vst [vmem:[#allocation102_spill] sm:$0xff] %v16412_v5  ;;  %v16437_v59 = vpop.f32.mrb[30].mxu1 }
 0x298   : > { %v16401_v13 = vsub.f32 %v16397_v57, %v16245_v26  ;;  %v12795_v44 = vpop.eup %12794  ;;  %12806 = vpow2.f32 %v3259_v3  ;;  %11904 = vmatprep.subr.bf16.mxu1 %v4539_v14  ;;  %v22301_v26 = vld [vmem:[#allocation5_spill] sm:$0xff]  ;;  %v22304_v3 = vmax.f32 %v16143_v56, 0.0 }
 0x299   : > { %v1779_v27 = vrot.slane %v16278_v15, %v22301_v26  ;;  %v12797_v2 = vpop.eup %12796  ;;  %v4002_v48 = vmul.f32 0.6931472, %v12795_v44  ;;  %12808 = vlog2.f32 %v3604_v62  ;;  %v3249_v20 = vmul.f32 1.442695, %v2835_v10  ;;  %11905 = vmatpush3.bf16.msra.mxu1 %v4539_v14  ;;  %v16433_v14 = vpop.permute.xlu0 %1519  ;;  %22305 = vst [vmem:[#allocation5_spill] sm:$0xff] %v16437_v59 }
 0x29a   : > { %v16425_v11 = vadd.f32 %v4012_v31, %v22304_v3  ;;  %v3599_v36 = vadd.f32 1.0, %v12797_v2  ;;  %v2586_v37 = vand.u32 2147483647, %v16401_v13  ;;  %v2581_v26 = vand.u32 2147483647, %v16410_v24  ;;  %v16435_v5 = vpop.permute.xlu1 %1504 }
 0x29b   : > { %v12799_v38 = vpop.eup %12798  ;;  %12810 = vpow2.f32 %v3249_v20  ;;  %1785 = vbcast.lane.b32.xlu0 %v1779_v27, 264  ;;  %v8222_v62 = vsel %vm8158_vm2, 1, %v22208_v45  ;;  %v4540_v10 = vpack.c.bf16 %v16149_v34, %v16255_v33  ;;  %1781 = vbcast.lane.b32.xlu1 %v1779_v27, 256  ;;  %v16442_v34 = vsub.f32 %v16329_v6, %v16292_v51 }
 0x29c   : > { %v12801_v31 = vpop.eup %12800  ;;  %v4016_v56 = vmul.f32 0.6931472, %v12799_v38  ;;  %12812 = vlog2.f32 %v3599_v36  ;;  %v2842_v2 = vsub.f32 0.0, %v2586_v37  ;;  %v2837_v3 = vsub.f32 0.0, %v2581_v26  ;;  %v16448_v38 = vpop.f32.mrb[31].mxu1 }
 0x29d   : > { %v12803_v20 = vpop.eup %12802  ;;  %v4006_v44 = vmul.f32 0.6931472, %v12801_v31  ;;  %v8313_v4 = vrot.slane %v8222_v62, %v22078_v50  ;;  %11906 = vmatprep.subr.bf16.mxu1 %v4540_v10  ;;  %v16446_v33 = vsub.f32 %v15888_v60, %v16251_v63  ;;  %22306 = vst [vmem:[#allocation28_spill] sm:$0xff] %v16448_v38  ;;  %v22307_v36 = vmax.f32 %v16157_v47, 0.0 }
 0x29e   : > { %v12805_v37 = vpop.eup %12804  ;;  %v3606_v59 = vadd.f32 1.0, %v12803_v20  ;;  %v3263_v31 = vmul.f32 1.442695, %v2842_v2  ;;  %11907 = vmatpush3.bf16.msra.mxu1 %v4540_v10  ;;  %v16457_v51 = vadd.f32 %v4016_v56, %v22308_v7  ;;  %v3253_v28 = vmul.f32 1.442695, %v2837_v3 }
 0x29f   : > { %v16452_v26 = vadd.f32 %v4002_v48, %v22307_v36  ;;  %v3601_v35 = vadd.f32 1.0, %v12805_v37  ;;  %vm16459_vm4 = vcmp.eq.s32.totalorder %v8313_v4, 1  ;;  %v22309_v60 = vmov 0  ;;  %1793 = vbcast.lane.b32.xlu0 %v1779_v27, 280  ;;  %1789 = vbcast.lane.b32.xlu1 %v1779_v27, 272 }
 0x2a0   : > { %v22310_v60 = vsel %vm16459_vm4, 4294967295, %v22309_v60  ;;  %12814 = vlog2.f32 %v3606_v59  ;;  %v2588_v16 = vand.u32 2147483647, %v16442_v34  ;;  %v22314_v7 = vmax.f32 %v16213_v1, 0.0  ;;  %v16480_v59 = vpop.permute.xlu0 %1527 }
 0x2a1   : > { %22311 = vst [vmem:[#allocation103_spill] sm:$0xff] %v22310_v60  ;;  %12816 = vlog2.f32 %v3601_v35  ;;  %v2583_v4 = vand.u32 2147483647, %v16446_v33  ;;  %11909 = vmatmul.mubr.msk.bf16.vlgmr.msra.gmra.mrb[68].mxu1 %vm21729_vm0, %v16166_v21  ;;  %v4541_v35 = vpack.c.bf16 %v16192_v25, %v16269_v30  ;;  %v16499_v25 = vsub.f32 %v16406_v54, %v16304_v49  ;;  %v22318_v30 = vld [vmem:[#allocation6_spill] sm:$0xff] }
 0x2a2   : > { %v16472_v56 = vadd.f32 %v4006_v44, %v22314_v7  ;;  %v12807_v3 = vpop.eup %12806  ;;  %12818 = vpow2.f32 %v3263_v31  ;;  %v2844_v20 = vsub.f32 0.0, %v2588_v16  ;;  %11924 = vmatprep.mubr.msk.bf16.mxu1 %vm21729_vm0, %v16369_v52  ;;  %v16489_v44 = vpop.permute.xlu1 %1515  ;;  %v16493_v31 = vsub.f32 %v16397_v57, %v16336_v41 }
 0x2a3   : > { %v12809_v36 = vpop.eup %12808  ;;  %v3608_v7 = vadd.f32 1.0, %v12807_v3  ;;  %12820 = vpow2.f32 %v3253_v28  ;;  %v2839_v27 = vsub.f32 0.0, %v2583_v4  ;;  %v16495_v16 = vpop.f32.mrb[32].mxu0  ;;  %11912 = vmatprep.subr.bf16.mxu0 %v4541_v35  ;;  %v1798_v10 = vrot.slane %v16278_v15, %v22318_v30 }
 0x2a4   : > { %22317 = vst [vmem:[#allocation104_spill] sm:$0xff] %v16495_v16  ;;  %v4020_v63 = vmul.f32 0.6931472, %v12809_v36  ;;  %v3267_v1 = vmul.f32 1.442695, %v2844_v20  ;;  %v16503_v62 = vpop.f32.mrb[33].mxu0  ;;  %11913 = vmatpush3.bf16.msra.mxu0 %v4541_v35  ;;  %v16514_v4 = vpop.permute.xlu0 %1538 }
 0x2a5   : > { %22319 = vst [vmem:[#allocation6_spill] sm:$0xff] %v16503_v62  ;;  %v12811_v28 = vpop.eup %12810  ;;  %12822 = vlog2.f32 %v3608_v7  ;;  %v3257_v41 = vmul.f32 1.442695, %v2839_v27  ;;  %v2590_v3 = vand.u32 2147483647, %v16493_v31  ;;  %1804 = vbcast.lane.b32.xlu0 %v1798_v10, 264 }
 0x2a6   : > { %v12813_v36 = vpop.eup %12812  ;;  %v3603_v20 = vadd.f32 1.0, %v12811_v28  ;;  %12824 = vpow2.f32 %v3267_v1  ;;  %1800 = vbcast.lane.b32.xlu1 %v1798_v10, 256  ;;  %v22320_v30 = vmax.f32 %v16236_v39, 0.0  ;;  %v2585_v27 = vand.u32 2147483647, %v16499_v25  ;;  %v22321_v35 = vld [vmem:[#allocation31_spill] sm:$0xff]  ;;  %v16523_v49 = vpop.permute.xlu1 %1523 }
 0x2a7   : > { %12826 = vpow2.f32 %v3257_v41  ;;  %v2846_v7 = vsub.f32 0.0, %v2590_v3  ;;  %vm8159_vm6 = vcmp.ne.s32.totalorder %v22321_v35, 0  ;;  %v4542_v1 = vpack.c.bf16 %v16242_v19, %v16354_v8  ;;  %v16532_v19 = vld [vmem:[%s21552_s0 + $0x10] sm:$0xff] }
 0x2a8   : > { %v16511_v37 = vadd.f32 %v4020_v63, %v22320_v30  ;;  %12828 = vlog2.f32 %v3603_v20  ;;  %v16521_v28 = vsub.f32 %v16329_v6, %v16385_v17  ;;  %v2841_v41 = vsub.f32 0.0, %v2585_v27  ;;  %v16538_v17 = vpop.f32.mrb[34].mxu0 }
 0x2a9   : > { %v3271_v39 = vmul.f32 1.442695, %v2846_v7  ;;  %v8223_v3 = vsel %vm8159_vm6, 1, %v22208_v45  ;;  %v4010_v2 = vmul.f32 0.6931472, %v12813_v36  ;;  %11914 = vmatprep.subr.bf16.mxu0 %v4542_v1  ;;  %v16536_v8 = vsub.f32 %v16532_v19, %v16340_v22  ;;  %1812 = vbcast.lane.b32.xlu0 %v1798_v10, 280 }
 0x2aa   : > { %v12815_v30 = vpop.eup %12814  ;;  %v8317_v20 = vrot.slane %v8223_v3, %v22078_v50  ;;  %v2592_v47 = vand.u32 2147483647, %v16521_v28  ;;  %22322 = vst [vmem:[#allocation31_spill] sm:$0xff] %v16538_v17  ;;  %v3261_v36 = vmul.f32 1.442695, %v2841_v41  ;;  %11915 = vmatpush3.bf16.msra.mxu0 %v4542_v1  ;;  %v4543_v3 = vpack.c.bf16 %v16265_v55, %v16379_v53  ;;  %1808 = vbcast.lane.b32.xlu1 %v1798_v10, 272  ;;  %v16553_v53 = vpop.permute.xlu0 %1546 }
 0x2ab   : > { %v12817_v7 = vpop.eup %12816  ;;  %12830 = vpow2.f32 %v3271_v39  ;;  %v16543_v63 = vpop.f32.mrb[35].mxu0  ;;  %v4024_v60 = vmul.f32 0.6931472, %v12815_v30  ;;  %v22324_v22 = vmov 0  ;;  %v22329_v30 = vmax.f32 %v16261_v0, 0.0 }
 0x2ac   : > { %22323 = vst [vmem:[#allocation105_spill] sm:$0xff] %v16543_v63  ;;  %v12819_v48 = vpop.eup %12818  ;;  %v4014_v62 = vmul.f32 0.6931472, %v12817_v7  ;;  %vm16545_vm8 = vcmp.eq.s32.totalorder %v8317_v20, 1  ;;  %v2848_v17 = vsub.f32 0.0, %v2592_v47  ;;  %12832 = vpow2.f32 %v3261_v36  ;;  %11920 = vmatprep.subr.bf16.mxu1 %v4543_v3  ;;  %v16555_v10 = vpop.f32.mrb[32].mxu1 }
 0x2ad   : > { %v22325_v22 = vsel %vm16545_vm8, 4294967295, %v22324_v22  ;;  %v12821_v16 = vpop.eup %12820  ;;  %v3610_v39 = vadd.f32 1.0, %v12819_v48  ;;  %22328 = vst [vmem:[#allocation107_spill] sm:$0xff] %v16555_v10  ;;  %v16559_v20 = vadd.f32 %v4010_v2, %v22329_v30  ;;  %11917 = vmatmul.mubr.msk.bf16.vlgmr.msra.gmra.mrb[72].mxu0 %vm21729_vm0, %v16166_v21  ;;  %11921 = vmatpush3.bf16.msra.mxu1 %v4543_v3  ;;  %v16566_v1 = vpop.permute.xlu1 %1534  ;;  %v2587_v0 = vand.u32 2147483647, %v16536_v8 }
 0x2ae   : > { %22326 = vst [vmem:[#allocation106_spill] sm:$0xff] %v22325_v22  ;;  %v3605_v7 = vadd.f32 1.0, %v12821_v16  ;;  %v3275_v36 = vmul.f32 1.442695, %v2848_v17  ;;  %v16568_v55 = vpop.f32.mrb[33].mxu1  ;;  %11932 = vmatprep.mubr.msk.bf16.mxu0 %vm21729_vm0, %v16369_v52  ;;  %v16581_v41 = vsub.f32 %v16397_v57, %v16433_v14  ;;  %v22334_v22 = vld [vmem:[#allocation7_spill] sm:$0xff] }
 0x2af   : > { %22331 = vst [vmem:[#allocation108_spill] sm:$0xff] %v16568_v55  ;;  %v12823_v27 = vpop.eup %12822  ;;  %12834 = vlog2.f32 %v3610_v39  ;;  %v16585_v39 = vsub.f32 %v16406_v54, %v16392_v23  ;;  %v2843_v2 = vsub.f32 0.0, %v2587_v0  ;;  %v1817_v17 = vrot.slane %v16278_v15, %v22334_v22  ;;  %v16603_v0 = vpop.permute.xlu0 %1557 }
 0x2b0   : > { %v12825_v3 = vpop.eup %12824  ;;  %v4028_v48 = vmul.f32 0.6931472, %v12823_v27  ;;  %12836 = vlog2.f32 %v3605_v7  ;;  %v22335_v55 = vmax.f32 %v16298_v61, 0.0  ;;  %v22336_v7 = vmax.f32 %v16302_v42, 0.0 }
 0x2b1   : > { %v12827_v47 = vpop.eup %12826  ;;  %v3612_v16 = vadd.f32 1.0, %v12825_v3  ;;  %12838 = vpow2.f32 %v3275_v36  ;;  %v2594_v23 = vand.u32 2147483647, %v16581_v41  ;;  %v22337_v63 = vmax.f32 %v16333_v9, 0.0  ;;  %1823 = vbcast.lane.b32.xlu0 %v1817_v17, 264  ;;  %1819 = vbcast.lane.b32.xlu1 %v1817_v17, 256 }
 0x2b2   : > { %v12829_v30 = vpop.eup %12828  ;;  %v16591_v27 = vadd.f32 %v4024_v60, %v22335_v55  ;;  %v16595_v14 = vadd.f32 %v4014_v62, %v22336_v7  ;;  %v3607_v10 = vadd.f32 1.0, %v12827_v47  ;;  %v3265_v36 = vmul.f32 1.442695, %v2843_v2  ;;  %v16608_v60 = vpop.permute.xlu1 %1542 }
 0x2b3   : > { %v16600_v3 = vadd.f32 %v4028_v48, %v22337_v63  ;;  %12840 = vlog2.f32 %v3612_v16  ;;  %v2850_v61 = vsub.f32 0.0, %v2594_v23  ;;  %v2589_v42 = vand.u32 2147483647, %v16585_v39  ;;  %v16610_v9 = vpop.f32.mrb[34].mxu1 }
 0x2b4   : > { %12842 = vlog2.f32 %v3607_v10  ;;  %v7852_v62 = vcombine.high %v22302_v18, %v22302_v18  ;;  %22338 = vst [vmem:[#allocation7_spill] sm:$0xff] %v16610_v9  ;;  %v4018_v55 = vmul.f32 0.6931472, %v12829_v30  ;;  %v4544_v47 = vpack.c.bf16 %v16319_v46, %v16452_v26  ;;  %v16618_v48 = vpop.f32.mrb[35].mxu1 }
 0x2b5   : > { %v12831_v63 = vpop.eup %12830  ;;  %12844 = vpow2.f32 %v3265_v36  ;;  %v16616_v10 = vsub.f32 %v16329_v6, %v16480_v59  ;;  %22339 = vst [vmem:[#allocation109_spill] sm:$0xff] %v16618_v48  ;;  %v3279_v16 = vmul.f32 1.442695, %v2850_v61  ;;  %v2845_v18 = vsub.f32 0.0, %v2589_v42  ;;  %1831 = vbcast.lane.b32.xlu0 %v1817_v17, 280  ;;  %1827 = vbcast.lane.b32.xlu1 %v1817_v17, 272  ;;  %v16633_v48 = vpop.permute.xlu0 %1565 }
 0x2b6   : > { %v3614_v2 = vadd.f32 1.0, %v12831_v63  ;;  %vm8160_vm11 = vcmp.ne.s32.totalorder %v7852_v62, 0  ;;  %v12833_v7 = vpop.eup %12832  ;;  %11922 = vmatprep.subr.bf16.mxu1 %v4544_v47  ;;  %v16625_v46 = vsub.f32 %v16532_v19, %v16435_v5  ;;  %v22340_v42 = vmax.f32 %v16350_v40, 0.0 }
 0x2b7   : > { %v8224_v22 = vsel %vm8160_vm11, 1, %v22208_v45  ;;  %v2596_v30 = vand.u32 2147483647, %v16616_v10  ;;  %v3609_v26 = vadd.f32 1.0, %v12833_v7  ;;  %v3269_v59 = vmul.f32 1.442695, %v2845_v18  ;;  %11923 = vmatpush3.bf16.msra.mxu1 %v4544_v47 }
 0x2b8   : > { %12846 = vlog2.f32 %v3614_v2  ;;  %v8321_v36 = vrot.slane %v8224_v22, %v22078_v50  ;;  %v16630_v62 = vadd.f32 %v4018_v55, %v22340_v42  ;;  %v2591_v23 = vand.u32 2147483647, %v16625_v46  ;;  %v16641_v22 = vpop.permute.xlu1 %1553 }
 0x2b9   : > { %v12835_v61 = vpop.eup %12834  ;;  %12848 = vpow2.f32 %v3279_v16  ;;  %v2852_v63 = vsub.f32 0.0, %v2596_v30  ;;  %v22341_v2 = vmov 0  ;;  %v4545_v17 = vpack.c.bf16 %v16375_v58, %v16472_v56  ;;  %v16682_v18 = vpop.permute.xlu0 %1576 }
 0x2ba   : > { %v12837_v5 = vpop.eup %12836  ;;  %v4032_v9 = vmul.f32 0.6931472, %v12835_v61  ;;  %12850 = vlog2.f32 %v3609_v26  ;;  %vm16635_vm2 = vcmp.eq.s32.totalorder %v8321_v36, 1  ;;  %11925 = vmatmul.mubr.msk.bf16.vlgmr.msra.gmra.mrb[72].mxu1 %vm21729_vm0, %v16166_v21  ;;  %v2847_v56 = vsub.f32 0.0, %v2591_v23 }
 0x2bb   : > { %v22342_v2 = vsel %vm16635_vm2, 4294967295, %v22341_v2  ;;  %v12839_v40 = vpop.eup %12838  ;;  %v4022_v55 = vmul.f32 0.6931472, %v12837_v5  ;;  %12852 = vpow2.f32 %v3269_v59  ;;  %v3283_v58 = vmul.f32 1.442695, %v2852_v63  ;;  %11928 = vmatprep.subr.bf16.mxu0 %v4545_v17  ;;  %11940 = vmatprep.mubr.msk.bf16.mxu1 %vm21729_vm0, %v16369_v52  ;;  %v16654_v59 = vpop.f32.mrb[36].mxu0 }
 0x2bc   : > { %22343 = vst [vmem:[#allocation110_spill] sm:$0xff] %v22342_v2  ;;  %v3616_v30 = vadd.f32 1.0, %v12839_v40  ;;  %22346 = vst [vmem:[#allocation111_spill] sm:$0xff] %v16654_v59  ;;  %v16665_v23 = vsub.f32 %v16397_v57, %v16514_v4  ;;  %11929 = vmatpush3.bf16.msra.mxu0 %v4545_v17  ;;  %v16667_v63 = vpop.f32.mrb[37].mxu0  ;;  %v22350_v26 = vmax.f32 %v16401_v13, 0.0  ;;  %v16675_v5 = vsub.f32 %v16406_v54, %v16489_v44 }
 0x2bd   : > { %v12841_v36 = vpop.eup %12840  ;;  %22349 = vst [vmem:[#allocation112_spill] sm:$0xff] %v16667_v63  ;;  %v3273_v61 = vmul.f32 1.442695, %v2847_v56  ;;  %v22351_v40 = vmax.f32 %v16410_v24, 0.0  ;;  %v22354_v56 = vmax.f32 %v16442_v34, 0.0  ;;  %v22355_v34 = vmax.f32 %v16446_v33, 0.0 }
 0x2be   : > { %v12843_v7 = vpop.eup %12842  ;;  %v16671_v47 = vadd.f32 %v4032_v9, %v22350_v26  ;;  %12854 = vlog2.f32 %v3616_v30  ;;  %v4036_v4 = vmul.f32 0.6931472, %v12841_v36  ;;  %v2598_v17 = vand.u32 2147483647, %v16665_v23  ;;  %v16685_v26 = vpop.permute.xlu1 %1561 }
 0x2bf   : > { %v12845_v42 = vpop.eup %12844  ;;  %v16679_v16 = vadd.f32 %v4022_v55, %v22351_v40  ;;  %12856 = vpow2.f32 %v3283_v58  ;;  %v4026_v13 = vmul.f32 0.6931472, %v12843_v7  ;;  %v2593_v24 = vand.u32 2147483647, %v16675_v5  ;;  %v22352_v55 = vld [vmem:[#allocation8_spill] sm:$0xff] }
 0x2c0   : > { %v3611_v9 = vadd.f32 1.0, %v12845_v42  ;;  %12858 = vpow2.f32 %v3273_v61  ;;  %v2854_v44 = vsub.f32 0.0, %v2598_v17  ;;  %v1836_v36 = vrot.slane %v16278_v15, %v22352_v55  ;;  %v16699_v42 = vpop.f32.mrb[38].mxu0 }
 0x2c1   : > { %v7854_v40 = vcombine.high %v22321_v35, %v22321_v35  ;;  %v4546_v7 = vpack.c.bf16 %v16425_v11, %v16559_v20  ;;  %v16697_v61 = vsub.f32 %v16329_v6, %v16553_v53  ;;  %22353 = vst [vmem:[#allocation8_spill] sm:$0xff] %v16699_v42  ;;  %v16703_v30 = vadd.f32 %v4036_v4, %v22354_v56 }
 0x2c2   : > { %v12847_v58 = vpop.eup %12846  ;;  %12860 = vlog2.f32 %v3611_v9  ;;  %v3287_v2 = vmul.f32 1.442695, %v2854_v44  ;;  %v2849_v9 = vsub.f32 0.0, %v2593_v24  ;;  %1842 = vbcast.lane.b32.xlu0 %v1836_v36, 264  ;;  %v16708_v53 = vsub.f32 %v16532_v19, %v16523_v49  ;;  %1838 = vbcast.lane.b32.xlu1 %v1836_v36, 256  ;;  %v16715_v24 = vpop.permute.xlu0 %1584 }
 0x2c3   : > { %v12849_v17 = vpop.eup %12848  ;;  %v4040_v55 = vmul.f32 0.6931472, %v12847_v58  ;;  %vm8161_vm6 = vcmp.ne.s32.totalorder %v7854_v40, 0  ;;  %11930 = vmatprep.subr.bf16.mxu0 %v4546_v7  ;;  %v2600_v11 = vand.u32 2147483647, %v16697_v61  ;;  %v16712_v4 = vadd.f32 %v4026_v13, %v22355_v34  ;;  %v16717_v58 = vpop.f32.mrb[39].mxu0 }
 0x2c4   : > { %v12851_v63 = vpop.eup %12850  ;;  %v3618_v35 = vadd.f32 1.0, %v12849_v17  ;;  %12862 = vpow2.f32 %v3287_v2  ;;  %v3277_v44 = vmul.f32 1.442695, %v2849_v9  ;;  %11931 = vmatpush3.bf16.msra.mxu0 %v4546_v7  ;;  %22356 = vst [vmem:[#allocation113_spill] sm:$0xff] %v16717_v58  ;;  %v8225_v49 = vsel %vm8161_vm6, 1, %v22208_v45  ;;  %v16720_v42 = vpop.permute.xlu1 %1572 }
 0x2c5   : > { %v12853_v20 = vpop.eup %12852  ;;  %v2856_v17 = vsub.f32 0.0, %v2600_v11  ;;  %v22357_v33 = vmax.f32 %v16493_v31, 0.0  ;;  %v4030_v2 = vmul.f32 0.6931472, %v12851_v63  ;;  %v8325_v9 = vrot.slane %v8225_v49, %v22078_v50  ;;  %v16727_v7 = vpop.f32.mrb[36].mxu1 }
 0x2c6   : > { %12864 = vlog2.f32 %v3618_v35  ;;  %v3613_v40 = vadd.f32 1.0, %v12853_v20  ;;  %1850 = vbcast.lane.b32.xlu0 %v1836_v36, 280  ;;  %22358 = vst [vmem:[#allocation114_spill] sm:$0xff] %v16727_v7  ;;  %v2595_v20 = vand.u32 2147483647, %v16708_v53  ;;  %v4547_v31 = vpack.c.bf16 %v16457_v51, %v16595_v14  ;;  %1846 = vbcast.lane.b32.xlu1 %v1836_v36, 272  ;;  %v16763_v56 = vpop.permute.xlu0 %1595 }
 0x2c7   : > { %v16724_v13 = vadd.f32 %v4040_v55, %v22357_v33  ;;  %12866 = vpow2.f32 %v3277_v44  ;;  %v3291_v35 = vmul.f32 1.442695, %v2856_v17  ;;  %11933 = vmatmul.mubr.msk.bf16.vlgmr.msra.gmra.mrb[76].mxu0 %vm21729_vm0, %v16166_v21  ;;  %v16734_v55 = vpop.f32.mrb[37].mxu1  ;;  %vm16736_vm11 = vcmp.eq.s32.totalorder %v8325_v9, 1  ;;  %v22367_v33 = vld [vmem:[#allocation9_spill] sm:$0xff] }
 0x2c8   : > { %v12855_v34 = vpop.eup %12854  ;;  %12868 = vlog2.f32 %v3613_v40  ;;  %22359 = vst [vmem:[#allocation115_spill] sm:$0xff] %v16734_v55  ;;  %v22360_v44 = vmov 0  ;;  %v16742_v40 = vsub.f32 %v16397_v57, %v16603_v0  ;;  %v16746_v49 = vsub.f32 %v16406_v54, %v16566_v1  ;;  %11948 = vmatprep.mubr.msk.bf16.mxu0 %vm21729_vm0, %v16369_v52  ;;  %11936 = vmatprep.subr.bf16.mxu1 %v4547_v31  ;;  %v22385_v55 = vld [vmem:[#allocation25_spill] sm:$0xff] }
 0x2c9   : > { %v12857_v63 = vpop.eup %12856  ;;  %v4044_v11 = vmul.f32 0.6931472, %v12855_v34  ;;  %v22361_v44 = vsel %vm16736_vm11, 4294967295, %v22360_v44  ;;  %12870 = vpow2.f32 %v3291_v35  ;;  %v22365_v0 = vmax.f32 %v16499_v25, 0.0  ;;  %11937 = vmatpush3.bf16.msra.mxu1 %v4547_v31  ;;  %v16781_v35 = vpop.f32.mrb[38].mxu1 }
 0x2ca   : > { %22362 = vst [vmem:[#allocation116_spill] sm:$0xff] %v22361_v44  ;;  %v12859_v21 = vpop.eup %12858  ;;  %v3620_v51 = vadd.f32 1.0, %v12857_v63  ;;  %v2851_v34 = vsub.f32 0.0, %v2595_v20  ;;  %v2602_v25 = vand.u32 2147483647, %v16742_v40  ;;  %v22366_v20 = vmax.f32 %v16521_v28, 0.0 }
 0x2cb   : > { %v16758_v9 = vadd.f32 %v4030_v2, %v22365_v0  ;;  %v3615_v1 = vadd.f32 1.0, %v12859_v21  ;;  %v16770_v2 = vpop.permute.xlu1 %1580  ;;  %v1855_v14 = vrot.slane %v16278_v15, %v22367_v33  ;;  %vm8162_vm6 = vcmp.ne.s32.totalorder %v22368_v29, 0  ;;  %22369 = vst [vmem:[#allocation9_spill] sm:$0xff] %v16781_v35 }
 0x2cc   : > { %v12861_v36 = vpop.eup %12860  ;;  %12872 = vlog2.f32 %v3620_v51  ;;  %v16774_v21 = vadd.f32 %v4044_v11, %v22366_v20  ;;  %v3281_v31 = vmul.f32 1.442695, %v2851_v34  ;;  %v2858_v63 = vsub.f32 0.0, %v2602_v25 }
 0x2cd   : > { %12874 = vlog2.f32 %v3615_v1  ;;  %v2597_v51 = vand.u32 2147483647, %v16746_v49  ;;  %v4034_v17 = vmul.f32 0.6931472, %v12861_v36  ;;  %v8226_v28 = vsel %vm8162_vm6, 1, %v22208_v45  ;;  %v16786_v1 = vpop.f32.mrb[39].mxu1 }
 0x2ce   : > { %v12863_v32 = vpop.eup %12862  ;;  %12876 = vpow2.f32 %v3281_v31  ;;  %v4548_v11 = vpack.c.bf16 %v16511_v37, %v16630_v62  ;;  %22370 = vst [vmem:[#allocation30_spill] sm:$0xff] %v16786_v1  ;;  %v3295_v20 = vmul.f32 1.442695, %v2858_v63  ;;  %1861 = vbcast.lane.b32.xlu0 %v1855_v14, 264  ;;  %v8329_v33 = vrot.slane %v8226_v28, %v22078_v50  ;;  %1857 = vbcast.lane.b32.xlu1 %v1855_v14, 256  ;;  %v16799_v62 = vpop.permute.xlu0 %1603 }
 0x2cf   : > { %v3622_v25 = vadd.f32 1.0, %v12863_v32  ;;  %v2853_v0 = vsub.f32 0.0, %v2597_v51  ;;  %v16791_v36 = vsub.f32 %v16329_v6, %v16633_v48  ;;  %v16795_v37 = vsub.f32 %v16532_v19, %v16608_v60  ;;  %v16805_v48 = vpop.permute.xlu1 %1591 }
 0x2d0   : > { %v12865_v34 = vpop.eup %12864  ;;  %11938 = vmatprep.subr.bf16.mxu1 %v4548_v11  ;;  %v4549_v32 = vpack.c.bf16 %v16591_v27, %v16679_v16  ;;  %vm16801_vm6 = vcmp.eq.s32.totalorder %v8329_v33, 1  ;;  %v22371_v28 = vmov 0  ;;  %v16850_v60 = vsub.f32 %v16406_v54, %v16641_v22 }
 0x2d1   : > { %v12867_v44 = vpop.eup %12866  ;;  %v4048_v35 = vmul.f32 0.6931472, %v12865_v34  ;;  %12878 = vlog2.f32 %v3622_v25  ;;  %v3285_v51 = vmul.f32 1.442695, %v2853_v0  ;;  %v22372_v28 = vsel %vm16801_vm6, 4294967295, %v22371_v28  ;;  %11939 = vmatpush3.bf16.msra.mxu1 %v4548_v11 }
 0x2d2   : > { %v12869_v63 = vpop.eup %12868  ;;  %v3617_v31 = vadd.f32 1.0, %v12867_v44  ;;  %22373 = vst [vmem:[#allocation117_spill] sm:$0xff] %v22372_v28  ;;  %12880 = vpow2.f32 %v3295_v20  ;;  %11944 = vmatprep.subr.bf16.mxu0 %v4549_v32  ;;  %v22374_v44 = vmax.f32 %v16536_v8, 0.0  ;;  %v2604_v33 = vand.u32 2147483647, %v16791_v36  ;;  %1869 = vbcast.lane.b32.xlu0 %v1855_v14, 280 }
 0x2d3   : > { %v4038_v34 = vmul.f32 0.6931472, %v12869_v63  ;;  %v12871_v16 = vpop.eup %12870  ;;  %11945 = vmatpush3.bf16.msra.mxu0 %v4549_v32  ;;  %v22376_v20 = vmax.f32 %v16581_v41, 0.0  ;;  %v16827_v8 = vld [vmem:[%s21558_s6 + $0x8] sm:$0xff]   ;;  %1865 = vbcast.lane.b32.xlu1 %v1855_v14, 272  ;;  %v22382_v28 = vmax.f32 %v16616_v10, 0.0  ;;  %v4550_v10 = vpack.c.bf16 %v16600_v3, %v16712_v4 }
 0x2d4   : > { %v16813_v0 = vadd.f32 %v4034_v17, %v22374_v44  ;;  %12882 = vlog2.f32 %v3617_v31  ;;  %v3624_v27 = vadd.f32 1.0, %v12871_v16  ;;  %11941 = vmatmul.mubr.msk.bf16.vlgmr.msra.gmra.mrb[76].mxu1 %vm21729_vm0, %v16827_v8  ;;  %v16831_v17 = vpop.f32.mrb[40].mxu0  ;;  %v2860_v31 = vsub.f32 0.0, %v2604_v33 }
 0x2d5   : > { %v16821_v63 = vadd.f32 %v4048_v35, %v22376_v20  ;;  %12884 = vpow2.f32 %v3285_v51  ;;  %22377 = vst [vmem:[#allocation118_spill] sm:$0xff] %v16831_v17  ;;  %v2599_v41 = vand.u32 2147483647, %v16795_v37  ;;  %v16839_v16 = vsub.f32 %v16397_v57, %v16682_v18  ;;  %11956 = vmatprep.mubr.msk.bf16.mxu1 %vm21729_vm0, %v16369_v52  ;;  %v16843_v44 = vpop.f32.mrb[41].mxu0  ;;  %v16852_v51 = vpop.permute.xlu0 %1614  ;;  %11946 = vmatprep.subr.bf16.mxu0 %v4550_v10 }
 0x2d6   : > { %v12873_v32 = vpop.eup %12872  ;;  %22379 = vst [vmem:[#allocation119_spill] sm:$0xff] %v16843_v44  ;;  %12886 = vlog2.f32 %v3624_v27  ;;  %v22381_v18 = vmax.f32 %v16585_v39, 0.0  ;;  %v3299_v25 = vmul.f32 1.442695, %v2860_v31  ;;  %v16858_v17 = vpop.permute.xlu1 %1599  ;;  %v2601_v22 = vand.u32 2147483647, %v16850_v60 }
 0x2d7   : > { %v12875_v14 = vpop.eup %12874  ;;  %v4052_v20 = vmul.f32 0.6931472, %v12873_v32  ;;  %v2855_v44 = vsub.f32 0.0, %v2599_v41  ;;  %v2606_v11 = vand.u32 2147483647, %v16839_v16  ;;  %v22384_v32 = vld [vmem:[#allocation12_spill] sm:$0xff]  ;;  %v22386_v33 = vcombine.high %v22385_v55, %v22385_v55  ;;  %11947 = vmatpush3.bf16.msra.mxu0 %v4550_v10 }
 0x2d8   : > { %v16856_v35 = vadd.f32 %v4038_v34, %v22381_v18  ;;  %v4042_v43 = vmul.f32 0.6931472, %v12875_v14  ;;  %v12877_v27 = vpop.eup %12876  ;;  %12888 = vpow2.f32 %v3299_v25  ;;  %v2857_v41 = vsub.f32 0.0, %v2601_v22  ;;  %v22383_v14 = vld [vmem:[#allocation10_spill] sm:$0xff] }
 0x2d9   : > { %v16866_v1 = vadd.f32 %v4052_v20, %v22382_v28  ;;  %v3619_v39 = vadd.f32 1.0, %v12877_v27  ;;  %v3289_v34 = vmul.f32 1.442695, %v2855_v44  ;;  %v2862_v31 = vsub.f32 0.0, %v2606_v11 }
 0x2da   : > { %v16870_v18 = vrot.slane %v16278_v15, %v22383_v14  ;;  %v16876_v7 = vrot.slane %v22386_v33, %v22384_v32  ;;  %v16882_v28 = vsub.f32 %v16329_v6, %v16715_v24  ;;  %v16886_v25 = vsub.f32 %v16532_v19, %v16685_v26  ;;  %v16888_v15 = vpop.f32.mrb[42].mxu0  ;;  %v16890_v33 = vpop.permute.xlu0 %1622  ;;  %11949 = vmatmul.mubr.msk.bf16.vlgmr.msra.gmra.mrb[80].mxu0 %vm22395_vm15, %v16827_v8 }
 0x2db   : > { %v12879_v58 = vpop.eup %12878  ;;  %12890 = vlog2.f32 %v3619_v39  ;;  %22387 = vst [vmem:[#allocation10_spill] sm:$0xff] %v16888_v15  ;;  %v3303_v55 = vmul.f32 1.442695, %v2862_v31  ;;  %v3293_v20 = vmul.f32 1.442695, %v2857_v41  ;;  %v16896_v26 = vpop.permute.xlu1 %1610  ;;  %v22388_v24 = vmax.f32 %v16625_v46, 0.0  ;;  %11964 = vmatprep.mubr.msk.bf16.mxu0 %vm22399_vm10, %v16369_v52 }
 0x2dc   : > { %v12881_v11 = vpop.eup %12880  ;;  %v4056_v44 = vmul.f32 0.6931472, %v12879_v58  ;;  %12892 = vpow2.f32 %v3289_v34  ;;  %1880 = vbcast.lane.b32.xlu0 %v16870_v18, 264  ;;  %vm8163_vm0 = vcmp.ne.s32.totalorder %v16876_v7, 0  ;;  %v2608_v6 = vand.u32 2147483647, %v16882_v28 }
 0x2dd   : > { %v3626_v22 = vadd.f32 1.0, %v12881_v11  ;;  %v16900_v58 = vadd.f32 %v4042_v43, %v22388_v24  ;;  %12894 = vpow2.f32 %v3303_v55  ;;  %v8227_v34 = vsel %vm8163_vm0, 1, %v22208_v45  ;;  %1876 = vbcast.lane.b32.xlu1 %v16870_v18, 256  ;;  %v16904_v31 = vpop.f32.mrb[43].mxu0 }
 0x2de   : > { %v12883_v27 = vpop.eup %12882  ;;  %22389 = vst [vmem:[#allocation25_spill] sm:$0xff] %v16904_v31  ;;  %v8333_v14 = vrot.slane %v8227_v34, %v22078_v50  ;;  %v2864_v11 = vsub.f32 0.0, %v2608_v6  ;;  %v22390_v46 = vmax.f32 %v16665_v23, 0.0  ;;  %v2603_v10 = vand.u32 2147483647, %v16886_v25  ;;  %v13245_v34 = vld [vmem:[%s13375_s19 + $0x38] sm:$0xff] }
 0x2df   : > { %v12885_v4 = vpop.eup %12884  ;;  %v4046_v39 = vmul.f32 0.6931472, %v12883_v27  ;;  %12896 = vlog2.f32 %v3626_v22  ;;  %v16913_v27 = vpop.f32.mrb[40].mxu1  ;;  %v22392_v22 = vmov 0  ;;  %v22400_v55 = vmax.f32 %v16675_v5, 0.0 }
 0x2e0   : > { %v3621_v41 = vadd.f32 1.0, %v12885_v4  ;;  %v12887_v3 = vpop.eup %12886  ;;  %v16909_v43 = vadd.f32 %v4056_v44, %v22390_v46  ;;  %12898 = vpow2.f32 %v3293_v20  ;;  %22391 = vst [vmem:[#allocation120_spill] sm:$0xff] %v16913_v27  ;;  %vm16915_vm0 = vcmp.eq.s32.totalorder %v8333_v14, 1  ;;  %v16921_v23 = vpop.f32.mrb[41].mxu1 }
 0x2e1   : > { %v4060_v24 = vmul.f32 0.6931472, %v12887_v3  ;;  %v22393_v22 = vsel %vm16915_vm0, 4294967295, %v22392_v22  ;;  %v3307_v6 = vmul.f32 1.442695, %v2864_v11  ;;  %22396 = vst [vmem:[#allocation122_spill] sm:$0xff] %v16921_v23  ;;  %v16935_v11 = vpop.permute.xlu0 %1633  ;;  %v16939_v23 = vadd.f32 %v4046_v39, %v22400_v55 }
 0x2e2   : > { %12900 = vlog2.f32 %v3621_v41  ;;  %22394 = vst [vmem:[#allocation121_spill] sm:$0xff] %v22393_v22  ;;  %v2859_v3 = vsub.f32 0.0, %v2603_v10  ;;  %v22398_v41 = vld [vmem:[#allocation11_spill] sm:$0xff]  ;;  %v12889_v46 = vpop.eup %12888  ;;  %v4551_v5 = vpack.c.bf16 %v16671_v47, %v16758_v9  ;;  %v16954_v39 = vsub.f32 %v16397_v57, %v16763_v56 }
 0x2e3   : > { %v16931_v14 = vrot.slane %v13245_v34, %v22398_v41  ;;  %12902 = vpow2.f32 %v3307_v6  ;;  %v16947_v41 = vpop.permute.xlu1 %1618  ;;  %v3628_v44 = vadd.f32 1.0, %v12889_v46  ;;  %v16960_v4 = vsub.f32 %v16406_v54, %v16720_v42  ;;  %v16974_v54 = vld [vmem:[%s21552_s0 + $0x18] sm:$0xff] }
 0x2e4   : > { %v3297_v52 = vmul.f32 1.442695, %v2859_v3  ;;  %v7853_v3 = vcombine.high %v22368_v29, %v22368_v29  ;;  %v4552_v46 = vpack.c.bf16 %v16703_v30, %v16813_v0  ;;  %v22403_v9 = vmax.f32 %v16697_v61, 0.0  ;;  %11952 = vmatprep.subr.bf16.mxu1 %v4551_v5 }
 0x2e5   : > { %1899 = vbcast.lane.b32.xlu0 %v16931_v14, 264  ;;  %1895 = vbcast.lane.b32.xlu1 %v16931_v14, 256  ;;  %v12891_v55 = vpop.eup %12890  ;;  %12904 = vlog2.f32 %v3628_v44  ;;  %v2610_v56 = vand.u32 2147483647, %v16954_v39  ;;  %v16978_v29 = vsub.f32 %v16974_v54, %v16799_v62  ;;  %v2605_v61 = vand.u32 2147483647, %v16960_v4  ;;  %v16984_v34 = vpop.permute.xlu0 %1641 }
 0x2e6   : > { %v12893_v47 = vpop.eup %12892  ;;  %v16968_v57 = vadd.f32 %v4060_v24, %v22403_v9  ;;  %v4050_v42 = vmul.f32 0.6931472, %v12891_v55  ;;  %12906 = vpow2.f32 %v3297_v52  ;;  %11953 = vmatpush3.bf16.msra.mxu1 %v4551_v5  ;;  %vm8164_vm15 = vcmp.ne.s32.totalorder %v7853_v3, 0 }
 0x2e7   : > { %v3623_v30 = vadd.f32 1.0, %v12893_v47  ;;  %v12895_v0 = vpop.eup %12894  ;;  %v2866_v44 = vsub.f32 0.0, %v2610_v56  ;;  %11954 = vmatprep.subr.bf16.mxu1 %v4552_v46  ;;  %v2861_v47 = vsub.f32 0.0, %v2605_v61  ;;  %v8228_v52 = vsel %vm8164_vm15, 1, %v22208_v45  ;;  %v16988_v5 = vpop.permute.xlu1 %1629 }
 0x2e8   : > { %v3630_v55 = vadd.f32 1.0, %v12895_v0  ;;  %v8337_v9 = vrot.slane %v8228_v52, %v22078_v50  ;;  %v2612_v3 = vand.u32 2147483647, %v16978_v29  ;;  %v16996_v61 = vpop.f32.mrb[42].mxu1  ;;  %vm22414_vm15 = vcmask 261120  }
 0x2e9   : > { %1888 = vbcast.lane.b32.xlu0 %v16870_v18, 280  ;;  %v12897_v62 = vpop.eup %12896  ;;  %12908 = vlog2.f32 %v3623_v30  ;;  %1884 = vbcast.lane.b32.xlu1 %v16870_v18, 272  ;;  %v3311_v6 = vmul.f32 1.442695, %v2866_v44  ;;  %v3301_v12 = vmul.f32 1.442695, %v2861_v47  ;;  %v16994_v30 = vsub.f32 %v16532_v19, %v16770_v2 }
 0x2ea   : > { %v12899_v24 = vpop.eup %12898  ;;  %v4064_v56 = vmul.f32 0.6931472, %v12897_v62  ;;  %12910 = vlog2.f32 %v3630_v55  ;;  %11955 = vmatpush3.bf16.msra.mxu1 %v4552_v46  ;;  %22404 = vst [vmem:[#allocation11_spill] sm:$0xff] %v16996_v61  ;;  %v22405_v18 = vmax.f32 %v16708_v53, 0.0  ;;  %vm17002_vm10 = vcmp.eq.s32.totalorder %v8337_v9, 1  ;;  %v17009_v55 = vpop.f32.mrb[44].mxu0 }
 0x2eb   : > { %v3625_v10 = vadd.f32 1.0, %v12899_v24  ;;  %12912 = vpow2.f32 %v3311_v6  ;;  %v22406_v62 = vmov 0  ;;  %v17007_v24 = vpop.f32.mrb[43].mxu1  ;;  %22410 = vst [vmem:[#allocation125_spill] sm:$0xff] %v17009_v55  ;;  %v2868_v6 = vsub.f32 0.0, %v2612_v3  ;;  %v17027_v53 = vpop.f32.mrb[45].mxu0 }
 0x2ec   : > { %v12901_v20 = vpop.eup %12900  ;;  %v17000_v0 = vadd.f32 %v4050_v42, %v22405_v18  ;;  %v22407_v62 = vsel %vm17002_vm10, 4294967295, %v22406_v62  ;;  %22409 = vst [vmem:[#allocation124_spill] sm:$0xff] %v17007_v24  ;;  %v22413_v9 = vmax.f32 %v16742_v40, 0.0  ;;  %22415 = vst [vmem:[#allocation126_spill] sm:$0xff] %v17027_v53  ;;  %v2607_v3 = vand.u32 2147483647, %v16994_v30 }
 0x2ed   : > { %v4054_v44 = vmul.f32 0.6931472, %v12901_v20  ;;  %22408 = vst [vmem:[#allocation123_spill] sm:$0xff] %v22407_v62  ;;  %1907 = vbcast.lane.b32.xlu0 %v16931_v14, 280  ;;  %v12903_v2 = vpop.eup %12902  ;;  %12914 = vlog2.f32 %v3625_v10  ;;  %1903 = vbcast.lane.b32.xlu1 %v16931_v14, 272  ;;  %v17025_v10 = vpop.permute.xlu0 %1652  ;;  %v4553_v14 = vpack.c.bf16 %v16724_v13, %v16856_v35  ;;  %v17050_v13 = vld [vmem:[%s21552_s0 + $0x8] sm:$0xff]  ;;  %v17088_v22 = vsub.f32 %v16974_v54, %v16890_v33 }
 0x2ee   : > { %v17020_v47 = vadd.f32 %v4064_v56, %v22413_v9  ;;  %v3632_v52 = vadd.f32 1.0, %v12903_v2  ;;  %12916 = vpow2.f32 %v3301_v12  ;;  %11957 = vmatmul.mubr.msk.bf16.vlgmr.msra.gmra.mrb[80].mxu1 %vm22414_vm15, %v16827_v8  ;;  %v3315_v46 = vmul.f32 1.442695, %v2868_v6  ;;  %v17038_v12 = vld [vmem:[%s21558_s6] sm:$0xff]   ;;  %v17042_v56 = vpop.permute.xlu1 %1637  ;;  %v17083_v24 = vpop.f32.mrb[46].mxu0 }
 0x2ef   : > { %11972 = vmatprep.mubr.msk.bf16.mxu1 %vm22414_vm15, %v17038_v12  ;;  %v12905_v2 = vpop.eup %12904  ;;  %v17054_v35 = vsub.f32 %v17050_v13, %v16852_v51  ;;  %v17059_v40 = vld [vmem:[%s21552_s0] sm:$0xff]  ;;  %v22418_v9 = vmax.f32 %v16746_v49, 0.0  ;;  %v2863_v6 = vsub.f32 0.0, %v2607_v3  ;;  %11960 = vmatprep.subr.bf16.mxu0 %v4553_v14  ;;  %v7855_v51 = vcombine.high %v16876_v7, %v16876_v7  ;;  %22419 = vst [vmem:[#allocation127_spill] sm:$0xff] %v17083_v24 }
 0x2f0   : > { %12918 = vlog2.f32 %v3632_v52  ;;  %v17063_v52 = vsub.f32 %v17059_v40, %v16805_v48  ;;  %v12907_v18 = vpop.eup %12906  ;;  %v4068_v42 = vmul.f32 0.6931472, %v12905_v2  ;;  %11961 = vmatpush3.bf16.msra.mxu0 %v4553_v14  ;;  %v4554_v14 = vpack.c.bf16 %v16774_v21, %v16900_v58 }
 0x2f1   : > { %v17067_v20 = vadd.f32 %v4054_v44, %v22418_v9  ;;  %12920 = vpow2.f32 %v3315_v46  ;;  %v3627_v62 = vadd.f32 1.0, %v12907_v18  ;;  %v2614_v53 = vand.u32 2147483647, %v17054_v35  ;;  %v17076_v7 = vpop.permute.xlu0 %1660 }
 0x2f2   : > { %v3305_v55 = vmul.f32 1.442695, %v2863_v6  ;;  %v2609_v49 = vand.u32 2147483647, %v17063_v52  ;;  %vm8165_vm15 = vcmp.ne.s32.totalorder %v7855_v51, 0  ;;  %v17081_v6 = vpop.permute.xlu1 %1648  ;;  %v22421_v21 = vmov 0  ;;  %11962 = vmatprep.subr.bf16.mxu0 %v4554_v14 }
 0x2f3   : > { %v12909_v48 = vpop.eup %12908  ;;  %12922 = vlog2.f32 %v3627_v62  ;;  %v2870_v46 = vsub.f32 0.0, %v2614_v53  ;;  %v8229_v3 = vsel %vm8165_vm15, 1, %v22208_v45  ;;  %v17098_v58 = vsub.f32 %v16532_v19, %v16858_v17 }
 0x2f4   : > { %v4058_v44 = vmul.f32 0.6931472, %v12909_v48  ;;  %v12911_v18 = vpop.eup %12910  ;;  %12924 = vpow2.f32 %v3305_v55  ;;  %v2865_v2 = vsub.f32 0.0, %v2609_v49  ;;  %v8341_v9 = vrot.slane %v8229_v3, %v22078_v50  ;;  %v17090_v55 = vpop.f32.mrb[47].mxu0  ;;  %11963 = vmatpush3.bf16.msra.mxu0 %v4554_v14 }
 0x2f5   : > { %v12913_v51 = vpop.eup %12912  ;;  %v4072_v48 = vmul.f32 0.6931472, %v12911_v18  ;;  %v3319_v62 = vmul.f32 1.442695, %v2870_v46  ;;  %22420 = vst [vmem:[#allocation128_spill] sm:$0xff] %v17090_v55  ;;  %v22424_v18 = vmax.f32 %v16791_v36, 0.0 }
 0x2f6   : > { %v3634_v3 = vadd.f32 1.0, %v12913_v51  ;;  %v3309_v61 = vmul.f32 1.442695, %v2865_v2  ;;  %vm17092_vm15 = vcmp.eq.s32.totalorder %v8341_v9, 1  ;;  %v22425_v33 = vmax.f32 %v16795_v37, 0.0  ;;  %v22435_v37 = vld [vmem:[#allocation32_spill] sm:$0xff] }
 0x2f7   : > { %v12915_v49 = vpop.eup %12914  ;;  %v22422_v21 = vsel %vm17092_vm15, 4294967295, %v22421_v21  ;;  %v17102_v53 = vadd.f32 %v4068_v42, %v22424_v18  ;;  %12926 = vpow2.f32 %v3319_v62  ;;  %v22428_v42 = vmax.f32 %v16839_v16, 0.0  ;;  %v17120_v62 = vpop.permute.xlu0 %1671 }
 0x2f8   : > { %22423 = vst [vmem:[#allocation129_spill] sm:$0xff] %v22422_v21  ;;  %v12917_v46 = vpop.eup %12916  ;;  %v17106_v55 = vadd.f32 %v4058_v44, %v22425_v33  ;;  %v4062_v51 = vmul.f32 0.6931472, %v12915_v49  ;;  %12928 = vlog2.f32 %v3634_v3  ;;  %v2616_v44 = vand.u32 2147483647, %v17088_v22  ;;  %v17128_v16 = vpop.permute.xlu1 %1656 }
 0x2f9   : > { %v3629_v24 = vadd.f32 1.0, %v12917_v46  ;;  %v17116_v18 = vadd.f32 %v4072_v48, %v22428_v42  ;;  %12930 = vpow2.f32 %v3309_v61  ;;  %v2611_v3 = vand.u32 2147483647, %v17098_v58 }
 0x2fa   : > { %v12919_v36 = vpop.eup %12918  ;;  %vm22430_vm10 = vcmask 261120   ;;  %v2872_v48 = vsub.f32 0.0, %v2616_v44  ;;  %v22433_v33 = vmax.f32 %v16850_v60, 0.0  ;;  %v17145_v44 = vsub.f32 %v17050_v13, %v16935_v11 }
 0x2fb   : > { %v12921_v14 = vpop.eup %12920  ;;  %v4076_v49 = vmul.f32 0.6931472, %v12919_v36  ;;  %12932 = vlog2.f32 %v3629_v24  ;;  %11965 = vmatmul.mubr.msk.bf16.vlgmr.msra.gmra.mrb[84].mxu0 %vm22430_vm10, %v16827_v8  ;;  %v4555_v24 = vpack.c.bf16 %v16821_v63, %v16939_v23  ;;  %vm22431_vm0 = vmmov %vm22430_vm10  ;;  %v17137_v36 = vpop.f32.mrb[44].mxu1  ;;  %v2867_v17 = vsub.f32 0.0, %v2611_v3 }
 0x2fc   : > { %v3636_v61 = vadd.f32 1.0, %v12921_v14  ;;  %11980 = vmatprep.mubr.msk.bf16.mxu0 %vm22431_vm0, %v17038_v12  ;;  %22432 = vst [vmem:[#allocation130_spill] sm:$0xff] %v17137_v36  ;;  %v17141_v9 = vadd.f32 %v4062_v51, %v22433_v33  ;;  %v17149_v14 = vsub.f32 %v17059_v40, %v16896_v26  ;;  %v17151_v42 = vpop.f32.mrb[45].mxu1  ;;  %v3323_v23 = vmul.f32 1.442695, %v2872_v48  ;;  %v17163_v2 = vpop.permute.xlu0 %1679 }
 0x2fd   : > { %22434 = vst [vmem:[#allocation131_spill] sm:$0xff] %v17151_v42  ;;  %v12923_v63 = vpop.eup %12922  ;;  %11968 = vmatprep.subr.bf16.mxu1 %v4555_v24  ;;  %vm8166_vm0 = vcmp.ne.s32.totalorder %v22435_v37, 0  ;;  %v4556_v60 = vpack.c.bf16 %v16866_v1, %v17000_v0  ;;  %v22436_v3 = vmax.f32 %v16882_v28, 0.0  ;;  %v3313_v46 = vmul.f32 1.442695, %v2867_v17  ;;  %v17173_v17 = vpop.permute.xlu1 %1667 }
 0x2fe   : > { %12934 = vlog2.f32 %v3636_v61  ;;  %v12925_v51 = vpop.eup %12924  ;;  %v4066_v33 = vmul.f32 0.6931472, %v12923_v63  ;;  %11969 = vmatpush3.bf16.msra.mxu1 %v4555_v24  ;;  %v2618_v61 = vand.u32 2147483647, %v17145_v44  ;;  %v2613_v48 = vand.u32 2147483647, %v17149_v14 }
 0x2ff   : > { %v17158_v11 = vadd.f32 %v4076_v49, %v22436_v3  ;;  %v3631_v38 = vadd.f32 1.0, %v12925_v51  ;;  %12936 = vpow2.f32 %v3323_v23  ;;  %11970 = vmatprep.subr.bf16.mxu1 %v4556_v60  ;;  %v8230_v28 = vsel %vm8166_vm0, 1, %v22208_v45  ;;  %v17175_v49 = vpop.f32.mrb[46].mxu1  ;;  %v17197_v36 = vpop.f32.mrb[48].mxu0 }
 0x300   : > { %12938 = vpow2.f32 %v3313_v46  ;;  %v17171_v0 = vsub.f32 %v16974_v54, %v16984_v34  ;;  %22437 = vst [vmem:[#allocation32_spill] sm:$0xff] %v17175_v49  ;;  %v2874_v63 = vsub.f32 0.0, %v2618_v61  ;;  %v2869_v23 = vsub.f32 0.0, %v2613_v48  ;;  %v17178_v51 = vpop.f32.mrb[47].mxu1  ;;  %v17185_v34 = vld [vmem:[%s21552_s0 + $0x10] sm:$0xff]  ;;  %22442 = vst [vmem:[#allocation134_spill] sm:$0xff] %v17197_v36 }
 0x301   : > { %v12927_v24 = vpop.eup %12926  ;;  %12940 = vlog2.f32 %v3631_v38  ;;  %v8345_v46 = vrot.slane %v8230_v28, %v22078_v50  ;;  %22438 = vst [vmem:[#allocation132_spill] sm:$0xff] %v17178_v51  ;;  %v17189_v38 = vsub.f32 %v17185_v34, %v16947_v41  ;;  %v22439_v49 = vmov 0 }
 0x302   : > { %v12929_v3 = vpop.eup %12928  ;;  %v3638_v1 = vadd.f32 1.0, %v12927_v24  ;;  %v2620_v19 = vand.u32 2147483647, %v17171_v0  ;;  %11971 = vmatpush3.bf16.msra.mxu1 %v4556_v60  ;;  %v3327_v28 = vmul.f32 1.442695, %v2874_v63  ;;  %v4557_v24 = vpack.c.bf16 %v16909_v43, %v17067_v20  ;;  %v17209_v20 = vpop.permute.xlu0 %1690  ;;  %v22455_v63 = vld [vmem:[#allocation42_spill] sm:$0xff] }
 0x303   : > { %v12931_v61 = vpop.eup %12930  ;;  %v4080_v48 = vmul.f32 0.6931472, %v12929_v3  ;;  %v3317_v21 = vmul.f32 1.442695, %v2869_v23  ;;  %vm17193_vm10 = vcmp.eq.s32.totalorder %v8345_v46, 1  ;;  %v22443_v41 = vmax.f32 %v16886_v25, 0.0  ;;  %v17218_v3 = vpop.permute.xlu1 %1675 }
 0x304   : > { %12942 = vlog2.f32 %v3638_v1  ;;  %v3633_v51 = vadd.f32 1.0, %v12931_v61  ;;  %v22440_v49 = vsel %vm17193_vm10, 4294967295, %v22439_v49  ;;  %v2876_v42 = vsub.f32 0.0, %v2620_v19  ;;  %11976 = vmatprep.subr.bf16.mxu0 %v4557_v24  ;;  %v17211_v19 = vpop.f32.mrb[49].mxu0 }
 0x305   : > { %v12933_v26 = vpop.eup %12932  ;;  %22441 = vst [vmem:[#allocation133_spill] sm:$0xff] %v22440_v49  ;;  %v17201_v60 = vadd.f32 %v4066_v33, %v22443_v41  ;;  %12944 = vpow2.f32 %v3327_v28  ;;  %vm22445_vm0 = vcmask 261120   ;;  %22446 = vst [vmem:[#allocation135_spill] sm:$0xff] %v17211_v19  ;;  %11977 = vmatpush3.bf16.msra.mxu0 %v4557_v24  ;;  %v22449_v28 = vmax.f32 %v16954_v39, 0.0 }
 0x306   : > { %11973 = vmatmul.mubr.msk.bf16.vlgmr.msra.gmra.mrb[84].mxu1 %vm22445_vm0, %v16827_v8  ;;  %v4070_v1 = vmul.f32 0.6931472, %v12933_v26  ;;  %12946 = vlog2.f32 %v3633_v51  ;;  %v3331_v46 = vmul.f32 1.442695, %v2876_v42  ;;  %vm22448_vm15 = vmmov %vm22445_vm0  ;;  %v2615_v26 = vand.u32 2147483647, %v17189_v38 }
 0x307   : > { %11988 = vmatprep.mubr.msk.bf16.mxu1 %vm22448_vm15, %v17038_v12  ;;  %v17222_v41 = vadd.f32 %v4080_v48, %v22449_v28  ;;  %12948 = vpow2.f32 %v3317_v21  ;;  %v17233_v43 = vsub.f32 %v17050_v13, %v17025_v10  ;;  %v17237_v21 = vsub.f32 %v17059_v40, %v16988_v5  ;;  %v22452_v28 = vld [vmem:[#allocation35_spill] sm:$0xff] }
 0x308   : > { %v12935_v61 = vpop.eup %12934  ;;  %12950 = vpow2.f32 %v3331_v46  ;;  %v2871_v48 = vsub.f32 0.0, %v2615_v26  ;;  %vm8167_vm15 = vcmp.ne.s32.totalorder %v22452_v28, 0  ;;  %v22453_v23 = vmax.f32 %v16960_v4, 0.0 }
 0x309   : > { %v4084_v33 = vmul.f32 0.6931472, %v12935_v61  ;;  %v12937_v39 = vpop.eup %12936  ;;  %v4558_v61 = vpack.c.bf16 %v16968_v57, %v17106_v55  ;;  %v2622_v42 = vand.u32 2147483647, %v17233_v43  ;;  %v22456_v5 = vsel %vm15621_vm12, %v22455_v63, -1e+30 }
 0x30a   : > { %v12939_v46 = vpop.eup %12938  ;;  %v17244_v51 = vadd.f32 %v4070_v1, %v22453_v23  ;;  %v3640_v24 = vadd.f32 1.0, %v12937_v39  ;;  %v22457_v49 = vmax.f32 %v16978_v29, 0.0  ;;  %v3321_v55 = vmul.f32 1.442695, %v2871_v48  ;;  %v17257_v23 = vpop.permute.xlu0 %1698 }
 0x30b   : > { %v12941_v25 = vpop.eup %12940  ;;  %v3635_v57 = vadd.f32 1.0, %v12939_v46  ;;  %v2617_v4 = vand.u32 2147483647, %v17237_v21  ;;  %11978 = vmatprep.subr.bf16.mxu0 %v4558_v61  ;;  %v2878_v39 = vsub.f32 0.0, %v2622_v42  ;;  %v8231_v63 = vsel %vm8167_vm15, 1, %v22208_v45  ;;  %v17264_v29 = vpop.f32.mrb[50].mxu0 }
 0x30c   : > { %8856 = vmax.xlane.f32.xlu0 %v22456_v5  ;;  %v17254_v19 = vadd.f32 %v4084_v33, %v22457_v49  ;;  %v4074_v1 = vmul.f32 0.6931472, %v12941_v25  ;;  %12952 = vlog2.f32 %v3640_v24  ;;  %11979 = vmatpush3.bf16.msra.mxu0 %v4558_v61  ;;  %v17262_v5 = vpop.permute.xlu1 %1686  ;;  %22458 = vst [vmem:[#allocation35_spill] sm:$0xff] %v17264_v29  ;;  %v8349_v33 = vrot.slane %v8231_v63, %v22078_v50  ;;  %v17271_v25 = vpop.f32.mrb[51].mxu0 }
 0x30d   : > { %12954 = vlog2.f32 %v3635_v57  ;;  %v2873_v49 = vsub.f32 0.0, %v2617_v4  ;;  %v17269_v48 = vsub.f32 %v16974_v54, %v17076_v7  ;;  %22459 = vst [vmem:[#allocation20_spill] sm:$0xff] %v17271_v25  ;;  %v3335_v46 = vmul.f32 1.442695, %v2878_v39  ;;  %v22460_v57 = vld [vmem:[#allocation40_spill] sm:$0xff] }
 0x30e   : > { %v12943_v42 = vpop.eup %12942  ;;  %12956 = vpow2.f32 %v3321_v55  ;;  %v17276_v61 = vsub.f32 %v17185_v34, %v17042_v56  ;;  %v22461_v4 = vsel %vm15621_vm12, %v22460_v57, -1e+30  ;;  %vm17283_vm0 = vcmp.eq.s32.totalorder %v8349_v33, 1  ;;  %v17307_v39 = vpop.permute.xlu0 %1709 }
 0x30f   : > { %v12945_v63 = vpop.eup %12944  ;;  %v4088_v10 = vmul.f32 0.6931472, %v12943_v42  ;;  %v3325_v29 = vmul.f32 1.442695, %v2873_v49  ;;  %v22462_v25 = vmov 0  ;;  %vm22465_vm15 = vcmask 261120  }
 0x310   : > { %8858 = vmax.xlane.f32.xlu0 %v22461_v4  ;;  %v22463_v25 = vsel %vm17283_vm0, 4294967295, %v22462_v25  ;;  %11981 = vmatmul.mubr.msk.bf16.vlgmr.msra.gmra.mrb[88].mxu0 %vm22465_vm15, %v16827_v8  ;;  %v12947_v55 = vpop.eup %12946  ;;  %v3642_v56 = vadd.f32 1.0, %v12945_v63  ;;  %12958 = vpow2.f32 %v3335_v46  ;;  %vm22468_vm10 = vmmov %vm22465_vm15  ;;  %v22469_v49 = vld [vmem:[#allocation4_spill] sm:$0xff]  ;;  %v22471_v63 = vmax.f32 %v16994_v30, 0.0  ;;  %v17314_v30 = vpop.permute.xlu1 %1694 }
 0x311   : > { %22464 = vst [vmem:[#allocation42_spill] sm:$0xff] %v22463_v25  ;;  %11996 = vmatprep.mubr.msk.bf16.mxu0 %vm22468_vm10, %v17038_v12  ;;  %v22470_v33 = vsel %vm15621_vm12, %v22469_v49, -1e+30  ;;  %v12949_v7 = vpop.eup %12948  ;;  %12960 = vpow2.f32 %v3325_v29  ;;  %v2624_v24 = vand.u32 2147483647, %v17269_v48  ;;  %v7901_v26 = vcombine.high %v22435_v37, %v22435_v37  ;;  %v22518_v25 = vld [vmem:[#allocation51_spill] sm:$0xff] }
 0x312   : > { %8854 = vmax.xlane.f32.xlu1 %v22470_v33  ;;  %v17303_v46 = vadd.f32 %v4074_v1, %v22471_v63  ;;  %v12951_v42 = vpop.eup %12950  ;;  %v4078_v4 = vmul.f32 0.6931472, %v12947_v55  ;;  %12962 = vlog2.f32 %v3642_v56  ;;  %v3637_v36 = vadd.f32 1.0, %v12949_v7  ;;  %v22473_v33 = vld [vmem:[#allocation47_spill] sm:$0xff]  ;;  %v17323_v7 = vpop.f32.mrb[48].mxu1 }
 0x313   : > { %v2619_v27 = vand.u32 2147483647, %v17276_v61  ;;  %v22474_v32 = vsel %vm15697_vm13, %v22473_v33, -1e+30  ;;  %v22475_v1 = vmax.f32 %v17054_v35, 0.0  ;;  %v3644_v63 = vadd.f32 1.0, %v12951_v42 }
 0x314   : > { %8862 = vmax.xlane.f32.xlu0 %v22474_v32  ;;  %v2880_v57 = vsub.f32 0.0, %v2624_v24  ;;  %22477 = vst [vmem:[#allocation40_spill] sm:$0xff] %v17323_v7  ;;  %12964 = vlog2.f32 %v3637_v36  ;;  %v4559_v33 = vpack.c.bf16 %v17020_v47, %v17141_v9  ;;  %v22479_v35 = vld [vmem:[#allocation41_spill] sm:$0xff]  ;;  %v17334_v24 = vpop.f32.mrb[49].mxu1  ;;  %v17338_v36 = vsub.f32 %v17050_v13, %v17120_v62  ;;  %v17358_v32 = vpop.permute.xlu0 %1717 }
 0x315   : > { %v17318_v29 = vadd.f32 %v4088_v10, %v22475_v1  ;;  %v2875_v56 = vsub.f32 0.0, %v2619_v27  ;;  %v22480_v10 = vsel %vm15621_vm12, %v22479_v35, -1e+30  ;;  %22481 = vst [vmem:[#allocation4_spill] sm:$0xff] %v17334_v24  ;;  %12966 = vlog2.f32 %v3644_v63 }
 0x316   : > { %8860 = vmax.xlane.f32.xlu1 %v22480_v10  ;;  %v3339_v42 = vmul.f32 1.442695, %v2880_v57  ;;  %v17342_v27 = vsub.f32 %v17059_v40, %v17081_v6  ;;  %v12953_v1 = vpop.eup %12952  ;;  %11984 = vmatprep.subr.bf16.mxu1 %v4559_v33  ;;  %v4560_v63 = vpack.c.bf16 %v17102_v53, %v17201_v60  ;;  %v22482_v57 = vld [vmem:[#allocation46_spill] sm:$0xff]  ;;  %v22484_v6 = vmax.f32 %v17063_v52, 0.0  ;;  %v17366_v52 = vpop.permute.xlu1 %1705 }
 0x317   : > { %v3329_v9 = vmul.f32 1.442695, %v2875_v56  ;;  %v22483_v62 = vsel %vm15697_vm13, %v22482_v57, -1e+30  ;;  %v12955_v35 = vpop.eup %12954  ;;  %v4092_v55 = vmul.f32 0.6931472, %v12953_v1  ;;  %11985 = vmatpush3.bf16.msra.mxu1 %v4559_v33  ;;  %v17364_v57 = vsub.f32 %v16974_v54, %v17163_v2 }
 0x318   : > { %8866 = vmax.xlane.f32.xlu0 %v22483_v62  ;;  %v17355_v10 = vadd.f32 %v4078_v4, %v22484_v6  ;;  %12968 = vpow2.f32 %v3339_v42  ;;  %v2626_v56 = vand.u32 2147483647, %v17338_v36  ;;  %v12957_v37 = vpop.eup %12956  ;;  %v2621_v60 = vand.u32 2147483647, %v17342_v27  ;;  %11986 = vmatprep.subr.bf16.mxu1 %v4560_v63  ;;  %v22485_v4 = vld [vmem:[#allocation49_spill] sm:$0xff] }
 0x319   : > { %12970 = vpow2.f32 %v3329_v9  ;;  %v22486_v42 = vsel %vm15697_vm13, %v22485_v4, -1e+30  ;;  %v4082_v33 = vmul.f32 0.6931472, %v12955_v35  ;;  %v3639_v1 = vadd.f32 1.0, %v12957_v37  ;;  %v17372_v9 = vpop.f32.mrb[50].mxu1 }
 0x31a   : > { %8864 = vmax.xlane.f32.xlu1 %v22486_v42  ;;  %v2882_v62 = vsub.f32 0.0, %v2626_v56  ;;  %vm8168_vm12 = vcmp.ne.s32.totalorder %v7901_v26, 0  ;;  %22487 = vst [vmem:[#allocation39_spill] sm:$0xff] %v17372_v9  ;;  %v12959_v6 = vpop.eup %12958  ;;  %v22488_v53 = vmax.f32 %v17088_v22, 0.0  ;;  %v2877_v31 = vsub.f32 0.0, %v2621_v60  ;;  %v22490_v4 = vld [vmem:[#allocation44_spill] sm:$0xff] }
 0x31b   : > { %v8232_v15 = vsel %vm8168_vm12, 1, %v22208_v45  ;;  %v22491_v42 = vsel %vm15906_vm1, %v22490_v4, -1e+30  ;;  %v17384_v35 = vpop.f32.mrb[51].mxu1  ;;  %v12961_v26 = vpop.eup %12960  ;;  %12972 = vlog2.f32 %v3639_v1  ;;  %v3646_v56 = vadd.f32 1.0, %v12959_v6  ;;  %11987 = vmatpush3.bf16.msra.mxu1 %v4560_v63  ;;  %v22493_v4 = vld [vmem:[#allocation48_spill] sm:$0xff] }
 0x31c   : > { %v17376_v47 = vadd.f32 %v4092_v55, %v22488_v53  ;;  %8870 = vmax.xlane.f32.xlu0 %v22491_v42  ;;  %22492 = vst [vmem:[#allocation47_spill] sm:$0xff] %v17384_v35  ;;  %v3343_v37 = vmul.f32 1.442695, %v2882_v62  ;;  %v8353_v22 = vrot.slane %v8232_v15, %v22078_v50  ;;  %v12963_v55 = vpop.eup %12962  ;;  %v3641_v53 = vadd.f32 1.0, %v12961_v26  ;;  %v17404_v63 = vpop.f32.mrb[52].mxu0 }
 0x31d   : > { %v3333_v2 = vmul.f32 1.442695, %v2877_v31  ;;  %v2628_v60 = vand.u32 2147483647, %v17364_v57  ;;  %v17390_v9 = vsub.f32 %v17185_v34, %v17128_v16  ;;  %v22494_v42 = vsel %vm15697_vm13, %v22493_v4, -1e+30  ;;  %v17402_v31 = vpop.permute.xlu0 %1728  ;;  %vm22500_vm13 = vmmov %vm22465_vm15 }
 0x31e   : > { %8868 = vmax.xlane.f32.xlu1 %v22494_v42  ;;  %v4096_v1 = vmul.f32 0.6931472, %v12963_v55  ;;  %12974 = vlog2.f32 %v3646_v56  ;;  %vm17396_vm10 = vcmp.eq.s32.totalorder %v8353_v22, 1  ;;  %v22495_v62 = vmov 0  ;;  %22498 = vst [vmem:[#allocation46_spill] sm:$0xff] %v17404_v63  ;;  %v12965_v16 = vpop.eup %12964  ;;  %11989 = vmatmul.mubr.msk.bf16.vlgmr.msra.gmra.mrb[88].mxu1 %vm22500_vm13, %v16827_v8  ;;  %v17418_v22 = vpop.permute.xlu1 %1713  ;;  %vm22505_vm15 = vmmov %vm22500_vm13 }
 0x31f   : > { %v22496_v62 = vsel %vm17396_vm10, 4294967295, %v22495_v62  ;;  %v4561_v15 = vpack.c.bf16 %v17116_v18, %v17244_v51  ;;  %12976 = vlog2.f32 %v3641_v53  ;;  %v2884_v56 = vsub.f32 0.0, %v2628_v60  ;;  %v22501_v18 = vld [vmem:[#allocation43_spill] sm:$0xff]  ;;  %v17420_v55 = vpop.f32.mrb[53].mxu0  ;;  %v12967_v53 = vpop.eup %12966  ;;  %12004 = vmatprep.mubr.msk.bf16.mxu1 %vm22505_vm15, %v17038_v12  ;;  %vm22533_vm15 = vmmov %vm22500_vm13 }
 0x320   : > { %22497 = vst [vmem:[#allocation41_spill] sm:$0xff] %v22496_v62  ;;  %v22502_v51 = vsel %vm15906_vm1, %v22501_v18, -1e+30  ;;  %22503 = vst [vmem:[#allocation49_spill] sm:$0xff] %v17420_v55  ;;  %v22504_v4 = vmax.f32 %v17098_v58, 0.0  ;;  %12978 = vpow2.f32 %v3343_v37  ;;  %v22506_v8 = vmax.f32 %v17145_v44, 0.0 }
 0x321   : > { %8874 = vmax.xlane.f32.xlu0 %v22502_v51  ;;  %v4086_v49 = vmul.f32 0.6931472, %v12965_v16  ;;  %11992 = vmatprep.subr.bf16.mxu0 %v4561_v15  ;;  %12980 = vpow2.f32 %v3333_v2  ;;  %v3347_v51 = vmul.f32 1.442695, %v2884_v56  ;;  %v2623_v26 = vand.u32 2147483647, %v17390_v9 }
 0x322   : > { %v17424_v42 = vadd.f32 %v4082_v33, %v22504_v4  ;;  %v17431_v18 = vadd.f32 %v4096_v1, %v22506_v8  ;;  %11993 = vmatpush3.bf16.msra.mxu0 %v4561_v15  ;;  %v22507_v58 = vld [vmem:[#allocation50_spill] sm:$0xff]  ;;  %v12969_v37 = vpop.eup %12968  ;;  %v4100_v16 = vmul.f32 0.6931472, %v12967_v53  ;;  %v17446_v2 = vsub.f32 %v17050_v13, %v17209_v20  ;;  %v22512_v53 = vld [vmem:[#allocation52_spill] sm:$0xff] }
 0x323   : > { %v22508_v33 = vsel %vm15906_vm1, %v22507_v58, -1e+30  ;;  %v12971_v1 = vpop.eup %12970  ;;  %v3648_v15 = vadd.f32 1.0, %v12969_v37  ;;  %12982 = vpow2.f32 %v3347_v51  ;;  %v2879_v8 = vsub.f32 0.0, %v2623_v26  ;;  %v17462_v51 = vpop.permute.xlu0 %1736 }
 0x324   : > { %8872 = vmax.xlane.f32.xlu1 %v22508_v33  ;;  %v22513_v33 = vsel %vm15991_vm3, %v22512_v53, -1e+30  ;;  %v22514_v60 = vmax.f32 %v17149_v14, 0.0  ;;  %v3643_v44 = vadd.f32 1.0, %v12971_v1  ;;  %v2630_v59 = vand.u32 2147483647, %v17446_v2  ;;  %v17468_v14 = vpop.permute.xlu1 %1724 }
 0x325   : > { %8878 = vmax.xlane.f32.xlu0 %v22513_v33  ;;  %v17460_v20 = vsub.f32 %v17059_v40, %v17173_v17  ;;  %12984 = vlog2.f32 %v3648_v15  ;;  %v3337_v26 = vmul.f32 1.442695, %v2879_v8  ;;  %v7903_v37 = vcombine.high %v22452_v28, %v22452_v28  ;;  %v12973_v1 = vpop.eup %12972 }
 0x326   : > { %v17455_v4 = vadd.f32 %v4086_v49, %v22514_v60  ;;  %v4562_v53 = vpack.c.bf16 %v17158_v11, %v17303_v46  ;;  %v22515_v49 = vld [vmem:[#allocation45_spill] sm:$0xff]  ;;  %v22517_v17 = vmax.f32 %v17171_v0, 0.0  ;;  %12986 = vlog2.f32 %v3643_v44 }
 0x327   : > { %v22516_v60 = vsel %vm15906_vm1, %v22515_v49, -1e+30  ;;  %v2886_v15 = vsub.f32 0.0, %v2630_v59  ;;  %v2625_v8 = vand.u32 2147483647, %v17460_v20  ;;  %12988 = vpow2.f32 %v3337_v26  ;;  %v17489_v26 = vpop.f32.mrb[54].mxu0 }
 0x328   : > { %8876 = vmax.xlane.f32.xlu1 %v22516_v60  ;;  %v17476_v33 = vadd.f32 %v4100_v16, %v22517_v17  ;;  %v4090_v28 = vmul.f32 0.6931472, %v12973_v1  ;;  %vm8169_vm12 = vcmp.ne.s32.totalorder %v7903_v37, 0  ;;  %11994 = vmatprep.subr.bf16.mxu0 %v4562_v53  ;;  %v17481_v11 = vsub.f32 %v16974_v54, %v17257_v23  ;;  %v12975_v0 = vpop.eup %12974  ;;  %22520 = vst [vmem:[#allocation78_spill] sm:$0xff] %v17489_v26  ;;  %v17508_v23 = vpop.permute.xlu0 %1747 }
 0x329   : > { %v22519_v46 = vsel %vm15991_vm3, %v22518_v25, -1e+30  ;;  %v3351_v44 = vmul.f32 1.442695, %v2886_v15  ;;  %v2881_v59 = vsub.f32 0.0, %v2625_v8  ;;  %v8233_v49 = vsel %vm8169_vm12, 1, %v22208_v45  ;;  %11995 = vmatpush3.bf16.msra.mxu0 %v4562_v53  ;;  %v12977_v37 = vpop.eup %12976 }
 0x32a   : > { %8882 = vmax.xlane.f32.xlu0 %v22519_v46  ;;  %v4104_v60 = vmul.f32 0.6931472, %v12975_v0  ;;  %v8357_v1 = vrot.slane %v8233_v49, %v22078_v50  ;;  %v17495_v17 = vsub.f32 %v17185_v34, %v17218_v3  ;;  %v22521_v25 = vld [vmem:[#allocation54_spill] sm:$0xff]  ;;  %v17501_v8 = vpop.f32.mrb[55].mxu0  ;;  %v12979_v53 = vpop.eup %12978  ;;  %v22524_v46 = vmax.f32 %v17189_v38, 0.0  ;;  %v17518_v38 = vld [vmem:[%s21558_s6 + $0x8] sm:$0xff]  }
 0x32b   : > { %v22522_v15 = vsel %vm15991_vm3, %v22521_v25, -1e+30  ;;  %22523 = vst [vmem:[#allocation44_spill] sm:$0xff] %v17501_v8  ;;  %12990 = vpow2.f32 %v3351_v44  ;;  %v3341_v0 = vmul.f32 1.442695, %v2881_v59  ;;  %v12981_v3 = vpop.eup %12980  ;;  %v3650_v6 = vadd.f32 1.0, %v12979_v53 }
 0x32c   : > { %8880 = vmax.xlane.f32.xlu1 %v22522_v15  ;;  %v17505_v16 = vadd.f32 %v4090_v28, %v22524_v46  ;;  %v2632_v49 = vand.u32 2147483647, %v17481_v11  ;;  %v4094_v56 = vmul.f32 0.6931472, %v12977_v37  ;;  %vm17510_vm1 = vcmp.eq.s32.totalorder %v8357_v1, 1  ;;  %11997 = vmatmul.mubr.msk.bf16.vlgmr.msra.gmra.mrb[92].mxu0 %vm22500_vm13, %v17518_v38  ;;  %v22529_v44 = vld [vmem:[#allocation56_spill] sm:$0xff]  ;;  %v17526_v37 = vpop.permute.xlu1 %1732 }
 0x32d   : > { %v22525_v62 = vmov 0  ;;  %v22530_v59 = vsel %vm16079_vm5, %v22529_v44, -1e+30  ;;  %v22531_v1 = vmax.f32 %v17233_v43, 0.0  ;;  %v3645_v53 = vadd.f32 1.0, %v12981_v3  ;;  %12012 = vmatprep.mubr.msk.bf16.mxu0 %vm22533_vm15, %v17038_v12  ;;  %v17537_v8 = vpop.f32.mrb[52].mxu1  ;;  %v12983_v26 = vpop.eup %12982 }
 0x32e   : > { %v22526_v62 = vsel %vm17510_vm1, 4294967295, %v22525_v62  ;;  %8886 = vmax.xlane.f32.xlu0 %v22530_v59  ;;  %12992 = vpow2.f32 %v3341_v0  ;;  %22534 = vst [vmem:[#allocation43_spill] sm:$0xff] %v17537_v8  ;;  %v2888_v43 = vsub.f32 0.0, %v2632_v49  ;;  %v22536_v0 = vld [vmem:[#allocation53_spill] sm:$0xff]  ;;  %v3652_v25 = vadd.f32 1.0, %v12983_v26  ;;  %v22541_v26 = vld [vmem:[#allocation55_spill] sm:$0xff] }
 0x32f   : > { %22527 = vst [vmem:[#allocation48_spill] sm:$0xff] %v22526_v62  ;;  %v17530_v15 = vadd.f32 %v4104_v60, %v22531_v1  ;;  %12994 = vlog2.f32 %v3650_v6  ;;  %v2627_v60 = vand.u32 2147483647, %v17495_v17  ;;  %v22537_v3 = vsel %vm15991_vm3, %v22536_v0, -1e+30  ;;  %v17547_v1 = vpop.f32.mrb[53].mxu1  ;;  %v12985_v49 = vpop.eup %12984 }
 0x330   : > { %8884 = vmax.xlane.f32.xlu1 %v22537_v3  ;;  %22538 = vst [vmem:[#allocation50_spill] sm:$0xff] %v17547_v1  ;;  %12996 = vlog2.f32 %v3645_v53  ;;  %v3355_v44 = vmul.f32 1.442695, %v2888_v43  ;;  %v4563_v58 = vpack.c.bf16 %v17222_v41, %v17355_v10  ;;  %v17559_v0 = vsub.f32 %v17050_v13, %v17307_v39  ;;  %v12987_v3 = vpop.eup %12986  ;;  %v22543_v43 = vld [vmem:[#allocation34_spill] sm:$0xff] }
 0x331   : > { %v2883_v55 = vsub.f32 0.0, %v2627_v60  ;;  %v22542_v53 = vsel %vm16079_vm5, %v22541_v26, -1e+30  ;;  %v4108_v6 = vmul.f32 0.6931472, %v12985_v49  ;;  %12998 = vlog2.f32 %v3652_v25  ;;  %v17570_v60 = vpop.permute.xlu0 %1755  ;;  %v12989_v41 = vpop.eup %12988 }
 0x332   : > { %8890 = vmax.xlane.f32.xlu0 %v22542_v53  ;;  %v17567_v59 = vsub.f32 %v17059_v40, %v17262_v5  ;;  %vm8170_vm3 = vcmp.ne.s32.totalorder %v22543_v43, 0  ;;  %v22544_v39 = vmax.f32 %v17237_v21, 0.0  ;;  %13000 = vpow2.f32 %v3355_v44  ;;  %12000 = vmatprep.subr.bf16.mxu1 %v4563_v58  ;;  %v17577_v49 = vpop.permute.xlu1 %1743  ;;  %v22545_v5 = vld [vmem:[#allocation58_spill] sm:$0xff] }
 0x333   : > { %v3345_v53 = vmul.f32 1.442695, %v2883_v55  ;;  %v22546_v25 = vsel %vm16079_vm5, %v22545_v5, -1e+30  ;;  %v4098_v46 = vmul.f32 0.6931472, %v12987_v3  ;;  %12001 = vmatpush3.bf16.msra.mxu1 %v4563_v58  ;;  %v17605_v1 = vsub.f32 %v16974_v54, %v17358_v32 }
 0x334   : > { %v17574_v10 = vadd.f32 %v4094_v56, %v22544_v39  ;;  %8888 = vmax.xlane.f32.xlu1 %v22546_v25  ;;  %v3647_v8 = vadd.f32 1.0, %v12989_v41  ;;  %v2634_v21 = vand.u32 2147483647, %v17559_v0  ;;  %v22547_v56 = vmax.f32 %v17269_v48, 0.0  ;;  %v22549_v3 = vld [vmem:[#allocation60_spill] sm:$0xff] }
 0x335   : > { %13002 = vpow2.f32 %v3345_v53  ;;  %v2629_v55 = vand.u32 2147483647, %v17567_v59  ;;  %v8234_v39 = vsel %vm8170_vm3, 1, %v22208_v45  ;;  %v22550_v41 = vsel %vm16180_vm7, %v22549_v3, -1e+30  ;;  %v12991_v25 = vpop.eup %12990  ;;  %v22552_v3 = vld [vmem:[#allocation57_spill] sm:$0xff]  ;;  %v17623_v32 = vpop.permute.xlu0 %1766 }
 0x336   : > { %v17587_v44 = vadd.f32 %v4108_v6, %v22547_v56  ;;  %8894 = vmax.xlane.f32.xlu0 %v22550_v41  ;;  %13004 = vlog2.f32 %v3647_v8  ;;  %v2890_v62 = vsub.f32 0.0, %v2634_v21  ;;  %v8361_v58 = vrot.slane %v8234_v39, %v22078_v50  ;;  %v17600_v6 = vpop.f32.mrb[54].mxu1 }
 0x337   : > { %v4564_v48 = vpack.c.bf16 %v17254_v19, %v17424_v42  ;;  %22551 = vst [vmem:[#allocation82_spill] sm:$0xff] %v17600_v6  ;;  %v3654_v53 = vadd.f32 1.0, %v12991_v25  ;;  %v2885_v26 = vsub.f32 0.0, %v2629_v55  ;;  %v22553_v8 = vsel %vm16079_vm5, %v22552_v3, -1e+30  ;;  %v17611_v21 = vpop.f32.mrb[55].mxu1  ;;  %vm22568_vm5 = vmmov %vm22500_vm13 }
 0x338   : > { %8892 = vmax.xlane.f32.xlu1 %v22553_v8  ;;  %22554 = vst [vmem:[#allocation52_spill] sm:$0xff] %v17611_v21  ;;  %v12993_v39 = vpop.eup %12992  ;;  %v3359_v41 = vmul.f32 1.442695, %v2890_v62  ;;  %vm17613_vm12 = vcmp.eq.s32.totalorder %v8361_v58, 1  ;;  %v22555_v19 = vmov 0  ;;  %v17619_v42 = vsub.f32 %v17185_v34, %v17314_v30  ;;  %v17628_v58 = vpop.permute.xlu1 %1751  ;;  %v22559_v30 = vld [vmem:[#allocation59_spill] sm:$0xff]  ;;  %vm22571_vm13 = vmmov %vm22568_vm5 }
 0x339   : > { %v22556_v19 = vsel %vm17613_vm12, 4294967295, %v22555_v19  ;;  %12002 = vmatprep.subr.bf16.mxu1 %v4564_v48  ;;  %v4565_v54 = vpack.c.bf16 %v17318_v29, %v17455_v4  ;;  %v12995_v28 = vpop.eup %12994  ;;  %13006 = vlog2.f32 %v3654_v53  ;;  %v3649_v55 = vadd.f32 1.0, %v12993_v39  ;;  %vm22602_vm3 = vmmov %vm22568_vm5 }
 0x33a   : > { %22557 = vst [vmem:[#allocation45_spill] sm:$0xff] %v22556_v19  ;;  %v3349_v25 = vmul.f32 1.442695, %v2885_v26  ;;  %12003 = vmatpush3.bf16.msra.mxu1 %v4564_v48  ;;  %v22560_v8 = vsel %vm16180_vm7, %v22559_v30, -1e+30  ;;  %v12997_v56 = vpop.eup %12996  ;;  %13008 = vpow2.f32 %v3359_v41  ;;  %v17639_v26 = vsub.f32 %v17050_v13, %v17402_v31  ;;  %v17641_v48 = vpop.f32.mrb[56].mxu0 }
 0x33b   : > { %8898 = vmax.xlane.f32.xlu0 %v22560_v8  ;;  %v4112_v29 = vmul.f32 0.6931472, %v12995_v28  ;;  %12008 = vmatprep.subr.bf16.mxu0 %v4565_v54  ;;  %22562 = vst [vmem:[#allocation51_spill] sm:$0xff] %v17641_v48  ;;  %v22563_v39 = vmax.f32 %v17276_v61, 0.0  ;;  %v4102_v30 = vmul.f32 0.6931472, %v12997_v56  ;;  %13010 = vlog2.f32 %v3649_v55  ;;  %v12999_v13 = vpop.eup %12998 }
 0x33c   : > { %v2636_v28 = vand.u32 2147483647, %v17605_v1  ;;  %12009 = vmatpush3.bf16.msra.mxu0 %v4565_v54  ;;  %v22564_v41 = vld [vmem:[#allocation62_spill] sm:$0xff]  ;;  %v17652_v53 = vpop.f32.mrb[57].mxu0  ;;  %13012 = vpow2.f32 %v3349_v25  ;;  %v2631_v61 = vand.u32 2147483647, %v17619_v42  ;;  %v13001_v54 = vpop.eup %13000 }
 0x33d   : > { %v17645_v62 = vadd.f32 %v4098_v46, %v22563_v39  ;;  %v22565_v8 = vsel %vm16180_vm7, %v22564_v41, -1e+30  ;;  %22566 = vst [vmem:[#allocation54_spill] sm:$0xff] %v17652_v53  ;;  %12005 = vmatmul.mubr.msk.bf16.vlgmr.msra.gmra.mrb[92].mxu1 %vm22568_vm5, %v17518_v38  ;;  %v22569_v55 = vmax.f32 %v17338_v36, 0.0  ;;  %v22573_v56 = vld [vmem:[#allocation64_spill] sm:$0xff]  ;;  %v22575_v4 = vmax.f32 %v17342_v27, 0.0 }
 0x33e   : > { %8896 = vmax.xlane.f32.xlu1 %v22565_v8  ;;  %v2892_v41 = vsub.f32 0.0, %v2636_v28  ;;  %12020 = vmatprep.mubr.msk.bf16.mxu1 %vm22571_vm13, %v17038_v12  ;;  %v22574_v46 = vsel %vm16271_vm9, %v22573_v56, -1e+30  ;;  %v2887_v28 = vsub.f32 0.0, %v2631_v61  ;;  %v17680_v8 = vpop.permute.xlu0 %1774  ;;  %v4116_v31 = vmul.f32 0.6931472, %v12999_v13  ;;  %vm22622_vm13 = vmmov %vm22602_vm3 }
 0x33f   : > { %v17663_v39 = vadd.f32 %v4112_v29, %v22569_v55  ;;  %8902 = vmax.xlane.f32.xlu0 %v22574_v46  ;;  %v17677_v36 = vadd.f32 %v4102_v30, %v22575_v4  ;;  %v3656_v29 = vadd.f32 1.0, %v13001_v54  ;;  %v2638_v55 = vand.u32 2147483647, %v17639_v26  ;;  %v13003_v19 = vpop.eup %13002  ;;  %v22576_v53 = vld [vmem:[#allocation12_spill] sm:$0xff]  ;;  %v22577_v56 = vld [vmem:[#allocation29_spill] sm:$0xff]  ;;  %v17692_v4 = vpop.permute.xlu1 %1762 }
 0x340   : > { %v3363_v25 = vmul.f32 1.442695, %v2892_v41  ;;  %v17684_v12 = vsub.f32 %v17059_v40, %v17366_v52  ;;  %v22578_v46 = vcombine.high %v22577_v56, %v22577_v56  ;;  %v22579_v30 = vld [vmem:[#allocation61_spill] sm:$0xff]  ;;  %v13005_v54 = vpop.eup %13004  ;;  %v3651_v13 = vadd.f32 1.0, %v13003_v19  ;;  %v17744_v52 = vpop.f32.mrb[56].mxu1 }
 0x341   : > { %v22580_v61 = vsel %vm16180_vm7, %v22579_v30, -1e+30  ;;  %13014 = vlog2.f32 %v3656_v29  ;;  %v3353_v41 = vmul.f32 1.442695, %v2887_v28  ;;  %v2894_v48 = vsub.f32 0.0, %v2638_v55  ;;  %v17707_v29 = vpop.f32.mrb[58].mxu0 }
 0x342   : > { %v17690_v27 = vrot.slane %v22578_v46, %v22576_v53  ;;  %8900 = vmax.xlane.f32.xlu1 %v22580_v61  ;;  %v4106_v40 = vmul.f32 0.6931472, %v13005_v54  ;;  %13016 = vpow2.f32 %v3363_v25  ;;  %v2633_v56 = vand.u32 2147483647, %v17684_v12  ;;  %v22581_v46 = vld [vmem:[#allocation63_spill] sm:$0xff]  ;;  %22583 = vst [vmem:[#allocation86_spill] sm:$0xff] %v17707_v29 }
 0x343   : > { %v22582_v53 = vsel %vm16271_vm9, %v22581_v46, -1e+30  ;;  %13018 = vlog2.f32 %v3651_v13  ;;  %v3367_v5 = vmul.f32 1.442695, %v2894_v48  ;;  %v4566_v19 = vpack.c.bf16 %v17376_v47, %v17505_v16  ;;  %v13007_v28 = vpop.eup %13006  ;;  %v17718_v54 = vpop.f32.mrb[59].mxu0  ;;  %22591 = vst [vmem:[#allocation53_spill] sm:$0xff] %v17744_v52 }
 0x344   : > { %8906 = vmax.xlane.f32.xlu0 %v22582_v53  ;;  %vm8171_vm7 = vcmp.ne.s32.totalorder %v17690_v27, 0  ;;  %v22584_v25 = vmax.f32 %v17364_v57, 0.0  ;;  %13020 = vpow2.f32 %v3353_v41  ;;  %v2889_v30 = vsub.f32 0.0, %v2633_v56  ;;  %v22585_v53 = vld [vmem:[#allocation66_spill] sm:$0xff]  ;;  %22587 = vst [vmem:[#allocation56_spill] sm:$0xff] %v17718_v54  ;;  %v13009_v13 = vpop.eup %13008  ;;  %v17730_v41 = vpop.permute.xlu0 %1785 }
 0x345   : > { %v8235_v61 = vsel %vm8171_vm7, 1, %v22208_v45  ;;  %v22586_v48 = vsel %vm16271_vm9, %v22585_v53, -1e+30  ;;  %v4120_v47 = vmul.f32 0.6931472, %v13007_v28  ;;  %13022 = vpow2.f32 %v3367_v5  ;;  %12010 = vmatprep.subr.bf16.mxu0 %v4566_v19  ;;  %v17724_v57 = vld [vmem:[%s21552_s0 + $0x18] sm:$0xff]  ;;  %v13011_v56 = vpop.eup %13010 }
 0x346   : > { %v17711_v55 = vadd.f32 %v4116_v31, %v22584_v25  ;;  %8904 = vmax.xlane.f32.xlu1 %v22586_v48  ;;  %v8365_v16 = vrot.slane %v8235_v61, %v22078_v50  ;;  %v17728_v31 = vsub.f32 %v17724_v57, %v17462_v51  ;;  %v3658_v46 = vadd.f32 1.0, %v13009_v13  ;;  %12011 = vmatpush3.bf16.msra.mxu0 %v4566_v19  ;;  %v17738_v61 = vpop.permute.xlu1 %1770  ;;  %v22589_v48 = vld [vmem:[#allocation68_spill] sm:$0xff]  ;;  %v13013_v54 = vpop.eup %13012 }
 0x347   : > { %v3357_v25 = vmul.f32 1.442695, %v2889_v30  ;;  %v17734_v5 = vsub.f32 %v17185_v34, %v17418_v22  ;;  %v4567_v28 = vpack.c.bf16 %v17431_v18, %v17574_v10  ;;  %v22590_v51 = vsel %vm16356_vm14, %v22589_v48, -1e+30  ;;  %v17755_v18 = vpop.f32.mrb[57].mxu1 }
 0x348   : > { %8910 = vmax.xlane.f32.xlu0 %v22590_v51  ;;  %v22592_v30 = vmax.f32 %v17390_v9, 0.0  ;;  %v4110_v22 = vmul.f32 0.6931472, %v13011_v56  ;;  %vm17751_vm15 = vcmp.eq.s32.totalorder %v8365_v16, 1  ;;  %v22593_v29 = vmov 0  ;;  %22596 = vst [vmem:[#allocation34_spill] sm:$0xff] %v17755_v18 }
 0x349   : > { %v22594_v29 = vsel %vm17751_vm15, 4294967295, %v22593_v29  ;;  %13024 = vlog2.f32 %v3658_v46  ;;  %v3653_v10 = vadd.f32 1.0, %v13013_v54  ;;  %12016 = vmatprep.subr.bf16.mxu1 %v4567_v28  ;;  %v22601_v56 = vmax.f32 %v17446_v2, 0.0  ;;  %12013 = vmatmul.mubr.msk.bf16.vlgmr.msra.gmra.mrb[96].mxu0 %vm22602_vm3, %v17518_v38  ;;  %v17800_v2 = vld [vmem:[%s21552_s0 + $0x8] sm:$0xff] }
 0x34a   : > { %v17748_v13 = vadd.f32 %v4106_v40, %v22592_v30  ;;  %22595 = vst [vmem:[#allocation55_spill] sm:$0xff] %v22594_v29  ;;  %v22599_v40 = vld [vmem:[#allocation65_spill] sm:$0xff]  ;;  %13026 = vpow2.f32 %v3357_v25  ;;  %v2640_v46 = vand.u32 2147483647, %v17728_v31  ;;  %12017 = vmatpush3.bf16.msra.mxu1 %v4567_v28  ;;  %v2635_v51 = vand.u32 2147483647, %v17734_v5  ;;  %v17821_v3 = vpop.permute.xlu1 %1781 }
 0x34b   : > { %v22600_v16 = vsel %vm16271_vm9, %v22599_v40, -1e+30  ;;  %v17769_v30 = vadd.f32 %v4120_v47, %v22601_v56  ;;  %13028 = vlog2.f32 %v3653_v10  ;;  %v17785_v47 = vld [vmem:[%s21558_s6] sm:$0xff]   ;;  %vm22605_vm9 = vmmov %vm22602_vm3  ;;  %v13015_v10 = vpop.eup %13014  ;;  %v22608_v56 = vmax.f32 %v17460_v20, 0.0 }
 0x34c   : > { %8908 = vmax.xlane.f32.xlu1 %v22600_v16  ;;  %12028 = vmatprep.mubr.msk.bf16.mxu0 %vm22605_vm9, %v17785_v47  ;;  %v22606_v25 = vld [vmem:[#allocation67_spill] sm:$0xff]  ;;  %v2896_v9 = vsub.f32 0.0, %v2640_v46  ;;  %v17804_v54 = vsub.f32 %v17800_v2, %v17508_v23  ;;  %v13017_v46 = vpop.eup %13016  ;;  %v7902_v19 = vcombine.high %v22543_v43, %v22543_v43  ;;  %v4568_v23 = vpack.c.bf16 %v17476_v33, %v17645_v62  ;;  %v22609_v16 = vld [vmem:[#allocation70_spill] sm:$0xff] }
 0x34d   : > { %v22607_v28 = vsel %vm16356_vm14, %v22606_v25, -1e+30  ;;  %v17795_v40 = vadd.f32 %v4110_v22, %v22608_v56  ;;  %v17809_v25 = vld [vmem:[%s21552_s0] sm:$0xff]  ;;  %v17815_v22 = vpop.permute.xlu0 %1793  ;;  %v2891_v56 = vsub.f32 0.0, %v2635_v51  ;;  %v22610_v48 = vsel %vm16356_vm14, %v22609_v16, -1e+30 }
 0x34e   : > { %8914 = vmax.xlane.f32.xlu0 %v22607_v28  ;;  %v17813_v20 = vsub.f32 %v17809_v25, %v17468_v14  ;;  %v4124_v28 = vmul.f32 0.6931472, %v13015_v10  ;;  %v13019_v14 = vpop.eup %13018  ;;  %v3660_v52 = vadd.f32 1.0, %v13017_v46  ;;  %v3371_v29 = vmul.f32 1.442695, %v2896_v9  ;;  %12018 = vmatprep.subr.bf16.mxu1 %v4568_v23  ;;  %v22613_v9 = vld [vmem:[#allocation72_spill] sm:$0xff] }
 0x34f   : > { %v2642_v51 = vand.u32 2147483647, %v17804_v54  ;;  %v13021_v10 = vpop.eup %13020  ;;  %v22611_v43 = vmax.f32 %v17481_v11, 0.0  ;;  %v3361_v33 = vmul.f32 1.442695, %v2891_v56  ;;  %v17836_v16 = vsub.f32 %v17724_v57, %v17570_v60  ;;  %12019 = vmatpush3.bf16.msra.mxu1 %v4568_v23  ;;  %v22615_v60 = vld [vmem:[#allocation69_spill] sm:$0xff] }
 0x350   : > { %8912 = vmax.xlane.f32.xlu1 %v22610_v48  ;;  %v22614_v46 = vsel %vm16459_vm4, %v22613_v9, -1e+30  ;;  %v13023_v18 = vpop.eup %13022  ;;  %13030 = vlog2.f32 %v3660_v52  ;;  %v3655_v6 = vadd.f32 1.0, %v13021_v10  ;;  %v2637_v11 = vand.u32 2147483647, %v17813_v20 }
 0x351   : > { %v17831_v21 = vadd.f32 %v4124_v28, %v22611_v43  ;;  %v2898_v63 = vsub.f32 0.0, %v2642_v51  ;;  %v4114_v28 = vmul.f32 0.6931472, %v13019_v14  ;;  %v3662_v56 = vadd.f32 1.0, %v13023_v18  ;;  %v17848_v52 = vpop.permute.xlu0 %1804  ;;  %v17850_v51 = vpop.f32.mrb[58].mxu1 }
 0x352   : > { %8918 = vmax.xlane.f32.xlu0 %v22614_v46  ;;  %13032 = vpow2.f32 %v3371_v29  ;;  %vm8172_vm5 = vcmp.ne.s32.totalorder %v7902_v19, 0  ;;  %v22616_v43 = vsel %vm16356_vm14, %v22615_v60, -1e+30  ;;  %v2893_v9 = vsub.f32 0.0, %v2637_v11  ;;  %22617 = vst [vmem:[#allocation58_spill] sm:$0xff] %v17850_v51  ;;  %vm22618_vm14 = vmmov %vm22602_vm3  ;;  %v17863_v23 = vpop.f32.mrb[59].mxu1 }
 0x353   : > { %13034 = vlog2.f32 %v3655_v6  ;;  %v3375_v62 = vmul.f32 1.442695, %v2898_v63  ;;  %v8236_v46 = vsel %vm8172_vm5, 1, %v22208_v45  ;;  %v13025_v10 = vpop.eup %13024  ;;  %v2644_v53 = vand.u32 2147483647, %v17836_v16  ;;  %12021 = vmatmul.mubr.msk.bf16.vlgmr.msra.gmra.mrb[96].mxu1 %vm22618_vm14, %v17518_v38  ;;  %v17857_v6 = vpop.permute.xlu1 %1789  ;;  %v22619_v63 = vld [vmem:[#allocation71_spill] sm:$0xff] }
 0x354   : > { %8916 = vmax.xlane.f32.xlu1 %v22616_v43  ;;  %13036 = vlog2.f32 %v3662_v56  ;;  %v8369_v29 = vrot.slane %v8236_v46, %v22078_v50  ;;  %v22620_v19 = vsel %vm16459_vm4, %v22619_v63, -1e+30  ;;  %22621 = vst [vmem:[#allocation90_spill] sm:$0xff] %v17863_v23  ;;  %v13027_v14 = vpop.eup %13026  ;;  %v4128_v11 = vmul.f32 0.6931472, %v13025_v10  ;;  %12036 = vmatprep.mubr.msk.bf16.mxu1 %vm22622_vm13, %v17785_v47  ;;  %v22626_v10 = vld [vmem:[#allocation74_spill] sm:$0xff] }
 0x355   : > { %13038 = vpow2.f32 %v3361_v33  ;;  %v3365_v56 = vmul.f32 1.442695, %v2893_v9  ;;  %v17867_v60 = vsub.f32 %v17185_v34, %v17526_v37  ;;  %v13029_v43 = vpop.eup %13028  ;;  %v3657_v46 = vadd.f32 1.0, %v13027_v14  ;;  %v18000_v23 = vld [vmem:[%s21552_s0 + $0x10] sm:$0xff] }
 0x356   : > { %8922 = vmax.xlane.f32.xlu0 %v22620_v19  ;;  %13040 = vpow2.f32 %v3375_v62  ;;  %vm17871_vm7 = vcmp.eq.s32.totalorder %v8369_v29, 1  ;;  %v22623_v18 = vmov 0  ;;  %v2900_v63 = vsub.f32 0.0, %v2644_v53  ;;  %v17886_v29 = vpop.f32.mrb[60].mxu0 }
 0x357   : > { %v22624_v18 = vsel %vm17871_vm7, 4294967295, %v22623_v18  ;;  %v22627_v33 = vsel %vm16459_vm4, %v22626_v10, -1e+30  ;;  %v22628_v9 = vmax.f32 %v17495_v17, 0.0  ;;  %v4118_v37 = vmul.f32 0.6931472, %v13029_v43  ;;  %v17909_v10 = vpop.permute.xlu0 %1812 }
 0x358   : > { %22625 = vst [vmem:[#allocation60_spill] sm:$0xff] %v22624_v18  ;;  %8920 = vmax.xlane.f32.xlu1 %v22627_v33  ;;  %13042 = vpow2.f32 %v3365_v56  ;;  %22630 = vst [vmem:[#allocation57_spill] sm:$0xff] %v17886_v29  ;;  %v3379_v33 = vmul.f32 1.442695, %v2900_v63  ;;  %v22633_v17 = vld [vmem:[#allocation75_spill] sm:$0xff]  ;;  %v17896_v56 = vpop.f32.mrb[61].mxu0 }
 0x359   : > { %v17881_v34 = vadd.f32 %v4114_v28, %v22628_v9  ;;  %13044 = vlog2.f32 %v3657_v46  ;;  %v22634_v28 = vsel %vm16545_vm8, %v22633_v17, -1e+30  ;;  %22635 = vst [vmem:[#allocation59_spill] sm:$0xff] %v17896_v56  ;;  %v22636_v43 = vmax.f32 %v17559_v0, 0.0  ;;  %v22645_v18 = vld [vmem:[#allocation77_spill] sm:$0xff] }
 0x35a   : > { %8926 = vmax.xlane.f32.xlu0 %v22634_v28  ;;  %v2639_v46 = vand.u32 2147483647, %v17867_v60  ;;  %13046 = vpow2.f32 %v3379_v33  ;;  %v4569_v17 = vpack.c.bf16 %v17530_v15, %v17677_v36  ;;  %v17915_v0 = vsub.f32 %v17800_v2, %v17623_v32  ;;  %v17921_v28 = vpop.permute.xlu1 %1800  ;;  %v13031_v63 = vpop.eup %13030 }
 0x35b   : > { %v17900_v9 = vadd.f32 %v4128_v11, %v22636_v43  ;;  %v17919_v11 = vsub.f32 %v17809_v25, %v17577_v49  ;;  %v22640_v43 = vld [vmem:[#allocation73_spill] sm:$0xff]  ;;  %v7904_v15 = vcombine.high %v17690_v27, %v17690_v27  ;;  %v4570_v32 = vpack.c.bf16 %v17587_v44, %v17748_v13 }
 0x35c   : > { %22639 = vst [vmem:[#allocation62_spill] sm:$0xff] %v17915_v0  ;;  %v22641_v53 = vsel %vm16459_vm4, %v22640_v43, -1e+30  ;;  %v2895_v62 = vsub.f32 0.0, %v2639_v46  ;;  %v13033_v36 = vpop.eup %13032  ;;  %v22642_v49 = vmax.f32 %v17567_v59, 0.0  ;;  %12024 = vmatprep.subr.bf16.mxu0 %v4569_v17  ;;  %v22643_v46 = vld [vmem:[#allocation13_spill] sm:$0xff] }
 0x35d   : > { %8924 = vmax.xlane.f32.xlu1 %v22641_v53  ;;  %v4132_v14 = vmul.f32 0.6931472, %v13031_v63  ;;  %v2646_v48 = vand.u32 2147483647, %v17915_v0  ;;  %v17939_v53 = vsub.f32 %v17724_v57, %v17680_v8  ;;  %v22644_v27 = vsel %vm16545_vm8, %v22643_v46, -1e+30  ;;  %v13035_v43 = vpop.eup %13034  ;;  %12025 = vmatpush3.bf16.msra.mxu0 %v4569_v17 }
 0x35e   : > { %v17934_v19 = vadd.f32 %v4118_v37, %v22642_v49  ;;  %8930 = vmax.xlane.f32.xlu0 %v22644_v27  ;;  %v3664_v44 = vadd.f32 1.0, %v13033_v36  ;;  %v3369_v13 = vmul.f32 1.442695, %v2895_v62  ;;  %v2641_v59 = vand.u32 2147483647, %v17919_v11  ;;  %v13037_v37 = vpop.eup %13036  ;;  %12026 = vmatprep.subr.bf16.mxu0 %v4570_v32  ;;  %v17958_v51 = vpop.permute.xlu1 %1808 }
 0x35f   : > { %vm8173_vm4 = vcmp.ne.s32.totalorder %v7904_v15, 0  ;;  %v4122_v63 = vmul.f32 0.6931472, %v13035_v43  ;;  %v2902_v33 = vsub.f32 0.0, %v2646_v48  ;;  %v22646_v46 = vsel %vm16545_vm8, %v22645_v18, -1e+30  ;;  %v13039_v27 = vpop.eup %13038  ;;  %v17953_v15 = vpop.permute.xlu0 %1823 }
 0x360   : > { %v8237_v8 = vsel %vm8173_vm4, 1, %v22208_v45  ;;  %v4136_v36 = vmul.f32 0.6931472, %v13037_v37  ;;  %13048 = vlog2.f32 %v3664_v44  ;;  %v2897_v62 = vsub.f32 0.0, %v2641_v59  ;;  %v17955_v43 = vpop.f32.mrb[62].mxu0  ;;  %v13041_v49 = vpop.eup %13040  ;;  %22648 = vst [vmem:[#allocation64_spill] sm:$0xff] %v17958_v51 }
 0x361   : > { %8928 = vmax.xlane.f32.xlu1 %v22646_v46  ;;  %v8373_v17 = vrot.slane %v8237_v8, %v22078_v50  ;;  %22647 = vst [vmem:[#allocation95_spill] sm:$0xff] %v17955_v43  ;;  %v3659_v48 = vadd.f32 1.0, %v13039_v27  ;;  %13050 = vpow2.f32 %v3369_v13  ;;  %v3383_v56 = vmul.f32 1.442695, %v2902_v33  ;;  %v22650_v46 = vld [vmem:[#allocation18_spill] sm:$0xff]  ;;  %v17964_v44 = vpop.f32.mrb[63].mxu0  ;;  %12027 = vmatpush3.bf16.msra.mxu0 %v4570_v32 }
 0x362   : > { %v22651_v37 = vsel %vm16635_vm2, %v22650_v46, -1e+30  ;;  %22652 = vst [vmem:[#allocation29_spill] sm:$0xff] %v17964_v44  ;;  %v13043_v59 = vpop.eup %13042  ;;  %v22653_v8 = vmax.f32 %v17605_v1, 0.0  ;;  %v3666_v43 = vadd.f32 1.0, %v13041_v49  ;;  %v22654_v33 = vmov 0 }
 0x363   : > { %8934 = vmax.xlane.f32.xlu0 %v22651_v37  ;;  %v3373_v27 = vmul.f32 1.442695, %v2897_v62  ;;  %vm17970_vm3 = vcmp.eq.s32.totalorder %v8373_v17, 1  ;;  %v17974_v13 = vpop.f32.mrb[60].mxu1  ;;  %v13045_v29 = vpop.eup %13044  ;;  %13052 = vlog2.f32 %v3659_v48  ;;  %v3661_v46 = vadd.f32 1.0, %v13043_v59  ;;  %v22746_v35 = vld [vmem:[#allocation62_spill] sm:$0xff] }
 0x364   : > { %v17968_v0 = vadd.f32 %v4132_v14, %v22653_v8  ;;  %v22655_v33 = vsel %vm17970_vm3, 4294967295, %v22654_v33  ;;  %22657 = vst [vmem:[#allocation63_spill] sm:$0xff] %v17974_v13  ;;  %v22660_v14 = vld [vmem:[#allocation76_spill] sm:$0xff]  ;;  %v17986_v62 = vpop.f32.mrb[61].mxu1  ;;  %v22663_v32 = vmax.f32 %v17619_v42, 0.0  ;;  %v22664_v48 = vmax.f32 %v17639_v26, 0.0  ;;  %v13047_v44 = vpop.eup %13046 }
 0x365   : > { %22656 = vst [vmem:[#allocation61_spill] sm:$0xff] %v22655_v33  ;;  %v22661_v49 = vsel %vm16545_vm8, %v22660_v14, -1e+30  ;;  %22662 = vst [vmem:[#allocation66_spill] sm:$0xff] %v17986_v62  ;;  %13054 = vlog2.f32 %v3666_v43  ;;  %v2648_v8 = vand.u32 2147483647, %v17939_v53  ;;  %v18004_v14 = vsub.f32 %v18000_v23, %v17628_v58  ;;  %v18024_v1 = vpop.permute.xlu0 %1831  ;;  %v18026_v42 = vpop.permute.xlu1 %1819 }
 0x366   : > { %8932 = vmax.xlane.f32.xlu1 %v22661_v49  ;;  %v17990_v17 = vadd.f32 %v4122_v63, %v22663_v32  ;;  %v17994_v59 = vadd.f32 %v4136_v36, %v22664_v48  ;;  %13056 = vlog2.f32 %v3661_v46  ;;  %vm22667_vm8 = vmmov %vm22605_vm9  ;;  %v22668_v43 = vld [vmem:[#allocation79_spill] sm:$0xff]  ;;  %v4126_v49 = vmul.f32 0.6931472, %v13045_v29  ;;  %v22671_v29 = vld [vmem:[#allocation81_spill] sm:$0xff] }
 0x367   : > { %12029 = vmatmul.mubr.msk.bf16.vlgmr.msra.gmra.mrb[100].mxu0 %vm22667_vm8, %v17518_v38  ;;  %v22669_v46 = vsel %vm16635_vm2, %v22668_v43, -1e+30  ;;  %v3668_v32 = vadd.f32 1.0, %v13047_v44  ;;  %13058 = vpow2.f32 %v3383_v56  ;;  %v2904_v58 = vsub.f32 0.0, %v2648_v8  ;;  %vm22670_vm9 = vmmov %vm22667_vm8 }
 0x368   : > { %8938 = vmax.xlane.f32.xlu0 %v22669_v46  ;;  %12044 = vmatprep.mubr.msk.bf16.mxu0 %vm22670_vm9, %v17785_v47  ;;  %13060 = vpow2.f32 %v3373_v27  ;;  %v2643_v26 = vand.u32 2147483647, %v18004_v14  ;;  %v4571_v36 = vpack.c.bf16 %v17663_v39, %v17795_v40  ;;  %v22672_v56 = vsel %vm16635_vm2, %v22671_v29, -1e+30  ;;  %v18040_v39 = vpop.f32.mrb[62].mxu1  ;;  %v18042_v40 = vpop.f32.mrb[64].mxu0  ;;  %vm22701_vm14 = vmmov %vm22667_vm8 }
 0x369   : > { %13062 = vlog2.f32 %v3668_v32  ;;  %v3387_v44 = vmul.f32 1.442695, %v2904_v58  ;;  %v18034_v27 = vsub.f32 %v17800_v2, %v17730_v41  ;;  %v18038_v8 = vsub.f32 %v17809_v25, %v17692_v4  ;;  %22673 = vst [vmem:[#allocation100_spill] sm:$0xff] %v18040_v39  ;;  %22674 = vst [vmem:[#allocation68_spill] sm:$0xff] %v18042_v40  ;;  %v22675_v29 = vld [vmem:[#allocation19_spill] sm:$0xff]  ;;  %v22677_v41 = vld [vmem:[#allocation84_spill] sm:$0xff] }
 0x36a   : > { %8936 = vmax.xlane.f32.xlu1 %v22672_v56  ;;  %v2899_v46 = vsub.f32 0.0, %v2643_v26  ;;  %12032 = vmatprep.subr.bf16.mxu1 %v4571_v36  ;;  %vm8174_vm5 = vcmp.ne.s32.totalorder %v22675_v29, 0  ;;  %v4572_v32 = vpack.c.bf16 %v17711_v55, %v17881_v34  ;;  %v22678_v56 = vsel %vm16736_vm11, %v22677_v41, -1e+30  ;;  %v18052_v4 = vpop.f32.mrb[63].mxu1  ;;  %v18054_v48 = vpop.f32.mrb[65].mxu0  ;;  %vm22707_vm13 = vmmov %vm22667_vm8 }
 0x36b   : > { %22679 = vst [vmem:[#allocation65_spill] sm:$0xff] %v18052_v4  ;;  %22680 = vst [vmem:[#allocation67_spill] sm:$0xff] %v18054_v48  ;;  %v13049_v63 = vpop.eup %13048  ;;  %13064 = vpow2.f32 %v3387_v44  ;;  %v2650_v26 = vand.u32 2147483647, %v18034_v27  ;;  %12033 = vmatpush3.bf16.msra.mxu1 %v4571_v36  ;;  %v18060_v40 = vsub.f32 %v17724_v57, %v17815_v22  ;;  %v18062_v55 = vpop.f32.mrb[66].mxu0  ;;  %v22684_v36 = vld [vmem:[#allocation80_spill] sm:$0xff]  ;;  %v18164_v58 = vsub.f32 %v17809_v25, %v17821_v3 }
 0x36c   : > { %8942 = vmax.xlane.f32.xlu0 %v22678_v56  ;;  %22681 = vst [vmem:[#allocation70_spill] sm:$0xff] %v18062_v55  ;;  %v18064_v34 = vpop.f32.mrb[64].mxu1  ;;  %v13051_v41 = vpop.eup %13050  ;;  %v22683_v56 = vmax.f32 %v17684_v12, 0.0  ;;  %v4140_v48 = vmul.f32 0.6931472, %v13049_v63  ;;  %12034 = vmatprep.subr.bf16.mxu1 %v4572_v32  ;;  %v18080_v12 = vsub.f32 %v18000_v23, %v17738_v61  ;;  %v22717_v3 = vmax.f32 %v17813_v20, 0.0 }
 0x36d   : > { %22682 = vst [vmem:[#allocation103_spill] sm:$0xff] %v18064_v34  ;;  %v3377_v44 = vmul.f32 1.442695, %v2899_v46  ;;  %v2645_v43 = vand.u32 2147483647, %v18038_v8  ;;  %v3663_v22 = vadd.f32 1.0, %v13051_v41  ;;  %v13053_v46 = vpop.eup %13052 }
 0x36e   : > { %v18068_v37 = vadd.f32 %v4126_v49, %v22683_v56  ;;  %v22685_v51 = vsel %vm16635_vm2, %v22684_v36, -1e+30  ;;  %v2906_v33 = vsub.f32 0.0, %v2650_v26  ;;  %v8238_v34 = vsel %vm8174_vm5, 1, %v22208_v45  ;;  %v18082_v63 = vpop.f32.mrb[67].mxu0  ;;  %v18084_v49 = vpop.f32.mrb[65].mxu1 }
 0x36f   : > { %8940 = vmax.xlane.f32.xlu1 %v22685_v51  ;;  %22686 = vst [vmem:[#allocation72_spill] sm:$0xff] %v18082_v63  ;;  %22687 = vst [vmem:[#allocation69_spill] sm:$0xff] %v18084_v49  ;;  %13066 = vpow2.f32 %v3377_v44  ;;  %v2901_v56 = vsub.f32 0.0, %v2645_v43  ;;  %v8377_v51 = vrot.slane %v8238_v34, %v22078_v50  ;;  %v22688_v26 = vld [vmem:[#allocation83_spill] sm:$0xff]  ;;  %v18092_v36 = vpop.f32.mrb[66].mxu1  ;;  %v18094_v61 = vpop.f32.mrb[68].mxu0  ;;  %12035 = vmatpush3.bf16.msra.mxu1 %v4572_v32 }
 0x370   : > { %v22689_v41 = vsel %vm16736_vm11, %v22688_v26, -1e+30  ;;  %22690 = vst [vmem:[#allocation71_spill] sm:$0xff] %v18092_v36  ;;  %22691 = vst [vmem:[#allocation74_spill] sm:$0xff] %v18094_v61  ;;  %v13055_v55 = vpop.eup %13054  ;;  %v4130_v63 = vmul.f32 0.6931472, %v13053_v46  ;;  %13068 = vlog2.f32 %v3663_v22  ;;  %v18104_v36 = vpop.permute.xlu1 %1827 }
 0x371   : > { %8946 = vmax.xlane.f32.xlu0 %v22689_v41  ;;  %v3391_v49 = vmul.f32 1.442695, %v2906_v33  ;;  %v2652_v44 = vand.u32 2147483647, %v18060_v40  ;;  %v13057_v18 = vpop.eup %13056  ;;  %v4144_v43 = vmul.f32 0.6931472, %v13055_v55  ;;  %v18102_v41 = vpop.permute.xlu0 %1842 }
 0x372   : > { %v3381_v4 = vmul.f32 1.442695, %v2901_v56  ;;  %vm18097_vm2 = vcmp.eq.s32.totalorder %v8377_v51, 1  ;;  %v22694_v22 = vld [vmem:[#allocation85_spill] sm:$0xff]  ;;  %v13059_v46 = vpop.eup %13058  ;;  %v22696_v32 = vmax.f32 %v17728_v31, 0.0  ;;  %v18118_v61 = vpop.f32.mrb[67].mxu1  ;;  %12037 = vmatmul.mubr.msk.bf16.vlgmr.msra.gmra.mrb[100].mxu1 %vm22701_vm14, %v17518_v38 }
 0x373   : > { %v22695_v33 = vsel %vm16736_vm11, %v22694_v22, -1e+30  ;;  %13070 = vpow2.f32 %v3391_v49  ;;  %22698 = vst [vmem:[#allocation106_spill] sm:$0xff] %v18118_v61  ;;  %v18120_v39 = vpop.f32.mrb[69].mxu0  ;;  %v13061_v62 = vpop.eup %13060  ;;  %v4134_v13 = vmul.f32 0.6931472, %v13057_v18  ;;  %12052 = vmatprep.mubr.msk.bf16.mxu1 %vm22707_vm13, %v17785_v47 }
 0x374   : > { %8944 = vmax.xlane.f32.xlu1 %v22695_v33  ;;  %v18112_v55 = vadd.f32 %v4140_v48, %v22696_v32  ;;  %22699 = vst [vmem:[#allocation75_spill] sm:$0xff] %v18120_v39  ;;  %v3670_v22 = vadd.f32 1.0, %v13059_v46  ;;  %13072 = vpow2.f32 %v3381_v4  ;;  %v22703_v49 = vld [vmem:[#allocation87_spill] sm:$0xff]  ;;  %v18131_v51 = vpop.f32.mrb[70].mxu0  ;;  %v13063_v26 = vpop.eup %13062  ;;  %v22706_v39 = vmax.f32 %v17734_v5, 0.0 }
 0x375   : > { %v22704_v32 = vsel %vm16801_vm6, %v22703_v49, -1e+30  ;;  %22705 = vst [vmem:[#allocation73_spill] sm:$0xff] %v18131_v51  ;;  %v3665_v4 = vadd.f32 1.0, %v13061_v62  ;;  %v2908_v46 = vsub.f32 0.0, %v2652_v44  ;;  %v18140_v31 = vpop.f32.mrb[71].mxu0  ;;  %v18160_v5 = vsub.f32 %v17800_v2, %v17848_v52 }
 0x376   : > { %8950 = vmax.xlane.f32.xlu0 %v22704_v32  ;;  %v18135_v18 = vadd.f32 %v4130_v63, %v22706_v39  ;;  %v2647_v56 = vand.u32 2147483647, %v18080_v12  ;;  %22708 = vst [vmem:[#allocation13_spill] sm:$0xff] %v18140_v31  ;;  %v4148_v33 = vmul.f32 0.6931472, %v13063_v26  ;;  %13074 = vlog2.f32 %v3670_v22  ;;  %v22710_v51 = vld [vmem:[#allocation20_spill] sm:$0xff]  ;;  %v13065_v63 = vpop.eup %13064 }
 0x377   : > { %v22711_v62 = vld [vmem:[#allocation17_spill] sm:$0xff]  ;;  %13076 = vlog2.f32 %v3665_v4  ;;  %v3395_v44 = vmul.f32 1.442695, %v2908_v46  ;;  %v4573_v26 = vpack.c.bf16 %v17769_v30, %v17934_v19  ;;  %v22713_v22 = vmax.f32 %v17804_v54, 0.0  ;;  %v22716_v54 = vld [vmem:[#allocation23_spill] sm:$0xff]  ;;  %v18175_v19 = vpop.permute.xlu0 %1850 }
 0x378   : > { %v22712_v39 = vsel %vm16736_vm11, %v22711_v62, -1e+30  ;;  %v2903_v61 = vsub.f32 0.0, %v2647_v56  ;;  %v3672_v32 = vadd.f32 1.0, %v13065_v63  ;;  %v18166_v62 = vpop.permute.xlu1 %1838  ;;  %v22714_v56 = vld [vmem:[#allocation14_spill] sm:$0xff]  ;;  %vm8175_vm11 = vcmp.ne.s32.totalorder %v22716_v54, 0 }
 0x379   : > { %8948 = vmax.xlane.f32.xlu1 %v22712_v39  ;;  %v18156_v31 = vadd.f32 %v4144_v43, %v22713_v22  ;;  %v22715_v4 = vsel %vm16801_vm6, %v22714_v56, -1e+30  ;;  %13078 = vpow2.f32 %v3395_v44  ;;  %12040 = vmatprep.subr.bf16.mxu0 %v4573_v26  ;;  %v4574_v52 = vpack.c.bf16 %v17831_v21, %v17990_v17  ;;  %v13067_v43 = vpop.eup %13066  ;;  %v22719_v44 = vld [vmem:[#allocation89_spill] sm:$0xff] }
 0x37a   : > { %8954 = vmax.xlane.f32.xlu0 %v22715_v4  ;;  %v3385_v30 = vmul.f32 1.442695, %v2903_v61  ;;  %v18179_v46 = vadd.f32 %v4134_v13, %v22717_v3  ;;  %v22718_v39 = vmax.f32 %v17836_v16, 0.0  ;;  %13080 = vlog2.f32 %v3672_v32  ;;  %12041 = vmatpush3.bf16.msra.mxu0 %v4573_v26  ;;  %v13069_v21 = vpop.eup %13068  ;;  %v22721_v56 = vld [vmem:[#allocation121_spill] sm:$0xff]  ;;  %v22723_v4 = vld [vmem:[#allocation92_spill] sm:$0xff] }
 0x37b   : > { %v2654_v61 = vand.u32 2147483647, %v18160_v5  ;;  %v22720_v22 = vsel %vm16801_vm6, %v22719_v44, -1e+30  ;;  %v3667_v17 = vadd.f32 1.0, %v13067_v43  ;;  %v8239_v13 = vsel %vm8175_vm11, 1, %v22208_v45  ;;  %12042 = vmatprep.subr.bf16.mxu0 %v4574_v52 }
 0x37c   : > { %v18183_v63 = vadd.f32 %v4148_v33, %v22718_v39  ;;  %13082 = vpow2.f32 %v3385_v30  ;;  %v2649_v20 = vand.u32 2147483647, %v18164_v58  ;;  %v4138_v16 = vmul.f32 0.6931472, %v13069_v21  ;;  %v18201_v43 = vpop.f32.mrb[68].mxu1 }
 0x37d   : > { %8952 = vmax.xlane.f32.xlu1 %v22720_v22  ;;  %v2910_v33 = vsub.f32 0.0, %v2654_v61  ;;  %v8381_v32 = vrot.slane %v8239_v13, %v22078_v50  ;;  %v18195_v26 = vsub.f32 %v17724_v57, %v17909_v10  ;;  %vm22722_vm4 = vnez %v22721_v56  ;;  %22725 = vst [vmem:[#allocation77_spill] sm:$0xff] %v18201_v43  ;;  %v13071_v30 = vpop.eup %13070  ;;  %v18209_v22 = vpop.f32.mrb[69].mxu1  ;;  %v13263_v43 = vld [vmem:[%s21558_s6 + $0x8] sm:$0xff]  }
 0x37e   : > { %v22724_v3 = vsel %vm22722_vm4, %v22723_v4, -1e+30  ;;  %13084 = vlog2.f32 %v3667_v17  ;;  %v2905_v39 = vsub.f32 0.0, %v2649_v20  ;;  %v18205_v44 = vsub.f32 %v18000_v23, %v17857_v6  ;;  %22726 = vst [vmem:[#allocation110_spill] sm:$0xff] %v18209_v22  ;;  %v13073_v10 = vpop.eup %13072  ;;  %12043 = vmatpush3.bf16.msra.mxu0 %v4574_v52  ;;  %v18216_v17 = vpop.permute.xlu1 %1846  ;;  %v22730_v6 = vld [vmem:[#allocation88_spill] sm:$0xff] }
 0x37f   : > { %8958 = vmax.xlane.f32.xlu0 %v22724_v3  ;;  %v4575_v61 = vpack.c.bf16 %v17900_v9, %v18068_v37  ;;  %v3674_v21 = vadd.f32 1.0, %v13071_v30  ;;  %v3399_v4 = vmul.f32 1.442695, %v2910_v33  ;;  %vm18212_vm8 = vcmp.eq.s32.totalorder %v8381_v32, 1  ;;  %v18222_v9 = vpop.f32.mrb[70].mxu1  ;;  %v18228_v32 = vpop.permute.xlu0 %1861 }
 0x380   : > { %v22727_v3 = vmov 0  ;;  %v22731_v20 = vsel %vm16801_vm6, %v22730_v6, -1e+30  ;;  %22732 = vst [vmem:[#allocation76_spill] sm:$0xff] %v18222_v9  ;;  %v3669_v37 = vadd.f32 1.0, %v13073_v10  ;;  %v13075_v52 = vpop.eup %13074  ;;  %v22733_v13 = vmax.f32 %v17867_v60, 0.0  ;;  %vm22738_vm6 = vmmov %vm22670_vm9 }
 0x381   : > { %v22728_v3 = vsel %vm18212_vm8, 4294967295, %v22727_v3  ;;  %8956 = vmax.xlane.f32.xlu1 %v22731_v20  ;;  %v3389_v49 = vmul.f32 1.442695, %v2905_v39  ;;  %12048 = vmatprep.subr.bf16.mxu1 %v4575_v61  ;;  %13086 = vlog2.f32 %v3674_v21  ;;  %v2656_v6 = vand.u32 2147483647, %v18195_v26  ;;  %v22734_v39 = vld [vmem:[#allocation91_spill] sm:$0xff]  ;;  %v13077_v30 = vpop.eup %13076  ;;  %vm22739_vm9 = vmmov %vm22738_vm6 }
 0x382   : > { %22729 = vst [vmem:[#allocation18_spill] sm:$0xff] %v22728_v3  ;;  %v18232_v48 = vadd.f32 %v4138_v16, %v22733_v13  ;;  %12049 = vmatpush3.bf16.msra.mxu1 %v4575_v61  ;;  %v22735_v20 = vsel %vm22722_vm4, %v22734_v39, -1e+30  ;;  %v18242_v33 = vpop.f32.mrb[71].mxu1  ;;  %v4152_v7 = vmul.f32 0.6931472, %v13075_v52  ;;  %13088 = vlog2.f32 %v3669_v37  ;;  %12045 = vmatmul.mubr.msk.bf16.vlgmr.msra.gmra.mrb[104].mxu0 %vm22738_vm6, %v17518_v38 }
 0x383   : > { %8962 = vmax.xlane.f32.xlu0 %v22735_v20  ;;  %22736 = vst [vmem:[#allocation79_spill] sm:$0xff] %v18242_v33  ;;  %v2651_v60 = vand.u32 2147483647, %v18205_v44  ;;  %v4142_v61 = vmul.f32 0.6931472, %v13077_v30  ;;  %13090 = vpow2.f32 %v3399_v4  ;;  %v2912_v13 = vsub.f32 0.0, %v2656_v6  ;;  %12060 = vmatprep.mubr.msk.bf16.mxu0 %vm22739_vm9, %v17785_v47  ;;  %v13079_v20 = vpop.eup %13078  ;;  %v18285_v3 = vpop.permute.xlu0 %1869 }
 0x384   : > { %v22740_v37 = vld [vmem:[#allocation94_spill] sm:$0xff]  ;;  %13092 = vpow2.f32 %v3389_v49  ;;  %v18262_v4 = vsub.f32 %v17800_v2, %v17953_v15  ;;  %v13081_v30 = vpop.eup %13080  ;;  %v3676_v6 = vadd.f32 1.0, %v13079_v20  ;;  %v18267_v16 = vsub.f32 %v17809_v25, %v17921_v28  ;;  %v22744_v49 = vld [vmem:[#allocation97_spill] sm:$0xff] }
 0x385   : > { %v22741_v52 = vsel %vm22722_vm4, %v22740_v37, -1e+30  ;;  %v2907_v38 = vsub.f32 0.0, %v2651_v60  ;;  %v3403_v39 = vmul.f32 1.442695, %v2912_v13  ;;  %v18269_v37 = vpop.permute.xlu1 %1857  ;;  %v22747_v15 = vmax.f32 %v22746_v35, 0.0 }
 0x386   : > { %8960 = vmax.xlane.f32.xlu1 %v22741_v52  ;;  %v22742_v52 = vld [vmem:[#allocation123_spill] sm:$0xff]  ;;  %v13083_v60 = vpop.eup %13082  ;;  %v22748_v13 = vmax.f32 %v17919_v11, 0.0  ;;  %v7950_v28 = vcombine.high %v22675_v29, %v22675_v29  ;;  %v4156_v33 = vmul.f32 0.6931472, %v13081_v30  ;;  %13094 = vlog2.f32 %v3676_v6  ;;  %v22749_v35 = vld [vmem:[#allocation93_spill] sm:$0xff]  ;;  %v22751_v6 = vld [vmem:[#allocation96_spill] sm:$0xff] }
 0x387   : > { %vm22743_vm5 = vnez %v22742_v52  ;;  %v18277_v24 = vadd.f32 %v4152_v7, %v22747_v15  ;;  %v3393_v10 = vmul.f32 1.442695, %v2907_v38  ;;  %v3671_v9 = vadd.f32 1.0, %v13083_v60 }
 0x388   : > { %v22745_v21 = vsel %vm22743_vm5, %v22744_v49, -1e+30  ;;  %v18281_v20 = vadd.f32 %v4142_v61, %v22748_v13  ;;  %v22750_v7 = vsel %vm22722_vm4, %v22749_v35, -1e+30  ;;  %v13085_v49 = vpop.eup %13084  ;;  %13096 = vpow2.f32 %v3403_v39  ;;  %v18302_v13 = vpop.f32.mrb[72].mxu0  ;;  %vm22776_vm4 = vmmov %vm22738_vm6 }
 0x389   : > { %8966 = vmax.xlane.f32.xlu0 %v22745_v21  ;;  %v2658_v21 = vand.u32 2147483647, %v18262_v4  ;;  %v2653_v61 = vand.u32 2147483647, %v18267_v16  ;;  %vm8176_vm14 = vcmp.ne.s32.totalorder %v7950_v28, 0  ;;  %13098 = vlog2.f32 %v3671_v9  ;;  %22753 = vst [vmem:[#allocation81_spill] sm:$0xff] %v18302_v13  ;;  %vm22777_vm6 = vmmov %vm22776_vm4 }
 0x38a   : > { %8964 = vmax.xlane.f32.xlu1 %v22750_v7  ;;  %v4146_v29 = vmul.f32 0.6931472, %v13085_v49  ;;  %v8240_v30 = vsel %vm8176_vm14, 1, %v22208_v45  ;;  %v22752_v60 = vsel %vm22743_vm5, %v22751_v6, -1e+30  ;;  %13100 = vpow2.f32 %v3393_v10  ;;  %v22754_v7 = vld [vmem:[#allocation64_spill] sm:$0xff]  ;;  %v18313_v10 = vpop.permute.xlu1 %1865  ;;  %vm22791_vm14 = vmmov %vm22776_vm4 }
 0x38b   : > { %v2914_v38 = vsub.f32 0.0, %v2658_v21  ;;  %v2909_v56 = vsub.f32 0.0, %v2653_v61  ;;  %v8385_v15 = vrot.slane %v8240_v30, %v22078_v50  ;;  %v4576_v39 = vpack.c.bf16 %v17968_v0, %v18135_v18  ;;  %v13087_v28 = vpop.eup %13086  ;;  %v22755_v61 = vld [vmem:[#allocation99_spill] sm:$0xff]  ;;  %v18319_v18 = vpop.f32.mrb[73].mxu0 }
 0x38c   : > { %v18307_v21 = vsub.f32 %v17724_v57, %v18024_v1  ;;  %v18311_v49 = vsub.f32 %v18000_v23, %v22754_v7  ;;  %v22756_v0 = vsel %vm22743_vm5, %v22755_v61, -1e+30  ;;  %22757 = vst [vmem:[#allocation19_spill] sm:$0xff] %v18319_v18  ;;  %v4160_v30 = vmul.f32 0.6931472, %v13087_v28  ;;  %v18327_v7 = vpop.permute.xlu0 %1880  ;;  %v18329_v9 = vpop.f32.mrb[74].mxu0 }
 0x38d   : > { %8970 = vmax.xlane.f32.xlu0 %v22752_v60  ;;  %v3407_v35 = vmul.f32 1.442695, %v2914_v38  ;;  %v13089_v38 = vpop.eup %13088  ;;  %v3397_v6 = vmul.f32 1.442695, %v2909_v56  ;;  %vm18321_vm13 = vcmp.eq.s32.totalorder %v8385_v15, 1  ;;  %v22758_v60 = vmov 0  ;;  %12050 = vmatprep.subr.bf16.mxu1 %v4576_v39 }
 0x38e   : > { %8968 = vmax.xlane.f32.xlu1 %v22756_v0  ;;  %v22759_v60 = vsel %vm18321_vm13, 4294967295, %v22758_v60  ;;  %v4577_v1 = vpack.c.bf16 %v17994_v59, %v18179_v46  ;;  %22761 = vst [vmem:[#allocation84_spill] sm:$0xff] %v18329_v9  ;;  %v13091_v11 = vpop.eup %13090  ;;  %v22762_v61 = vmax.f32 %v17939_v53, 0.0  ;;  %12051 = vmatpush3.bf16.msra.mxu1 %v4576_v39  ;;  %v22765_v59 = vld [vmem:[#allocation129_spill] sm:$0xff]  ;;  %v22767_v46 = vld [vmem:[#allocation102_spill] sm:$0xff]  ;;  %v22769_v53 = vmax.f32 %v18004_v14, 0.0 }
 0x38f   : > { %22760 = vst [vmem:[#allocation116_spill] sm:$0xff] %v22759_v60  ;;  %13102 = vpow2.f32 %v3407_v35  ;;  %vm22766_vm11 = vnez %v22765_v59  ;;  %v13093_v9 = vpop.eup %13092  ;;  %v4150_v35 = vmul.f32 0.6931472, %v13089_v38  ;;  %v18349_v56 = vpop.f32.mrb[75].mxu0  ;;  %v22771_v28 = vmax.f32 %v18034_v27, 0.0  ;;  %v22772_v14 = vld [vmem:[#allocation98_spill] sm:$0xff] }
 0x390   : > { %v18333_v0 = vadd.f32 %v4156_v33, %v22762_v61  ;;  %v22768_v13 = vsel %vm22766_vm11, %v22767_v46, -1e+30  ;;  %v18347_v33 = vadd.f32 %v4146_v29, %v22769_v53  ;;  %v3678_v61 = vadd.f32 1.0, %v13091_v11  ;;  %12056 = vmatprep.subr.bf16.mxu0 %v4577_v1  ;;  %22770 = vst [vmem:[#allocation80_spill] sm:$0xff] %v18349_v56  ;;  %v13095_v52 = vpop.eup %13094  ;;  %v18385_v53 = vpop.permute.xlu1 %1876 }
 0x391   : > { %8974 = vmax.xlane.f32.xlu0 %v22768_v13  ;;  %13104 = vpow2.f32 %v3397_v6  ;;  %v18353_v18 = vadd.f32 %v4160_v30, %v22771_v28  ;;  %v3673_v39 = vadd.f32 1.0, %v13093_v9  ;;  %v2660_v13 = vand.u32 2147483647, %v18307_v21  ;;  %12057 = vmatpush3.bf16.msra.mxu0 %v4577_v1  ;;  %v18371_v6 = vld [vmem:[%s21558_s6 + $0x8] sm:$0xff]   ;;  %v18395_v27 = vpop.permute.xlu0 %1899 }
 0x392   : > { %v22773_v29 = vsel %vm22743_vm5, %v22772_v14, -1e+30  ;;  %13106 = vlog2.f32 %v3678_v61  ;;  %v2655_v11 = vand.u32 2147483647, %v18311_v49  ;;  %12053 = vmatmul.mubr.msk.bf16.vlgmr.msra.gmra.mrb[104].mxu1 %vm22776_vm4, %v18371_v6  ;;  %v18377_v28 = vsub.f32 %v17800_v2, %v18102_v41  ;;  %v22778_v61 = vld [vmem:[#allocation101_spill] sm:$0xff] }
 0x393   : > { %8972 = vmax.xlane.f32.xlu1 %v22773_v29  ;;  %13108 = vlog2.f32 %v3673_v39  ;;  %v2916_v1 = vsub.f32 0.0, %v2660_v13  ;;  %v18381_v46 = vsub.f32 %v17809_v25, %v18026_v42  ;;  %12068 = vmatprep.mubr.msk.bf16.mxu1 %vm22777_vm6, %v17785_v47  ;;  %v22779_v14 = vsel %vm22766_vm11, %v22778_v61, -1e+30  ;;  %v13097_v39 = vpop.eup %13096 }
 0x394   : > { %v4164_v13 = vmul.f32 0.6931472, %v13095_v52  ;;  %v2911_v29 = vsub.f32 0.0, %v2655_v11  ;;  %v7952_v41 = vcombine.high %v22716_v54, %v22716_v54  ;;  %v4578_v42 = vpack.c.bf16 %v18112_v55, %v18232_v48  ;;  %v13099_v9 = vpop.eup %13098  ;;  %v22781_v11 = vld [vmem:[#allocation28_spill] sm:$0xff] }
 0x395   : > { %8978 = vmax.xlane.f32.xlu0 %v22779_v14  ;;  %v22780_v15 = vmax.f32 %v18038_v8, 0.0  ;;  %v3680_v30 = vadd.f32 1.0, %v13097_v39  ;;  %v3411_v60 = vmul.f32 1.442695, %v2916_v1  ;;  %v2662_v61 = vand.u32 2147483647, %v18377_v28  ;;  %v13101_v54 = vpop.eup %13100 }
 0x396   : > { %v22782_v52 = vsel %vm22766_vm11, %v22781_v11, -1e+30  ;;  %v22783_v14 = vmax.f32 %v18060_v40, 0.0  ;;  %v3401_v56 = vmul.f32 1.442695, %v2911_v29  ;;  %12058 = vmatprep.subr.bf16.mxu0 %v4578_v42  ;;  %v22784_v39 = vld [vmem:[#allocation133_spill] sm:$0xff] }
 0x397   : > { %v18399_v38 = vadd.f32 %v4150_v35, %v22780_v15  ;;  %8976 = vmax.xlane.f32.xlu1 %v22782_v52  ;;  %13110 = vlog2.f32 %v3680_v30  ;;  %v3675_v15 = vadd.f32 1.0, %v13101_v54  ;;  %v2918_v35 = vsub.f32 0.0, %v2662_v61  ;;  %12059 = vmatpush3.bf16.msra.mxu0 %v4578_v42  ;;  %v22786_v11 = vld [vmem:[#allocation6_spill] sm:$0xff]  ;;  %v22788_v42 = vld [vmem:[#allocation5_spill] sm:$0xff] }
 0x398   : > { %v18408_v55 = vadd.f32 %v4164_v13, %v22783_v14  ;;  %v2657_v1 = vand.u32 2147483647, %v18381_v46  ;;  %vm22785_vm9 = vnez %v22784_v39  ;;  %v4154_v40 = vmul.f32 0.6931472, %v13099_v9  ;;  %v18422_v14 = vpop.permute.xlu1 %1895  ;;  %v18428_v9 = vpop.f32.mrb[72].mxu1 }
 0x399   : > { %v22787_v52 = vsel %vm22785_vm9, %v22786_v11, -1e+30  ;;  %13112 = vpow2.f32 %v3411_v60  ;;  %vm8177_vm5 = vcmp.ne.s32.totalorder %v7952_v41, 0  ;;  %v18419_v13 = vsub.f32 %v17724_v57, %v18175_v19  ;;  %v13103_v29 = vpop.eup %13102  ;;  %22790 = vst [vmem:[#allocation83_spill] sm:$0xff] %v18428_v9 }
 0x39a   : > { %8982 = vmax.xlane.f32.xlu0 %v22787_v52  ;;  %13114 = vlog2.f32 %v3675_v15  ;;  %v3415_v30 = vmul.f32 1.442695, %v2918_v35  ;;  %v2913_v54 = vsub.f32 0.0, %v2657_v1  ;;  %v8241_v61 = vsel %vm8177_vm5, 1, %v22208_v45  ;;  %12061 = vmatmul.mubr.msk.bf16.vlgmr.msra.gmra.mrb[108].mxu0 %vm22791_vm14, %v18371_v6  ;;  %v18434_v15 = vpop.permute.xlu0 %1888  ;;  %v18436_v35 = vpop.f32.mrb[73].mxu1 }
 0x39b   : > { %v22789_v11 = vsel %vm22766_vm11, %v22788_v42, -1e+30  ;;  %v13105_v60 = vpop.eup %13104  ;;  %v3682_v41 = vadd.f32 1.0, %v13103_v29  ;;  %13116 = vpow2.f32 %v3401_v56  ;;  %v8389_v19 = vrot.slane %v8241_v61, %v22078_v50  ;;  %22792 = vst [vmem:[#allocation85_spill] sm:$0xff] %v18436_v35  ;;  %vm22793_vm11 = vmmov %vm22776_vm4  ;;  %v22794_v56 = vld [vmem:[#allocation104_spill] sm:$0xff]  ;;  %v18445_v61 = vpop.f32.mrb[74].mxu1 }
 0x39c   : > { %8980 = vmax.xlane.f32.xlu1 %v22789_v11  ;;  %v3677_v59 = vadd.f32 1.0, %v13105_v60  ;;  %13118 = vpow2.f32 %v3415_v30  ;;  %v3405_v1 = vmul.f32 1.442695, %v2913_v54  ;;  %v2664_v52 = vand.u32 2147483647, %v18419_v13  ;;  %12076 = vmatprep.mubr.msk.bf16.mxu0 %vm22793_vm11, %v17785_v47  ;;  %22796 = vst [vmem:[#allocation117_spill] sm:$0xff] %v18445_v61  ;;  %v13107_v42 = vpop.eup %13106  ;;  %vm22825_vm5 = vmmov %vm22793_vm11 }
 0x39d   : > { %v22795_v29 = vsel %vm22785_vm9, %v22794_v56, -1e+30  ;;  %13120 = vlog2.f32 %v3682_v41  ;;  %vm18447_vm4 = vcmp.eq.s32.totalorder %v8389_v19, 1  ;;  %v22797_v11 = vmov 0  ;;  %v18457_v54 = vpop.f32.mrb[75].mxu1  ;;  %v13109_v60 = vpop.eup %13108  ;;  %vm22833_vm14 = vmmov %vm22825_vm5 }
 0x39e   : > { %8986 = vmax.xlane.f32.xlu0 %v22795_v29  ;;  %v22798_v11 = vsel %vm18447_vm4, 4294967295, %v22797_v11  ;;  %v18453_v30 = vsub.f32 %v18000_v23, %v18104_v36  ;;  %v4579_v47 = vpack.c.bf16 %v18156_v31, %v18281_v20  ;;  %22800 = vst [vmem:[#allocation20_spill] sm:$0xff] %v18457_v54  ;;  %v4168_v56 = vmul.f32 0.6931472, %v13107_v42  ;;  %v22803_v36 = vld [vmem:[#allocation105_spill] sm:$0xff]  ;;  %v18494_v57 = vpop.permute.xlu0 %1907  ;;  %v18542_v35 = vpop.f32.mrb[76].mxu0  ;;  %vm22868_vm11 = vmmov %vm22825_vm5 }
 0x39f   : > { %22799 = vst [vmem:[#allocation87_spill] sm:$0xff] %v22798_v11  ;;  %13122 = vlog2.f32 %v3677_v59  ;;  %v22804_v8 = vsel %vm22785_vm9, %v22803_v36, -1e+30  ;;  %v4158_v48 = vmul.f32 0.6931472, %v13109_v60  ;;  %v2920_v20 = vsub.f32 0.0, %v2664_v52 }
 0x3a0   : > { %8984 = vmax.xlane.f32.xlu1 %v22804_v8  ;;  %13124 = vpow2.f32 %v3405_v1  ;;  %12064 = vmatprep.subr.bf16.mxu1 %v4579_v47  ;;  %v22805_v59 = vmax.f32 %v18080_v12, 0.0  ;;  %v2659_v41 = vand.u32 2147483647, %v18453_v30  ;;  %v22809_v60 = vld [vmem:[#allocation108_spill] sm:$0xff]  ;;  %v18496_v8 = vpop.permute.xlu1 %1884  ;;  %v22811_v31 = vmax.f32 %v18160_v5, 0.0  ;;  %22821 = vst [vmem:[#allocation14_spill] sm:$0xff] %v18542_v35 }
 0x3a1   : > { %12065 = vmatpush3.bf16.msra.mxu1 %v4579_v47  ;;  %v22810_v52 = vsel %vm17283_vm0, %v22809_v60, -1e+30  ;;  %v3419_v36 = vmul.f32 1.442695, %v2920_v20  ;;  %v13111_v47 = vpop.eup %13110  ;;  %v22815_v12 = vmax.f32 %v18164_v58, 0.0  ;;  %v22830_v61 = vmax.f32 %v18195_v26, 0.0 }
 0x3a2   : > { %v18472_v42 = vadd.f32 %v4154_v40, %v22805_v59  ;;  %8990 = vmax.xlane.f32.xlu0 %v22810_v52  ;;  %v18488_v40 = vsub.f32 %v17800_v2, %v18228_v32  ;;  %v18492_v59 = vsub.f32 %v17809_v25, %v18166_v62  ;;  %v18500_v60 = vadd.f32 %v4168_v56, %v22811_v31  ;;  %v22812_v52 = vld [vmem:[#allocation22_spill] sm:$0xff]  ;;  %v22813_v32 = vld [vmem:[#allocation31_spill] sm:$0xff] }
 0x3a3   : > { %v2915_v20 = vsub.f32 0.0, %v2659_v41  ;;  %vm8178_vm6 = vcmp.ne.s32.totalorder %v22812_v52, 0  ;;  %v4580_v2 = vpack.c.bf16 %v18183_v63, %v18347_v33  ;;  %v22814_v25 = vsel %vm22785_vm9, %v22813_v32, -1e+30  ;;  %v13113_v62 = vpop.eup %13112  ;;  %v18518_v63 = vld [vmem:[%s21552_s0 + $0x18] sm:$0xff]  ;;  %v22816_v33 = vld [vmem:[#allocation107_spill] sm:$0xff]  ;;  %v18532_v32 = vpop.xlane.xlu0 %8856 }
 0x3a4   : > { %8988 = vmax.xlane.f32.xlu1 %v22814_v25  ;;  %v18511_v29 = vadd.f32 %v4158_v48, %v22815_v12  ;;  %v4172_v19 = vmul.f32 0.6931472, %v13111_v47  ;;  %13126 = vpow2.f32 %v3419_v36  ;;  %v2666_v5 = vand.u32 2147483647, %v18488_v40  ;;  %v13115_v56 = vpop.eup %13114  ;;  %22818 = vst [vmem:[#allocation17_spill] sm:$0xff] %v18532_v32 }
 0x3a5   : > { %v3684_v41 = vadd.f32 1.0, %v13113_v62  ;;  %v3409_v31 = vmul.f32 1.442695, %v2915_v20  ;;  %v2661_v11 = vand.u32 2147483647, %v18492_v59  ;;  %12066 = vmatprep.subr.bf16.mxu1 %v4580_v2  ;;  %v18522_v58 = vsub.f32 %v18518_v63, %v18285_v3  ;;  %v13117_v39 = vpop.eup %13116 }
 0x3a6   : > { %v22817_v48 = vsel %vm17283_vm0, %v22816_v33, -1e+30  ;;  %v4162_v36 = vmul.f32 0.6931472, %v13115_v56  ;;  %v2922_v47 = vsub.f32 0.0, %v2666_v5  ;;  %v8242_v20 = vsel %vm8178_vm6, 1, %v22208_v45  ;;  %12067 = vmatpush3.bf16.msra.mxu1 %v4580_v2  ;;  %v13119_v25 = vpop.eup %13118  ;;  %v18540_v2 = vpop.permute.xlu1 %1903  ;;  %vm22874_vm6 = vmmov %vm22825_vm5 }
 0x3a7   : > { %8994 = vmax.xlane.f32.xlu0 %v22817_v48  ;;  %13128 = vlog2.f32 %v3684_v41  ;;  %v3679_v3 = vadd.f32 1.0, %v13117_v39  ;;  %v2917_v62 = vsub.f32 0.0, %v2661_v11  ;;  %v8393_v54 = vrot.slane %v8242_v20, %v22078_v50  ;;  %v22819_v33 = vld [vmem:[#allocation109_spill] sm:$0xff]  ;;  %v13121_v48 = vpop.eup %13120  ;;  %v18573_v26 = vpop.xlane.xlu0 %8858 }
 0x3a8   : > { %v22820_v56 = vsel %vm17283_vm0, %v22819_v33, -1e+30  ;;  %v3686_v5 = vadd.f32 1.0, %v13119_v25  ;;  %13130 = vpow2.f32 %v3409_v31  ;;  %v3423_v12 = vmul.f32 1.442695, %v2922_v47  ;;  %v22827_v31 = vld [vmem:[#allocation112_spill] sm:$0xff] }
 0x3a9   : > { %8992 = vmax.xlane.f32.xlu1 %v22820_v56  ;;  %v13123_v41 = vpop.eup %13122  ;;  %v4176_v39 = vmul.f32 0.6931472, %v13121_v48  ;;  %13132 = vlog2.f32 %v3679_v3  ;;  %v3413_v11 = vmul.f32 1.442695, %v2917_v62  ;;  %vm18544_vm9 = vcmp.eq.s32.totalorder %v8393_v54, 1  ;;  %12069 = vmatmul.mubr.msk.bf16.vlgmr.msra.gmra.mrb[108].mxu1 %vm22825_vm5, %v18371_v6  ;;  %v18554_v33 = vpop.f32.mrb[77].mxu0 }
 0x3aa   : > { %v22822_v20 = vmov 0  ;;  %v22828_v47 = vsel %vm17396_vm10, %v22827_v31, -1e+30  ;;  %22829 = vst [vmem:[#allocation89_spill] sm:$0xff] %v18554_v33  ;;  %v13125_v56 = vpop.eup %13124  ;;  %v18558_v48 = vadd.f32 %v4172_v19, %v22830_v61  ;;  %13134 = vlog2.f32 %v3686_v5  ;;  %v18569_v31 = vld [vmem:[%s21558_s6] sm:$0xff]   ;;  %22834 = vst [vmem:[#allocation121_spill] sm:$0xff] %v18573_v26 }
 0x3ab   : > { %v22823_v20 = vsel %vm18544_vm9, 4294967295, %v22822_v20  ;;  %8998 = vmax.xlane.f32.xlu0 %v22828_v47  ;;  %12084 = vmatprep.mubr.msk.bf16.mxu1 %vm22833_vm14, %v18569_v31  ;;  %v22835_v61 = vmax.f32 %v18205_v44, 0.0  ;;  %v4166_v5 = vmul.f32 0.6931472, %v13123_v41  ;;  %v3681_v47 = vadd.f32 1.0, %v13125_v56  ;;  %v22836_v3 = vld [vmem:[#allocation7_spill] sm:$0xff]  ;;  %vm22912_vm14 = vmmov %vm22874_vm6 }
 0x3ac   : > { %22824 = vst [vmem:[#allocation23_spill] sm:$0xff] %v22823_v20  ;;  %13136 = vpow2.f32 %v3423_v12  ;;  %v22837_v35 = vsel %vm17283_vm0, %v22836_v3, -1e+30  ;;  %v18583_v54 = vpop.f32.mrb[78].mxu0  ;;  %v22839_v62 = vmax.f32 %v18262_v4, 0.0  ;;  %v18592_v44 = vsub.f32 %v18000_v23, %v18216_v17  ;;  %v22844_v17 = vld [vmem:[#allocation111_spill] sm:$0xff]  ;;  %v18618_v4 = vpop.xlane.xlu0 %8862 }
 0x3ad   : > { %v18577_v19 = vadd.f32 %v4162_v36, %v22835_v61  ;;  %8996 = vmax.xlane.f32.xlu1 %v22837_v35  ;;  %22838 = vst [vmem:[#allocation92_spill] sm:$0xff] %v18583_v54  ;;  %13138 = vpow2.f32 %v3413_v11  ;;  %v2668_v9 = vand.u32 2147483647, %v18522_v58  ;;  %v18594_v36 = vpop.xlane.xlu1 %8854  ;;  %v18596_v12 = vpop.f32.mrb[79].mxu0  ;;  %v22845_v11 = vsel %vm17396_vm10, %v22844_v17, -1e+30 }
 0x3ae   : > { %v18587_v33 = vadd.f32 %v4176_v39, %v22839_v62  ;;  %22840 = vst [vmem:[#allocation88_spill] sm:$0xff] %v18594_v36  ;;  %22841 = vst [vmem:[#allocation91_spill] sm:$0xff] %v18596_v12  ;;  %13140 = vlog2.f32 %v3681_v47  ;;  %v4581_v39 = vpack.c.bf16 %v18277_v24, %v18399_v38  ;;  %v13127_v56 = vpop.eup %13126  ;;  %v2663_v61 = vand.u32 2147483647, %v18592_v44  ;;  %v13260_v47 = vld [vmem:[%s21552_s0 + $0x8] sm:$0xff]  ;;  %v18623_v38 = vld [vmem:[%s21552_s0] sm:$0xff] }
 0x3af   : > { %9002 = vmax.xlane.f32.xlu0 %v22845_v11  ;;  %v2924_v62 = vsub.f32 0.0, %v2668_v9  ;;  %v18616_v35 = vsub.f32 %v13260_v47, %v18327_v7  ;;  %22846 = vst [vmem:[#allocation94_spill] sm:$0xff] %v18618_v4  ;;  %v3688_v24 = vadd.f32 1.0, %v13127_v56  ;;  %v18627_v9 = vsub.f32 %v18623_v38, %v18269_v37  ;;  %v22847_v17 = vld [vmem:[#allocation12_spill] sm:$0xff]  ;;  %v22850_v56 = vld [vmem:[#allocation113_spill] sm:$0xff]  ;;  %v22859_v25 = vld [vmem:[#allocation114_spill] sm:$0xff] }
 0x3b0   : > { %12072 = vmatprep.subr.bf16.mxu0 %v4581_v39  ;;  %v22848_v11 = vld [vmem:[#allocation16_spill] sm:$0xff]  ;;  %v4582_v7 = vpack.c.bf16 %v18333_v0, %v18472_v42  ;;  %v22851_v41 = vsel %vm17396_vm10, %v22850_v56, -1e+30  ;;  %v22852_v20 = vmax.f32 %v18267_v16, 0.0  ;;  %v2919_v54 = vsub.f32 0.0, %v2663_v61  ;;  %v22855_v16 = vld [vmem:[#allocation115_spill] sm:$0xff]  ;;  %v18655_v56 = vpop.xlane.xlu0 %8866 }
 0x3b1   : > { %v22849_v3 = vcombine.high %v22848_v11, %v22848_v11  ;;  %9000 = vmax.xlane.f32.xlu1 %v22851_v41  ;;  %v3427_v37 = vmul.f32 1.442695, %v2924_v62  ;;  %v2670_v26 = vand.u32 2147483647, %v18616_v35  ;;  %12073 = vmatpush3.bf16.msra.mxu0 %v4581_v39  ;;  %v18646_v11 = vpop.xlane.xlu1 %8860  ;;  %13142 = vlog2.f32 %v3688_v24  ;;  %v22857_v36 = vld [vmem:[#allocation8_spill] sm:$0xff]  ;;  %v23027_v34 = vld [vmem:[#allocation121_spill] sm:$0xff] }
 0x3b2   : > { %v18643_v12 = vadd.f32 %v4166_v5, %v22852_v20  ;;  %22853 = vst [vmem:[#allocation123_spill] sm:$0xff] %v18646_v11  ;;  %v2665_v42 = vand.u32 2147483647, %v18627_v9  ;;  %12074 = vmatprep.subr.bf16.mxu0 %v4582_v7  ;;  %v22856_v20 = vsel %vm17510_vm1, %v22855_v16, -1e+30  ;;  %v18668_v0 = vsub.f32 %v13260_v47, %v18395_v27 }
 0x3b3   : > { %v18633_v1 = vrot.slane %v22849_v3, %v22847_v17  ;;  %v13129_v3 = vpop.eup %13128  ;;  %9006 = vmax.xlane.f32.xlu0 %v22856_v20  ;;  %13144 = vpow2.f32 %v3427_v37  ;;  %v3417_v39 = vmul.f32 1.442695, %v2919_v54  ;;  %v2926_v61 = vsub.f32 0.0, %v2670_v26 }
 0x3b4   : > { %v13131_v5 = vpop.eup %13130  ;;  %v4180_v62 = vmul.f32 0.6931472, %v13129_v3  ;;  %v2921_v4 = vsub.f32 0.0, %v2665_v42  ;;  %v22858_v17 = vsel %vm17396_vm10, %v22857_v36, -1e+30  ;;  %v22864_v47 = vmax.f32 %v18311_v49, 0.0 }
 0x3b5   : > { %vm8179_vm0 = vcmp.ne.s32.totalorder %v18633_v1, 0  ;;  %v13133_v24 = vpop.eup %13132  ;;  %v3683_v11 = vadd.f32 1.0, %v13131_v5  ;;  %9004 = vmax.xlane.f32.xlu1 %v22858_v17  ;;  %13146 = vpow2.f32 %v3417_v39  ;;  %v3431_v37 = vmul.f32 1.442695, %v2926_v61  ;;  %12075 = vmatpush3.bf16.msra.mxu0 %v4582_v7  ;;  %v18664_v26 = vpop.xlane.xlu1 %8864 }
 0x3b6   : > { %v8243_v32 = vsel %vm8179_vm0, 1, %v22208_v45  ;;  %v13135_v16 = vpop.eup %13134  ;;  %v4170_v20 = vmul.f32 0.6931472, %v13133_v24  ;;  %v3421_v5 = vmul.f32 1.442695, %v2921_v4  ;;  %v18674_v17 = vpop.f32.mrb[76].mxu1  ;;  %v18743_v49 = vsub.f32 %v18623_v38, %v18385_v53 }
 0x3b7   : > { %v13137_v3 = vpop.eup %13136  ;;  %13148 = vlog2.f32 %v3683_v11  ;;  %v8397_v42 = vrot.slane %v8243_v32, %v22078_v50  ;;  %v22860_v36 = vsel %vm17510_vm1, %v22859_v25, -1e+30  ;;  %22861 = vst [vmem:[#allocation97_spill] sm:$0xff] %v18674_v17  ;;  %v22862_v7 = vmax.f32 %v18307_v21, 0.0  ;;  %v18680_v4 = vpop.xlane.xlu0 %8870  ;;  %v22869_v21 = vld [vmem:[#allocation30_spill] sm:$0xff] }
 0x3b8   : > { %9010 = vmax.xlane.f32.xlu0 %v22860_v36  ;;  %v13139_v39 = vpop.eup %13138  ;;  %v4184_v24 = vmul.f32 0.6931472, %v13135_v16  ;;  %v3690_v11 = vadd.f32 1.0, %v13137_v3  ;;  %13150 = vpow2.f32 %v3431_v37  ;;  %v18682_v32 = vpop.f32.mrb[77].mxu1  ;;  %v18686_v54 = vadd.f32 %v4170_v20, %v22864_v47  ;;  %12077 = vmatmul.mubr.msk.bf16.vlgmr.msra.gmra.mrb[112].mxu0 %vm22868_vm11, %v18371_v6  ;;  %vm22934_vm11 = vmmov %vm22874_vm6 }
 0x3b9   : > { %v18678_v61 = vadd.f32 %v4180_v62, %v22862_v7  ;;  %22863 = vst [vmem:[#allocation62_spill] sm:$0xff] %v18682_v32  ;;  %v13141_v27 = vpop.eup %13140  ;;  %v3685_v25 = vadd.f32 1.0, %v13139_v39  ;;  %13152 = vpow2.f32 %v3421_v5  ;;  %vm18688_vm10 = vcmp.eq.s32.totalorder %v8397_v42, 1  ;;  %v18698_v16 = vpop.f32.mrb[78].mxu1  ;;  %12092 = vmatprep.mubr.msk.bf16.mxu0 %vm22874_vm6, %v18569_v31 }
 0x3ba   : > { %v22865_v36 = vmov 0  ;;  %v22870_v62 = vsel %vm17510_vm1, %v22869_v21, -1e+30  ;;  %22871 = vst [vmem:[#allocation96_spill] sm:$0xff] %v18698_v16  ;;  %v4174_v37 = vmul.f32 0.6931472, %v13141_v27  ;;  %13154 = vlog2.f32 %v3690_v11  ;;  %v18708_v42 = vpop.xlane.xlu1 %8868 }
 0x3bb   : > { %v22866_v36 = vsel %vm18688_vm10, 4294967295, %v22865_v36  ;;  %9008 = vmax.xlane.f32.xlu1 %v22870_v62  ;;  %13156 = vlog2.f32 %v3685_v25  ;;  %v2674_v39 = vand.u32 2147483647, %v18668_v0  ;;  %v18713_v7 = vsub.f32 %v18000_v23, %v18313_v10  ;;  %v22877_v21 = vld [vmem:[#allocation119_spill] sm:$0xff]  ;;  %v18722_v20 = vpop.f32.mrb[79].mxu1  ;;  %v18734_v27 = vpop.xlane.xlu0 %8874 }
 0x3bc   : > { %22867 = vst [vmem:[#allocation93_spill] sm:$0xff] %v22866_v36  ;;  %v22878_v62 = vsel %vm17613_vm12, %v22877_v21, -1e+30  ;;  %22879 = vst [vmem:[#allocation64_spill] sm:$0xff] %v18722_v20  ;;  %v4583_v23 = vpack.c.bf16 %v18353_v18, %v18511_v29  ;;  %v18732_v10 = vsub.f32 %v18518_v63, %v18434_v15  ;;  %v13143_v11 = vpop.eup %13142  ;;  %v22881_v21 = vmax.f32 %v18377_v28, 0.0  ;;  %v22882_v18 = vld [vmem:[#allocation9_spill] sm:$0xff] }
 0x3bd   : > { %9014 = vmax.xlane.f32.xlu0 %v22878_v62  ;;  %v2930_v3 = vsub.f32 0.0, %v2674_v39  ;;  %v2667_v5 = vand.u32 2147483647, %v18713_v7  ;;  %v22883_v29 = vsel %vm17510_vm1, %v22882_v18, -1e+30  ;;  %v13145_v15 = vpop.eup %13144  ;;  %v22884_v25 = vmax.f32 %v18381_v46, 0.0 }
 0x3be   : > { %v18738_v62 = vadd.f32 %v4184_v24, %v22881_v21  ;;  %12080 = vmatprep.subr.bf16.mxu1 %v4583_v23  ;;  %v2672_v24 = vand.u32 2147483647, %v18732_v10  ;;  %v7951_v39 = vcombine.high %v22812_v52, %v22812_v52  ;;  %v18757_v53 = vpop.xlane.xlu1 %8872  ;;  %v4188_v21 = vmul.f32 0.6931472, %v13143_v11  ;;  %v22886_v46 = vld [vmem:[#allocation118_spill] sm:$0xff] }
 0x3bf   : > { %9012 = vmax.xlane.f32.xlu1 %v22883_v29  ;;  %v18751_v36 = vadd.f32 %v4174_v37, %v22884_v25  ;;  %22885 = vst [vmem:[#allocation99_spill] sm:$0xff] %v18757_v53  ;;  %v3692_v41 = vadd.f32 1.0, %v13145_v15  ;;  %v3439_v20 = vmul.f32 1.442695, %v2930_v3  ;;  %v2923_v18 = vsub.f32 0.0, %v2667_v5  ;;  %12081 = vmatpush3.bf16.msra.mxu1 %v4583_v23  ;;  %v13147_v25 = vpop.eup %13146  ;;  %v18765_v52 = vpop.xlane.xlu0 %8878  ;;  %v22889_v23 = vld [vmem:[#allocation25_spill] sm:$0xff] }
 0x3c0   : > { %v22887_v37 = vsel %vm17613_vm12, %v22886_v46, -1e+30  ;;  %v2928_v28 = vsub.f32 0.0, %v2672_v24  ;;  %v2669_v16 = vand.u32 2147483647, %v18743_v49  ;;  %vm8180_vm1 = vcmp.ne.s32.totalorder %v7951_v39, 0 }
 0x3c1   : > { %9018 = vmax.xlane.f32.xlu0 %v22887_v37  ;;  %22888 = vst [vmem:[#allocation129_spill] sm:$0xff] %v18765_v52  ;;  %v13149_v32 = vpop.eup %13148  ;;  %13158 = vlog2.f32 %v3692_v41  ;;  %v3687_v11 = vadd.f32 1.0, %v13147_v25  ;;  %v3425_v3 = vmul.f32 1.442695, %v2923_v18  ;;  %v8244_v5 = vsel %vm8180_vm1, 1, %v22208_v45  ;;  %v22892_v53 = vld [vmem:[#allocation122_spill] sm:$0xff]  ;;  %vm22939_vm1 = vmmov %vm22934_vm11 }
 0x3c2   : > { %v22890_v15 = vsel %vm17613_vm12, %v22889_v23, -1e+30  ;;  %v13151_v46 = vpop.eup %13150  ;;  %v4178_v37 = vmul.f32 0.6931472, %v13149_v32  ;;  %13160 = vpow2.f32 %v3439_v20  ;;  %v3435_v24 = vmul.f32 1.442695, %v2928_v28  ;;  %v18772_v17 = vpop.xlane.xlu1 %8876 }
 0x3c3   : > { %9016 = vmax.xlane.f32.xlu1 %v22890_v15  ;;  %v2925_v29 = vsub.f32 0.0, %v2669_v16  ;;  %v13153_v39 = vpop.eup %13152  ;;  %13162 = vlog2.f32 %v3687_v11  ;;  %v3694_v52 = vadd.f32 1.0, %v13151_v46  ;;  %v8401_v41 = vrot.slane %v8244_v5, %v22078_v50  ;;  %v18782_v28 = vpop.xlane.xlu0 %8882  ;;  %v22919_v25 = vld [vmem:[#allocation125_spill] sm:$0xff] }
 0x3c4   : > { %v4584_v18 = vpack.c.bf16 %v18408_v55, %v18577_v19  ;;  %v22893_v23 = vsel %vm17751_vm15, %v22892_v53, -1e+30  ;;  %v13155_v15 = vpop.eup %13154  ;;  %v3689_v32 = vadd.f32 1.0, %v13153_v39  ;;  %13164 = vpow2.f32 %v3425_v3  ;;  %v18784_v11 = vpop.f32.mrb[80].mxu0 }
 0x3c5   : > { %9022 = vmax.xlane.f32.xlu0 %v22893_v23  ;;  %v3429_v20 = vmul.f32 1.442695, %v2925_v29  ;;  %v13157_v46 = vpop.eup %13156  ;;  %v4192_v5 = vmul.f32 0.6931472, %v13155_v15  ;;  %13166 = vlog2.f32 %v3694_v52  ;;  %vm18786_vm5 = vcmp.eq.s32.totalorder %v8401_v41, 1  ;;  %v18794_v53 = vpop.f32.mrb[81].mxu0 }
 0x3c6   : > { %v22894_v55 = vmov 0  ;;  %12082 = vmatprep.subr.bf16.mxu1 %v4584_v18  ;;  %v18792_v19 = vsub.f32 %v18518_v63, %v18494_v57  ;;  %v22897_v29 = vld [vmem:[#allocation10_spill] sm:$0xff]  ;;  %v22899_v39 = vmax.f32 %v18419_v13, 0.0  ;;  %13168 = vlog2.f32 %v3689_v32  ;;  %v18810_v63 = vpop.xlane.xlu1 %8880 }
 0x3c7   : > { %v22895_v55 = vsel %vm18786_vm5, 4294967295, %v22894_v55  ;;  %v22898_v3 = vsel %vm17613_vm12, %v22897_v29, -1e+30  ;;  %12083 = vmatpush3.bf16.msra.mxu1 %v4584_v18  ;;  %v22902_v47 = vmax.f32 %v18453_v30, 0.0  ;;  %13170 = vpow2.f32 %v3435_v24  ;;  %vm22909_vm12 = vmmov %vm22874_vm6 }
 0x3c8   : > { %22896 = vst [vmem:[#allocation102_spill] sm:$0xff] %v22895_v55  ;;  %9020 = vmax.xlane.f32.xlu1 %v22898_v3  ;;  %v18802_v23 = vadd.f32 %v4188_v21, %v22899_v39  ;;  %v4182_v3 = vmul.f32 0.6931472, %v13157_v46  ;;  %v2676_v13 = vand.u32 2147483647, %v18792_v19  ;;  %v22903_v21 = vld [vmem:[#allocation120_spill] sm:$0xff]  ;;  %13172 = vpow2.f32 %v3429_v20  ;;  %v18834_v46 = vpop.xlane.xlu0 %8886 }
 0x3c9   : > { %v18814_v29 = vadd.f32 %v4178_v37, %v22902_v47  ;;  %v22904_v32 = vsel %vm17751_vm15, %v22903_v21, -1e+30  ;;  %v18821_v39 = vpop.f32.mrb[82].mxu0  ;;  %v22906_v41 = vmax.f32 %v18488_v40, 0.0  ;;  %v18829_v30 = vsub.f32 %v18623_v38, %v18422_v14  ;;  %v13262_v38 = vld [vmem:[%s21552_s0 + $0x10] sm:$0xff] }
 0x3ca   : > { %9026 = vmax.xlane.f32.xlu0 %v22904_v32  ;;  %22905 = vst [vmem:[#allocation98_spill] sm:$0xff] %v18821_v39  ;;  %v18836_v47 = vpop.f32.mrb[83].mxu0  ;;  %v2932_v21 = vsub.f32 0.0, %v2676_v13  ;;  %12085 = vmatmul.mubr.msk.bf16.vlgmr.msra.gmra.mrb[112].mxu1 %vm22909_vm12, %v18371_v6  ;;  %v4585_v14 = vpack.c.bf16 %v18500_v60, %v18643_v12  ;;  %v18849_v20 = vsub.f32 %v13262_v38, %v18496_v8  ;;  %v18863_v8 = vpop.xlane.xlu1 %8884  ;;  %v22913_v57 = vmax.f32 %v18492_v59, 0.0 }
 0x3cb   : > { %v18825_v18 = vadd.f32 %v4192_v5, %v22906_v41  ;;  %v22910_v5 = vld [vmem:[#allocation124_spill] sm:$0xff]  ;;  %v2673_v24 = vand.u32 2147483647, %v18829_v30  ;;  %v7953_v40 = vcombine.high %v18633_v1, %v18633_v1  ;;  %v4586_v60 = vpack.c.bf16 %v18558_v48, %v18686_v54  ;;  %12100 = vmatprep.mubr.msk.bf16.mxu1 %vm22912_vm14, %v18569_v31  ;;  %v13159_v12 = vpop.eup %13158  ;;  %v22915_v48 = vld [vmem:[#allocation126_spill] sm:$0xff]  ;;  %vm22954_vm14 = vmmov %vm22939_vm1 }
 0x3cc   : > { %v22911_v41 = vsel %vm17751_vm15, %v22910_v5, -1e+30  ;;  %v18867_v5 = vadd.f32 %v4182_v3, %v22913_v57  ;;  %12088 = vmatprep.subr.bf16.mxu0 %v4585_v14  ;;  %v2671_v13 = vand.u32 2147483647, %v18849_v20  ;;  %v18871_v16 = vsub.f32 %v13262_v38, %v18540_v2  ;;  %v13161_v37 = vpop.eup %13160  ;;  %v18879_v57 = vpop.xlane.xlu0 %8890 }
 0x3cd   : > { %9024 = vmax.xlane.f32.xlu1 %v22911_v41  ;;  %v3443_v41 = vmul.f32 1.442695, %v2932_v21  ;;  %v22916_v54 = vsel %vm17871_vm7, %v22915_v48, -1e+30  ;;  %v4196_v32 = vmul.f32 0.6931472, %v13159_v12  ;;  %12089 = vmatpush3.bf16.msra.mxu0 %v4585_v14  ;;  %v4587_v59 = vpack.c.bf16 %v18587_v33, %v18751_v36  ;;  %v13163_v3 = vpop.eup %13162 }
 0x3ce   : > { %9030 = vmax.xlane.f32.xlu0 %v22916_v54  ;;  %v2929_v52 = vsub.f32 0.0, %v2673_v24  ;;  %vm8181_vm0 = vcmp.ne.s32.totalorder %v7953_v40, 0  ;;  %v3698_v21 = vadd.f32 1.0, %v13161_v37  ;;  %v2927_v2 = vsub.f32 0.0, %v2671_v13  ;;  %12090 = vmatprep.subr.bf16.mxu0 %v4586_v60  ;;  %v22917_v48 = vld [vmem:[#allocation11_spill] sm:$0xff]  ;;  %v13165_v24 = vpop.eup %13164  ;;  %v18888_v36 = vpop.xlane.xlu1 %8888 }
 0x3cf   : > { %13174 = vpow2.f32 %v3443_v41  ;;  %v8245_v38 = vsel %vm8181_vm0, 1, %v22208_v45  ;;  %v22918_v54 = vsel %vm17751_vm15, %v22917_v48, -1e+30  ;;  %v4186_v14 = vmul.f32 0.6931472, %v13163_v3  ;;  %12096 = vmatprep.subr.bf16.mxu1 %v4587_v59  ;;  %v13167_v37 = vpop.eup %13166 }
 0x3d0   : > { %v3437_v12 = vmul.f32 1.442695, %v2929_v52  ;;  %v8405_v33 = vrot.slane %v8245_v38, %v22078_v50  ;;  %13176 = vlog2.f32 %v3698_v21  ;;  %v3691_v13 = vadd.f32 1.0, %v13165_v24  ;;  %12097 = vmatpush3.bf16.msra.mxu1 %v4587_v59  ;;  %v13169_v3 = vpop.eup %13168 }
 0x3d1   : > { %9028 = vmax.xlane.f32.xlu1 %v22918_v54  ;;  %v3433_v15 = vmul.f32 1.442695, %v2927_v2  ;;  %v22920_v48 = vsel %vm17871_vm7, %v22919_v25, -1e+30  ;;  %v22921_v52 = vmax.f32 %v18522_v58, 0.0  ;;  %v22922_v38 = vmov 0  ;;  %12091 = vmatpush3.bf16.msra.mxu0 %v4586_v60  ;;  %v18904_v2 = vpop.xlane.xlu0 %8894  ;;  %v13171_v59 = vpop.eup %13170 }
 0x3d2   : > { %9034 = vmax.xlane.f32.xlu0 %v22920_v48  ;;  %13178 = vpow2.f32 %v3437_v12  ;;  %vm18899_vm15 = vcmp.eq.s32.totalorder %v8405_v33, 1  ;;  %v4190_v24 = vmul.f32 0.6931472, %v13169_v3  ;;  %v22927_v12 = vld [vmem:[#allocation128_spill] sm:$0xff]  ;;  %v22929_v60 = vmax.f32 %v18592_v44, 0.0  ;;  %v18919_v3 = vpop.f32.mrb[80].mxu1  ;;  %v18921_v48 = vpop.xlane.xlu1 %8892 }
 0x3d3   : > { %v18897_v54 = vadd.f32 %v4196_v32, %v22921_v52  ;;  %v22923_v38 = vsel %vm18899_vm15, 4294967295, %v22922_v38  ;;  %13180 = vlog2.f32 %v3691_v13  ;;  %v22928_v33 = vsel %vm17871_vm7, %v22927_v12, -1e+30  ;;  %v13173_v52 = vpop.eup %13172  ;;  %22930 = vst [vmem:[#allocation28_spill] sm:$0xff] %v18919_v3 }
 0x3d4   : > { %22924 = vst [vmem:[#allocation101_spill] sm:$0xff] %v22923_v38  ;;  %v4455_v21 = vadd.f32 %v4186_v14, %v22929_v60  ;;  %v3696_v41 = vadd.f32 1.0, %v13171_v59  ;;  %13182 = vpow2.f32 %v3433_v15  ;;  %v2675_v13 = vand.u32 2147483647, %v18871_v16  ;;  %12093 = vmatmul.mubr.msk.bf16.vlgmr.msra.gmra.mrb[116].mxu0 %vm22934_vm11, %v18371_v6  ;;  %v18933_v15 = vpop.f32.mrb[81].mxu1  ;;  %v22936_v59 = vld [vmem:[#allocation131_spill] sm:$0xff] }
 0x3d5   : > { %9032 = vmax.xlane.f32.xlu1 %v22928_v33  ;;  %v22931_v40 = vmax.f32 %v18627_v9, 0.0  ;;  %v3693_v25 = vadd.f32 1.0, %v13173_v52  ;;  %v22937_v60 = vsel %vm17970_vm3, %v22936_v59, -1e+30  ;;  %12108 = vmatprep.mubr.msk.bf16.mxu0 %vm22939_vm1, %v18569_v31  ;;  %v18944_v52 = vpop.f32.mrb[82].mxu1  ;;  %v18946_v12 = vpop.xlane.xlu0 %8898  ;;  %v4589_v59 = vpack.c.bf16 %v18738_v62, %v18867_v5 }
 0x3d6   : > { %9038 = vmax.xlane.f32.xlu0 %v22937_v60  ;;  %13184 = vlog2.f32 %v3696_v41  ;;  %v2931_v9 = vsub.f32 0.0, %v2675_v13  ;;  %22940 = vst [vmem:[#allocation133_spill] sm:$0xff] %v18944_v52  ;;  %v22941_v41 = vld [vmem:[#allocation38_spill] sm:$0xff]  ;;  %v18952_v13 = vpop.f32.mrb[83].mxu1  ;;  %v4590_v33 = vpack.c.bf16 %v18802_v23, %v4455_v21  ;;  %v18961_v38 = vpop.xlane.xlu1 %8896  ;;  %v4200_v5 = vmul.f32 0.6931472, %v13167_v37 }
 0x3d7   : > { %v4457_v32 = vadd.f32 %v4190_v24, %v22931_v40  ;;  %v22938_v40 = vld [vmem:[#allocation36_spill] sm:$0xff]  ;;  %v4588_v24 = vpack.c.bf16 %v18678_v61, %v18814_v29  ;;  %13186 = vlog2.f32 %v3693_v25  ;;  %vm8183_vm12 = vcmp.ne.s32.totalorder %v22941_v41, 0  ;;  %v22942_v61 = vld [vmem:[#allocation127_spill] sm:$0xff]  ;;  %12104 = vmatprep.subr.bf16.mxu0 %v4589_v59  ;;  %v22948_v37 = vld [vmem:[#allocation130_spill] sm:$0xff] }
 0x3d8   : > { %vm8182_vm6 = vcmp.ne.s32.totalorder %v22938_v40, 0  ;;  %v22943_v29 = vsel %vm17871_vm7, %v22942_v61, -1e+30  ;;  %v3441_v60 = vmul.f32 1.442695, %v2931_v9  ;;  %v8247_v25 = vsel %vm8183_vm12, 1, %v22208_v45  ;;  %12105 = vmatpush3.bf16.msra.mxu0 %v4589_v59 }
 0x3d9   : > { %v8246_v44 = vsel %vm8182_vm6, 1, %v22208_v45  ;;  %9036 = vmax.xlane.f32.xlu1 %v22943_v29  ;;  %12098 = vmatprep.subr.bf16.mxu1 %v4588_v24  ;;  %v13175_v62 = vpop.eup %13174  ;;  %v8413_v55 = vrot.slane %v8247_v25, %v22078_v50  ;;  %v4591_v1 = vpack.c.bf16 %v18825_v18, %v4457_v32  ;;  %v7999_v9 = vcombine.high %v22938_v40, %v22938_v40  ;;  %v18978_v29 = vpop.xlane.xlu0 %8902  ;;  %v22958_v25 = vld [vmem:[#allocation132_spill] sm:$0xff]  ;;  %vm22963_vm6 = vmmov %vm22939_vm1 }
 0x3da   : > { %v8409_v58 = vrot.slane %v8246_v44, %v22078_v50  ;;  %12099 = vmatpush3.bf16.msra.mxu1 %v4588_v24  ;;  %v3700_v61 = vadd.f32 1.0, %v13175_v62  ;;  %13188 = vpow2.f32 %v3441_v60  ;;  %v22944_v44 = vmov 0  ;;  %v13177_v18 = vpop.eup %13176  ;;  %12106 = vmatprep.subr.bf16.mxu0 %v4590_v33  ;;  %v19034_v40 = vpop.f32.mrb[84].mxu0  ;;  %vm22974_vm12 = vmmov %vm22963_vm6 }
 0x3db   : > { %v22947_v23 = vlaneseq  ;;  %v22949_v24 = vsel %vm17970_vm3, %v22948_v37, -1e+30  ;;  %12112 = vmatprep.subr.bf16.mxu1 %v4591_v1  ;;  %v8001_v62 = vcombine.high %v22941_v41, %v22941_v41  ;;  %v4208_v37 = vmul.f32 0.6931472, %v13177_v18  ;;  %v19004_v41 = vpop.xlane.xlu1 %8900  ;;  %22970 = vst [vmem:[#allocation105_spill] sm:$0xff] %v19034_v40 }
 0x3dc   : > { %vm18967_vm7 = vcmp.eq.s32.totalorder %v8409_v58, 1  ;;  %9042 = vmax.xlane.f32.xlu0 %v22949_v24  ;;  %13190 = vlog2.f32 %v3700_v61  ;;  %vm18996_vm0 = vcmp.eq.s32.totalorder %v8413_v55, 1  ;;  %v22955_v60 = vmov 0  ;;  %22960 = vst [vmem:[#allocation104_spill] sm:$0xff] %v19004_v41  ;;  %12107 = vmatpush3.bf16.msra.mxu0 %v4590_v33 }
 0x3dd   : > { %v22945_v44 = vsel %vm18967_vm7, 4294967295, %v22944_v44  ;;  %v18972_v21 = vand.u32 127, %v22947_v23  ;;  %v13179_v23 = vpop.eup %13178  ;;  %12101 = vmatmul.mubr.msk.bf16.vlgmr.msra.gmra.mrb[116].mxu1 %vm22954_vm14, %v18371_v6  ;;  %v22956_v60 = vsel %vm18996_vm0, 4294967295, %v22955_v60  ;;  %v22959_v59 = vsel %vm17970_vm3, %v22958_v25, -1e+30  ;;  %v19026_v55 = vpop.xlane.xlu0 %8906 }
 0x3de   : > { %22946 = vst [vmem:[#allocation6_spill] sm:$0xff] %v22945_v44  ;;  %22957 = vst [vmem:[#allocation5_spill] sm:$0xff] %v22956_v60  ;;  %9040 = vmax.xlane.f32.xlu1 %v22959_v59  ;;  %v13181_v18 = vpop.eup %13180  ;;  %v3697_v61 = vadd.f32 1.0, %v13179_v23  ;;  %12113 = vmatpush3.bf16.msra.mxu1 %v4591_v1  ;;  %vm8184_vm11 = vcmp.ne.s32.totalorder %v7999_v9, 0  ;;  %v22964_v59 = vmax.f32 %v18616_v35, 0.0  ;;  %v22967_v1 = vld [vmem:[#allocation135_spill] sm:$0xff] }
 0x3df   : > { %12116 = vmatprep.mubr.msk.bf16.mxu1 %vm22963_vm6, %v18569_v31  ;;  %v13183_v58 = vpop.eup %13182  ;;  %v4194_v44 = vmul.f32 0.6931472, %v13181_v18  ;;  %v22968_v9 = vsel %vm18097_vm2, %v22967_v1, -1e+30  ;;  %vm8185_vm1 = vcmp.ne.s32.totalorder %v8001_v62, 0  ;;  %v9636_v41 = vadd.s32 4294967288, %v18972_v21  ;;  %12109 = vmatmul.mubr.msk.bf16.vlgmr.msra.gmra.mrb[120].mxu0 %vm22974_vm12, %v18371_v6 }
 0x3e0   : > { %v4462_v25 = vadd.f32 %v4200_v5, %v22964_v59  ;;  %9046 = vmax.xlane.f32.xlu0 %v22968_v9  ;;  %13192 = vlog2.f32 %v3697_v61  ;;  %v3695_v35 = vadd.f32 1.0, %v13183_v58  ;;  %v8248_v5 = vsel %vm8184_vm11, 1, %v22208_v45  ;;  %v13185_v18 = vpop.eup %13184  ;;  %v22971_v1 = vld [vmem:[#allocation32_spill] sm:$0xff]  ;;  %v19040_v58 = vpop.xlane.xlu1 %8904  ;;  %vm22981_vm11 = vmmov %vm22963_vm6 }
 0x3e1   : > { %v22969_v59 = vmax.f32 %v18713_v7, 0.0  ;;  %v8417_v23 = vrot.slane %v8248_v5, %v22078_v50  ;;  %v8249_v32 = vsel %vm8185_vm1, 1, %v22208_v45  ;;  %v22972_v61 = vsel %vm17970_vm3, %v22971_v1, -1e+30  ;;  %22973 = vst [vmem:[#allocation42_spill] sm:$0xff] %v19040_v58  ;;  %v13187_v62 = vpop.eup %13186  ;;  %12124 = vmatprep.mubr.msk.bf16.mxu0 %vm22981_vm11, %v18569_v31  ;;  %v19065_v60 = vpop.xlane.xlu0 %8910  ;;  %vm23004_vm1 = vmmov %vm22981_vm11 }
 0x3e2   : > { %9044 = vmax.xlane.f32.xlu1 %v22972_v61  ;;  %v4204_v9 = vmul.f32 0.6931472, %v13185_v18  ;;  %13194 = vlog2.f32 %v3695_v35  ;;  %v8421_v7 = vrot.slane %v8249_v32, %v22078_v50  ;;  %v4198_v14 = vmul.f32 0.6931472, %v13187_v62  ;;  %v22980_v18 = vld [vmem:[#allocation37_spill] sm:$0xff]  ;;  %v22983_v32 = vld [vmem:[#allocation134_spill] sm:$0xff]  ;;  %vm23017_vm11 = vmmov %vm23004_vm1 }
 0x3e3   : > { %v4459_v33 = vadd.f32 %v4194_v44, %v22969_v59  ;;  %v22975_v44 = vld [vmem:[#allocation3_spill] sm:$0xff]  ;;  %v19049_v59 = vpop.f32.mrb[85].mxu0  ;;  %vm19051_vm14 = vcmp.eq.s32.totalorder %v8417_v23, 1  ;;  %v22977_v1 = vmov 0  ;;  %vm8186_vm3 = vcmp.ne.s32.totalorder %v22980_v18, 0  ;;  %22985 = vst [vmem:[#allocation107_spill] sm:$0xff] %v19065_v60 }
 0x3e4   : > { %v19047_v5 = vsub.s32 %v18972_v21, %v22975_v44  ;;  %22976 = vst [vmem:[#allocation108_spill] sm:$0xff] %v19049_v59  ;;  %v22978_v1 = vsel %vm19051_vm14, 4294967295, %v22977_v1  ;;  %v19059_v35 = vpop.f32.mrb[86].mxu0  ;;  %v22984_v24 = vsel %vm18097_vm2, %v22983_v32, -1e+30  ;;  %v22986_v23 = vmax.f32 %v18668_v0, 0.0  ;;  %v13189_v32 = vpop.eup %13188 }
 0x3e5   : > { %22979 = vst [vmem:[#allocation22_spill] sm:$0xff] %v22978_v1  ;;  %v4592_v61 = vpack.c.bf16 %v18897_v54, %v4459_v33  ;;  %22982 = vst [vmem:[#allocation31_spill] sm:$0xff] %v19059_v35  ;;  %9050 = vmax.xlane.f32.xlu0 %v22984_v24  ;;  %v22990_v24 = vmax.f32 %v18743_v49, 0.0  ;;  %vm19085_vm6 = vcmp.eq.s32.totalorder %v8421_v7, 1  ;;  %v19090_v54 = vsub.s32 %v9636_v41, %v22975_v44  ;;  %v19092_v40 = vpop.f32.mrb[87].mxu0  ;;  %v19098_v49 = vpop.xlane.xlu1 %8908  ;;  %v23000_v0 = vld [vmem:[#allocation4_spill] sm:$0xff] }
 0x3e6   : > { %v19069_v62 = vadd.f32 %v4208_v37, %v22986_v23  ;;  %v22992_v23 = vmov 0  ;;  %22995 = vst [vmem:[#allocation41_spill] sm:$0xff] %v19092_v40  ;;  %v22996_v58 = vsel %vm18097_vm2, %v22710_v51, -1e+30  ;;  %v13191_v37 = vpop.eup %13190  ;;  %v23001_v41 = vsel %vm18212_vm8, %v23000_v0, -1e+30  ;;  %v19120_v22 = vpop.xlane.xlu0 %8914 }
 0x3e7   : > { %v4461_v60 = vadd.f32 %v4198_v14, %v22990_v24  ;;  %12114 = vmatprep.subr.bf16.mxu1 %v4592_v61  ;;  %v22993_v23 = vsel %vm19085_vm6, 4294967295, %v22992_v23  ;;  %9048 = vmax.xlane.f32.xlu1 %v22996_v58  ;;  %v3699_v14 = vadd.f32 1.0, %v13189_v32  ;;  %v8250_v24 = vsel %vm8186_vm3, 1, %v22208_v45  ;;  %23002 = vst [vmem:[#allocation112_spill] sm:$0xff] %v19120_v22  ;;  %v23009_v0 = vld [vmem:[#allocation33_spill] sm:$0xff]  ;;  %v23019_v32 = vld [vmem:[#allocation40_spill] sm:$0xff] }
 0x3e8   : > { %22994 = vst [vmem:[#allocation109_spill] sm:$0xff] %v22993_v23  ;;  %12115 = vmatpush3.bf16.msra.mxu1 %v4592_v61  ;;  %v8425_v7 = vrot.slane %v8250_v24, %v22078_v50  ;;  %v23003_v59 = vmax.f32 %v18732_v10, 0.0  ;;  %v9643_v58 = vadd.s32 4294967280, %v18972_v21  ;;  %v23005_v24 = vmov 0  ;;  %v23008_v61 = vld [vmem:[#allocation12_spill] sm:$0xff]  ;;  %v23024_v33 = vld [vmem:[#allocation94_spill] sm:$0xff] }
 0x3e9   : > { %v4593_v35 = vpack.c.bf16 %v4462_v25, %v4461_v60  ;;  %9054 = vmax.xlane.f32.xlu0 %v23001_v41  ;;  %v4212_v25 = vmul.f32 0.6931472, %v13191_v37  ;;  %13196 = vlog2.f32 %v3699_v14  ;;  %v23010_v41 = vcombine.high %v23009_v0, %v23009_v0  ;;  %v23011_v10 = vld [vmem:[#allocation88_spill] sm:$0xff]  ;;  %v19175_v23 = vpop.f32.mrb[84].mxu1 }
 0x3ea   : > { %v4464_v60 = vadd.f32 %v4204_v9, %v23003_v59  ;;  %vm19127_vm12 = vcmp.eq.s32.totalorder %v8425_v7, 1  ;;  %vm21878_vm3 = vcmask 130112   ;;  %v9635_v9 = vrot.slane %v23011_v10, %v19047_v5  ;;  %v19139_v59 = vpop.xlane.xlu1 %8912  ;;  %v13193_v37 = vpop.eup %13192  ;;  %23025 = vst [vmem:[#allocation113_spill] sm:$0xff] %v19175_v23 }
 0x3eb   : > { %12117 = vmatmul.mubr.msk.bf16.vlgmr.msra.gmra.mrb[120].mxu1 %vm23004_vm1, %v18371_v6  ;;  %12120 = vmatprep.subr.bf16.mxu0 %v4593_v35  ;;  %v23006_v24 = vsel %vm19127_vm12, 4294967295, %v23005_v24  ;;  %v19135_v51 = vrot.slane %v23010_v41, %v23008_v61  ;;  %23012 = vst [vmem:[#allocation111_spill] sm:$0xff] %v19139_v59  ;;  %v23013_v6 = vld [vmem:[#allocation17_spill] sm:$0xff]  ;;  %v4206_v10 = vmul.f32 0.6931472, %v13193_v37  ;;  %v19165_v7 = vpop.xlane.xlu0 %8918  ;;  %v9660_v41 = vrot.slane %v23024_v33, %v19047_v5 }
 0x3ec   : > { %23007 = vst [vmem:[#allocation7_spill] sm:$0xff] %v23006_v24  ;;  %12121 = vmatpush3.bf16.msra.mxu0 %v4593_v35  ;;  %v9640_v14 = vrot.slane %v23013_v6, %v19090_v54  ;;  %12132 = vmatprep.mubr.msk.bf16.mxu1 %vm23017_vm11, %v18569_v31  ;;  %v19155_v35 = vsub.s32 %v9643_v58, %v22975_v44  ;;  %v23020_v0 = vsel %vm18212_vm8, %v23019_v32, -1e+30  ;;  %23021 = vst [vmem:[#allocation16_spill] sm:$0xff] %v19165_v7  ;;  %v23022_v31 = vld [vmem:[#allocation35_spill] sm:$0xff]  ;;  %v13195_v58 = vpop.eup %13194  ;;  %vm21869_vm11 = vcmask 195712  }
 0x3ed   : > { %vm8187_vm1 = vcmp.ne.s32.totalorder %v19135_v51, 0  ;;  %9058 = vmax.xlane.f32.xlu0 %v23020_v0  ;;  %v23023_v37 = vsel %vm18097_vm2, %v23022_v31, -1e+30  ;;  %v23026_v32 = vmax.f32 %v18829_v30, 0.0  ;;  %v4202_v24 = vmul.f32 0.6931472, %v13195_v58 }
 0x3ee   : > { %9052 = vmax.xlane.f32.xlu1 %v23023_v37  ;;  %v8251_v1 = vsel %vm8187_vm1, 1, %v22208_v45  ;;  %v9642_v6 = vsel %vm21878_vm3, %v9640_v14, %v9635_v9  ;;  %v9647_v7 = vrot.slane %v23027_v34, %v19155_v35  ;;  %v19182_v37 = vpop.f32.mrb[85].mxu1  ;;  %v19184_v59 = vpop.xlane.xlu1 %8916  ;;  %v23028_v33 = vmax.f32 %v18792_v19, 0.0 }
 0x3ef   : > { %v4465_v0 = vadd.f32 %v4206_v10, %v23026_v32  ;;  %v8429_v31 = vrot.slane %v8251_v1, %v22078_v50  ;;  %v9679_v9 = vrot.slane %v18680_v4, %v19047_v5  ;;  %v9650_v14 = vadd.s32 4294967272, %v18972_v21  ;;  %v19193_v10 = vpop.f32.mrb[86].mxu1  ;;  %v23035_v21 = vld [vmem:[#allocation49_spill] sm:$0xff]  ;;  %v23091_v4 = vld [vmem:[#allocation24_spill] sm:$0xff] }
 0x3f0   : > { %v4468_v22 = vadd.f32 %v4212_v25, %v23028_v33  ;;  %v8000_v30 = vcombine.high %v22980_v18, %v22980_v18  ;;  %23029 = vst [vmem:[#allocation48_spill] sm:$0xff] %v19193_v10  ;;  %v23030_v58 = vmax.f32 %v18849_v20, 0.0  ;;  %v23031_v34 = vmov 0  ;;  %v19203_v25 = vpop.f32.mrb[87].mxu1  ;;  %v19209_v18 = vpop.xlane.xlu0 %8922  ;;  %v23038_v20 = vld [vmem:[#allocation47_spill] sm:$0xff] }
 0x3f1   : > { %v4595_v32 = vpack.c.bf16 %v19069_v62, %v4465_v0  ;;  %vm19198_vm2 = vcmp.eq.s32.totalorder %v8429_v31, 1  ;;  %v9649_v19 = vsel %vm21869_vm11, %v9647_v7, %v9642_v6  ;;  %v23036_v33 = vsel %vm18321_vm13, %v23035_v21, -1e+30  ;;  %23037 = vst [vmem:[#allocation8_spill] sm:$0xff] %v19209_v18 }
 0x3f2   : > { %v4463_v1 = vadd.f32 %v4202_v24, %v23030_v58  ;;  %v23032_v34 = vsel %vm19198_vm2, 4294967295, %v23031_v34  ;;  %9062 = vmax.xlane.f32.xlu0 %v23036_v33  ;;  %v23039_v24 = vsel %vm18212_vm8, %v23038_v20, -1e+30  ;;  %v19225_v21 = vsub.s32 %v9650_v14, %v22975_v44  ;;  %v23044_v58 = vld [vmem:[#allocation123_spill] sm:$0xff] }
 0x3f3   : > { %23033 = vst [vmem:[#allocation115_spill] sm:$0xff] %v23032_v34  ;;  %9056 = vmax.xlane.f32.xlu1 %v23039_v24  ;;  %12128 = vmatprep.subr.bf16.mxu1 %v4595_v32  ;;  %vm21875_vm1 = vcmask 261312   ;;  %vm8188_vm11 = vcmp.ne.s32.totalorder %v8000_v30, 0  ;;  %v19230_v24 = vpop.xlane.xlu1 %8920  ;;  %v13197_v0 = vpop.eup %13196  ;;  %v9669_v7 = vrot.slane %v18655_v56, %v19155_v35  ;;  %v9688_v30 = vrot.slane %v18734_v27, %v19155_v35  ;;  %v23045_v56 = vld [vmem:[#allocation46_spill] sm:$0xff] }
 0x3f4   : > { %v4594_v33 = vpack.c.bf16 %v4464_v60, %v4463_v1  ;;  %12129 = vmatpush3.bf16.msra.mxu1 %v4595_v32  ;;  %v9654_v6 = vrot.slane %v23044_v58, %v19225_v21  ;;  %v8252_v44 = vsel %vm8188_vm11, 1, %v22208_v45  ;;  %v9664_v60 = vrot.slane %v18664_v26, %v19090_v54  ;;  %v19248_v58 = vpop.xlane.xlu0 %8926 }
 0x3f5   : > { %v4210_v14 = vmul.f32 0.6931472, %v13197_v0  ;;  %v8433_v1 = vrot.slane %v8252_v44, %v22078_v50  ;;  %v9674_v32 = vrot.slane %v18708_v42, %v19225_v21  ;;  %v23046_v20 = vsel %vm18321_vm13, %v23045_v56, -1e+30  ;;  %v23052_v56 = vld [vmem:[#allocation99_spill] sm:$0xff] }
 0x3f6   : > { %12122 = vmatprep.subr.bf16.mxu0 %v4594_v33  ;;  %9066 = vmax.xlane.f32.xlu0 %v23046_v20  ;;  %v9656_v26 = vsel %vm21875_vm1, %v9654_v6, %v9649_v19  ;;  %v9665_v0 = vsel %vm21878_vm3, %v9664_v60, %v9660_v41  ;;  %vm21874_vm11 = vcmask 1041409   ;;  %v8002_v44 = vcombine.high %v19135_v51, %v19135_v51  ;;  %v23053_v19 = vld [vmem:[#allocation39_spill] sm:$0xff]  ;;  %v23068_v51 = vld [vmem:[#allocation26_spill] sm:$0xff] }
 0x3f7   : > { %12123 = vmatpush3.bf16.msra.mxu0 %v4594_v33  ;;  %v23047_v27 = vmax.f32 %v18871_v16, 0.0  ;;  %vm19256_vm2 = vcmp.eq.s32.totalorder %v8433_v1, 1  ;;  %v23048_v42 = vmov 0  ;;  %vm23051_vm12 = vcmask 195712   ;;  %v19267_v6 = vpop.xlane.xlu1 %8924  ;;  %v19287_v16 = vpop.f32.mrb[88].mxu0  ;;  %v23064_v1 = vld [vmem:[#allocation21_spill] sm:$0xff] }
 0x3f8   : > { %v23049_v42 = vsel %vm19256_vm2, 4294967295, %v23048_v42  ;;  %v9670_v20 = vsel %vm23051_vm12, %v9669_v7, %v9665_v0  ;;  %v9683_v33 = vrot.slane %v23052_v56, %v19090_v54  ;;  %v23054_v41 = vsel %vm18212_vm8, %v23053_v19, -1e+30  ;;  %23060 = vst [vmem:[#allocation30_spill] sm:$0xff] %v19287_v16  ;;  %v23062_v7 = vld [vmem:[#allocation50_spill] sm:$0xff] }
 0x3f9   : > { %v4467_v62 = vadd.f32 %v4210_v14, %v23047_v27  ;;  %23050 = vst [vmem:[#allocation114_spill] sm:$0xff] %v23049_v42  ;;  %9060 = vmax.xlane.f32.xlu1 %v23054_v41  ;;  %v9675_v0 = vsel %vm21875_vm1, %v9674_v32, %v9670_v20  ;;  %vm23058_vm8 = vcmask 261120   ;;  %vm8189_vm12 = vcmp.ne.s32.totalorder %v8002_v44, 0  ;;  %v19293_v20 = vpop.xlane.xlu0 %8930  ;;  %v19303_v44 = vpop.f32.mrb[89].mxu0 }
 0x3fa   : > { %12125 = vmatmul.mubr.msk.bf16.vlgmr.msra.gmra.mrb[124].mxu0 %vm23058_vm8, %v13263_v43  ;;  %v10855_v41 = vsel %vm21874_vm11, %v9675_v0, %v9656_v26  ;;  %v23063_v32 = vsel %vm18447_vm4, %v23062_v7, -1e+30  ;;  %v8253_v19 = vsel %vm8189_vm12, 1, %v22208_v45  ;;  %v9684_v26 = vsel %vm21878_vm3, %v9683_v33, %v9679_v9  ;;  %23066 = vst [vmem:[#allocation45_spill] sm:$0xff] %v19303_v44  ;;  %v23072_v33 = vld [vmem:[#allocation129_spill] sm:$0xff] }
 0x3fb   : > { %v4596_v27 = vpack.c.bf16 %v4468_v22, %v4467_v62  ;;  %9070 = vmax.xlane.f32.xlu0 %v23063_v32  ;;  %v23065_v22 = vcombine.high %v23064_v1, %v23064_v1  ;;  %vm21881_vm8 = vcmask 1042434   ;;  %v8437_v0 = vrot.slane %v8253_v19, %v22078_v50  ;;  %v19310_v1 = vpop.f32.mrb[90].mxu0  ;;  %v19316_v9 = vpop.xlane.xlu1 %8928 }
 0x3fc   : > { %vm23067_vm11 = vcmask 195712   ;;  %v9693_v32 = vrot.slane %v18772_v17, %v19225_v21  ;;  %vm8190_vm1 = vcmp.ne.s32.totalorder %v23068_v51, 0  ;;  %23069 = vst [vmem:[#allocation119_spill] sm:$0xff] %v19310_v1  ;;  %v9698_v19 = vrot.slane %v23072_v33, %v19047_v5  ;;  %v19325_v60 = vpop.f32.mrb[91].mxu0 }
 0x3fd   : > { %v19299_v62 = vrot.slane %v23065_v22, %v23008_v61  ;;  %12130 = vmatprep.subr.bf16.mxu1 %v4596_v27  ;;  %v9689_v7 = vsel %vm23067_vm11, %v9688_v30, %v9684_v26  ;;  %v23070_v22 = vld [vmem:[#allocation44_spill] sm:$0xff]  ;;  %v9707_v30 = vrot.slane %v18782_v28, %v19155_v35  ;;  %v8254_v17 = vsel %vm8190_vm1, 1, %v22208_v45  ;;  %23073 = vst [vmem:[#allocation9_spill] sm:$0xff] %v19325_v60  ;;  %v19337_v33 = vpop.xlane.xlu0 %8934 }
 0x3fe   : > { %v23071_v56 = vsel %vm18321_vm13, %v23070_v22, -1e+30  ;;  %12131 = vmatpush3.bf16.msra.mxu1 %v4596_v27  ;;  %v9702_v26 = vrot.slane %v18810_v63, %v19090_v54  ;;  %vm19327_vm11 = vcmp.eq.s32.totalorder %v8437_v0, 1  ;;  %v23074_v42 = vmov 0  ;;  %v23078_v22 = vld [vmem:[#allocation43_spill] sm:$0xff] }
 0x3ff   : > { %9064 = vmax.xlane.f32.xlu1 %v23071_v56  ;;  %v23075_v42 = vsel %vm19327_vm11, 4294967295, %v23074_v42  ;;  %vm23077_vm12 = vcmask 261312   ;;  %v8441_v27 = vrot.slane %v8254_v17, %v22078_v50  ;;  %v23079_v28 = vsel %vm18447_vm4, %v23078_v22, -1e+30  ;;  %v23094_v22 = vld [vmem:[#allocation54_spill] sm:$0xff] }
 0x400   : > { %23076 = vst [vmem:[#allocation118_spill] sm:$0xff] %v23075_v42  ;;  %v9694_v56 = vsel %vm23077_vm12, %v9693_v32, %v9689_v7  ;;  %9074 = vmax.xlane.f32.xlu0 %v23079_v28  ;;  %vm23083_vm1 = vcmask 261120   ;;  %v23085_v28 = vmov 0  ;;  %vm23087_vm3 = vcmask 130112   ;;  %v23088_v7 = vld [vmem:[#allocation78_spill] sm:$0xff] }
 0x401   : > { %v10857_v32 = vsel %vm21881_vm8, %v9694_v56, %v10855_v41  ;;  %12133 = vmatmul.mubr.msk.bf16.vlgmr.msra.gmra.mrb[124].mxu1 %vm23083_vm1, %v13263_v43  ;;  %vm19353_vm12 = vcmp.eq.s32.totalorder %v8441_v27, 1  ;;  %v9703_v63 = vsel %vm23087_vm3, %v9702_v26, %v9698_v19  ;;  %v9712_v31 = vrot.slane %v18863_v8, %v19225_v21  ;;  %v19364_v41 = vpop.xlane.xlu1 %8932  ;;  %v19387_v56 = vpop.xlane.xlu0 %8938  ;;  %v23114_v17 = vld [vmem:[#allocation34_spill] sm:$0xff] }
 0x402   : > { %v23086_v28 = vsel %vm19353_vm12, 4294967295, %v23085_v28  ;;  %v23089_v34 = vsel %vm18321_vm13, %v23088_v7, -1e+30  ;;  %vm23090_vm3 = vcmask 195712   ;;  %vm23092_vm13 = vcmask 261312  }
 0x403   : > { %9068 = vmax.xlane.f32.xlu1 %v23089_v34  ;;  %v9708_v8 = vsel %vm23090_vm3, %v9707_v30, %v9703_v63  ;;  %vm8191_vm1 = vcmp.ne.s32.totalorder %v19299_v62, 0  ;;  %v23095_v43 = vsel %vm18544_vm9, %v23094_v22, -1e+30  ;;  %v9717_v30 = vrot.slane %v18834_v46, %v19047_v5  ;;  %v23097_v46 = vld [vmem:[#allocation52_spill] sm:$0xff] }
 0x404   : > { %v9713_v27 = vsel %vm23092_vm13, %v9712_v31, %v9708_v8  ;;  %9078 = vmax.xlane.f32.xlu0 %v23095_v43  ;;  %vm23096_vm3 = vcmask 1043459   ;;  %v8255_v19 = vsel %vm8191_vm1, 1, %v22208_v45  ;;  %v9721_v34 = vrot.slane %v18888_v36, %v19090_v54 }
 0x405   : > { %v10859_v63 = vsel %vm23096_vm3, %v9713_v27, %v10857_v32  ;;  %v9726_v31 = vrot.slane %v18879_v57, %v19155_v35  ;;  %v8445_v8 = vrot.slane %v8255_v19, %v22078_v50  ;;  %v9731_v22 = vrot.slane %v18921_v48, %v19225_v21  ;;  %v19406_v27 = vpop.xlane.xlu1 %8936  ;;  %v19426_v18 = vpop.xlane.xlu0 %8942 }
 0x406   : > { %v8048_v43 = vcombine.high %v23068_v51, %v23068_v51  ;;  %v23098_v32 = vsel %vm18447_vm4, %v23097_v46, -1e+30  ;;  %v19410_v36 = vrot.slane %v23091_v4, %v23008_v61  ;;  %v9736_v57 = vrot.slane %v18904_v2, %v19047_v5 }
 0x407   : > { %9072 = vmax.xlane.f32.xlu1 %v23098_v32  ;;  %vm23099_vm13 = vcmask 130112   ;;  %v9740_v48 = vrot.slane %v18961_v38, %v19090_v54  ;;  %vm19417_vm1 = vcmp.eq.s32.totalorder %v8445_v8, 1  ;;  %v23100_v51 = vmov 0  ;;  %v23103_v32 = vld [vmem:[#allocation51_spill] sm:$0xff]  ;;  %v23111_v38 = vld [vmem:[#allocation42_spill] sm:$0xff] }
 0x408   : > { %v9722_v19 = vsel %vm23099_vm13, %v9721_v34, %v9717_v30  ;;  %v23101_v51 = vsel %vm19417_vm1, 4294967295, %v23100_v51  ;;  %vm21888_vm3 = vcmask 1044484   ;;  %vm23102_vm8 = vcmask 195712  }
 0x409   : > { %v9727_v46 = vsel %vm23102_vm8, %v9726_v31, %v9722_v19  ;;  %vm8192_vm11 = vcmp.ne.s32.totalorder %v8048_v43, 0  ;;  %v23104_v26 = vsel %vm18544_vm9, %v23103_v32, -1e+30  ;;  %vm23105_vm8 = vcmask 261312   ;;  %v19445_v19 = vpop.f32.mrb[88].mxu1  ;;  %v23107_v32 = vld [vmem:[#allocation82_spill] sm:$0xff]  ;;  %v19451_v34 = vpop.xlane.xlu1 %8940 }
 0x40a   : > { %9082 = vmax.xlane.f32.xlu0 %v23104_v26  ;;  %v9732_v30 = vsel %vm23105_vm8, %v9731_v22, %v9727_v46  ;;  %v9745_v31 = vrot.slane %v18946_v12, %v19155_v35  ;;  %v8256_v8 = vsel %vm8192_vm11, 1, %v22208_v45  ;;  %v9741_v43 = vsel %vm23099_vm13, %v9740_v48, %v9736_v57  ;;  %23106 = vst [vmem:[#allocation25_spill] sm:$0xff] %v19445_v19  ;;  %v19460_v48 = vpop.f32.mrb[89].mxu1  ;;  %v19473_v0 = vpop.xlane.xlu0 %8946 }
 0x40b   : > { %v23108_v2 = vsel %vm18447_vm4, %v23107_v32, -1e+30  ;;  %v9755_v12 = vrot.slane %v18978_v29, %v19047_v5  ;;  %v8449_v22 = vrot.slane %v8256_v8, %v22078_v50  ;;  %v9764_v46 = vrot.slane %v19026_v55, %v19155_v35  ;;  %23109 = vst [vmem:[#allocation55_spill] sm:$0xff] %v19460_v48  ;;  %v23110_v32 = vld [vmem:[#allocation107_spill] sm:$0xff]  ;;  %v19467_v29 = vpop.f32.mrb[90].mxu1 }
 0x40c   : > { %9076 = vmax.xlane.f32.xlu1 %v23108_v2  ;;  %v8050_v57 = vcombine.high %v19299_v62, %v19299_v62  ;;  %v10861_v14 = vsel %vm21888_vm3, %v9732_v30, %v10859_v63  ;;  %v9774_v2 = vrot.slane %v23110_v32, %v19047_v5  ;;  %v9759_v26 = vrot.slane %v23111_v38, %v19090_v54  ;;  %v23120_v30 = vld [vmem:[#allocation104_spill] sm:$0xff]  ;;  %v19482_v38 = vpop.f32.mrb[91].mxu1 }
 0x40d   : > { %23112 = vst [vmem:[#allocation122_spill] sm:$0xff] %v19467_v29  ;;  %v23115_v55 = vsel %vm18688_vm10, %v23114_v17, -1e+30  ;;  %vm19475_vm11 = vcmp.eq.s32.totalorder %v8449_v22, 1  ;;  %v23116_v62 = vmov 0  ;;  %vm23119_vm8 = vcmask 195712  }
 0x40e   : > { %9086 = vmax.xlane.f32.xlu0 %v23115_v55  ;;  %v23117_v62 = vsel %vm19475_vm11, 4294967295, %v23116_v62  ;;  %v9746_v63 = vsel %vm23119_vm8, %v9745_v31, %v9741_v43  ;;  %v9750_v32 = vrot.slane %v23120_v30, %v19225_v21  ;;  %vm8193_vm13 = vcmp.ne.s32.totalorder %v8050_v57, 0  ;;  %23121 = vst [vmem:[#allocation120_spill] sm:$0xff] %v19482_v38  ;;  %v23125_v43 = vld [vmem:[#allocation56_spill] sm:$0xff]  ;;  %v19499_v30 = vpop.xlane.xlu1 %8944  ;;  %v19515_v52 = vpop.xlane.xlu0 %8950 }
 0x40f   : > { %23118 = vst [vmem:[#allocation10_spill] sm:$0xff] %v23117_v62  ;;  %v9769_v31 = vrot.slane %v19098_v49, %v19225_v21  ;;  %v23126_v57 = vsel %vm18544_vm9, %v23125_v43, -1e+30  ;;  %v8257_v55 = vsel %vm8193_vm13, 1, %v22208_v45  ;;  %vm23127_vm8 = vcmask 130112   ;;  %v23128_v49 = vld [vmem:[#allocation112_spill] sm:$0xff] }
 0x410   : > { %9080 = vmax.xlane.f32.xlu1 %v23126_v57  ;;  %v9760_v42 = vsel %vm23127_vm8, %v9759_v26, %v9755_v12  ;;  %vm8194_vm3 = vcmp.ne.s32.totalorder %v19410_v36, 0  ;;  %v8453_v39 = vrot.slane %v8257_v55, %v22078_v50  ;;  %v9783_v22 = vrot.slane %v23128_v49, %v19155_v35  ;;  %v23129_v57 = vld [vmem:[#allocation53_spill] sm:$0xff]  ;;  %v23133_v55 = vld [vmem:[#allocation111_spill] sm:$0xff] }
 0x411   : > { %v8258_v43 = vsel %vm8194_vm3, 1, %v22208_v45  ;;  %v23130_v17 = vsel %vm18688_vm10, %v23129_v57, -1e+30  ;;  %vm23131_vm13 = vcmask 261312   ;;  %vm23132_vm8 = vcmask 195712  }
 0x412   : > { %9090 = vmax.xlane.f32.xlu0 %v23130_v17  ;;  %v9751_v40 = vsel %vm23131_vm13, %v9750_v32, %v9746_v63  ;;  %v9765_v26 = vsel %vm23132_vm8, %v9764_v46, %v9760_v42  ;;  %v8457_v12 = vrot.slane %v8258_v43, %v22078_v50  ;;  %v9778_v62 = vrot.slane %v23133_v55, %v19090_v54  ;;  %vm23136_vm3 = vmmov %vm23131_vm13  ;;  %v23137_v17 = vld [vmem:[#allocation86_spill] sm:$0xff]  ;;  %v19531_v63 = vpop.xlane.xlu1 %8948  ;;  %v23153_v55 = vld [vmem:[#allocation59_spill] sm:$0xff]  ;;  %v19585_v46 = vpop.f32.mrb[92].mxu0 }
 0x413   : > { %vm19522_vm2 = vcmp.eq.s32.totalorder %v8453_v39, 1  ;;  %v9770_v3 = vsel %vm23136_vm3, %v9769_v31, %v9765_v26  ;;  %v23138_v57 = vsel %vm18544_vm9, %v23137_v17, -1e+30  ;;  %vm23139_vm13 = vcmask 130112   ;;  %23158 = vst [vmem:[#allocation60_spill] sm:$0xff] %v19585_v46  ;;  %v23191_v26 = vld [vmem:[#allocation8_spill] sm:$0xff] }
 0x414   : > { %9084 = vmax.xlane.f32.xlu1 %v23138_v57  ;;  %v9779_v32 = vsel %vm23139_vm13, %v9778_v62, %v9774_v2  ;;  %v13292_v7 = vmov -1e+30   ;;  %vm23140_vm8 = vcmask 261120   ;;  %vm19554_vm13 = vcmp.eq.s32.totalorder %v8457_v12, 1  ;;  %v19565_v57 = vpop.xlane.xlu0 %8954  ;;  %v23159_v12 = vld [vmem:[#allocation90_spill] sm:$0xff] }
 0x415   : > { %419 = vst.msk [vmem:[#allocation2] sm:$0xff] %vm23140_vm8, %v13292_v7  ;;  %vm23141_vm9 = vmmov %vm23140_vm8  ;;  %v23148_v62 = vmov 0  ;;  %v9788_v43 = vrot.slane %v19184_v59, %v19225_v21  ;;  %v23154_v17 = vsel %vm18786_vm5, %v23153_v55, -1e+30  ;;  %v23155_v59 = vcombine.high %v23091_v4, %v23091_v4  ;;  %v23475_v49 = vld [vmem:[#allocation120_spill] sm:$0xff] }
 0x416   : > { %420 = vst.msk [vmem:[#allocation2 + $0x8] sm:$0xff] %vm23141_vm9, %v13292_v7  ;;  %vm23142_vm3 = vmmov %vm23140_vm8  ;;  %v23149_v62 = vsel %vm19554_vm13, 4294967295, %v23148_v62  ;;  %vm23151_vm8 = vcmask 195712   ;;  %9094 = vmax.xlane.f32.xlu0 %v23154_v17  ;;  %v23160_v42 = vsel %vm18688_vm10, %v23159_v12, -1e+30  ;;  %vm23165_vm9 = vcmask 1047559  }
 0x417   : > { %421 = vst.msk [vmem:[#allocation2 + $0x10] sm:$0xff] %vm23142_vm3, %v13292_v7  ;;  %vm23143_vm4 = vmmov %vm23142_vm3  ;;  %v9784_v31 = vsel %vm23151_vm8, %v9783_v22, %v9779_v32  ;;  %v8047_v32 = vrot.slane %v23155_v59, %v23008_v61  ;;  %v19591_v22 = vpop.xlane.xlu1 %8952  ;;  %v19594_v59 = vpop.f32.mrb[93].mxu0  ;;  %v8049_v12 = vcombine.high %v19410_v36, %v19410_v36  ;;  %v23172_v16 = vmov 0 }
 0x418   : > { %422 = vst.msk [vmem:[#allocation2 + $0x18] sm:$0xff] %vm23143_vm4, %v13292_v7  ;;  %vm23144_vm11 = vmmov %vm23142_vm3  ;;  %9088 = vmax.xlane.f32.xlu1 %v23160_v42  ;;  %v19605_v42 = vpop.f32.mrb[94].mxu0  ;;  %v19611_v17 = vpop.xlane.xlu0 %8958  ;;  %v23179_v8 = vmov 0 }
 0x419   : > { %423 = vst.msk [vmem:[#allocation2 + $0x20] sm:$0xff] %vm23144_vm11, %v13292_v7  ;;  %vm23145_vm1 = vmmov %vm23142_vm3  ;;  %vm8195_vm4 = vcmp.ne.s32.totalorder %v8047_v32, 0  ;;  %v19614_v2 = vpop.f32.mrb[95].mxu0  ;;  %vm8196_vm3 = vcmp.ne.s32.totalorder %v8049_v12, 0 }
 0x41a   : > { %424 = vst.msk [vmem:[#allocation2 + $0x28] sm:$0xff] %vm23145_vm1, %v13292_v7  ;;  %vm23146_vm12 = vmmov %vm23145_vm1 }
 0x41b   : > { %425 = vst.msk [vmem:[#allocation2 + $0x30] sm:$0xff] %vm23146_vm12, %v13292_v7  ;;  %vm23147_vm6 = vmmov %vm23145_vm1  ;;  %vm23157_vm12 = vcmask 261312   ;;  %vm23161_vm1 = vcmask 1046534   ;;  %v19620_v1 = vpop.xlane.xlu1 %8956 }
 0x41c   : > { %426 = vst.msk [vmem:[#allocation2 + $0x38] sm:$0xff] %vm23147_vm6, %v13292_v7  ;;  %23150 = vst [vmem:[#allocation124_spill] sm:$0xff] %v23149_v62  ;;  %vm23156_vm6 = vcmask 1045509   ;;  %v9789_v7 = vsel %vm23157_vm12, %v9788_v43, %v9784_v31  ;;  %v8259_v43 = vsel %vm8195_vm4, 1, %v22208_v45  ;;  %v9366_v39 = vld [vmem:[#allocation2] sm:$0xff] }
 0x41d   : > { %v10863_v55 = vsel %vm23156_vm6, %v9751_v40, %v10861_v14  ;;  %23162 = vst [vmem:[#allocation126_spill] sm:$0xff] %v19594_v59  ;;  %v23163_v40 = vld [vmem:[#allocation27_spill] sm:$0xff]  ;;  %23166 = vst [vmem:[#allocation11_spill] sm:$0xff] %v19605_v42 }
 0x41e   : > { %v10865_v4 = vsel %vm23161_vm1, %v9770_v3, %v10863_v55  ;;  %vm23164_vm11 = vnez %v23163_v40  ;;  %v23167_v3 = vld [vmem:[#allocation57_spill] sm:$0xff]  ;;  %v8461_v40 = vrot.slane %v8259_v43, %v22078_v50  ;;  %23169 = vst [vmem:[#allocation125_spill] sm:$0xff] %v19614_v2  ;;  %v8260_v43 = vsel %vm8196_vm3, 1, %v22208_v45 }
 0x41f   : > { %v19599_v14 = vsel %vm23164_vm11, 1, %v22208_v45  ;;  %v10867_v31 = vsel %vm23165_vm9, %v9789_v7, %v10865_v4  ;;  %v23168_v55 = vsel %vm18786_vm5, %v23167_v3, -1e+30  ;;  %v8051_v7 = vcombine.high %v8047_v32, %v8047_v32  ;;  %v23170_v4 = vld [vmem:[#allocation58_spill] sm:$0xff] }
 0x420   : > { %9098 = vmax.xlane.f32.xlu0 %v23168_v55  ;;  %v23171_v36 = vsel %vm18688_vm10, %v23170_v4, -1e+30  ;;  %v8059_v3 = vrot.slane %v19599_v14, %v23008_v61  ;;  %v10925_v55 = vmax.f32 %v9366_v39, %v10867_v31  ;;  %vm19624_vm8 = vcmp.eq.s32.totalorder %v8461_v40, 1  ;;  %v23176_v40 = vld [vmem:[#allocation66_spill] sm:$0xff] }
 0x421   : > { %9092 = vmax.xlane.f32.xlu1 %v23171_v36  ;;  %v23173_v16 = vsel %vm19624_vm8, 4294967295, %v23172_v16  ;;  %v8465_v39 = vrot.slane %v8260_v43, %v22078_v50  ;;  %v23177_v4 = vsel %vm18899_vm15, %v23176_v40, -1e+30  ;;  %v19643_v36 = vpop.xlane.xlu0 %8962  ;;  %vm23178_vm10 = vcmask 261120   ;;  %v23182_v40 = vld [vmem:[#allocation29_spill] sm:$0xff] }
 0x422   : > { %23174 = vst [vmem:[#allocation128_spill] sm:$0xff] %v23173_v16  ;;  %10933 = vst.msk [vmem:[#allocation2] sm:$0xff] %vm23178_vm10, %v10925_v55  ;;  %vm8197_vm6 = vcmp.ne.s32.totalorder %v8051_v7, 0  ;;  %v9816_v43 = vrot.slane %v19316_v9, %v19090_v54  ;;  %v19660_v55 = vpop.xlane.xlu1 %8960  ;;  %v9797_v32 = vrot.slane %v19230_v24, %v19090_v54  ;;  %v8067_v29 = vcombine.high %v8059_v3, %v8059_v3  ;;  %v23186_v9 = vld [vmem:[#allocation16_spill] sm:$0xff]  ;;  %v23188_v24 = vld [vmem:[#allocation95_spill] sm:$0xff] }
 0x423   : > { %vm19649_vm12 = vcmp.eq.s32.totalorder %v8465_v39, 1  ;;  %v8261_v12 = vsel %vm8197_vm6, 1, %v22208_v45  ;;  %v9793_v59 = vrot.slane %v23186_v9, %v19047_v5  ;;  %vm23187_vm1 = vcmask 130112  }
 0x424   : > { %9102 = vmax.xlane.f32.xlu0 %v23177_v4  ;;  %v23180_v8 = vsel %vm19649_vm12, 4294967295, %v23179_v8  ;;  %v23183_v4 = vsel %vm18786_vm5, %v23182_v40, -1e+30  ;;  %v9812_v40 = vrot.slane %v19248_v58, %v19047_v5  ;;  %v8469_v39 = vrot.slane %v8261_v12, %v22078_v50  ;;  %vm23190_vm4 = vmmov %vm23187_vm1 }
 0x425   : > { %23181 = vst [vmem:[#allocation61_spill] sm:$0xff] %v23180_v8  ;;  %9096 = vmax.xlane.f32.xlu1 %v23183_v4  ;;  %v23184_v4 = vld [vmem:[#allocation63_spill] sm:$0xff]  ;;  %v19682_v46 = vpop.xlane.xlu0 %8966  ;;  %v9826_v58 = vrot.slane %v19364_v41, %v19225_v21  ;;  %v23189_v2 = vsel %vm18786_vm5, %v23188_v24, -1e+30  ;;  %v9821_v9 = vrot.slane %v19293_v20, %v19155_v35  ;;  %v9798_v12 = vsel %vm23190_vm4, %v9797_v32, %v9793_v59  ;;  %v19722_v32 = vpop.f32.mrb[92].mxu1 }
 0x426   : > { %v23185_v7 = vsel %vm18899_vm15, %v23184_v4, -1e+30  ;;  %v9817_v42 = vsel %vm23187_vm1, %v9816_v43, %v9812_v40  ;;  %v19694_v8 = vpop.xlane.xlu1 %8964  ;;  %v9807_v43 = vrot.slane %v19267_v6, %v19225_v21  ;;  %v19705_v41 = vrot.slane %v8067_v29, %v23008_v61  ;;  %23196 = vst [vmem:[#allocation131_spill] sm:$0xff] %v19722_v32 }
 0x427   : > { %v9802_v40 = vrot.slane %v23191_v26, %v19155_v35  ;;  %v9831_v59 = vrot.slane %v19337_v33, %v19047_v5  ;;  %v9840_v6 = vrot.slane %v19387_v56, %v19155_v35  ;;  %vm23195_vm5 = vcmask 195712   ;;  %v19733_v33 = vpop.f32.mrb[93].mxu1 }
 0x428   : > { %9106 = vmax.xlane.f32.xlu0 %v23185_v7  ;;  %v19697_v7 = vrot.slane %v8059_v3, %v23008_v61  ;;  %v23193_v3 = vld [vmem:[#allocation67_spill] sm:$0xff]  ;;  %v9822_v29 = vsel %vm23195_vm5, %v9821_v9, %v9817_v42  ;;  %vm19724_vm11 = vcmp.eq.s32.totalorder %v8469_v39, 1  ;;  %v23197_v26 = vmov 0  ;;  %vm23200_vm9 = vmmov %vm23195_vm5  ;;  %23202 = vst [vmem:[#allocation38_spill] sm:$0xff] %v19733_v33  ;;  %v23203_v42 = vld [vmem:[#allocation65_spill] sm:$0xff] }
 0x429   : > { %9100 = vmax.xlane.f32.xlu1 %v23189_v2  ;;  %v9835_v2 = vrot.slane %v19406_v27, %v19090_v54  ;;  %v23194_v4 = vsel %vm18967_vm7, %v23193_v3, -1e+30  ;;  %v19715_v20 = vpop.xlane.xlu0 %8970  ;;  %v23198_v26 = vsel %vm19724_vm11, 4294967295, %v23197_v26  ;;  %v9803_v27 = vsel %vm23200_vm9, %v9802_v40, %v9798_v12  ;;  %v19747_v40 = vpop.f32.mrb[94].mxu1  ;;  %vm23211_vm5 = vmmov %vm23187_vm1 }
 0x42a   : > { %23199 = vst [vmem:[#allocation36_spill] sm:$0xff] %v23198_v26  ;;  %vm23201_vm3 = vcmask 261312   ;;  %v9854_v56 = vrot.slane %v19499_v30, %v19090_v54  ;;  %v23204_v39 = vsel %vm18899_vm15, %v23203_v42, -1e+30  ;;  %v8969_v9 = vpop.xlane.xlu1 %8968  ;;  %23206 = vst [vmem:[#allocation127_spill] sm:$0xff] %v19747_v40  ;;  %vm8198_vm6 = vcmp.ne.s32.totalorder %v19697_v7, 0 }
 0x42b   : > { %v9827_v3 = vsel %vm23201_vm3, %v9826_v58, %v9822_v29  ;;  %vm23205_vm10 = vmmov %vm23201_vm3  ;;  %v9850_v58 = vrot.slane %v19426_v18, %v19047_v5  ;;  %v19753_v29 = vpop.f32.mrb[95].mxu1  ;;  %v9836_v42 = vsel %vm23187_vm1, %v9835_v2, %v9831_v59  ;;  %v9873_v18 = vrot.slane %v19591_v22, %v19090_v54 }
 0x42c   : > { %9110 = vmax.xlane.f32.xlu0 %v23194_v4  ;;  %v9808_v19 = vsel %vm23205_vm10, %v9807_v43, %v9803_v27  ;;  %23207 = vst [vmem:[#allocation130_spill] sm:$0xff] %v19753_v29  ;;  %v9845_v43 = vrot.slane %v19451_v34, %v19225_v21  ;;  %v23208_v27 = vld [vmem:[#allocation68_spill] sm:$0xff]  ;;  %vm23210_vm4 = vcmask 1041409   ;;  %v9859_v30 = vrot.slane %v19473_v0, %v19155_v35  ;;  %vm23214_vm10 = vmmov %vm23187_vm1 }
 0x42d   : > { %9104 = vmax.xlane.f32.xlu1 %v23204_v39  ;;  %v23209_v39 = vsel %vm18967_vm7, %v23208_v27, -1e+30  ;;  %v8975_v4 = vpop.xlane.xlu0 %8974  ;;  %v10868_v12 = vsel %vm23210_vm4, %v9827_v3, %v9808_v19  ;;  %v9892_v34 = vrot.slane %v19660_v55, %v19090_v54  ;;  %v9869_v22 = vrot.slane %v19515_v52, %v19047_v5  ;;  %v23212_v0 = vld [vmem:[#allocation100_spill] sm:$0xff]  ;;  %vm23221_vm4 = vmmov %vm23211_vm5 }
 0x42e   : > { %v8262_v59 = vsel %vm8198_vm6, 1, %v22208_v45  ;;  %v9855_v27 = vsel %vm23211_vm5, %v9854_v56, %v9850_v58  ;;  %v9864_v19 = vrot.slane %v19531_v63, %v19225_v21  ;;  %v23213_v3 = vsel %vm18899_vm15, %v23212_v0, -1e+30  ;;  %vm23218_vm15 = vmmov %vm23200_vm9  ;;  %v23259_v0 = vld [vmem:[#allocation110_spill] sm:$0xff] }
 0x42f   : > { %v9841_v2 = vsel %vm23200_vm9, %v9840_v6, %v9836_v42  ;;  %v9878_v55 = vrot.slane %v19565_v57, %v19155_v35  ;;  %v9888_v52 = vrot.slane %v19611_v17, %v19047_v5  ;;  %v9911_v40 = vrot.slane %v8969_v9, %v19090_v54  ;;  %v23216_v6 = vld [vmem:[#allocation69_spill] sm:$0xff]  ;;  %vm23219_vm6 = vmmov %vm23187_vm1 }
 0x430   : > { %9114 = vmax.xlane.f32.xlu0 %v23209_v39  ;;  %v8973_v39 = vpop.xlane.xlu1 %8972  ;;  %v9846_v56 = vsel %vm23201_vm3, %v9845_v43, %v9841_v2  ;;  %v9874_v63 = vsel %vm23214_vm10, %v9873_v18, %v9869_v22  ;;  %v9907_v31 = vrot.slane %v19682_v46, %v19047_v5  ;;  %v9883_v58 = vrot.slane %v19620_v1, %v19225_v21  ;;  %vm23220_vm1 = vmmov %vm23201_vm3  ;;  %v23222_v22 = vld [vmem:[#allocation72_spill] sm:$0xff] }
 0x431   : > { %9108 = vmax.xlane.f32.xlu1 %v23213_v3  ;;  %v23217_v42 = vsel %vm18996_vm0, %v23216_v6, -1e+30  ;;  %v8979_v57 = vpop.xlane.xlu0 %8978  ;;  %v8473_v17 = vrot.slane %v8262_v59, %v22078_v50  ;;  %v9860_v9 = vsel %vm23218_vm15, %v9859_v30, %v9855_v27  ;;  %v9893_v43 = vsel %vm23219_vm6, %v9892_v34, %v9888_v52  ;;  %vm23224_vm5 = vmmov %vm23200_vm9 }
 0x432   : > { %v9902_v18 = vrot.slane %v19694_v8, %v19225_v21  ;;  %v9865_v46 = vsel %vm23220_vm1, %v9864_v19, %v9860_v9  ;;  %v9897_v1 = vrot.slane %v19643_v36, %v19155_v35  ;;  %v9912_v2 = vsel %vm23221_vm4, %v9911_v40, %v9907_v31  ;;  %vm23226_vm10 = vmmov %vm23220_vm1 }
 0x433   : > { %v23223_v3 = vsel %vm18967_vm7, %v23222_v22, -1e+30  ;;  %v9921_v59 = vrot.slane %v8973_v39, %v19225_v21  ;;  %v9879_v34 = vsel %vm23224_vm5, %v9878_v55, %v9874_v63  ;;  %v9916_v8 = vrot.slane %v19715_v20, %v19155_v35  ;;  %vm23227_vm15 = vmmov %vm23224_vm5  ;;  %v23228_v39 = vld [vmem:[#allocation103_spill] sm:$0xff]  ;;  %v19827_v20 = vpop.f32.mrb[96].mxu0 }
 0x434   : > { %9118 = vmax.xlane.f32.xlu0 %v23217_v42  ;;  %v8977_v30 = vpop.xlane.xlu1 %8976  ;;  %v9926_v27 = vrot.slane %v8975_v4, %v19047_v5  ;;  %vm23225_vm9 = vcmask 1042434   ;;  %vm8199_vm3 = vcmp.ne.s32.totalorder %v19705_v41, 0  ;;  %v9884_v40 = vsel %vm23226_vm10, %v9883_v58, %v9879_v34  ;;  %vm23232_vm4 = vmmov %vm23224_vm5  ;;  %v19839_v6 = vpop.f32.mrb[97].mxu0 }
 0x435   : > { %9112 = vmax.xlane.f32.xlu1 %v23223_v3  ;;  %v9930_v19 = vrot.slane %v8977_v30, %v19090_v54  ;;  %v10869_v36 = vsel %vm23225_vm9, %v9846_v56, %v10868_v12  ;;  %v9898_v52 = vsel %vm23227_vm15, %v9897_v1, %v9893_v43  ;;  %v23229_v31 = vsel %vm18996_vm0, %v23228_v39, -1e+30  ;;  %v19825_v55 = vpop.xlane.xlu0 %8982  ;;  %vm23235_vm10 = vmmov %vm23220_vm1  ;;  %v23236_v43 = vld [vmem:[#allocation70_spill] sm:$0xff]  ;;  %v19851_v22 = vpop.f32.mrb[98].mxu0 }
 0x436   : > { %vm19829_vm6 = vcmp.eq.s32.totalorder %v8473_v17, 1  ;;  %v23230_v4 = vmov 0  ;;  %v9903_v12 = vsel %vm23220_vm1, %v9902_v18, %v9898_v52  ;;  %v9917_v56 = vsel %vm23232_vm4, %v9916_v8, %v9912_v2  ;;  %v23241_v8 = vld [vmem:[#allocation75_spill] sm:$0xff] }
 0x437   : > { %v23231_v4 = vsel %vm19829_vm6, 4294967295, %v23230_v4  ;;  %vm23233_vm5 = vcmask 130112   ;;  %vm23234_vm9 = vcmask 1043459   ;;  %v9935_v9 = vrot.slane %v8979_v57, %v19155_v35 }
 0x438   : > { %9122 = vmax.xlane.f32.xlu0 %v23229_v31  ;;  %v9931_v63 = vsel %vm23233_vm5, %v9930_v19, %v9926_v27  ;;  %v10870_v42 = vsel %vm23234_vm9, %v9865_v46, %v10869_v36  ;;  %v9922_v17 = vsel %vm23235_vm10, %v9921_v59, %v9917_v56  ;;  %v23237_v18 = vsel %vm18967_vm7, %v23236_v43, -1e+30  ;;  %v8981_v1 = vpop.xlane.xlu1 %8980  ;;  %v7003_v59 = vpop.f32.mrb[99].mxu0  ;;  %v9367_v36 = vld [vmem:[#allocation2 + $0x8] sm:$0xff] }
 0x439   : > { %9116 = vmax.xlane.f32.xlu1 %v23237_v18  ;;  %v8790_v2 = vsel %vm19829_vm6, %v19839_v6, -1e+30  ;;  %v8263_v46 = vsel %vm8199_vm3, 1, %v22208_v45  ;;  %vm23238_vm15 = vcmask 1044484   ;;  %v9940_v3 = vrot.slane %v8981_v1, %v19225_v21  ;;  %v19866_v19 = vpop.xlane.xlu0 %8986  ;;  %vm23243_vm3 = vmmov %vm23232_vm4 }
 0x43a   : > { %v10871_v57 = vsel %vm23238_vm15, %v9884_v40, %v10870_v42  ;;  %vm23239_vm7 = vcmask 1045509   ;;  %v23242_v27 = vsel %vm19051_vm14, %v23241_v8, -1e+30  ;;  %v9936_v52 = vsel %vm23243_vm3, %v9935_v9, %v9931_v63  ;;  %vm23245_vm4 = vmmov %vm23235_vm10  ;;  %v23249_v63 = vld [vmem:[#allocation74_spill] sm:$0xff] }
 0x43b   : > { %v10872_v30 = vsel %vm23239_vm7, %v9903_v12, %v10871_v57  ;;  %v8791_v40 = vsel %vm19829_vm6, %v7003_v59, -1e+30  ;;  %vm23244_vm1 = vcmask 1046534   ;;  %v9941_v31 = vsel %vm23245_vm4, %v9940_v3, %v9936_v52  ;;  %v23246_v12 = vld [vmem:[#allocation106_spill] sm:$0xff]  ;;  %v23254_v3 = vld [vmem:[#allocation71_spill] sm:$0xff] }
 0x43c   : > { %9126 = vmax.xlane.f32.xlu0 %v23242_v27  ;;  %v10873_v39 = vsel %vm23244_vm1, %v9922_v17, %v10872_v30  ;;  %v8477_v56 = vrot.slane %v8263_v46, %v22078_v50  ;;  %v23247_v42 = vsel %vm18996_vm0, %v23246_v12, -1e+30  ;;  %vm23248_vm5 = vcmask 1047559   ;;  %v19879_v18 = vpop.xlane.xlu1 %8984  ;;  %v19888_v46 = vpop.f32.mrb[96].mxu1 }
 0x43d   : > { %9120 = vmax.xlane.f32.xlu1 %v23247_v42  ;;  %v10874_v43 = vsel %vm23248_vm5, %v9941_v31, %v10873_v39  ;;  %v23250_v9 = vsel %vm19051_vm14, %v23249_v63, -1e+30  ;;  %v19885_v17 = vpop.xlane.xlu0 %8990  ;;  %vm23251_vm9 = vcmask 261120   ;;  %v23252_v57 = vmov 0  ;;  %v7049_v27 = vpop.f32.mrb[97].mxu1  ;;  %v23257_v31 = vld [vmem:[#allocation109_spill] sm:$0xff] }
 0x43e   : > { %v10926_v1 = vmax.f32 %v9367_v36, %v10874_v43  ;;  %vm19890_vm10 = vcmp.eq.s32.totalorder %v8477_v56, 1  ;;  %v23255_v59 = vsel %vm18996_vm0, %v23254_v3, -1e+30  ;;  %v19905_v52 = vpop.f32.mrb[98].mxu1  ;;  %v8097_v39 = vcombine.high %v19697_v7, %v19697_v7  ;;  %v23261_v63 = vld [vmem:[#allocation13_spill] sm:$0xff] }
 0x43f   : > { %v23253_v57 = vsel %vm19890_vm10, 4294967295, %v23252_v57  ;;  %v8794_v36 = vsel %vm19890_vm10, %v7049_v27, -1e+30  ;;  %23256 = vst [vmem:[#allocation132_spill] sm:$0xff] %v19905_v52  ;;  %vm23258_vm15 = vnez %v23257_v31  ;;  %v7052_v43 = vpop.f32.mrb[99].mxu1  ;;  %v23263_v3 = vld [vmem:[#allocation77_spill] sm:$0xff]  ;;  %vm23267_vm7 = vnez %v23086_v28 }
 0x440   : > { %9130 = vmax.xlane.f32.xlu0 %v23250_v9  ;;  %10934 = vst.msk [vmem:[#allocation2 + $0x8] sm:$0xff] %vm23251_vm9, %v10926_v1  ;;  %v19898_v30 = vpop.xlane.xlu1 %8988  ;;  %v23260_v56 = vsel %vm23258_vm15, %v23259_v0, -1e+30  ;;  %v8795_v1 = vsel %vm19890_vm10, %v7052_v43, -1e+30  ;;  %vm8200_vm0 = vcmp.ne.s32.totalorder %v8097_v39, 0  ;;  %v9949_v6 = vrot.slane %v19879_v18, %v19090_v54 }
 0x441   : > { %9124 = vmax.xlane.f32.xlu1 %v23255_v59  ;;  %v19913_v12 = vpop.xlane.xlu0 %8994  ;;  %v23262_v9 = vsel %vm19051_vm14, %v23261_v63, -1e+30  ;;  %v23264_v59 = vsel %vm23258_vm15, %v23263_v3, -1e+30  ;;  %v23265_v0 = vld [vmem:[#allocation73_spill] sm:$0xff]  ;;  %v8264_v63 = vsel %vm8200_vm0, 1, %v22208_v45  ;;  %v9964_v31 = vrot.slane %v19885_v17, %v19047_v5 }
 0x442   : > { %v23268_v39 = vsel %vm23267_vm7, %v18836_v47, -1e+30  ;;  %v8481_v3 = vrot.slane %v8264_v63, %v22078_v50  ;;  %v9973_v60 = vrot.slane %v19913_v12, %v19155_v35  ;;  %vm23297_vm11 = vcmask 261312   ;;  %v23402_v28 = vld [vmem:[#allocation105_spill] sm:$0xff] }
 0x443   : > { %vm23298_vm12 = vcmask 130112  }
 0x444   : > { %9134 = vmax.xlane.f32.xlu0 %v23260_v56  ;;  %v19924_v7 = vpop.xlane.xlu1 %8992  ;;  %v23266_v56 = vsel %vm19051_vm14, %v23265_v0, -1e+30  ;;  %vm23271_vm14 = vnez %v23101_v51  ;;  %vm19962_vm3 = vcmp.eq.s32.totalorder %v8481_v3, 1  ;;  %v23404_v51 = vsel %vm19522_vm2, %v19182_v37, -1e+30 }
 0x445   : > { %9128 = vmax.xlane.f32.xlu1 %v23262_v9  ;;  %v19930_v27 = vpop.xlane.xlu0 %8998  ;;  %v23272_v42 = vsel %vm23271_vm14, %v18952_v13, -1e+30  ;;  %v20014_v32 = vpop.f32.mrb[100].mxu1 }
 0x446   : > { %23279 = vst [vmem:[#allocation3_spill] sm:$0xff] %v20014_v32 }
 0x448   : > { %9138 = vmax.xlane.f32.xlu0 %v23264_v59  ;;  %v19936_v43 = vpop.xlane.xlu1 %8996  ;;  %v23269_v59 = vld [vmem:[#allocation79_spill] sm:$0xff] }
 0x449   : > { %9132 = vmax.xlane.f32.xlu1 %v23266_v56  ;;  %v19943_v9 = vpop.xlane.xlu0 %9002  ;;  %v23270_v34 = vsel %vm23258_vm15, %v23269_v59, -1e+30  ;;  %v8099_v56 = vcombine.high %v19705_v41, %v19705_v41  ;;  %v23276_v59 = vsel %vm23267_vm7, %v18794_v53, -1e+30  ;;  %v8052_v53 = vcombine.high %v19599_v14, %v19599_v14 }
 0x44a   : > { %v9978_v44 = vrot.slane %v19936_v43, %v19225_v21  ;;  %vm23318_vm15 = vcmask 130112  }
 0x44b   : > { %vm8201_vm1 = vcmp.ne.s32.totalorder %v8099_v56, 0  ;;  %v23278_v56 = vsel %vm23271_vm14, %v18933_v15, -1e+30 }
 0x44c   : > { %9176 = vmax.xlane.f32.xlu0 %v23268_v39  ;;  %v19950_v0 = vpop.xlane.xlu1 %9000  ;;  %v19960_v39 = vpop.f32.mrb[100].mxu0 }
 0x44d   : > { %9136 = vmax.xlane.f32.xlu1 %v23270_v34  ;;  %v19958_v47 = vpop.xlane.xlu0 %9006  ;;  %23273 = vst [vmem:[#allocation135_spill] sm:$0xff] %v19960_v39  ;;  %v19975_v41 = vpop.f32.mrb[101].mxu0  ;;  %v9987_v23 = vrot.slane %v19950_v0, %v19090_v54  ;;  %v9983_v0 = vrot.slane %v19930_v27, %v19047_v5 }
 0x44e   : > { %v19980_v3 = vpop.f32.mrb[102].mxu0 }
 0x44f   : > { %23277 = vst [vmem:[#allocation32_spill] sm:$0xff] %v19980_v3  ;;  %v19989_v13 = vpop.f32.mrb[103].mxu0  ;;  %v9945_v3 = vrot.slane %v19825_v55, %v19047_v5  ;;  %v9988_v12 = vsel %vm23298_vm12, %v9987_v23, %v9983_v0 }
 0x450   : > { %9184 = vmax.xlane.f32.xlu0 %v23272_v42  ;;  %v19970_v34 = vpop.xlane.xlu1 %9004  ;;  %v8265_v42 = vsel %vm8201_vm1, 1, %v22208_v45  ;;  %vm23291_vm1 = vcmask 130112  }
 0x451   : > { %9174 = vmax.xlane.f32.xlu1 %v23276_v59  ;;  %v19982_v24 = vpop.xlane.xlu0 %9010  ;;  %v8066_v59 = vrot.slane %v8052_v53, %v23008_v61  ;;  %v8485_v58 = vrot.slane %v8265_v42, %v22078_v50  ;;  %v9997_v27 = vrot.slane %v19970_v34, %v19225_v21 }
 0x453   : > { %vm20016_vm4 = vcmp.eq.s32.totalorder %v8485_v58, 1  ;;  %v8068_v58 = vcombine.high %v8066_v59, %v8066_v59 }
 0x454   : > { %9240 = vmax.xlane.f32.xlu0 %v8791_v40  ;;  %v19998_v40 = vpop.xlane.xlu1 %9008 }
 0x455   : > { %9182 = vmax.xlane.f32.xlu1 %v23278_v56  ;;  %v20001_v14 = vpop.xlane.xlu0 %9014  ;;  %v8082_v56 = vrot.slane %v8066_v59, %v23008_v61  ;;  %v20048_v16 = vrot.slane %v8068_v58, %v23008_v61 }
 0x456   : > { %v10021_v23 = vrot.slane %v20001_v14, %v19047_v5 }
 0x457   : > { %vm8202_vm5 = vcmp.ne.s32.totalorder %v8082_v56, 0  ;;  %vm8203_vm9 = vcmp.ne.s32.totalorder %v20048_v16, 0  ;;  %v8098_v32 = vcombine.high %v8082_v56, %v8082_v56 }
 0x458   : > { %9248 = vmax.xlane.f32.xlu0 %v8795_v1  ;;  %v20009_v8 = vpop.xlane.xlu1 %9012  ;;  %v23280_v1 = vmov 0  ;;  %v8266_v42 = vsel %vm8202_vm5, 1, %v22208_v45  ;;  %v8267_v17 = vsel %vm8203_vm9, 1, %v22208_v45  ;;  %vm23293_vm5 = vmmov %vm23291_vm1 }
 0x459   : > { %9238 = vmax.xlane.f32.xlu1 %v8790_v2  ;;  %v20011_v15 = vpop.xlane.xlu0 %9018  ;;  %v23281_v1 = vsel %vm20016_vm4, 4294967295, %v23280_v1  ;;  %v20025_v2 = vpop.f32.mrb[101].mxu1  ;;  %vm8204_vm9 = vcmp.ne.s32.totalorder %v8098_v32, 0 }
 0x45a   : > { %23282 = vst [vmem:[#allocation37_spill] sm:$0xff] %v23281_v1  ;;  %23283 = vst [vmem:[#allocation134_spill] sm:$0xff] %v20025_v2  ;;  %v20030_v29 = vpop.f32.mrb[102].mxu1  ;;  %v10030_v0 = vrot.slane %v20011_v15, %v19155_v35 }
 0x45b   : > { %23284 = vst [vmem:[#allocation18_spill] sm:$0xff] %v20030_v29  ;;  %v20037_v26 = vpop.f32.mrb[103].mxu1  ;;  %v9968_v29 = vrot.slane %v19924_v7, %v19090_v54  ;;  %v23287_v7 = vmov 0 }
 0x45c   : > { %v20020_v53 = vpop.xlane.xlu1 %9016  ;;  %23285 = vst [vmem:[#allocation4_spill] sm:$0xff] %v20037_v26 }
 0x45d   : > { %9246 = vmax.xlane.f32.xlu1 %v8794_v36  ;;  %v20032_v33 = vpop.xlane.xlu0 %9022  ;;  %v8489_v36 = vrot.slane %v8266_v42, %v22078_v50  ;;  %v20066_v42 = vpop.f32.mrb[104].mxu0  ;;  %v9969_v56 = vsel %vm23291_vm1, %v9968_v29, %v9964_v31  ;;  %v9954_v31 = vrot.slane %v19866_v19, %v19155_v35  ;;  %vm23295_vm1 = vcmask 195712  }
 0x45e   : > { %23286 = vst [vmem:[#allocation12_spill] sm:$0xff] %v20066_v42  ;;  %v20075_v18 = vpop.f32.mrb[105].mxu0  ;;  %v9950_v42 = vsel %vm23293_vm5, %v9949_v6, %v9945_v3  ;;  %v9974_v3 = vsel %vm23295_vm1, %v9973_v60, %v9969_v56  ;;  %v10006_v6 = vrot.slane %v19998_v40, %v19090_v54  ;;  %v8493_v19 = vrot.slane %v8267_v17, %v22078_v50  ;;  %vm23296_vm5 = vmmov %vm23295_vm1 }
 0x45f   : > { %vm20068_vm0 = vcmp.eq.s32.totalorder %v8489_v36, 1  ;;  %23290 = vst [vmem:[#allocation88_spill] sm:$0xff] %v20075_v18  ;;  %v20086_v62 = vpop.f32.mrb[106].mxu0  ;;  %v9959_v36 = vrot.slane %v19898_v30, %v19225_v21  ;;  %v9955_v29 = vsel %vm23296_vm5, %v9954_v31, %v9950_v42  ;;  %v9979_v30 = vsel %vm23297_vm11, %v9978_v44, %v9974_v3  ;;  %vm23299_vm1 = vmmov %vm23297_vm11 }
 0x460   : > { %v20042_v38 = vpop.xlane.xlu1 %9020  ;;  %v23288_v7 = vsel %vm20068_vm0, 4294967295, %v23287_v7  ;;  %23292 = vst [vmem:[#allocation17_spill] sm:$0xff] %v20086_v62  ;;  %v20098_v43 = vpop.f32.mrb[107].mxu0  ;;  %v10002_v62 = vrot.slane %v19958_v47, %v19047_v5  ;;  %v10025_v60 = vrot.slane %v20020_v53, %v19090_v54  ;;  %v20122_v17 = vsel %vm8204_vm9, 1, %v22208_v45  ;;  %vm23301_vm9 = vmmov %vm23296_vm5 }
 0x461   : > { %v20045_v48 = vpop.xlane.xlu0 %9026  ;;  %23289 = vst [vmem:[#allocation33_spill] sm:$0xff] %v23288_v7  ;;  %23294 = vst [vmem:[#allocation40_spill] sm:$0xff] %v20098_v43  ;;  %v9960_v40 = vsel %vm23299_vm1, %v9959_v36, %v9955_v29  ;;  %v9992_v44 = vrot.slane %v19943_v9, %v19155_v35  ;;  %v10016_v53 = vrot.slane %v20009_v8, %v19225_v21  ;;  %vm23300_vm11 = vcmask 1041409  }
 0x462   : > { %v10007_v34 = vsel %vm23298_vm12, %v10006_v6, %v10002_v62  ;;  %v10875_v36 = vsel %vm23300_vm11, %v9979_v30, %v9960_v40  ;;  %v10011_v29 = vrot.slane %v19982_v24, %v19155_v35  ;;  %vm23302_vm5 = vmmov %vm23299_vm1  ;;  %v10035_v8 = vrot.slane %v20042_v38, %v19225_v21 }
 0x463   : > { %v9993_v9 = vsel %vm23301_vm9, %v9992_v44, %v9988_v12  ;;  %vm23303_vm1 = vmmov %vm23298_vm12  ;;  %v10049_v6 = vrot.slane %v20045_v48, %v19155_v35  ;;  %v23310_v44 = vmov 0 }
 0x464   : > { %v20050_v59 = vpop.xlane.xlu1 %9024  ;;  %v9998_v31 = vsel %vm23302_vm5, %v9997_v27, %v9993_v9  ;;  %v10026_v14 = vsel %vm23303_vm1, %v10025_v60, %v10021_v23  ;;  %vm23304_vm12 = vmmov %vm23301_vm9 }
 0x465   : > { %v20055_v10 = vpop.xlane.xlu0 %9030  ;;  %v10044_v42 = vrot.slane %v20050_v59, %v19090_v54  ;;  %v10040_v59 = vrot.slane %v20032_v33, %v19047_v5  ;;  %v10012_v24 = vsel %vm23304_vm12, %v10011_v29, %v10007_v34  ;;  %vm23305_vm11 = vmmov %vm23303_vm1 }
 0x466   : > { %v10059_v62 = vrot.slane %v20055_v10, %v19047_v5  ;;  %vm23306_vm9 = vmmov %vm23302_vm5 }
 0x467   : > { %v10045_v12 = vsel %vm23305_vm11, %v10044_v42, %v10040_v59  ;;  %v10017_v3 = vsel %vm23306_vm9, %v10016_v53, %v10012_v24  ;;  %vm23307_vm5 = vmmov %vm23303_vm1  ;;  %vm23313_vm11 = vcmask 1042434  }
 0x468   : > { %v20062_v58 = vpop.xlane.xlu1 %9028  ;;  %vm23308_vm1 = vmmov %vm23304_vm12  ;;  %vm20164_vm12 = vcmp.eq.s32.totalorder %v8493_v19, 1  ;;  %v10876_v48 = vsel %vm23313_vm11, %v9998_v31, %v10875_v36  ;;  %vm23320_vm11 = vcmask 1043459   ;;  %v23450_v63 = vld [vmem:[#allocation40_spill] sm:$0xff] }
 0x469   : > { %v20081_v55 = vpop.xlane.xlu0 %9034  ;;  %v10054_v33 = vrot.slane %v20062_v58, %v19225_v21  ;;  %v10031_v27 = vsel %vm23308_vm1, %v10030_v0, %v10026_v14  ;;  %v20162_v58 = vpop.f32.mrb[104].mxu1  ;;  %v23311_v44 = vsel %vm20164_vm12, 4294967295, %v23310_v44  ;;  %v10877_v29 = vsel %vm23320_vm11, %v10017_v3, %v10876_v48  ;;  %v9368_v3 = vld [vmem:[#allocation2 + $0x10] sm:$0xff] }
 0x46a   : > { %v10068_v15 = vrot.slane %v20081_v55, %v19155_v35  ;;  %23309 = vst [vmem:[#allocation35_spill] sm:$0xff] %v20162_v58  ;;  %23312 = vst [vmem:[#allocation94_spill] sm:$0xff] %v23311_v44  ;;  %v10036_v42 = vsel %vm23306_vm9, %v10035_v8, %v10031_v27  ;;  %vm23357_vm12 = vcmask 130112  }
 0x46c   : > { %v9033_v18 = vpop.xlane.xlu1 %9032 }
 0x46d   : > { %v9039_v32 = vpop.xlane.xlu0 %9038  ;;  %v10063_v56 = vrot.slane %v9033_v18, %v19090_v54 }
 0x46e   : > { %v10078_v60 = vrot.slane %v9039_v32, %v19047_v5  ;;  %v20176_v32 = vpop.f32.mrb[105].mxu1 }
 0x46f   : > { %v10064_v10 = vsel %vm23307_vm5, %v10063_v56, %v10059_v62  ;;  %vm23314_vm5 = vmmov %vm23308_vm1  ;;  %23315 = vst [vmem:[#allocation121_spill] sm:$0xff] %v20176_v32  ;;  %v20184_v36 = vpop.f32.mrb[106].mxu1 }
 0x470   : > { %v9037_v47 = vpop.xlane.xlu1 %9036  ;;  %vm23316_vm1 = vmmov %vm23306_vm9  ;;  %23319 = vst [vmem:[#allocation116_spill] sm:$0xff] %v20184_v36  ;;  %v20192_v62 = vpop.f32.mrb[107].mxu1 }
 0x471   : > { %v9043_v18 = vpop.xlane.xlu0 %9042  ;;  %v10073_v38 = vrot.slane %v9037_v47, %v19225_v21  ;;  %v10050_v47 = vsel %vm23314_vm5, %v10049_v6, %v10045_v12  ;;  %vm23317_vm8 = vmmov %vm23314_vm5  ;;  %23322 = vst [vmem:[#allocation49_spill] sm:$0xff] %v20192_v62 }
 0x472   : > { %v10055_v34 = vsel %vm23316_vm1, %v10054_v33, %v10050_v47  ;;  %v10069_v19 = vsel %vm23317_vm8, %v10068_v15, %v10064_v10  ;;  %v10087_v9 = vrot.slane %v9043_v18, %v19155_v35  ;;  %vm23321_vm9 = vmmov %vm23316_vm1  ;;  %vm23323_vm8 = vcmask 1044484  }
 0x473   : > { %v10074_v59 = vsel %vm23321_vm9, %v10073_v38, %v10069_v19  ;;  %v10878_v8 = vsel %vm23323_vm8, %v10036_v42, %v10877_v29  ;;  %v8497_v18 = vrot.slane %v20122_v17, %v22078_v50  ;;  %vm23325_vm1 = vcmask 1046534   ;;  %vm23326_vm11 = vmmov %vm23321_vm9  ;;  %v20212_v17 = vpop.f32.mrb[108].mxu0 }
 0x474   : > { %v9041_v30 = vpop.xlane.xlu1 %9040  ;;  %vm23327_vm9 = vcmask 1047559   ;;  %v8100_v15 = vcombine.high %v20048_v16, %v20048_v16  ;;  %23328 = vst [vmem:[#allocation47_spill] sm:$0xff] %v20212_v17  ;;  %v20223_v47 = vpop.f32.mrb[109].mxu0 }
 0x475   : > { %v10082_v40 = vrot.slane %v9041_v30, %v19090_v54  ;;  %v20171_v23 = vpop.xlane.xlu0 %9046  ;;  %vm20214_vm8 = vcmp.eq.s32.totalorder %v8497_v18, 1  ;;  %23332 = vst [vmem:[#allocation46_spill] sm:$0xff] %v20223_v47 }
 0x477   : > { %v10083_v53 = vsel %vm23318_vm15, %v10082_v40, %v10078_v60  ;;  %vm23324_vm15 = vcmask 1045509   ;;  %v23329_v40 = vmov 0 }
 0x478   : > { %v9045_v31 = vpop.xlane.xlu1 %9044  ;;  %v10879_v12 = vsel %vm23324_vm15, %v10055_v34, %v10878_v8  ;;  %v10088_v6 = vsel %vm23314_vm5, %v10087_v9, %v10083_v53  ;;  %v23330_v40 = vsel %vm20214_vm8, 4294967295, %v23329_v40  ;;  %vm23333_vm15 = vcmask 261120   ;;  %v20229_v34 = vpop.f32.mrb[110].mxu0 }
 0x479   : > { %v10092_v0 = vrot.slane %v9045_v31, %v19225_v21  ;;  %v20202_v33 = vpop.xlane.xlu0 %9050  ;;  %v10880_v10 = vsel %vm23325_vm1, %v10074_v59, %v10879_v12  ;;  %23331 = vst [vmem:[#allocation123_spill] sm:$0xff] %v23330_v40  ;;  %23334 = vst [vmem:[#allocation99_spill] sm:$0xff] %v20229_v34  ;;  %v20234_v53 = vpop.f32.mrb[111].mxu0  ;;  %vm8205_vm5 = vcmp.ne.s32.totalorder %v8100_v15, 0  ;;  %v23336_v31 = vld [vmem:[#allocation15_spill] sm:$0xff]  ;;  %v23339_v15 = vmov 0 }
 0x47a   : > { %23335 = vst [vmem:[#allocation39_spill] sm:$0xff] %v20234_v53  ;;  %vm23337_vm1 = vnez %v23336_v31 }
 0x47b   : > { %v10093_v38 = vsel %vm23326_vm11, %v10092_v0, %v10088_v6  ;;  %v7757_v8 = vsel %vm23337_vm1, 1, %v22208_v45  ;;  %v8269_v0 = vsel %vm8205_vm5, 1, %v22208_v45 }
 0x47c   : > { %v10881_v30 = vsel %vm23327_vm9, %v10093_v38, %v10880_v10  ;;  %v20208_v27 = vpop.xlane.xlu1 %9048  ;;  %v8501_v6 = vrot.slane %v8269_v0, %v22078_v50  ;;  %v8101_v47 = vcombine.high %v7757_v8, %v7757_v8 }
 0x47d   : > { %v10927_v60 = vmax.f32 %v9368_v3, %v10881_v30  ;;  %v20218_v48 = vpop.xlane.xlu0 %9054  ;;  %v8108_v3 = vrot.slane %v7757_v8, %v23008_v61  ;;  %v20256_v30 = vpop.f32.mrb[108].mxu1 }
 0x47e   : > { %23338 = vst [vmem:[#allocation87_spill] sm:$0xff] %v20256_v30  ;;  %vm20258_vm11 = vcmp.eq.s32.totalorder %v8501_v6, 1  ;;  %v20265_v31 = vpop.f32.mrb[109].mxu1  ;;  %v8115_v58 = vrot.slane %v8101_v47, %v23008_v61 }
 0x47f   : > { %10935 = vst.msk [vmem:[#allocation2 + $0x10] sm:$0xff] %vm23333_vm15, %v10927_v60  ;;  %v8124_v38 = vrot.slane %v8108_v3, %v23008_v61  ;;  %v23340_v15 = vsel %vm20258_vm11, 4294967295, %v23339_v15  ;;  %23342 = vst [vmem:[#allocation21_spill] sm:$0xff] %v20265_v31  ;;  %v20272_v42 = vpop.f32.mrb[110].mxu1  ;;  %vm23350_vm11 = vcmask 130112   ;;  %v23426_v60 = vld [vmem:[#allocation7_spill] sm:$0xff] }
 0x480   : > { %v20241_v59 = vpop.xlane.xlu1 %9052  ;;  %23341 = vst [vmem:[#allocation50_spill] sm:$0xff] %v23340_v15  ;;  %23343 = vst [vmem:[#allocation26_spill] sm:$0xff] %v20272_v42  ;;  %v20277_v14 = vpop.f32.mrb[111].mxu1  ;;  %v8116_v42 = vcombine.high %v8108_v3, %v8108_v3  ;;  %v8117_v2 = vcombine.high %v8115_v58, %v8115_v58 }
 0x481   : > { %v20239_v9 = vpop.xlane.xlu0 %9058  ;;  %23344 = vst [vmem:[#allocation44_spill] sm:$0xff] %v20277_v14  ;;  %vm8206_vm9 = vcmp.ne.s32.totalorder %v8124_v38, 0 }
 0x482   : > { %v8270_v55 = vsel %vm8206_vm9, 1, %v22208_v45 }
 0x483   : > { %v8505_v56 = vrot.slane %v8270_v55, %v22078_v50  ;;  %v8138_v55 = vrot.slane %v8116_v42, %v23008_v61  ;;  %v8146_v42 = vcombine.high %v8124_v38, %v8124_v38 }
 0x484   : > { %v20249_v12 = vpop.xlane.xlu1 %9056 }
 0x485   : > { %v20247_v18 = vpop.xlane.xlu0 %9062  ;;  %vm20298_vm15 = vcmp.eq.s32.totalorder %v8505_v56, 1  ;;  %vm8207_vm5 = vcmp.ne.s32.totalorder %v8138_v55, 0  ;;  %vm8208_vm1 = vcmp.ne.s32.totalorder %v8146_v42, 0  ;;  %v10120_v38 = vrot.slane %v20249_v12, %v19090_v54 }
 0x486   : > { %v8271_v62 = vsel %vm8207_vm5, 1, %v22208_v45  ;;  %v8272_v8 = vsel %vm8208_vm1, 1, %v22208_v45  ;;  %v10101_v42 = vrot.slane %v20208_v27, %v19090_v54 }
 0x487   : > { %v8513_v7 = vrot.slane %v8272_v8, %v22078_v50  ;;  %v23452_v8 = vld [vmem:[#allocation109_spill] sm:$0xff] }
 0x488   : > { %v20267_v19 = vpop.xlane.xlu1 %9060 }
 0x489   : > { %v20253_v10 = vpop.xlane.xlu0 %9066  ;;  %v10130_v12 = vrot.slane %v20267_v19, %v19225_v21 }
 0x48b   : > { %v20296_v34 = vpop.f32.mrb[112].mxu0 }
 0x48c   : > { %v20284_v16 = vpop.xlane.xlu1 %9064  ;;  %v7392_v31 = vpop.f32.mrb[113].mxu0 }
 0x48d   : > { %v20279_v29 = vpop.xlane.xlu0 %9070  ;;  %v8822_v3 = vsel %vm20298_vm15, %v7392_v31, -1e+30  ;;  %v20310_v17 = vpop.f32.mrb[114].mxu0  ;;  %v10139_v39 = vrot.slane %v20284_v16, %v19090_v54  ;;  %v10106_v16 = vrot.slane %v20202_v33, %v19155_v35 }
 0x48e   : > { %23347 = vst [vmem:[#allocation129_spill] sm:$0xff] %v20310_v17  ;;  %v7395_v36 = vpop.f32.mrb[115].mxu0  ;;  %9302 = vmax.xlane.f32.xlu1 %v8822_v3  ;;  %v8148_v3 = vcombine.high %v8138_v55, %v8138_v55  ;;  %v23428_v55 = vld [vmem:[#allocation19_spill] sm:$0xff] }
 0x48f   : > { %v8823_v14 = vsel %vm20298_vm15, %v7395_v36, -1e+30  ;;  %v8509_v36 = vrot.slane %v8271_v62, %v22078_v50  ;;  %v10116_v62 = vrot.slane %v20218_v48, %v19047_v5  ;;  %v10097_v48 = vrot.slane %v20171_v23, %v19047_v5 }
 0x490   : > { %v20289_v24 = vpop.xlane.xlu1 %9068  ;;  %9304 = vmax.xlane.f32.xlu0 %v8823_v14  ;;  %v20331_v14 = vrot.slane %v8115_v58, %v23008_v61  ;;  %vm8209_vm9 = vcmp.ne.s32.totalorder %v8148_v3, 0 }
 0x491   : > { %v20287_v0 = vpop.xlane.xlu0 %9074  ;;  %vm20342_vm5 = vcmp.eq.s32.totalorder %v8509_v36, 1  ;;  %v8273_v17 = vsel %vm8209_vm9, 1, %v22208_v45  ;;  %v10121_v27 = vsel %vm23350_vm11, %v10120_v38, %v10116_v62  ;;  %v10102_v58 = vsel %vm23350_vm11, %v10101_v42, %v10097_v48 }
 0x492   : > { %vm8210_vm1 = vcmp.ne.s32.totalorder %v20331_v14, 0  ;;  %v10111_v38 = vrot.slane %v20241_v59, %v19225_v21  ;;  %vm23351_vm9 = vcmask 195712   ;;  %vm23354_vm11 = vcmask 261312  }
 0x493   : > { %v20377_v19 = vsel %vm8210_vm1, 1, %v22208_v45  ;;  %vm20390_vm1 = vcmp.eq.s32.totalorder %v8513_v7, 1  ;;  %v23355_v59 = vsel %vm23267_vm7, %v18784_v11, -1e+30  ;;  %vm23356_vm8 = vmmov %vm23351_vm9  ;;  %v10144_v11 = vrot.slane %v20253_v10, %v19155_v35 }
 0x494   : > { %v20294_v30 = vpop.xlane.xlu1 %9072  ;;  %v10107_v33 = vsel %vm23356_vm8, %v10106_v16, %v10102_v58  ;;  %vm23363_vm8 = vcmask 1041409  }
 0x495   : > { %v20292_v6 = vpop.xlane.xlu0 %9078  ;;  %v10158_v7 = vrot.slane %v20294_v30, %v19090_v54 }
 0x499   : > { %v20305_v15 = vpop.xlane.xlu0 %9082  ;;  %v20315_v53 = vpop.xlane.xlu1 %9076 }
 0x49d   : > { %v20319_v40 = vpop.xlane.xlu0 %9086  ;;  %v20321_v31 = vpop.xlane.xlu1 %9080 }
 0x49e   : > { %v20340_v43 = vpop.f32.mrb[112].mxu1  ;;  %v10177_v10 = vrot.slane %v20321_v31, %v19090_v54  ;;  %v23365_v31 = vld [vmem:[#allocation10_spill] sm:$0xff] }
 0x49f   : > { %v7441_v3 = vpop.f32.mrb[113].mxu1 }
 0x4a0   : > { %v8826_v36 = vsel %vm20342_vm5, %v7441_v3, -1e+30  ;;  %v20358_v26 = vpop.f32.mrb[114].mxu1  ;;  %v10125_v3 = vrot.slane %v20239_v9, %v19155_v35  ;;  %v8517_v9 = vrot.slane %v8273_v17, %v22078_v50  ;;  %v8521_v17 = vrot.slane %v20377_v19, %v22078_v50 }
 0x4a1   : > { %v20325_v56 = vpop.xlane.xlu0 %9090  ;;  %v20327_v32 = vpop.xlane.xlu1 %9084  ;;  %9310 = vmax.xlane.f32.xlu1 %v8826_v36  ;;  %v10135_v36 = vrot.slane %v20247_v18, %v19047_v5  ;;  %v23392_v19 = vsel %vm20298_vm15, %v20296_v34, -1e+30 }
 0x4a2   : > { %v7444_v1 = vpop.f32.mrb[115].mxu1 }
 0x4a3   : > { %v8827_v23 = vsel %vm20342_vm5, %v7444_v1, -1e+30  ;;  %v10126_v1 = vsel %vm23351_vm9, %v10125_v3, %v10121_v27  ;;  %v10140_v18 = vsel %vm23357_vm12, %v10139_v39, %v10135_v36  ;;  %v20406_v27 = vrot.slane %v8117_v2, %v23008_v61  ;;  %vm23358_vm9 = vmmov %vm23354_vm11 }
 0x4a4   : > { %9312 = vmax.xlane.f32.xlu0 %v8827_v23  ;;  %v10131_v42 = vsel %vm23354_vm11, %v10130_v12, %v10126_v1  ;;  %v10112_v12 = vsel %vm23358_vm9, %v10111_v38, %v10107_v33  ;;  %v10149_v3 = vrot.slane %v20289_v24, %v19225_v21  ;;  %v23359_v23 = vld [vmem:[#allocation28_spill] sm:$0xff]  ;;  %vm20417_vm12 = vcmp.eq.s32.totalorder %v8517_v9, 1 }
 0x4a5   : > { %v20336_v47 = vpop.xlane.xlu0 %9094  ;;  %v20338_v44 = vpop.xlane.xlu1 %9088  ;;  %9178 = vmax.xlane.f32.xlu1 %v23355_v59  ;;  %v23360_v58 = vsel %vm23271_vm14, %v23359_v23, -1e+30  ;;  %v10154_v61 = vrot.slane %v20279_v29, %v19047_v5  ;;  %v10882_v2 = vsel %vm23363_vm8, %v10131_v42, %v10112_v12  ;;  %v10163_v24 = vrot.slane %v20287_v0, %v19155_v35  ;;  %v23367_v42 = vld [vmem:[#allocation108_spill] sm:$0xff] }
 0x4a6   : > { %v10173_v38 = vrot.slane %v20292_v6, %v19047_v5  ;;  %vm23364_vm11 = vcmask 195712   ;;  %v10196_v16 = vrot.slane %v20338_v44, %v19090_v54  ;;  %vm23366_vm9 = vnez %v23365_v31 }
 0x4a7   : > { %v20426_v30 = vpop.f32.mrb[116].mxu0  ;;  %v10145_v9 = vsel %vm23364_vm11, %v10144_v11, %v10140_v18  ;;  %v23368_v59 = vsel %vm23366_vm9, %v23367_v42, -1e+30  ;;  %vm23369_vm8 = vcmask 130112   ;;  %v10168_v6 = vrot.slane %v20315_v53, %v19225_v21 }
 0x4a8   : > { %9186 = vmax.xlane.f32.xlu0 %v23360_v58  ;;  %v8832_v29 = vsel %vm20390_vm1, %v20426_v30, -1e+30  ;;  %v20438_v1 = vpop.f32.mrb[117].mxu0  ;;  %v10159_v0 = vsel %vm23369_vm8, %v10158_v7, %v10154_v61  ;;  %vm23370_vm11 = vcmask 261312   ;;  %v10182_v23 = vrot.slane %v20305_v15, %v19155_v35  ;;  %v23371_v58 = vld [vmem:[#allocation41_spill] sm:$0xff]  ;;  %vm23374_vm0 = vmmov %vm23369_vm8 }
 0x4a9   : > { %9190 = vmax.xlane.f32.xlu1 %v23368_v59  ;;  %v8830_v18 = vsel %vm20390_vm1, %v20438_v1, -1e+30  ;;  %v20451_v12 = vpop.f32.mrb[118].mxu0  ;;  %v10150_v11 = vsel %vm23370_vm11, %v10149_v3, %v10145_v9  ;;  %v10192_v7 = vrot.slane %v20319_v40, %v19047_v5  ;;  %v23372_v61 = vsel %vm23366_vm9, %v23371_v58, -1e+30  ;;  %vm23377_vm13 = vmmov %vm23374_vm0 }
 0x4aa   : > { %v8833_v53 = vsel %vm20390_vm1, %v20451_v12, -1e+30  ;;  %v10178_v42 = vsel %vm23369_vm8, %v10177_v10, %v10173_v38  ;;  %v10211_v3 = vrot.slane %v20336_v47, %v19047_v5  ;;  %v10187_v15 = vrot.slane %v20327_v32, %v19225_v21  ;;  %v23454_v12 = vld [vmem:[#allocation76_spill] sm:$0xff] }
 0x4ab   : > { %vm23373_vm11 = vcmask 195712   ;;  %v10197_v59 = vsel %vm23374_vm0, %v10196_v16, %v10192_v7  ;;  %v23375_v10 = vsel %vm19829_vm6, %v19827_v20, -1e+30  ;;  %vm23376_vm8 = vcmask 261312  }
 0x4ac   : > { %9192 = vmax.xlane.f32.xlu0 %v23372_v61  ;;  %v10164_v9 = vsel %vm23373_vm11, %v10163_v24, %v10159_v0  ;;  %v10201_v32 = vrot.slane %v20325_v56, %v19155_v35  ;;  %v10183_v16 = vsel %vm23373_vm11, %v10182_v23, %v10178_v42  ;;  %v23378_v56 = vsel %vm19890_vm10, %v19888_v46, -1e+30  ;;  %vm23380_vm4 = vmmov %vm23376_vm8 }
 0x4ad   : > { %v20382_v62 = vpop.xlane.xlu0 %9098  ;;  %9242 = vmax.xlane.f32.xlu1 %v23375_v10  ;;  %v10169_v47 = vsel %vm23376_vm8, %v10168_v6, %v10164_v9  ;;  %vm23379_vm0 = vcmask 1042434   ;;  %vm23381_vm6 = vmmov %vm23373_vm11  ;;  %vm23382_vm10 = vcmask 130112  }
 0x4ae   : > { %v20372_v52 = vpop.xlane.xlu1 %9092  ;;  %v10883_v6 = vsel %vm23379_vm0, %v10150_v11, %v10882_v2  ;;  %vm23384_vm0 = vcmask 1043459  }
 0x4af   : > { %v10206_v58 = vrot.slane %v20372_v52, %v19225_v21  ;;  %v10220_v52 = vrot.slane %v20382_v62, %v19155_v35  ;;  %v10202_v62 = vsel %vm23373_vm11, %v10201_v32, %v10197_v59 }
 0x4b0   : > { %v20493_v61 = vpop.f32.mrb[116].mxu1  ;;  %9250 = vmax.xlane.f32.xlu0 %v23378_v56 }
 0x4b1   : > { %v9103_v36 = vpop.xlane.xlu0 %9102  ;;  %v10207_v23 = vsel %vm23380_vm4, %v10206_v58, %v10202_v62 }
 0x4b2   : > { %v9097_v48 = vpop.xlane.xlu1 %9096  ;;  %v10230_v0 = vrot.slane %v9103_v36, %v19047_v5  ;;  %v8836_v36 = vsel %vm20417_vm12, %v20493_v61, -1e+30 }
 0x4b3   : > { %v10215_v33 = vrot.slane %v9097_v48, %v19090_v54  ;;  %v20461_v48 = vpop.f32.mrb[119].mxu0 }
 0x4b4   : > { %v8831_v40 = vsel %vm20390_vm1, %v20461_v48, -1e+30 }
 0x4b5   : > { %v10216_v38 = vsel %vm23377_vm13, %v10215_v33, %v10211_v3  ;;  %v9107_v7 = vpop.xlane.xlu0 %9106  ;;  %vm8211_vm13 = vcmp.ne.s32.totalorder %v20406_v27, 0  ;;  %v10188_v33 = vsel %vm23376_vm8, %v10187_v15, %v10183_v16  ;;  %v23383_v3 = vsel %vm19962_vm3, %v19975_v41, -1e+30  ;;  %v9369_v16 = vld [vmem:[#allocation2 + $0x18] sm:$0xff]  ;;  %vm23388_vm8 = vmmov %vm23373_vm11 }
 0x4b6   : > { %v9101_v44 = vpop.xlane.xlu1 %9100  ;;  %v10221_v42 = vsel %vm23381_vm6, %v10220_v52, %v10216_v38  ;;  %9254 = vmax.xlane.f32.xlu1 %v23383_v3  ;;  %v10884_v15 = vsel %vm23384_vm0, %v10169_v47, %v10883_v6  ;;  %v10239_v9 = vrot.slane %v9107_v7, %v19155_v35  ;;  %vm23385_vm6 = vcmask 1044484  }
 0x4b7   : > { %v10225_v48 = vrot.slane %v9101_v44, %v19225_v21  ;;  %v20506_v44 = vpop.f32.mrb[117].mxu1  ;;  %v10885_v38 = vsel %vm23385_vm6, %v10188_v33, %v10884_v15  ;;  %v23386_v47 = vsel %vm19962_vm3, %v19989_v13, -1e+30  ;;  %vm20544_vm11 = vcmp.eq.s32.totalorder %v8521_v17, 1 }
 0x4b8   : > { %v8834_v2 = vsel %vm20417_vm12, %v20506_v44, -1e+30  ;;  %v20514_v11 = vpop.f32.mrb[118].mxu1  ;;  %9256 = vmax.xlane.f32.xlu0 %v23386_v47  ;;  %vm23391_vm0 = vcmask 1046534   ;;  %vm23393_vm6 = vcmask 1047559  }
 0x4b9   : > { %v10226_v59 = vsel %vm23380_vm4, %v10225_v48, %v10221_v42  ;;  %v8837_v10 = vsel %vm20417_vm12, %v20514_v11, -1e+30  ;;  %v20526_v32 = vpop.f32.mrb[119].mxu1 }
 0x4ba   : > { %v9105_v24 = vpop.xlane.xlu1 %9104  ;;  %v8835_v41 = vsel %vm20417_vm12, %v20526_v32, -1e+30  ;;  %9306 = vmax.xlane.f32.xlu1 %v23392_v19 }
 0x4bb   : > { %v10234_v20 = vrot.slane %v9105_v24, %v19090_v54 }
 0x4bd   : > { %v10235_v46 = vsel %vm23382_vm10, %v10234_v20, %v10230_v0  ;;  %vm23387_vm10 = vcmask 1045509   ;;  %v20539_v0 = vpop.f32.mrb[120].mxu0  ;;  %v8275_v20 = vsel %vm8211_vm13, 1, %v22208_v45  ;;  %vm23395_vm13 = vcmask 261120  }
 0x4be   : > { %v9109_v58 = vpop.xlane.xlu1 %9108  ;;  %v10886_v48 = vsel %vm23387_vm10, %v10207_v23, %v10885_v38  ;;  %v10240_v52 = vsel %vm23388_vm8, %v10239_v9, %v10235_v46  ;;  %v8840_v6 = vsel %vm20544_vm11, %v20539_v0, -1e+30  ;;  %v20556_v33 = vpop.f32.mrb[121].mxu0  ;;  %v23394_v46 = vsel %vm20342_vm5, %v20340_v43, -1e+30  ;;  %9318 = vmax.xlane.f32.xlu1 %v8830_v18  ;;  %v23490_v0 = vld [vmem:[#allocation83_spill] sm:$0xff] }
 0x4bf   : > { %v10244_v24 = vrot.slane %v9109_v58, %v19225_v21  ;;  %v10887_v13 = vsel %vm23391_vm0, %v10226_v59, %v10886_v48  ;;  %v8838_v62 = vsel %vm20544_vm11, %v20556_v33, -1e+30  ;;  %v20566_v23 = vpop.f32.mrb[122].mxu0  ;;  %9314 = vmax.xlane.f32.xlu0 %v23394_v46  ;;  %v8525_v15 = vrot.slane %v8275_v20, %v22078_v50  ;;  %v20586_v43 = vpop.f32.mrb[120].mxu1  ;;  %v23459_v33 = vld [vmem:[#allocation115_spill] sm:$0xff] }
 0x4c0   : > { %v8841_v3 = vsel %vm20544_vm11, %v20566_v23, -1e+30  ;;  %v20575_v34 = vpop.f32.mrb[123].mxu0  ;;  %v8147_v58 = vcombine.high %v20331_v14, %v20331_v14  ;;  %vm23460_vm1 = vnez %v23459_v33  ;;  %v23526_v33 = vld [vmem:[#allocation62_spill] sm:$0xff] }
 0x4c1   : > { %v10245_v56 = vsel %vm23380_vm4, %v10244_v24, %v10240_v52  ;;  %v8839_v9 = vsel %vm20544_vm11, %v20575_v34, -1e+30  ;;  %vm20588_vm10 = vcmp.eq.s32.totalorder %v8525_v15, 1  ;;  %v20597_v24 = vpop.f32.mrb[121].mxu1  ;;  %vm23410_vm4 = vnez %v23253_v57  ;;  %v23463_v34 = vld [vmem:[#allocation20_spill] sm:$0xff] }
 0x4c2   : > { %v10888_v17 = vsel %vm23393_vm6, %v10245_v56, %v10887_v13  ;;  %v8844_v38 = vsel %vm20588_vm10, %v20586_v43, -1e+30  ;;  %v8842_v1 = vsel %vm20588_vm10, %v20597_v24, -1e+30  ;;  %v20602_v18 = vpop.f32.mrb[122].mxu1  ;;  %vm8212_vm8 = vcmp.ne.s32.totalorder %v8147_v58, 0  ;;  %v20752_v31 = vpop.xlane.xlu1 %9112 }
 0x4c3   : > { %v10928_v42 = vmax.f32 %v9369_v16, %v10888_v17  ;;  %9320 = vmax.xlane.f32.xlu0 %v8831_v40  ;;  %v23398_v40 = vld [vmem:[#allocation98_spill] sm:$0xff]  ;;  %v20611_v48 = vpop.f32.mrb[123].mxu1  ;;  %v23400_v16 = vld [vmem:[#allocation133_spill] sm:$0xff]  ;;  %v23403_v13 = vsel %vm23366_vm9, %v23402_v28, -1e+30  ;;  %v8149_v56 = vcombine.high %v20406_v27, %v20406_v27  ;;  %v8276_v19 = vsel %vm8212_vm8, 1, %v22208_v45 }
 0x4c4   : > { %v23399_v47 = vsel %vm23267_vm7, %v23398_v40, -1e+30  ;;  %v23401_v52 = vsel %vm23271_vm14, %v23400_v16, -1e+30  ;;  %v8843_v20 = vsel %vm20588_vm10, %v20611_v48, -1e+30  ;;  %vm23406_vm14 = vnez %v23231_v4 }
 0x4c5   : > { %10936 = vst.msk [vmem:[#allocation2 + $0x18] sm:$0xff] %vm23395_vm13, %v10928_v42  ;;  %9180 = vmax.xlane.f32.xlu1 %v23399_v47  ;;  %v23405_v17 = vsel %vm19522_vm2, %v19203_v25, -1e+30  ;;  %v8529_v42 = vrot.slane %v8276_v19, %v22078_v50  ;;  %vm8213_vm7 = vcmp.ne.s32.totalorder %v8149_v56, 0  ;;  %v23407_v46 = vsel %vm23406_vm14, %v19851_v22, -1e+30 }
 0x4c6   : > { %v8277_v27 = vsel %vm8213_vm7, 1, %v22208_v45  ;;  %v23411_v25 = vld [vmem:[#allocation132_spill] sm:$0xff]  ;;  %v23413_v22 = vld [vmem:[#allocation135_spill] sm:$0xff]  ;;  %v23415_v56 = vld [vmem:[#allocation37_spill] sm:$0xff] }
 0x4c7   : > { %9188 = vmax.xlane.f32.xlu0 %v23401_v52  ;;  %vm20643_vm0 = vcmp.eq.s32.totalorder %v8529_v42, 1  ;;  %v23412_v58 = vsel %vm23410_vm4, %v23411_v25, -1e+30  ;;  %v23414_v47 = vsel %vm19962_vm3, %v23413_v22, -1e+30  ;;  %v8533_v57 = vrot.slane %v8277_v27, %v22078_v50  ;;  %v23417_v19 = vld [vmem:[#allocation134_spill] sm:$0xff] }
 0x4c8   : > { %vm23416_vm6 = vnez %v23415_v56  ;;  %v23421_v50 = vld [vmem:[#allocation4_spill] sm:$0xff]  ;;  %v23481_v27 = vld [vmem:[#allocation94_spill] sm:$0xff]  ;;  %v23483_v52 = vld [vmem:[#allocation121_spill] sm:$0xff]  ;;  %vm23518_vm4 = vcmask 130112  }
 0x4c9   : > { %9194 = vmax.xlane.f32.xlu1 %v23403_v13  ;;  %vm20680_vm13 = vcmp.eq.s32.totalorder %v8533_v57, 1  ;;  %v23485_v56 = vld [vmem:[#allocation49_spill] sm:$0xff]  ;;  %v23492_v24 = vld [vmem:[#allocation114_spill] sm:$0xff]  ;;  %vm23523_vm11 = vmmov %vm23518_vm4 }
 0x4ca   : > { %vm23493_vm12 = vnez %v23492_v24  ;;  %v23569_v24 = vld [vmem:[#allocation97_spill] sm:$0xff] }
 0x4cb   : > { %9198 = vmax.xlane.f32.xlu0 %v23404_v51  ;;  %v23418_v51 = vsel %vm23416_vm6, %v23417_v19, -1e+30 }
 0x4cd   : > { %9200 = vmax.xlane.f32.xlu1 %v23405_v17  ;;  %v20641_v15 = vpop.f32.mrb[124].mxu0 }
 0x4ce   : > { %v20654_v40 = vpop.f32.mrb[125].mxu0 }
 0x4cf   : > { %9244 = vmax.xlane.f32.xlu0 %v23407_v46  ;;  %v8846_v45 = vsel %vm20643_vm0, %v20654_v40, -1e+30  ;;  %v20663_v16 = vpop.f32.mrb[126].mxu0  ;;  %v23422_v46 = vsel %vm23416_vm6, %v23421_v50, -1e+30  ;;  %v23521_v40 = vld [vmem:[#allocation14_spill] sm:$0xff] }
 0x4d0   : > { %v20669_v28 = vpop.f32.mrb[127].mxu0 }
 0x4d1   : > { %9252 = vmax.xlane.f32.xlu1 %v23412_v58  ;;  %v8847_v13 = vsel %vm20643_vm0, %v20669_v28, -1e+30 }
 0x4d3   : > { %9258 = vmax.xlane.f32.xlu0 %v23414_v47  ;;  %v23423_v47 = vld [vmem:[#allocation129_spill] sm:$0xff] }
 0x4d4   : > { %v20678_v17 = vpop.f32.mrb[124].mxu1  ;;  %v23424_v57 = vsel %vm20298_vm15, %v23423_v47, -1e+30  ;;  %vm23427_vm15 = vnez %v23426_v60  ;;  %v23430_v47 = vld [vmem:[#allocation80_spill] sm:$0xff]  ;;  %v23496_v60 = vld [vmem:[#allocation91_spill] sm:$0xff] }
 0x4d5   : > { %9262 = vmax.xlane.f32.xlu1 %v23418_v51  ;;  %v20691_v25 = vpop.f32.mrb[125].mxu1  ;;  %v23431_v30 = vsel %vm23427_vm15, %v23430_v47, -1e+30  ;;  %v20750_v47 = vpop.xlane.xlu0 %9110 }
 0x4d6   : > { %v20696_v22 = vpop.f32.mrb[126].mxu1 }
 0x4d7   : > { %9264 = vmax.xlane.f32.xlu0 %v23422_v46  ;;  %v20705_v51 = vpop.f32.mrb[127].mxu1  ;;  %v23425_v46 = vsel %vm20342_vm5, %v20358_v26, -1e+30  ;;  %v23429_v26 = vsel %vm23427_vm15, %v23428_v55, -1e+30  ;;  %v23440_v55 = vld [vmem:[#allocation9_spill] sm:$0xff] }
 0x4d9   : > { %9308 = vmax.xlane.f32.xlu1 %v23424_v57  ;;  %v23438_v57 = vld [vmem:[#allocation45_spill] sm:$0xff] }
 0x4db   : > { %9316 = vmax.xlane.f32.xlu0 %v23425_v46 }
 0x4dd   : > { %9322 = vmax.xlane.f32.xlu1 %v8832_v29  ;;  %v23432_v29 = vld [vmem:[#allocation31_spill] sm:$0xff] }
 0x4de   : > { %v23433_v44 = vsel %vm23366_vm9, %v23432_v29, -1e+30 }
 0x4df   : > { %9326 = vmax.xlane.f32.xlu0 %v8834_v2  ;;  %v23434_v2 = vld [vmem:[#allocation113_spill] sm:$0xff] }
 0x4e0   : > { %v23435_v32 = vsel %vm19522_vm2, %v23434_v2, -1e+30 }
 0x4e1   : > { %9328 = vmax.xlane.f32.xlu1 %v8835_v41  ;;  %v23436_v41 = vld [vmem:[#allocation124_spill] sm:$0xff] }
 0x4e2   : > { %vm23437_vm5 = vnez %v23436_v41  ;;  %v23506_v41 = vld [vmem:[#allocation125_spill] sm:$0xff] }
 0x4e3   : > { %9142 = vmax.xlane.f32.xlu0 %v23429_v26  ;;  %v23439_v46 = vsel %vm23437_vm5, %v23438_v57, -1e+30  ;;  %v23441_v26 = vsel %vm23437_vm5, %v23440_v55, -1e+30  ;;  %v23448_v57 = vld [vmem:[#allocation88_spill] sm:$0xff]  ;;  %v20766_v55 = vpop.xlane.xlu0 %9114 }
 0x4e5   : > { %9144 = vmax.xlane.f32.xlu1 %v23431_v30  ;;  %v23442_v30 = vld [vmem:[#allocation32_spill] sm:$0xff] }
 0x4e6   : > { %v23443_v29 = vsel %vm19962_vm3, %v23442_v30, -1e+30  ;;  %vm23453_vm3 = vnez %v23452_v8 }
 0x4e7   : > { %9196 = vmax.xlane.f32.xlu0 %v23433_v44  ;;  %v23444_v44 = vld [vmem:[#allocation3_spill] sm:$0xff]  ;;  %v20782_v30 = vpop.xlane.xlu0 %9118 }
 0x4e8   : > { %v23445_v2 = vsel %vm23416_vm6, %v23444_v44, -1e+30 }
 0x4e9   : > { %9202 = vmax.xlane.f32.xlu1 %v23435_v32  ;;  %v23446_v32 = vld [vmem:[#allocation33_spill] sm:$0xff] }
 0x4ea   : > { %vm23447_vm9 = vnez %v23446_v32  ;;  %v23516_v32 = vld [vmem:[#allocation39_spill] sm:$0xff] }
 0x4eb   : > { %9206 = vmax.xlane.f32.xlu0 %v23439_v46  ;;  %v23449_v46 = vsel %vm23447_vm9, %v23448_v57, -1e+30  ;;  %v23451_v19 = vsel %vm23447_vm9, %v23450_v63, -1e+30  ;;  %v20798_v61 = vpop.xlane.xlu0 %9122  ;;  %v23465_v63 = vld [vmem:[#allocation48_spill] sm:$0xff] }
 0x4ec   : > { %v23466_v8 = vsel %vm19522_vm2, %v23465_v63, -1e+30  ;;  %v23477_v63 = vld [vmem:[#allocation18_spill] sm:$0xff]  ;;  %vm23482_vm2 = vnez %v23481_v27 }
 0x4ed   : > { %9208 = vmax.xlane.f32.xlu1 %v23441_v26  ;;  %v20768_v26 = vpop.xlane.xlu1 %9116  ;;  %v23484_v50 = vsel %vm23482_vm2, %v23483_v52, -1e+30 }
 0x4ef   : > { %9260 = vmax.xlane.f32.xlu0 %v23443_v29  ;;  %v20814_v57 = vpop.xlane.xlu0 %9126 }
 0x4f1   : > { %9266 = vmax.xlane.f32.xlu1 %v23445_v2  ;;  %v20784_v29 = vpop.xlane.xlu1 %9120 }
 0x4f3   : > { %9270 = vmax.xlane.f32.xlu0 %v23449_v46 }
 0x4f5   : > { %9272 = vmax.xlane.f32.xlu1 %v23451_v19  ;;  %v23457_v19 = vld [vmem:[#allocation81_spill] sm:$0xff] }
 0x4f6   : > { %v23458_v44 = vsel %vm23427_vm15, %v23457_v19, -1e+30  ;;  %v23469_v19 = vld [vmem:[#allocation128_spill] sm:$0xff] }
 0x4f7   : > { %9324 = vmax.xlane.f32.xlu0 %v8833_v53  ;;  %v23455_v53 = vsel %vm23453_vm3, %v23454_v12, -1e+30  ;;  %v23467_v12 = vld [vmem:[#allocation30_spill] sm:$0xff]  ;;  %vm23470_vm8 = vnez %v23469_v19  ;;  %vm23549_vm3 = vcmask 195712  }
 0x4f8   : > { %v23538_v19 = vld [vmem:[#allocation130_spill] sm:$0xff] }
 0x4f9   : > { %9330 = vmax.xlane.f32.xlu1 %v8836_v36  ;;  %v20800_v36 = vpop.xlane.xlu1 %9124 }
 0x4fa   : > { %23456 = vst [vmem:[#allocation43_spill] sm:$0xff] %v20800_v36 }
 0x4fb   : > { %9334 = vmax.xlane.f32.xlu0 %v8838_v62  ;;  %v23461_v62 = vld [vmem:[#allocation85_spill] sm:$0xff] }
 0x4fc   : > { %v23462_v2 = vsel %vm23460_vm1, %v23461_v62, -1e+30 }
 0x4fd   : > { %9336 = vmax.xlane.f32.xlu1 %v8839_v9  ;;  %v23464_v9 = vsel %vm23460_vm1, %v23463_v34, -1e+30  ;;  %v20816_v46 = vpop.xlane.xlu1 %9128 }
 0x4ff   : > { %9140 = vmax.xlane.f32.xlu0 %v23455_v53  ;;  %v23468_v53 = vsel %vm23437_vm5, %v23467_v12, -1e+30  ;;  %v23479_v12 = vld [vmem:[#allocation12_spill] sm:$0xff] }
 0x501   : > { %9146 = vmax.xlane.f32.xlu1 %v23458_v44  ;;  %v23471_v44 = vld [vmem:[#allocation55_spill] sm:$0xff]  ;;  %v20832_v34 = vpop.xlane.xlu1 %9132 }
 0x502   : > { %v23472_v62 = vsel %vm23470_vm8, %v23471_v44, -1e+30  ;;  %23474 = vst [vmem:[#allocation24_spill] sm:$0xff] %v20832_v34 }
 0x503   : > { %9150 = vmax.xlane.f32.xlu0 %v23462_v2  ;;  %v20830_v2 = vpop.xlane.xlu0 %9130 }
 0x504   : > { %23473 = vst [vmem:[#allocation78_spill] sm:$0xff] %v20830_v2  ;;  %v23547_v2 = vld [vmem:[#allocation21_spill] sm:$0xff] }
 0x505   : > { %9152 = vmax.xlane.f32.xlu1 %v23464_v9  ;;  %v23476_v9 = vsel %vm23470_vm8, %v23475_v49, -1e+30  ;;  %v23486_v49 = vsel %vm23482_vm2, %v23485_v56, -1e+30  ;;  %v23500_v56 = vld [vmem:[#allocation25_spill] sm:$0xff] }
 0x507   : > { %9204 = vmax.xlane.f32.xlu0 %v23466_v8  ;;  %v23478_v8 = vsel %vm23416_vm6, %v23477_v63, -1e+30  ;;  %v20846_v44 = vpop.xlane.xlu0 %9134 }
 0x509   : > { %9210 = vmax.xlane.f32.xlu1 %v23468_v53  ;;  %v23480_v53 = vsel %vm23447_vm9, %v23479_v12, -1e+30  ;;  %v23498_v12 = vld [vmem:[#allocation119_spill] sm:$0xff] }
 0x50b   : > { %9214 = vmax.xlane.f32.xlu0 %v23472_v62  ;;  %v20848_v62 = vpop.xlane.xlu1 %9136 }
 0x50d   : > { %9216 = vmax.xlane.f32.xlu1 %v23476_v9  ;;  %v20862_v9 = vpop.xlane.xlu0 %9138 }
 0x50e   : > { %23487 = vst [vmem:[#allocation23_spill] sm:$0xff] %v20862_v9 }
 0x50f   : > { %9268 = vmax.xlane.f32.xlu0 %v23478_v8  ;;  %v20864_v63 = vpop.xlane.xlu1 %9174  ;;  %v23497_v8 = vsel %vm23493_vm12, %v23496_v60, -1e+30  ;;  %v23508_v60 = vld [vmem:[#allocation17_spill] sm:$0xff] }
 0x511   : > { %9274 = vmax.xlane.f32.xlu1 %v23480_v53  ;;  %v20878_v39 = vpop.xlane.xlu0 %9176  ;;  %v23499_v53 = vsel %vm23437_vm5, %v23498_v12, -1e+30  ;;  %vm23544_vm5 = vmmov %vm23518_vm4 }
 0x512   : > { %v10405_v14 = vrot.slane %v20878_v39, %v19090_v54 }
 0x513   : > { %9278 = vmax.xlane.f32.xlu0 %v23484_v50  ;;  %v20880_v11 = vpop.xlane.xlu1 %9182 }
 0x515   : > { %9280 = vmax.xlane.f32.xlu1 %v23486_v49  ;;  %v20894_v48 = vpop.xlane.xlu0 %9184  ;;  %v23501_v49 = vsel %vm23470_vm8, %v23500_v56, -1e+30  ;;  %v23510_v56 = vld [vmem:[#allocation35_spill] sm:$0xff] }
 0x517   : > { %9332 = vmax.xlane.f32.xlu0 %v8837_v10  ;;  %v23488_v10 = vld [vmem:[#allocation84_spill] sm:$0xff] }
 0x518   : > { %v23489_v52 = vsel %vm23427_vm15, %v23488_v10, -1e+30 }
 0x519   : > { %9338 = vmax.xlane.f32.xlu1 %v8840_v6  ;;  %v23491_v6 = vsel %vm23460_vm1, %v23490_v0, -1e+30  ;;  %v20910_v10 = vpop.xlane.xlu0 %9240  ;;  %v23502_v0 = vld [vmem:[#allocation61_spill] sm:$0xff] }
 0x51a   : > { %vm23503_vm7 = vnez %v23502_v0 }
 0x51b   : > { %9342 = vmax.xlane.f32.xlu0 %v8842_v1  ;;  %v23494_v1 = vld [vmem:[#allocation89_spill] sm:$0xff] }
 0x51c   : > { %v23495_v50 = vsel %vm23493_vm12, %v23494_v1, -1e+30 }
 0x51d   : > { %9344 = vmax.xlane.f32.xlu1 %v8843_v20  ;;  %v20896_v20 = vpop.xlane.xlu1 %9238  ;;  %v20926_v12 = vpop.xlane.xlu0 %9248 }
 0x51f   : > { %9148 = vmax.xlane.f32.xlu0 %v23489_v52 }
 0x521   : > { %9154 = vmax.xlane.f32.xlu1 %v23491_v6  ;;  %v20912_v52 = vpop.xlane.xlu1 %9246  ;;  %v23504_v6 = vld [vmem:[#allocation126_spill] sm:$0xff] }
 0x522   : > { %v23505_v1 = vsel %vm23503_vm7, %v23504_v6, -1e+30  ;;  %v23512_v6 = vld [vmem:[#allocation123_spill] sm:$0xff]  ;;  %v10572_v59 = vrot.slane %v20912_v52, %v19047_v5  ;;  %v23560_v52 = vsel %vm20680_vm13, %v20705_v51, -1e+30 }
 0x523   : > { %9158 = vmax.xlane.f32.xlu0 %v23495_v50  ;;  %v23507_v50 = vsel %vm23503_vm7, %v23506_v41, -1e+30  ;;  %vm23513_vm14 = vnez %v23512_v6  ;;  %v20938_v41 = vpop.xlane.xlu0 %9304 }
 0x525   : > { %9160 = vmax.xlane.f32.xlu1 %v23497_v8  ;;  %v23509_v8 = vsel %vm23447_vm9, %v23508_v60, -1e+30 }
 0x527   : > { %9212 = vmax.xlane.f32.xlu0 %v23499_v53  ;;  %v20928_v53 = vpop.xlane.xlu1 %9302 }
 0x529   : > { %9218 = vmax.xlane.f32.xlu1 %v23501_v49  ;;  %v23511_v49 = vsel %vm23482_vm2, %v23510_v56, -1e+30 }
 0x52b   : > { %9222 = vmax.xlane.f32.xlu0 %v23505_v1  ;;  %v23514_v1 = vld [vmem:[#allocation46_spill] sm:$0xff] }
 0x52c   : > { %v23515_v58 = vsel %vm23513_vm14, %v23514_v1, -1e+30 }
 0x52d   : > { %9224 = vmax.xlane.f32.xlu1 %v23507_v50  ;;  %v23517_v50 = vsel %vm23513_vm14, %v23516_v32, -1e+30 }
 0x52e   : > { %v9311_v60 = vpop.xlane.xlu1 %9310 }
 0x52f   : > { %9276 = vmax.xlane.f32.xlu0 %v23509_v8  ;;  %v10724_v8 = vrot.slane %v9311_v60, %v19047_v5 }
 0x531   : > { %9282 = vmax.xlane.f32.xlu1 %v23511_v49  ;;  %v9313_v56 = vpop.xlane.xlu0 %9312 }
 0x532   : > { %v10728_v49 = vrot.slane %v9313_v56, %v19090_v54 }
 0x533   : > { %9286 = vmax.xlane.f32.xlu0 %v23515_v58  ;;  %v9179_v58 = vpop.xlane.xlu1 %9178 }
 0x534   : > { %v20955_v1 = vsel %vm23518_vm4, %v10728_v49, %v10724_v8  ;;  %v23528_v49 = vld [vmem:[#allocation64_spill] sm:$0xff] }
 0x535   : > { %9288 = vmax.xlane.f32.xlu1 %v23517_v50  ;;  %v9187_v7 = vpop.xlane.xlu0 %9186 }
 0x536   : > { %v10429_v27 = vrot.slane %v9187_v7, %v19155_v35 }
 0x537   : > { %9340 = vmax.xlane.f32.xlu0 %v8841_v3  ;;  %v9191_v23 = vpop.xlane.xlu1 %9190  ;;  %v23519_v3 = vld [vmem:[#allocation117_spill] sm:$0xff] }
 0x538   : > { %v23520_v43 = vsel %vm23460_vm1, %v23519_v3, -1e+30  ;;  %vm23550_vm1 = vmmov %vm23518_vm4 }
 0x539   : > { %9346 = vmax.xlane.f32.xlu1 %v8844_v38  ;;  %v10439_v38 = vrot.slane %v9191_v23, %v19047_v5  ;;  %v9193_v32 = vpop.xlane.xlu0 %9192 }
 0x53a   : > { %v10443_v50 = vrot.slane %v9193_v32, %v19090_v54 }
 0x53b   : > { %9350 = vmax.xlane.f32.xlu0 %v8846_v45  ;;  %v23522_v45 = vsel %vm23493_vm12, %v23521_v40, -1e+30  ;;  %v9243_v60 = vpop.xlane.xlu1 %9242 }
 0x53c   : > { %v20976_v28 = vsel %vm23523_vm11, %v10443_v50, %v10439_v38  ;;  %v23532_v38 = vld [vmem:[#allocation60_spill] sm:$0xff]  ;;  %vm23557_vm11 = vcmask 1041409  }
 0x53d   : > { %9352 = vmax.xlane.f32.xlu1 %v8847_v13  ;;  %v23524_v13 = vld [vmem:[#allocation118_spill] sm:$0xff]  ;;  %v9251_v56 = vpop.xlane.xlu0 %9250  ;;  %v23533_v50 = vsel %vm23503_vm7, %v23532_v38, -1e+30  ;;  %v23540_v38 = vld [vmem:[#allocation116_spill] sm:$0xff] }
 0x53e   : > { %vm23525_vm6 = vnez %v23524_v13  ;;  %v23595_v13 = vld [vmem:[#allocation26_spill] sm:$0xff] }
 0x53f   : > { %9156 = vmax.xlane.f32.xlu0 %v23520_v43  ;;  %v23527_v8 = vsel %vm23525_vm6, %v23526_v33, -1e+30  ;;  %v23529_v23 = vsel %vm23525_vm6, %v23528_v49, -1e+30  ;;  %v23530_v43 = vld [vmem:[#allocation122_spill] sm:$0xff]  ;;  %v23534_v33 = vld [vmem:[#allocation36_spill] sm:$0xff] }
 0x540   : > { %v23531_v32 = vsel %vm23470_vm8, %v23530_v43, -1e+30  ;;  %vm23535_vm15 = vnez %v23534_v33  ;;  %vm23551_vm8 = vcmask 261312  }
 0x541   : > { %9162 = vmax.xlane.f32.xlu1 %v23522_v45  ;;  %vm23555_vm4 = vmmov %vm23551_vm8 }
 0x543   : > { %9166 = vmax.xlane.f32.xlu0 %v23527_v8  ;;  %v9255_v3 = vpop.xlane.xlu1 %9254  ;;  %v23536_v8 = vld [vmem:[#allocation38_spill] sm:$0xff] }
 0x544   : > { %v23537_v4 = vsel %vm23535_vm15, %v23536_v8, -1e+30  ;;  %v10410_v8 = vrot.slane %v9179_v58, %v19155_v35 }
 0x545   : > { %9168 = vmax.xlane.f32.xlu1 %v23529_v23  ;;  %v9257_v40 = vpop.xlane.xlu0 %9256  ;;  %v23539_v23 = vsel %vm23535_vm15, %v23538_v19, -1e+30  ;;  %v10420_v19 = vrot.slane %v20880_v11, %v19047_v5 }
 0x546   : > { %v10595_v51 = vrot.slane %v9257_v40, %v19090_v54  ;;  %v10705_v40 = vrot.slane %v20928_v53, %v19047_v5  ;;  %v23576_v53 = vld [vmem:[#allocation131_spill] sm:$0xff] }
 0x547   : > { %9220 = vmax.xlane.f32.xlu0 %v23531_v32  ;;  %v20994_v45 = vpop.xlane.xlu1 %9306  ;;  %v10401_v32 = vrot.slane %v20864_v63, %v19047_v5 }
 0x549   : > { %9226 = vmax.xlane.f32.xlu1 %v23533_v50  ;;  %v23541_v50 = vsel %vm23482_vm2, %v23540_v38, -1e+30  ;;  %v10424_v38 = vrot.slane %v20894_v48, %v19090_v54  ;;  %v10406_v58 = vsel %vm23544_vm5, %v10405_v14, %v10401_v32  ;;  %v23552_v48 = vld [vmem:[#allocation44_spill] sm:$0xff]  ;;  %vm23554_vm2 = vmmov %vm23549_vm3 }
 0x54a   : > { %v10411_v34 = vsel %vm23549_vm3, %v10410_v8, %v10406_v58  ;;  %v23556_v8 = vsel %vm20588_vm10, %v20602_v18, -1e+30  ;;  %v23559_v18 = vsel %vm20680_vm13, %v20691_v25, -1e+30  ;;  %v10581_v58 = vrot.slane %v9251_v56, %v19155_v35  ;;  %vm23561_vm10 = vmmov %vm23550_vm1 }
 0x54b   : > { %9230 = vmax.xlane.f32.xlu0 %v23537_v4  ;;  %v21006_v43 = vpop.xlane.xlu1 %9318  ;;  %v10591_v25 = vrot.slane %v9255_v3, %v19047_v5  ;;  %vm23562_vm5 = vmmov %vm23550_vm1 }
 0x54c   : > { %v21000_v49 = vpop.xlane.xlu0 %9314  ;;  %vm23565_vm3 = vmmov %vm23554_vm2 }
 0x54d   : > { %9232 = vmax.xlane.f32.xlu1 %v23539_v23  ;;  %v23542_v23 = vld [vmem:[#allocation47_spill] sm:$0xff]  ;;  %v10733_v0 = vrot.slane %v21000_v49, %v19155_v35 }
 0x54e   : > { %v23543_v9 = vsel %vm23513_vm14, %v23542_v23, -1e+30  ;;  %v23584_v49 = vld [vmem:[#allocation87_spill] sm:$0xff] }
 0x54f   : > { %9284 = vmax.xlane.f32.xlu0 %v23541_v50  ;;  %v23545_v50 = vld [vmem:[#allocation50_spill] sm:$0xff] }
 0x550   : > { %v21015_v4 = vpop.xlane.xlu0 %9320  ;;  %vm23546_vm9 = vnez %v23545_v50 }
 0x551   : > { %9290 = vmax.xlane.f32.xlu1 %v23543_v9  ;;  %v23548_v39 = vsel %vm23546_vm9, %v23547_v2, -1e+30  ;;  %v10425_v9 = vsel %vm23550_vm1, %v10424_v38, %v10420_v19  ;;  %v23553_v14 = vsel %vm23546_vm9, %v23552_v48, -1e+30  ;;  %v23558_v19 = vsel %vm20643_vm0, %v20641_v15, -1e+30  ;;  %vm23566_vm1 = vmmov %vm23554_vm2 }
 0x552   : > { %v9181_v63 = vpop.xlane.xlu1 %9180  ;;  %v10430_v32 = vsel %vm23554_vm2, %v10429_v27, %v10425_v9  ;;  %v10553_v38 = vrot.slane %v20896_v20, %v19047_v5  ;;  %v10557_v15 = vrot.slane %v20910_v10, %v19090_v54  ;;  %v10576_v9 = vrot.slane %v20926_v12, %v19090_v54  ;;  %v23563_v10 = vld [vmem:[#allocation92_spill] sm:$0xff]  ;;  %vm23568_vm2 = vmmov %vm23555_vm4 }
 0x553   : > { %9294 = vmax.xlane.f32.xlu0 %v23548_v39  ;;  %v10415_v11 = vrot.slane %v9181_v63, %v19225_v21  ;;  %v10562_v39 = vrot.slane %v9243_v60, %v19155_v35  ;;  %v10734_v6 = vsel %vm23566_vm1, %v10733_v0, %v20955_v1 }
 0x554   : > { %v9189_v36 = vpop.xlane.xlu0 %9188  ;;  %v10558_v56 = vsel %vm23561_vm10, %v10557_v15, %v10553_v38  ;;  %v10577_v60 = vsel %vm23562_vm5, %v10576_v9, %v10572_v59  ;;  %v10714_v9 = vrot.slane %v20994_v45, %v19155_v35  ;;  %vm23579_vm10 = vmmov %vm23562_vm5  ;;  %v23580_v45 = vld [vmem:[#allocation99_spill] sm:$0xff] }
 0x555   : > { %v10434_v7 = vrot.slane %v9189_v36, %v19225_v21  ;;  %v10416_v23 = vsel %vm23551_vm8, %v10415_v11, %v10411_v34  ;;  %9296 = vmax.xlane.f32.xlu1 %v23553_v14  ;;  %v10582_v48 = vsel %vm23565_vm3, %v10581_v58, %v10577_v60  ;;  %v10563_v14 = vsel %vm23566_vm1, %v10562_v39, %v10558_v56  ;;  %vm23567_vm8 = vmmov %vm23555_vm4  ;;  %v23574_v39 = vld [vmem:[#allocation11_spill] sm:$0xff] }
 0x556   : > { %v21043_v2 = vpop.xlane.xlu1 %9194  ;;  %vm23583_vm3 = vmmov %vm23568_vm2 }
 0x557   : > { %v10435_v63 = vsel %vm23555_vm4, %v10434_v7, %v10430_v32  ;;  %9348 = vmax.xlane.f32.xlu0 %v23556_v8  ;;  %vm23572_vm4 = vmmov %vm23557_vm11 }
 0x558   : > { %v21051_v36 = vsel %vm23557_vm11, %v10435_v63, %v10416_v23  ;;  %v21053_v34 = vpop.xlane.xlu0 %9198  ;;  %v23564_v23 = vsel %vm23493_vm12, %v23563_v10, -1e+30  ;;  %vm23571_vm12 = vmmov %vm23562_vm5 }
 0x559   : > { %9354 = vmax.xlane.f32.xlu1 %v23558_v19  ;;  %v23570_v19 = vsel %vm23525_vm6, %v23569_v24, -1e+30  ;;  %v10596_v38 = vsel %vm23571_vm12, %v10595_v51, %v10591_v25  ;;  %vm23573_vm11 = vmmov %vm23566_vm1  ;;  %vm23601_vm12 = vcmask 1042434  }
 0x55a   : > { %v21059_v27 = vpop.xlane.xlu1 %9200 }
 0x55b   : > { %9358 = vmax.xlane.f32.xlu0 %v23559_v18 }
 0x55c   : > { %v9245_v11 = vpop.xlane.xlu0 %9244 }
 0x55d   : > { %v10567_v20 = vrot.slane %v9245_v11, %v19225_v21  ;;  %9360 = vmax.xlane.f32.xlu1 %v23560_v52  ;;  %v23575_v11 = vsel %vm23503_vm7, %v23574_v39, -1e+30  ;;  %v10709_v52 = vrot.slane %v20938_v41, %v19090_v54  ;;  %vm23578_vm7 = vmmov %vm23562_vm5 }
 0x55e   : > { %v9253_v7 = vpop.xlane.xlu1 %9252  ;;  %vm23582_vm5 = vmmov %vm23566_vm1 }
 0x55f   : > { %9164 = vmax.xlane.f32.xlu0 %v23564_v23  ;;  %v10586_v12 = vrot.slane %v9253_v7, %v19225_v21  ;;  %v10568_v3 = vsel %vm23567_vm8, %v10567_v20, %v10563_v14  ;;  %v23577_v7 = vsel %vm23535_vm15, %v23576_v53, -1e+30  ;;  %v10710_v60 = vsel %vm23578_vm7, %v10709_v52, %v10705_v40  ;;  %vm23588_vm8 = vmmov %vm23572_vm4  ;;  %v23590_v40 = vld [vmem:[#allocation96_spill] sm:$0xff] }
 0x560   : > { %v9259_v32 = vpop.xlane.xlu0 %9258  ;;  %v23581_v23 = vsel %vm23513_vm14, %v23580_v45, -1e+30  ;;  %vm23586_vm14 = vmmov %vm23568_vm2  ;;  %v23591_v39 = vsel %vm23525_vm6, %v23590_v40, -1e+30 }
 0x561   : > { %v10600_v63 = vrot.slane %v9259_v32, %v19155_v35  ;;  %v10587_v8 = vsel %vm23568_vm2, %v10586_v12, %v10582_v48  ;;  %9170 = vmax.xlane.f32.xlu1 %v23570_v19  ;;  %v10715_v12 = vsel %vm23582_vm5, %v10714_v9, %v10710_v60  ;;  %v23585_v32 = vsel %vm23546_vm9, %v23584_v49, -1e+30  ;;  %v21180_v60 = vld [vmem:[#allocation2 + $0x8] sm:$0xff]  ;;  %vm23607_vm5 = vmmov %vm23601_vm12 }
 0x562   : > { %v21100_v59 = vsel %vm23572_vm4, %v10587_v8, %v10568_v3  ;;  %v9263_v18 = vpop.xlane.xlu1 %9262  ;;  %v23587_v8 = vsel %vm20643_vm0, %v20663_v16, -1e+30  ;;  %vm23592_vm0 = vmmov %vm23578_vm7 }
 0x563   : > { %v21105_v58 = vsel %vm23573_vm11, %v10600_v63, %v10596_v38  ;;  %9228 = vmax.xlane.f32.xlu0 %v23575_v11  ;;  %v10610_v15 = vrot.slane %v9263_v18, %v19047_v5  ;;  %v23589_v38 = vsel %vm20680_vm13, %v20678_v17, -1e+30  ;;  %v10448_v17 = vrot.slane %v21043_v2, %v19155_v35  ;;  %vm23597_vm6 = vmmov %vm23592_vm0 }
 0x564   : > { %v9265_v20 = vpop.xlane.xlu0 %9264  ;;  %v23598_v2 = vsel %vm20680_vm13, %v20696_v22, -1e+30  ;;  %vm23605_vm7 = vmmov %vm23592_vm0 }
 0x565   : > { %v10614_v25 = vrot.slane %v9265_v20, %v19090_v54  ;;  %9234 = vmax.xlane.f32.xlu1 %v23577_v7  ;;  %v21172_v7 = vld [vmem:[#allocation2] sm:$0xff] }
 0x566   : > { %v9309_v56 = vpop.xlane.xlu1 %9308 }
 0x567   : > { %v10615_v10 = vsel %vm23579_vm10, %v10614_v25, %v10610_v15  ;;  %9292 = vmax.xlane.f32.xlu0 %v23581_v23  ;;  %v10719_v41 = vrot.slane %v9309_v56, %v19225_v21  ;;  %v23593_v15 = vld [vmem:[#allocation127_spill] sm:$0xff]  ;;  %v23596_v25 = vsel %vm23546_vm9, %v23595_v13, -1e+30  ;;  %vm23600_vm9 = vcmask 261120   ;;  %vm23606_vm10 = vmmov %vm23568_vm2 }
 0x568   : > { %v9317_v48 = vpop.xlane.xlu0 %9316  ;;  %v23594_v9 = vsel %vm23535_vm15, %v23593_v15, -1e+30  ;;  %vm23599_vm15 = vmmov %vm23566_vm1  ;;  %v10952_v45 = vsel %vm23600_vm9, %v21172_v7, -inf }
 0x569   : > { %v10738_v14 = vrot.slane %v9317_v48, %v19225_v21  ;;  %v10720_v51 = vsel %vm23583_vm3, %v10719_v41, %v10715_v12  ;;  %9298 = vmax.xlane.f32.xlu1 %v23585_v32  ;;  %v10449_v50 = vsel %vm23599_vm15, %v10448_v17, %v20976_v28  ;;  %v21189_v12 = vld [vmem:[#allocation2 + $0x10] sm:$0xff]  ;;  %vm23602_vm13 = vmmov %vm23600_vm9 }
 0x56a   : > { %v21139_v3 = vpop.xlane.xlu1 %9322  ;;  %v10955_v48 = vsel %vm23602_vm13, %v21180_v60, -inf  ;;  %vm23603_vm4 = vmmov %vm23600_vm9 }
 0x56b   : > { %v10739_v63 = vsel %vm23586_vm14, %v10738_v14, %v10734_v6  ;;  %9356 = vmax.xlane.f32.xlu0 %v23587_v8  ;;  %v21195_v14 = vld [vmem:[#allocation2 + $0x18] sm:$0xff]  ;;  %v10958_v28 = vsel %vm23603_vm4, %v21189_v12, -inf  ;;  %vm23604_vm11 = vmmov %vm23603_vm4 }
 0x56c   : > { %v21147_v24 = vsel %vm23588_vm8, %v10739_v63, %v10720_v51  ;;  %v9327_v19 = vpop.xlane.xlu0 %9326  ;;  %vm23608_vm3 = vmmov %vm23566_vm1 }
 0x56d   : > { %9362 = vmax.xlane.f32.xlu1 %v23589_v38  ;;  %v10762_v1 = vrot.slane %v9327_v19, %v19047_v5  ;;  %vm23609_vm1 = vmmov %vm23592_vm0 }
 0x56e   : > { %v9329_v18 = vpop.xlane.xlu1 %9328  ;;  %vm23610_vm14 = vmmov %vm23592_vm0 }
 0x56f   : > { %9172 = vmax.xlane.f32.xlu0 %v23591_v39  ;;  %v10766_v37 = vrot.slane %v9329_v18, %v19090_v54  ;;  %v10743_v39 = vrot.slane %v21006_v43, %v19047_v5  ;;  %vm23611_vm8 = vmmov %vm23608_vm3 }
 0x570   : > { %v9143_v16 = vpop.xlane.xlu0 %9142  ;;  %vm23614_vm15 = vmmov %vm23608_vm3 }
 0x571   : > { %v10767_v11 = vsel %vm23592_vm0, %v10766_v37, %v10762_v1  ;;  %9236 = vmax.xlane.f32.xlu1 %v23594_v9  ;;  %v10325_v52 = vrot.slane %v9143_v16, %v19047_v5  ;;  %v10752_v16 = vrot.slane %v21139_v3, %v19155_v35  ;;  %v10747_v9 = vrot.slane %v21015_v4, %v19090_v54  ;;  %vm23612_vm0 = vmmov %vm23568_vm2 }
 0x572   : > { %v9145_v20 = vpop.xlane.xlu1 %9144  ;;  %vm23615_vm9 = vmmov %vm23609_vm1 }
 0x573   : > { %9300 = vmax.xlane.f32.xlu0 %v23596_v25  ;;  %v10329_v53 = vrot.slane %v9145_v20, %v19090_v54  ;;  %vm23618_vm13 = vmmov %vm23609_vm1 }
 0x574   : > { %v9197_v0 = vpop.xlane.xlu0 %9196 }
 0x575   : > { %v10453_v33 = vrot.slane %v9197_v0, %v19225_v21  ;;  %v10330_v56 = vsel %vm23597_vm6, %v10329_v53, %v10325_v52  ;;  %9364 = vmax.xlane.f32.xlu1 %v23598_v2  ;;  %vm23613_vm6 = vmmov %vm23607_vm5 }
 0x576   : > { %v21186_v23 = vpop.xlane.xlu1 %9202 }
 0x577   : > { %v10454_v41 = vsel %vm23568_vm2, %v10453_v33, %v10449_v50  ;;  %10953 = vmax.xlane.f32.xlu0 %v10952_v45  ;;  %vm23616_vm2 = vmmov %vm23608_vm3 }
 0x578   : > { %v10897_v42 = vsel %vm23601_vm12, %v10454_v41, %v21051_v36  ;;  %v9207_v22 = vpop.xlane.xlu0 %9206  ;;  %v10961_v36 = vsel %vm23604_vm11, %v21195_v14, -inf  ;;  %vm23617_vm12 = vmmov %vm23609_vm1 }
 0x579   : > { %10956 = vmax.xlane.f32.xlu1 %v10955_v48  ;;  %v10477_v49 = vrot.slane %v9207_v22, %v19047_v5  ;;  %vm23619_vm4 = vmmov %vm23616_vm2 }
 0x57a   : > { %v9209_v51 = vpop.xlane.xlu1 %9208  ;;  %vm23620_vm11 = vmmov %vm23612_vm0 }
 0x57b   : > { %10959 = vmax.xlane.f32.xlu0 %v10958_v28  ;;  %v10481_v32 = vrot.slane %v9209_v51, %v19090_v54  ;;  %v10467_v51 = vrot.slane %v21186_v23, %v19155_v35 }
 0x57c   : > { %v9261_v6 = vpop.xlane.xlu0 %9260 }
 0x57d   : > { %v10605_v63 = vrot.slane %v9261_v6, %v19225_v21  ;;  %v10482_v8 = vsel %vm23605_vm7, %v10481_v32, %v10477_v49  ;;  %10962 = vmax.xlane.f32.xlu1 %v10961_v36  ;;  %v10458_v32 = vrot.slane %v21053_v34, %v19047_v5  ;;  %vm23621_vm7 = vcmask 1043459  }
 0x57e   : > { %v9267_v19 = vpop.xlane.xlu1 %9266 }
 0x57f   : > { %v10606_v38 = vsel %vm23606_vm10, %v10605_v63, %v21105_v58  ;;  %v10619_v18 = vrot.slane %v9267_v19, %v19155_v35  ;;  %vm23622_vm10 = vmmov %vm23616_vm2 }
 0x580   : > { %v10904_v1 = vsel %vm23607_vm5, %v10606_v38, %v21100_v59  ;;  %v9271_v40 = vpop.xlane.xlu0 %9270  ;;  %v10748_v59 = vsel %vm23609_vm1, %v10747_v9, %v10743_v39  ;;  %vm23623_vm5 = vmmov %vm23609_vm1 }
 0x581   : > { %v10620_v37 = vsel %vm23608_vm3, %v10619_v18, %v10615_v10  ;;  %v10629_v58 = vrot.slane %v9271_v40, %v19047_v5  ;;  %v10753_v10 = vsel %vm23611_vm8, %v10752_v16, %v10748_v59  ;;  %vm23624_vm3 = vmmov %vm23612_vm0 }
 0x582   : > { %v9273_v15 = vpop.xlane.xlu1 %9272  ;;  %vm23625_vm1 = vmmov %vm23621_vm7 }
 0x583   : > { %v10633_v17 = vrot.slane %v9273_v15, %v19090_v54  ;;  %vm23627_vm8 = vmmov %vm23623_vm5 }
 0x584   : > { %v9325_v20 = vpop.xlane.xlu0 %9324 }
 0x585   : > { %v10757_v52 = vrot.slane %v9325_v20, %v19225_v21  ;;  %v10634_v43 = vsel %vm23610_vm14, %v10633_v17, %v10629_v58  ;;  %vm23626_vm14 = vmmov %vm23616_vm2 }
 0x586   : > { %v9331_v13 = vpop.xlane.xlu1 %9330 }
 0x587   : > { %v10758_v3 = vsel %vm23612_vm0, %v10757_v52, %v10753_v10  ;;  %v10771_v25 = vrot.slane %v9331_v13, %v19155_v35  ;;  %vm23628_vm0 = vmmov %vm23623_vm5 }
 0x588   : > { %v21227_v4 = vsel %vm23613_vm6, %v10758_v3, %v21147_v24  ;;  %v9335_v53 = vpop.xlane.xlu0 %9334  ;;  %v10462_v24 = vrot.slane %v21059_v27, %v19090_v54  ;;  %v10253_v3 = vrot.slane %v20752_v31, %v19090_v54  ;;  %v10258_v31 = vrot.slane %v20766_v55, %v19155_v35  ;;  %vm23629_vm6 = vmmov %vm23628_vm0 }
 0x589   : > { %v21230_v0 = vsel %vm23614_vm15, %v10771_v25, %v10767_v11  ;;  %v10781_v2 = vrot.slane %v9335_v53, %v19047_v5  ;;  %v10272_v53 = vrot.slane %v20784_v29, %v19090_v54  ;;  %v10277_v29 = vrot.slane %v20798_v61, %v19155_v35  ;;  %vm23631_vm15 = vmmov %vm23628_vm0 }
 0x58a   : > { %v9337_v33 = vpop.xlane.xlu1 %9336  ;;  %v10463_v19 = vsel %vm23617_vm12, %v10462_v24, %v10458_v32  ;;  %v10263_v55 = vrot.slane %v20768_v26, %v19225_v21  ;;  %v10306_v61 = vrot.slane %v20846_v44, %v19047_v5  ;;  %v23634_v26 = vld [vmem:[#allocation78_spill] sm:$0xff]  ;;  %vm23636_vm12 = vmmov %vm23625_vm1 }
 0x58b   : > { %v10785_v50 = vrot.slane %v9337_v33, %v19090_v54 }
 0x58c   : > { %v21234_v45 = vpop.xlane.xlu0 %9140 }
 0x58d   : > { %v21237_v41 = vsel %vm23615_vm9, %v10785_v50, %v10781_v2  ;;  %v10249_v2 = vrot.slane %v20750_v47, %v19047_v5  ;;  %vm23633_vm9 = vmmov %vm23624_vm3  ;;  %v10320_v44 = vrot.slane %v21234_v45, %v19225_v21 }
 0x58e   : > { %v9147_v22 = vpop.xlane.xlu1 %9146 }
 0x58f   : > { %v10334_v48 = vrot.slane %v9147_v22, %v19155_v35  ;;  %v10310_v22 = vrot.slane %v20848_v62, %v19090_v54  ;;  %v23630_v62 = vld [vmem:[#allocation43_spill] sm:$0xff] }
 0x590   : > { %v9151_v28 = vpop.xlane.xlu0 %9150 }
 0x591   : > { %v21243_v11 = vsel %vm23616_vm2, %v10334_v48, %v10330_v56  ;;  %v10344_v6 = vrot.slane %v9151_v28, %v19047_v5  ;;  %v10468_v56 = vsel %vm23619_vm4, %v10467_v51, %v10463_v19  ;;  %v10254_v48 = vsel %vm23627_vm8, %v10253_v3, %v10249_v2  ;;  %vm23635_vm2 = vmmov %vm23628_vm0 }
 0x592   : > { %v9153_v49 = vpop.xlane.xlu1 %9152  ;;  %v10282_v51 = vrot.slane %v23630_v62, %v19225_v21  ;;  %v10296_v19 = vrot.slane %v23634_v26, %v19155_v35  ;;  %vm23646_vm8 = vcmask 1041409  }
 0x593   : > { %v10348_v36 = vrot.slane %v9153_v49, %v19090_v54 }
 0x594   : > { %v9205_v63 = vpop.xlane.xlu0 %9204 }
 0x595   : > { %v10472_v38 = vrot.slane %v9205_v63, %v19225_v21  ;;  %v21254_v27 = vsel %vm23618_vm13, %v10348_v36, %v10344_v6  ;;  %vm23637_vm13 = vmmov %vm23619_vm4 }
 0x596   : > { %v9211_v18 = vpop.xlane.xlu1 %9210 }
 0x597   : > { %v10473_v23 = vsel %vm23620_vm11, %v10472_v38, %v10468_v56  ;;  %v10486_v40 = vrot.slane %v9211_v18, %v19155_v35  ;;  %v10311_v38 = vsel %vm23635_vm2, %v10310_v22, %v10306_v61  ;;  %vm23639_vm11 = vmmov %vm23619_vm4  ;;  %vm23650_vm2 = vcmask 1044484  }
 0x598   : > { %v21260_v34 = vsel %vm23621_vm7, %v10473_v23, %v10897_v42  ;;  %v9215_v39 = vpop.xlane.xlu0 %9214  ;;  %vm23640_vm7 = vmmov %vm23624_vm3 }
 0x599   : > { %v21263_v16 = vsel %vm23622_vm10, %v10486_v40, %v10482_v8  ;;  %v10496_v9 = vrot.slane %v9215_v39, %v19047_v5  ;;  %v23638_v40 = vld [vmem:[#allocation23_spill] sm:$0xff]  ;;  %vm23641_vm10 = vmmov %vm23619_vm4 }
 0x59a   : > { %v9217_v15 = vpop.xlane.xlu1 %9216  ;;  %v10315_v39 = vrot.slane %v23638_v40, %v19155_v35 }
 0x59b   : > { %v10500_v58 = vrot.slane %v9217_v15, %v19090_v54  ;;  %v10259_v15 = vsel %vm23639_vm11, %v10258_v31, %v10254_v48  ;;  %vm23654_vm11 = vmmov %vm23650_vm2 }
 0x59c   : > { %v9269_v17 = vpop.xlane.xlu0 %9268 }
 0x59d   : > { %v10624_v20 = vrot.slane %v9269_v17, %v19225_v21  ;;  %v21269_v59 = vsel %vm23623_vm5, %v10500_v58, %v10496_v9  ;;  %vm23642_vm5 = vmmov %vm23624_vm3 }
 0x59e   : > { %v9275_v52 = vpop.xlane.xlu1 %9274 }
 0x59f   : > { %v10625_v10 = vsel %vm23624_vm3, %v10624_v20, %v10620_v37  ;;  %v10638_v42 = vrot.slane %v9275_v52, %v19155_v35  ;;  %v10291_v37 = vrot.slane %v20816_v46, %v19090_v54  ;;  %v10287_v46 = vrot.slane %v20814_v57, %v19047_v5  ;;  %v23632_v57 = vld [vmem:[#allocation24_spill] sm:$0xff]  ;;  %vm23643_vm3 = vmmov %vm23619_vm4 }
 0x5a0   : > { %v21274_v13 = vsel %vm23625_vm1, %v10625_v10, %v10904_v1  ;;  %v9279_v8 = vpop.xlane.xlu0 %9278  ;;  %v10301_v6 = vrot.slane %v23632_v57, %v19225_v21  ;;  %vm23644_vm1 = vmmov %vm23642_vm5 }
 0x5a1   : > { %v21279_v25 = vsel %vm23626_vm14, %v10638_v42, %v10634_v43  ;;  %v10648_v1 = vrot.slane %v9279_v8, %v19047_v5  ;;  %v10268_v43 = vrot.slane %v20782_v30, %v19047_v5  ;;  %v10292_v32 = vsel %vm23631_vm15, %v10291_v37, %v10287_v46  ;;  %vm23645_vm14 = vmmov %vm23644_vm1 }
 0x5a2   : > { %v9281_v33 = vpop.xlane.xlu1 %9280  ;;  %v10297_v58 = vsel %vm23641_vm10, %v10296_v19, %v10292_v32  ;;  %v10264_v10 = vsel %vm23644_vm1, %v10263_v55, %v10259_v15  ;;  %vm23648_vm15 = vmmov %vm23636_vm12 }
 0x5a3   : > { %v10652_v50 = vrot.slane %v9281_v33, %v19090_v54  ;;  %v10273_v30 = vsel %vm23629_vm6, %v10272_v53, %v10268_v43  ;;  %v10302_v45 = vsel %vm23642_vm5, %v10301_v6, %v10297_v58  ;;  %vm23647_vm6 = vcmask 1042434   ;;  %vm23656_vm10 = vmmov %vm23628_vm0 }
 0x5a4   : > { %v9333_v47 = vpop.xlane.xlu0 %9332  ;;  %v10278_v23 = vsel %vm23637_vm13, %v10277_v29, %v10273_v30  ;;  %vm23652_vm13 = vmmov %vm23628_vm0 }
 0x5a5   : > { %v10776_v28 = vrot.slane %v9333_v47, %v19225_v21  ;;  %v21302_v24 = vsel %vm23628_vm0, %v10652_v50, %v10648_v1  ;;  %v10283_v9 = vsel %vm23640_vm7, %v10282_v51, %v10278_v23  ;;  %vm23655_vm7 = vmmov %vm23643_vm3 }
 0x5a6   : > { %v9339_v49 = vpop.xlane.xlu1 %9338  ;;  %v10889_v8 = vsel %vm23646_vm8, %v10283_v9, %v10264_v10  ;;  %vm23657_vm5 = vmmov %vm23644_vm1 }
 0x5a7   : > { %v10777_v36 = vsel %vm23633_vm9, %v10776_v28, %v21230_v0  ;;  %v10790_v63 = vrot.slane %v9339_v49, %v19155_v35  ;;  %v10890_v33 = vsel %vm23647_vm6, %v10302_v45, %v10889_v8  ;;  %vm23649_vm9 = vmmov %vm23644_vm1 }
 0x5a8   : > { %v10912_v56 = vsel %vm23636_vm12, %v10777_v36, %v21227_v4  ;;  %v9343_v18 = vpop.xlane.xlu0 %9342  ;;  %v10316_v4 = vsel %vm23643_vm3, %v10315_v39, %v10311_v38  ;;  %vm23651_vm12 = vmmov %vm23643_vm3 }
 0x5a9   : > { %v10791_v0 = vsel %vm23619_vm4, %v10790_v63, %v21237_v41  ;;  %v10800_v20 = vrot.slane %v9343_v18, %v19047_v5  ;;  %v10321_v42 = vsel %vm23645_vm14, %v10320_v44, %v10316_v4  ;;  %vm23653_vm4 = vmmov %vm23644_vm1 }
 0x5aa   : > { %v9345_v17 = vpop.xlane.xlu1 %9344  ;;  %v10891_v37 = vsel %vm23648_vm15, %v10321_v42, %v10890_v33  ;;  %vm23658_vm3 = vmmov %vm23650_vm2 }
 0x5ab   : > { %v10804_v52 = vrot.slane %v9345_v17, %v19090_v54  ;;  %vm23659_vm14 = vmmov %vm23650_vm2 }
 0x5ac   : > { %v9149_v41 = vpop.xlane.xlu0 %9148  ;;  %vm23660_vm8 = vmmov %vm23644_vm1 }
 0x5ad   : > { %v10339_v3 = vrot.slane %v9149_v41, %v19225_v21  ;;  %v21341_v53 = vsel %vm23628_vm0, %v10804_v52, %v10800_v20  ;;  %vm23661_vm0 = vcmask 1045509   ;;  %vm23662_vm6 = vmmov %vm23644_vm1 }
 0x5ae   : > { %v9155_v2 = vpop.xlane.xlu1 %9154  ;;  %vm23663_vm15 = vmmov %vm23661_vm0 }
 0x5af   : > { %v10340_v1 = vsel %vm23649_vm9, %v10339_v3, %v21243_v11  ;;  %v10353_v50 = vrot.slane %v9155_v2, %v19155_v35  ;;  %vm23664_vm9 = vmmov %vm23655_vm7 }
 0x5b0   : > { %v10892_v31 = vsel %vm23650_vm2, %v10340_v1, %v10891_v37  ;;  %v9159_v43 = vpop.xlane.xlu0 %9158  ;;  %vm23665_vm2 = vmmov %vm23644_vm1 }
 0x5b1   : > { %v10354_v29 = vsel %vm23651_vm12, %v10353_v50, %v21254_v27  ;;  %v10363_v47 = vrot.slane %v9159_v43, %v19047_v5  ;;  %vm23666_vm12 = vmmov %vm23661_vm0 }
 0x5b2   : > { %v9161_v22 = vpop.xlane.xlu1 %9160 }
 0x5b3   : > { %v10367_v48 = vrot.slane %v9161_v22, %v19090_v54 }
 0x5b4   : > { %v9213_v46 = vpop.xlane.xlu0 %9212 }
 0x5b5   : > { %v10491_v28 = vrot.slane %v9213_v46, %v19225_v21  ;;  %v10368_v55 = vsel %vm23652_vm13, %v10367_v48, %v10363_v47  ;;  %vm23667_vm13 = vmmov %vm23655_vm7 }
 0x5b6   : > { %v9219_v30 = vpop.xlane.xlu1 %9218 }
 0x5b7   : > { %v10492_v11 = vsel %vm23653_vm4, %v10491_v28, %v21263_v16  ;;  %v10505_v61 = vrot.slane %v9219_v30, %v19155_v35  ;;  %vm23668_vm4 = vmmov %vm23644_vm1 }
 0x5b8   : > { %v10899_v62 = vsel %vm23654_vm11, %v10492_v11, %v21260_v34  ;;  %v9223_v27 = vpop.xlane.xlu0 %9222  ;;  %vm23669_vm11 = vmmov %vm23661_vm0 }
 0x5b9   : > { %v10506_v51 = vsel %vm23655_vm7, %v10505_v61, %v21269_v59  ;;  %v10515_v32 = vrot.slane %v9223_v27, %v19047_v5 }
 0x5ba   : > { %v9225_v49 = vpop.xlane.xlu1 %9224 }
 0x5bb   : > { %v10519_v57 = vrot.slane %v9225_v49, %v19090_v54 }
 0x5bc   : > { %v9277_v6 = vpop.xlane.xlu0 %9276 }
 0x5bd   : > { %v10643_v36 = vrot.slane %v9277_v6, %v19225_v21  ;;  %v10520_v63 = vsel %vm23656_vm10, %v10519_v57, %v10515_v32  ;;  %vm23670_vm10 = vmmov %vm23644_vm1 }
 0x5be   : > { %v9283_v16 = vpop.xlane.xlu1 %9282 }
 0x5bf   : > { %v10644_v26 = vsel %vm23657_vm5, %v10643_v36, %v21279_v25  ;;  %v10657_v41 = vrot.slane %v9283_v16, %v19155_v35  ;;  %vm23671_vm5 = vcmask 1046534  }
 0x5c0   : > { %v10906_v34 = vsel %vm23658_vm3, %v10644_v26, %v21274_v13  ;;  %v21370_v19 = vpop.xlane.xlu0 %9286  ;;  %vm23672_vm3 = vmmov %vm23655_vm7 }
 0x5c1   : > { %v10658_v2 = vsel %vm23664_vm9, %v10657_v41, %v21302_v24  ;;  %vm23678_vm9 = vmmov %vm23672_vm3 }
 0x5c2   : > { %v21372_v59 = vpop.xlane.xlu1 %9288 }
 0x5c4   : > { %v9341_v38 = vpop.xlane.xlu0 %9340 }
 0x5c5   : > { %v10795_v44 = vrot.slane %v9341_v38, %v19225_v21 }
 0x5c6   : > { %v9347_v18 = vpop.xlane.xlu1 %9346 }
 0x5c7   : > { %v10796_v23 = vsel %vm23644_vm1, %v10795_v44, %v10791_v0  ;;  %v10809_v43 = vrot.slane %v9347_v18, %v19155_v35 }
 0x5c8   : > { %v10913_v40 = vsel %vm23659_vm14, %v10796_v23, %v10912_v56  ;;  %v21377_v39 = vpop.xlane.xlu0 %9350  ;;  %vm23673_vm14 = vmmov %vm23671_vm5 }
 0x5c9   : > { %v10810_v48 = vsel %vm23667_vm13, %v10809_v43, %v21341_v53  ;;  %v9370_v43 = vld [vmem:[#allocation2 + $0x20] sm:$0xff]  ;;  %vm23681_vm13 = vmmov %vm23644_vm1 }
 0x5ca   : > { %v21379_v15 = vpop.xlane.xlu1 %9352 }
 0x5cb   : > { %v10823_v23 = vrot.slane %v21379_v15, %v19090_v54 }
 0x5cc   : > { %v9157_v25 = vpop.xlane.xlu0 %9156 }
 0x5cd   : > { %v10358_v9 = vrot.slane %v9157_v25, %v19225_v21 }
 0x5ce   : > { %v9163_v13 = vpop.xlane.xlu1 %9162 }
 0x5cf   : > { %v10359_v58 = vsel %vm23660_vm8, %v10358_v9, %v10354_v29  ;;  %v10372_v11 = vrot.slane %v9163_v13, %v19155_v35  ;;  %v10819_v13 = vrot.slane %v21377_v39, %v19047_v5  ;;  %vm23674_vm8 = vcmask 130112  }
 0x5d0   : > { %v10893_v17 = vsel %vm23661_vm0, %v10359_v58, %v10892_v31  ;;  %v9167_v45 = vpop.xlane.xlu0 %9166  ;;  %vm23675_vm0 = vmmov %vm23674_vm8 }
 0x5d2   : > { %v9169_v4 = vpop.xlane.xlu1 %9168 }
 0x5d4   : > { %v9221_v20 = vpop.xlane.xlu0 %9220 }
 0x5d5   : > { %v10510_v52 = vrot.slane %v9221_v20, %v19225_v21 }
 0x5d6   : > { %v9227_v0 = vpop.xlane.xlu1 %9226 }
 0x5d7   : > { %v10511_v56 = vsel %vm23662_vm6, %v10510_v52, %v10506_v51  ;;  %v10373_v51 = vsel %vm23655_vm7, %v10372_v11, %v10368_v55  ;;  %v10524_v49 = vrot.slane %v9227_v0, %v19155_v35  ;;  %v10671_v55 = vrot.slane %v21372_v59, %v19090_v54  ;;  %vm23676_vm6 = vmmov %vm23675_vm0 }
 0x5d8   : > { %v10900_v10 = vsel %vm23663_vm15, %v10511_v56, %v10899_v62  ;;  %v9231_v42 = vpop.xlane.xlu0 %9230  ;;  %v10824_v52 = vsel %vm23675_vm0, %v10823_v23, %v10819_v13  ;;  %vm23677_vm15 = vmmov %vm23675_vm0  ;;  %vm23684_vm7 = vcmask 1047559   ;;  %v9373_v23 = vld [vmem:[#allocation2 + $0x38] sm:$0xff] }
 0x5d9   : > { %v10525_v16 = vsel %vm23672_vm3, %v10524_v49, %v10520_v63  ;;  %v10667_v63 = vrot.slane %v21370_v19, %v19047_v5  ;;  %v10534_v59 = vrot.slane %v9231_v42, %v19047_v5 }
 0x5da   : > { %v9233_v8 = vpop.xlane.xlu1 %9232 }
 0x5db   : > { %v10538_v25 = vrot.slane %v9233_v8, %v19090_v54 }
 0x5dc   : > { %v9285_v3 = vpop.xlane.xlu0 %9284 }
 0x5dd   : > { %v10662_v33 = vrot.slane %v9285_v3, %v19225_v21  ;;  %v10539_v56 = vsel %vm23677_vm15, %v10538_v25, %v10534_v59  ;;  %vm23692_vm15 = vmmov %vm23644_vm1 }
 0x5de   : > { %v9291_v37 = vpop.xlane.xlu1 %9290 }
 0x5df   : > { %v10663_v1 = vsel %vm23665_vm2, %v10662_v33, %v10658_v2  ;;  %v10676_v58 = vrot.slane %v9291_v37, %v19155_v35  ;;  %vm23679_vm2 = vmmov %vm23672_vm3 }
 0x5e0   : > { %v21393_v50 = vsel %vm23666_vm12, %v10663_v1, %v10906_v34  ;;  %v9295_v31 = vpop.xlane.xlu0 %9294  ;;  %vm23680_vm12 = vmmov %vm23675_vm0 }
 0x5e1   : > { %v10686_v42 = vrot.slane %v9295_v31, %v19047_v5  ;;  %vm23687_vm3 = vmmov %vm23675_vm0  ;;  %vm23690_vm0 = vcmask 1046534  }
 0x5e2   : > { %v9297_v29 = vpop.xlane.xlu1 %9296 }
 0x5e3   : > { %v10690_v0 = vrot.slane %v9297_v29, %v19090_v54 }
 0x5e4   : > { %v9349_v22 = vpop.xlane.xlu0 %9348 }
 0x5e5   : > { %v10814_v47 = vrot.slane %v9349_v22, %v19225_v21  ;;  %v10691_v22 = vsel %vm23680_vm12, %v10690_v0, %v10686_v42  ;;  %vm23695_vm12 = vmmov %vm23690_vm0 }
 0x5e6   : > { %v21399_v46 = vpop.xlane.xlu1 %9354 }
 0x5e7   : > { %v10815_v24 = vsel %vm23668_vm4, %v10814_v47, %v10810_v48  ;;  %v10828_v8 = vrot.slane %v21399_v46, %v19155_v35  ;;  %vm23682_vm4 = vmmov %vm23644_vm1 }
 0x5e8   : > { %v21403_v28 = vsel %vm23669_vm11, %v10815_v24, %v10913_v40  ;;  %v21405_v30 = vpop.xlane.xlu0 %9358  ;;  %v10386_v40 = vrot.slane %v9169_v4, %v19090_v54  ;;  %v10672_v4 = vsel %vm23674_vm8, %v10671_v55, %v10667_v63  ;;  %vm23683_vm11 = vmmov %vm23679_vm2 }
 0x5e9   : > { %v10677_v41 = vsel %vm23678_vm9, %v10676_v58, %v10672_v4  ;;  %v10838_v31 = vrot.slane %v21405_v30, %v19047_v5  ;;  %vm23689_vm8 = vmmov %vm23684_vm7 }
 0x5ea   : > { %v9361_v61 = vpop.xlane.xlu1 %9360  ;;  %vm23693_vm9 = vmmov %vm23679_vm2 }
 0x5eb   : > { %v10842_v33 = vrot.slane %v9361_v61, %v19090_v54 }
 0x5ec   : > { %v9165_v62 = vpop.xlane.xlu0 %9164 }
 0x5ed   : > { %v10377_v27 = vrot.slane %v9165_v62, %v19225_v21  ;;  %v9371_v62 = vld [vmem:[#allocation2 + $0x28] sm:$0xff]  ;;  %v10843_v30 = vsel %vm23687_vm3, %v10842_v33, %v10838_v31 }
 0x5ee   : > { %v9171_v53 = vpop.xlane.xlu1 %9170 }
 0x5ef   : > { %v10378_v32 = vsel %vm23670_vm10, %v10377_v27, %v10373_v51  ;;  %v10391_v20 = vrot.slane %v9171_v53, %v19155_v35  ;;  %vm23685_vm10 = vmmov %vm23679_vm2 }
 0x5f0   : > { %v10894_v57 = vsel %vm23671_vm5, %v10378_v32, %v10893_v17  ;;  %v9229_v6 = vpop.xlane.xlu0 %9228  ;;  %v10382_v17 = vrot.slane %v9167_v45, %v19047_v5  ;;  %v10829_v27 = vsel %vm23685_vm10, %v10828_v8, %v10824_v52  ;;  %vm23686_vm5 = vmmov %vm23644_vm1 }
 0x5f1   : > { %v10529_v36 = vrot.slane %v9229_v6, %v19225_v21  ;;  %v9372_v6 = vld [vmem:[#allocation2 + $0x30] sm:$0xff] }
 0x5f2   : > { %v9235_v26 = vpop.xlane.xlu1 %9234  ;;  %v10387_v19 = vsel %vm23676_vm6, %v10386_v40, %v10382_v17  ;;  %vm23691_vm6 = vcmask 261120  }
 0x5f3   : > { %v10530_v34 = vsel %vm23644_vm1, %v10529_v36, %v10525_v16  ;;  %v10392_v2 = vsel %vm23679_vm2, %v10391_v20, %v10387_v19 }
 0x5f4   : > { %v10901_v38 = vsel %vm23673_vm14, %v10530_v34, %v10900_v10  ;;  %v9293_v44 = vpop.xlane.xlu0 %9292  ;;  %v10543_v10 = vrot.slane %v9235_v26, %v19155_v35  ;;  %vm23688_vm14 = vmmov %vm23679_vm2 }
 0x5f5   : > { %v10681_v39 = vrot.slane %v9293_v44, %v19225_v21  ;;  %vm23694_vm2 = vmmov %vm23684_vm7 }
 0x5f6   : > { %v9299_v18 = vpop.xlane.xlu1 %9298  ;;  %v10544_v54 = vsel %vm23683_vm11, %v10543_v10, %v10539_v56  ;;  %vm23698_vm11 = vmmov %vm23694_vm2 }
 0x5f7   : > { %v10695_v1 = vrot.slane %v9299_v18, %v19155_v35  ;;  %v10682_v46 = vsel %vm23682_vm4, %v10681_v39, %v10677_v41  ;;  %vm23697_vm4 = vmmov %vm23644_vm1 }
 0x5f8   : > { %v9357_v9 = vpop.xlane.xlu0 %9356 }
 0x5f9   : > { %v10833_v37 = vrot.slane %v9357_v9, %v19225_v21  ;;  %v10696_v32 = vsel %vm23688_vm14, %v10695_v1, %v10691_v22 }
 0x5fa   : > { %v9363_v15 = vpop.xlane.xlu1 %9362 }
 0x5fb   : > { %v10847_v11 = vrot.slane %v9363_v15, %v19155_v35  ;;  %v10834_v53 = vsel %vm23644_vm1, %v10833_v37, %v10829_v27  ;;  %v10908_v35 = vsel %vm23690_vm0, %v10682_v46, %v21393_v50 }
 0x5fc   : > { %v9173_v45 = vpop.xlane.xlu0 %9172 }
 0x5fd   : > { %v10396_v3 = vrot.slane %v9173_v45, %v19225_v21  ;;  %v10848_v44 = vsel %vm23693_vm9, %v10847_v11, %v10843_v30 }
 0x5fe   : > { %v9237_v29 = vpop.xlane.xlu1 %9236 }
 0x5ff   : > { %v10397_v47 = vsel %vm23681_vm13, %v10396_v3, %v10392_v2  ;;  %v10548_v48 = vrot.slane %v9237_v29, %v19225_v21  ;;  %vm23696_vm13 = vmmov %vm23691_vm6 }
 0x600   : > { %v10895_v24 = vsel %vm23684_vm7, %v10397_v47, %v10894_v57  ;;  %v9301_v61 = vpop.xlane.xlu0 %9300  ;;  %vm23699_vm7 = vmmov %vm23691_vm6 }
 0x601   : > { %v10929_v51 = vmax.f32 %v9370_v43, %v10895_v24  ;;  %v10700_v49 = vrot.slane %v9301_v61, %v19225_v21  ;;  %v10549_v5 = vsel %vm23686_vm5, %v10548_v48, %v10544_v54  ;;  %vm23700_vm5 = vmmov %vm23691_vm6 }
 0x602   : > { %v10902_v57 = vsel %vm23689_vm8, %v10549_v5, %v10901_v38  ;;  %v9365_v36 = vpop.xlane.xlu1 %9364  ;;  %v10915_v38 = vsel %vm23695_vm12, %v10834_v53, %v21403_v28  ;;  %vm23701_vm1 = vmmov %vm23700_vm5 }
 0x603   : > { %10937 = vst.msk [vmem:[#allocation2 + $0x20] sm:$0xff] %vm23691_vm6, %v10929_v51  ;;  %v10701_v16 = vsel %vm23692_vm15, %v10700_v49, %v10696_v32  ;;  %v10930_v26 = vmax.f32 %v9371_v62, %v10902_v57  ;;  %v10852_v34 = vrot.slane %v9365_v36, %v19225_v21  ;;  %v11365_v21 = vld [vmem:[%s21559_s7] ss:$0 sm:$0xff]  ;;  %vm23702_vm8 = vmmov %vm23701_vm1 }
 0x604   : > { %v10909_v18 = vsel %vm23694_vm2, %v10701_v16, %v10908_v35  ;;  %v10954_v55 = vpop.xlane.xlu0 %10953  ;;  %v10991_v28 = vadd.f32 %v11365_v21, %v21172_v7  ;;  %v10992_v20 = vadd.f32 %v11365_v21, %v21180_v60  ;;  %v10993_v0 = vadd.f32 %v11365_v21, %v21189_v12  ;;  %vm23703_vm6 = vmmov %vm23701_vm1 }
 0x605   : > { %v10931_v40 = vmax.f32 %v9372_v6, %v10909_v18  ;;  %10938 = vst.msk [vmem:[#allocation2 + $0x28] sm:$0xff] %vm23696_vm13, %v10930_v26  ;;  %v10853_v50 = vsel %vm23697_vm4, %v10852_v34, %v10848_v44  ;;  %vm10976_vm10 = vcmp.gt.f32.partialorder %v10954_v55, -1e+29  ;;  %v10994_v60 = vadd.f32 %v11365_v21, %v21195_v14  ;;  %vm23704_vm15 = vmmov %vm23701_vm1 }
 0x606   : > { %v10916_v25 = vsel %vm23698_vm11, %v10853_v50, %v10915_v38  ;;  %v10957_v9 = vpop.xlane.xlu1 %10956  ;;  %v21482_v59 = vsel %vm10976_vm10, %v10991_v28, 0.0  ;;  %vm23705_vm9 = vmmov %vm23701_vm1 }
 0x607   : > { %10939 = vst.msk [vmem:[#allocation2 + $0x30] sm:$0xff] %vm23699_vm7, %v10931_v40  ;;  %v10932_v63 = vmax.f32 %v9373_v23, %v10916_v25  ;;  %vm10977_vm3 = vcmp.gt.f32.partialorder %v10957_v9, -1e+29  ;;  %v11023_v56 = vmul.f32 %v21482_v59, %v21482_v59  ;;  %vm23706_vm2 = vmmov %vm23701_vm1 }
 0x608   : > { %v10960_v13 = vpop.xlane.xlu0 %10959  ;;  %v21487_v19 = vsel %vm10977_vm3, %v10992_v20, 0.0  ;;  %vm23707_vm12 = vmmov %vm23701_vm1 }
 0x609   : > { %10940 = vst.msk [vmem:[#allocation2 + $0x38] sm:$0xff] %vm23700_vm5, %v10932_v63  ;;  %vm10978_vm14 = vcmp.gt.f32.partialorder %v10960_v13, -1e+29  ;;  %v11024_v42 = vmul.f32 %v21487_v19, %v21487_v19  ;;  %v11031_v3 = vsel %vm23705_vm9, %v11023_v56, 0.0  ;;  %vm23708_vm13 = vmmov %vm23701_vm1 }
 0x60a   : > { %v10948_v58 = vld [vmem:[#allocation2 + $0x20] sm:$0xff]  ;;  %v10963_v15 = vpop.xlane.xlu1 %10962  ;;  %v21492_v10 = vsel %vm10978_vm14, %v10993_v0, 0.0  ;;  %vm23709_vm10 = vmmov %vm23701_vm1 }
 0x60b   : > { %v10964_v17 = vsel %vm23701_vm1, %v10948_v58, -inf  ;;  %vm10979_vm0 = vcmp.gt.f32.partialorder %v10963_v15, -1e+29  ;;  %v11025_v8 = vmul.f32 %v21492_v10, %v21492_v10  ;;  %v11034_v14 = vsel %vm23706_vm2, %v11024_v42, 0.0  ;;  %vm23710_vm3 = vmmov %vm23701_vm1 }
 0x60c   : > { %10965 = vmax.xlane.f32.xlu0 %v10964_v17  ;;  %v10949_v4 = vld [vmem:[#allocation2 + $0x28] sm:$0xff]  ;;  %v21498_v41 = vsel %vm10979_vm0, %v10994_v60, 0.0  ;;  %v10995_v1 = vadd.f32 %v11365_v21, %v10948_v58  ;;  %vm23711_vm14 = vmmov %vm23701_vm1 }
 0x60d   : > { %v10967_v52 = vsel %vm23702_vm8, %v10949_v4, -inf  ;;  %v11026_v33 = vmul.f32 %v21498_v41, %v21498_v41  ;;  %v11037_v2 = vsel %vm23707_vm12, %v11025_v8, 0.0  ;;  %v10996_v22 = vadd.f32 %v11365_v21, %v10949_v4  ;;  %vm23712_vm8 = vmmov %vm23701_vm1 }
 0x60e   : > { %v10950_v7 = vld [vmem:[#allocation2 + $0x30] sm:$0xff]  ;;  %10968 = vmax.xlane.f32.xlu1 %v10967_v52  ;;  %vm23713_vm0 = vmmov %vm23701_vm1 }
 0x60f   : > { %v10970_v39 = vsel %vm23703_vm6, %v10950_v7, -inf  ;;  %v11040_v37 = vsel %vm23708_vm13, %v11026_v33, 0.0  ;;  %v10997_v48 = vadd.f32 %v11365_v21, %v10950_v7  ;;  %vm23714_vm6 = vmmov %vm23713_vm0 }
 0x610   : > { %10971 = vmax.xlane.f32.xlu0 %v10970_v39  ;;  %v10951_v45 = vld [vmem:[#allocation2 + $0x38] sm:$0xff]  ;;  %vm23716_vm9 = vmmov %vm23713_vm0 }
 0x611   : > { %v10973_v12 = vsel %vm23704_vm15, %v10951_v45, -inf  ;;  %v10998_v62 = vadd.f32 %v11365_v21, %v10951_v45  ;;  %vm23715_vm15 = vmmov %vm23713_vm0 }
 0x612   : > { %10974 = vmax.xlane.f32.xlu1 %v10973_v12  ;;  %vm23717_vm2 = vmmov %vm23713_vm0 }
 0x613   : > { %vm23718_vm12 = vmmov %vm23713_vm0 }
 0x614   : > { %11032 = vadd.xlane.f32.xlu0 %v11031_v3  ;;  %vm23719_vm13 = vmmov %vm23713_vm0 }
 0x616   : > { %11035 = vadd.xlane.f32.xlu1 %v11034_v14 }
 0x618   : > { %11038 = vadd.xlane.f32.xlu0 %v11037_v2 }
 0x61a   : > { %11041 = vadd.xlane.f32.xlu1 %v11040_v37 }
 0x699   : > { %v10966_v43 = vpop.xlane.xlu0 %10965 }
 0x69a   : > { %vm10980_vm4 = vcmp.gt.f32.partialorder %v10966_v43, -1e+29 }
 0x69b   : > { %v21508_v29 = vsel %vm10980_vm4, %v10995_v1, 0.0  ;;  %v10969_v31 = vpop.xlane.xlu1 %10968 }
 0x69c   : > { %v11027_v47 = vmul.f32 %v21508_v29, %v21508_v29  ;;  %vm10981_vm11 = vcmp.gt.f32.partialorder %v10969_v31, -1e+29 }
 0x69d   : > { %v10972_v46 = vpop.xlane.xlu0 %10971  ;;  %v11020_v54 = vsel %vm10981_vm11, %v10996_v22, 0.0 }
 0x69e   : > { %vm10982_vm7 = vcmp.gt.f32.partialorder %v10972_v46, -1e+29  ;;  %v11028_v24 = vmul.f32 %v11020_v54, %v11020_v54  ;;  %v11043_v11 = vsel %vm23709_vm10, %v11027_v47, 0.0 }
 0x69f   : > { %v11021_v61 = vsel %vm10982_vm7, %v10997_v48, 0.0  ;;  %11044 = vadd.xlane.f32.xlu0 %v11043_v11  ;;  %v10975_v27 = vpop.xlane.xlu1 %10974 }
 0x6a0   : > { %v11029_v51 = vmul.f32 %v11021_v61, %v11021_v61  ;;  %vm10983_vm5 = vcmp.gt.f32.partialorder %v10975_v27, -1e+29  ;;  %v11046_v49 = vsel %vm23710_vm3, %v11028_v24, 0.0 }
 0x6a1   : > { %v11033_v5 = vpop.xlane.xlu0 %11032  ;;  %v11022_v30 = vsel %vm10983_vm5, %v10998_v62, 0.0  ;;  %11047 = vadd.xlane.f32.xlu1 %v11046_v49 }
 0x6a2   : > { %v11055_v53 = vmax.f32 %v11033_v5, 1e-24  ;;  %v11030_v32 = vmul.f32 %v11022_v30, %v11022_v30  ;;  %v11049_v6 = vsel %vm23701_vm1, %v11029_v51, 0.0 }
 0x6a3   : > { %11050 = vadd.xlane.f32.xlu0 %v11049_v6  ;;  %v11036_v57 = vpop.xlane.xlu1 %11035 }
 0x6a4   : > { %13198 = vrsqrt.f32 %v11055_v53  ;;  %v11056_v36 = vmax.f32 %v11036_v57, 1e-24  ;;  %v11052_v35 = vsel %vm23711_vm14, %v11030_v32, 0.0 }
 0x6a5   : > { %v11039_v16 = vpop.xlane.xlu0 %11038  ;;  %11053 = vadd.xlane.f32.xlu1 %v11052_v35 }
 0x6a6   : > { %v11057_v26 = vmax.f32 %v11039_v16, 1e-24  ;;  %13200 = vrsqrt.f32 %v11056_v36 }
 0x6a7   : > { %v11042_v34 = vpop.xlane.xlu1 %11041 }
 0x6a8   : > { %13202 = vrsqrt.f32 %v11057_v26  ;;  %v11058_v44 = vmax.f32 %v11042_v34, 1e-24 }
 0x6aa   : > { %13204 = vrsqrt.f32 %v11058_v44 }
 0x6ae   : > { %v13199_v18 = vpop.eup %13198 }
 0x6af   : > { %v11071_v55 = vmul.f32 %v13199_v18, %v21482_v59 }
 0x6b0   : > { %v13201_v23 = vpop.eup %13200 }
 0x6b1   : > { %11079 = vst.msk [vmem:[%s21520_s13] sm:$0xff] %vm23712_vm8, %v11071_v55  ;;  %v11072_v38 = vmul.f32 %v13201_v23, %v21487_v19 }
 0x6b2   : > { %v13203_v40 = vpop.eup %13202 }
 0x6b3   : > { %v11073_v50 = vmul.f32 %v13203_v40, %v21492_v10  ;;  %11080 = vst.msk [vmem:[%s21520_s13 + $0x8] sm:$0xff] %vm23713_vm0, %v11072_v38 }
 0x6b4   : > { %v13205_v25 = vpop.eup %13204 }
 0x6b5   : > { %11081 = vst.msk [vmem:[%s21520_s13 + $0x10] sm:$0xff] %vm23714_vm6, %v11073_v50  ;;  %v11074_v9 = vmul.f32 %v13205_v25, %v21498_v41 }
 0x6b7   : > { %11082 = vst.msk [vmem:[%s21520_s13 + $0x18] sm:$0xff] %vm23715_vm15, %v11074_v9 }
 0x72c   : > { %v11045_v21 = vpop.xlane.xlu0 %11044 }
 0x72d   : > { %v11059_v63 = vmax.f32 %v11045_v21, 1e-24 }
 0x72e   : > { %v11048_v28 = vpop.xlane.xlu1 %11047 }
 0x72f   : > { %13206 = vrsqrt.f32 %v11059_v63  ;;  %v11060_v13 = vmax.f32 %v11048_v28, 1e-24 }
 0x730   : > { %v11051_v58 = vpop.xlane.xlu0 %11050 }
 0x731   : > { %v11061_v17 = vmax.f32 %v11051_v58, 1e-24  ;;  %13208 = vrsqrt.f32 %v11060_v13 }
 0x732   : > { %v11054_v59 = vpop.xlane.xlu1 %11053 }
 0x733   : > { %13210 = vrsqrt.f32 %v11061_v17  ;;  %v11062_v20 = vmax.f32 %v11054_v59, 1e-24 }
 0x735   : > { %13212 = vrsqrt.f32 %v11062_v20 }
 0x739   : > { %v13207_v15 = vpop.eup %13206 }
 0x73a   : > { %v11075_v4 = vmul.f32 %v13207_v15, %v21508_v29 }
 0x73b   : > { %v13209_v52 = vpop.eup %13208 }
 0x73c   : > { %11083 = vst.msk [vmem:[%s21520_s13 + $0x20] sm:$0xff] %vm23716_vm9, %v11075_v4  ;;  %v11076_v0 = vmul.f32 %v13209_v52, %v11020_v54 }
 0x73d   : > { %v13211_v19 = vpop.eup %13210 }
 0x73e   : > { %v11077_v7 = vmul.f32 %v13211_v19, %v11021_v61  ;;  %11084 = vst.msk [vmem:[%s21520_s13 + $0x28] sm:$0xff] %vm23717_vm2, %v11076_v0 }
 0x73f   : > { %v13213_v56 = vpop.eup %13212 }
 0x740   : > { %11085 = vst.msk [vmem:[%s21520_s13 + $0x30] sm:$0xff] %vm23718_vm12, %v11077_v7  ;;  %v11078_v39 = vmul.f32 %v13213_v56, %v11022_v30 }
 0x742   : > { %11086 = vst.msk [vmem:[%s21520_s13 + $0x38] sm:$0xff] %vm23719_vm13, %v11078_v39 }
 0x743 PF: > { %s18_s29 = sadd.s32 1, %s13286_s29   ;;  %s23720_s27 = smov %s13282_s28 }
 0x744   : > { %p15_p5 = scmp.ge.s32.totalorder %s18_s29, 4   ;;  %s23721_s28 = smov %s23723_s30 }
 0x746   :  { %17 = sbr.rel (!%p15_p5) target bundleno = 2 (0x2), region = 105 }

</bundles_post_ra>
